<compile_context>
chip_gen: v7x
topology: tpu7x:2x2x1
jax: 0.10.0
libtpu: 0.0.40
codegen_flags: <defaults>
</compile_context>

<pallas_src>
import functools

import jax
import jax.numpy as jnp
from jax import lax
from jax.experimental import pallas as pl
from jax.experimental.pallas import tpu as pltpu


def _round_up(x, m):
    return (x + m - 1) // m * m


def _pick_tile(size, align, max_tile):
    """Pick a tile size (multiple of `align`, <= max_tile) dividing the padded size."""
    padded = _round_up(size, align)
    t = min(max_tile, padded)
    while padded % t:
        t -= align
    return t, padded


def _apply_act(x, act):
    if act is None:
        return x
    if act == "relu":
        return jnp.maximum(x, 0.0)
    if act == "leaky":
        return jnp.where(x >= 0.0, x, 0.2 * x)
    if act == "sigmoid":
        return 1.0 / (1.0 + jnp.exp(-x))
    raise ValueError(act)


# --------------------------------------------------------------------------
# Tiled MXU GEMM with fused bias + input/output activation epilogue
# --------------------------------------------------------------------------
def _gemm_kernel(a_ref, b_ref, bias_ref, o_ref, acc_ref, *, act_in, act_out):
    @pl.when(pl.program_id(2) == 0)
    def _():
        acc_ref[...] = jnp.zeros_like(acc_ref)

    a = a_ref[...]
    if act_in == "relu":  # ReLU commutes with im2col; applied on the bf16 tile
        a = jnp.maximum(a, jnp.zeros((), a.dtype))
    acc_ref[...] += jnp.dot(a, b_ref[...], preferred_element_type=jnp.float32)

    @pl.when(pl.program_id(2) == pl.num_programs(2) - 1)
    def _():
        r = acc_ref[...] + bias_ref[...]
        o_ref[...] = _apply_act(r, act_out)


def gemm(a, b, bias, act_in=None, act_out=None):
    """act_out(act_in(a) @ b + bias): bf16 operands, f32 accumulate, tiled grid."""
    M, K = a.shape
    K2, N = b.shape
    assert K == K2
    tm, Mp = _pick_tile(M, 16, 256)   # multiples of 16 for bf16 sublane packing
    tk, Kp = _pick_tile(K, 128, 512)
    tn, Np = _pick_tile(N, 128, 256)
    a_p = jnp.pad(a.astype(jnp.bfloat16), ((0, Mp - M), (0, Kp - K)))
    b_p = jnp.pad(b.astype(jnp.bfloat16), ((0, Kp - K), (0, Np - N)))
    bias_p = jnp.pad(bias.astype(jnp.float32), (0, Np - N)).reshape(1, Np)
    out = pl.pallas_call(
        functools.partial(_gemm_kernel, act_in=act_in, act_out=act_out),
        out_shape=jax.ShapeDtypeStruct((Mp, Np), jnp.float32),
        grid=(Mp // tm, Np // tn, Kp // tk),
        in_specs=[
            pl.BlockSpec((tm, tk), lambda i, j, k: (i, k)),
            pl.BlockSpec((tk, tn), lambda i, j, k: (k, j)),
            pl.BlockSpec((1, tn), lambda i, j, k: (0, j)),
        ],
        out_specs=pl.BlockSpec((tm, tn), lambda i, j, k: (i, j)),
        scratch_shapes=[pltpu.VMEM((tm, tn), jnp.float32)],
        compiler_params=pltpu.CompilerParams(
            dimension_semantics=("parallel", "parallel", "arbitrary"),
            vmem_limit_bytes=32 * 1024 * 1024,
        ),
    )(a_p, b_p, bias_p)
    return out[:M, :N]


# --------------------------------------------------------------------------
# Tiled BatchNorm2d (training mode): stats pass + scale/shift pass (fused act)
# --------------------------------------------------------------------------
def _bn_stats_kernel(x_ref, s_ref, ss_ref):
    @pl.when(pl.program_id(0) == 0)
    def _():
        s_ref[...] = jnp.zeros_like(s_ref)
        ss_ref[...] = jnp.zeros_like(ss_ref)

    x = x_ref[...]
    s_ref[...] += jnp.sum(x, axis=0, keepdims=True)
    ss_ref[...] += jnp.sum(x * x, axis=0, keepdims=True)


def _bn_apply_kernel(x_ref, sc_ref, sh_ref, o_ref, *, act):
    o_ref[...] = _apply_act(x_ref[...] * sc_ref[...] + sh_ref[...], act)


def batchnorm2d(x2d, gamma, beta, act=None, eps=1e-5):
    """Train-mode BN over rows of x2d:(N*H*W, C) with fused output activation."""
    M, C = x2d.shape
    Cp = _round_up(C, 128)
    tm, Mp = _pick_tile(M, 8, 512)
    xp = jnp.pad(x2d, ((0, Mp - M), (0, Cp - C)))

    s, ss = pl.pallas_call(
        _bn_stats_kernel,
        out_shape=(jax.ShapeDtypeStruct((1, Cp), jnp.float32),
                   jax.ShapeDtypeStruct((1, Cp), jnp.float32)),
        grid=(Mp // tm,),
        in_specs=[pl.BlockSpec((tm, Cp), lambda i: (i, 0))],
        out_specs=(pl.BlockSpec((1, Cp), lambda i: (0, 0)),
                   pl.BlockSpec((1, Cp), lambda i: (0, 0))),
        compiler_params=pltpu.CompilerParams(dimension_semantics=("arbitrary",)),
    )(xp)

    count = float(M)
    mean = s[0, :C] / count
    var = jnp.maximum(ss[0, :C] / count - mean * mean, 0.0)  # biased var, clamped
    inv = lax.rsqrt(var + eps)
    scale = gamma * inv
    shift = beta - mean * scale
    sc = jnp.pad(scale, (0, Cp - C)).reshape(1, Cp)
    sh = jnp.pad(shift, (0, Cp - C)).reshape(1, Cp)

    out = pl.pallas_call(
        functools.partial(_bn_apply_kernel, act=act),
        out_shape=jax.ShapeDtypeStruct((Mp, Cp), jnp.float32),
        grid=(Mp // tm,),
        in_specs=[pl.BlockSpec((tm, Cp), lambda i: (i, 0)),
                  pl.BlockSpec((1, Cp), lambda i: (0, 0)),
                  pl.BlockSpec((1, Cp), lambda i: (0, 0))],
        out_specs=pl.BlockSpec((tm, Cp), lambda i: (i, 0)),
        compiler_params=pltpu.CompilerParams(dimension_semantics=("parallel",)),
    )(xp, sc, sh)
    return out[:M, :C]


# --------------------------------------------------------------------------
# Conv / ConvTranspose (NHWC) via im2col + tiled GEMM
# --------------------------------------------------------------------------
def _im2col_nhwc(x, kh, kw, stride, pad):
    N, H, W, C = x.shape
    if pad:
        x = jnp.pad(x, ((0, 0), (pad, pad), (pad, pad), (0, 0)))
    Ho = (H + 2 * pad - kh) // stride + 1
    Wo = (W + 2 * pad - kw) // stride + 1
    cols = []
    for i in range(kh):
        for j in range(kw):
            cols.append(x[:, i:i + stride * Ho:stride, j:j + stride * Wo:stride, :])
    p = jnp.stack(cols, axis=3)                            # (N, Ho, Wo, kh*kw, C)
    return p.reshape(N * Ho * Wo, kh * kw * C), Ho, Wo


def conv2d_nhwc(x, w, b, stride, pad, act_in=None, act_out=None):
    """x:(N,H,W,Cin), w:(Cout,Cin,kh,kw) [torch layout], b:(Cout,) -> (N,Ho,Wo,Cout)."""
    N = x.shape[0]
    Cout, Cin, kh, kw = w.shape
    patches, Ho, Wo = _im2col_nhwc(x, kh, kw, stride, pad)
    wm = jnp.transpose(w, (2, 3, 1, 0)).reshape(kh * kw * Cin, Cout)
    out = gemm(patches, wm, b, act_in=act_in, act_out=act_out)
    return out.reshape(N, Ho, Wo, Cout)


def _convT_subpixel_weight(w):
    """w:(Cin,Cout,4,4) torch ConvTranspose2d weight -> (9*Cin, 4*Cout) sub-pixel matrix."""
    Cin, Cout = w.shape[0], w.shape[1]
    wm = jnp.zeros((3, 3, Cin, 2, 2, Cout), jnp.float32)
    for r in range(2):
        for s in range(2):
            for a in range(2):
                for bb in range(2):
                    wm = wm.at[r + a, s + bb, :, r, s, :].set(
                        w[:, :, 3 - r - 2 * a, 3 - s - 2 * bb])
    return wm.reshape(9 * Cin, 4 * Cout)


def conv_transpose2d_nhwc(x, w, b, act_in=None, act_out=None):
    """ConvTranspose2d(k=4, s=2, p=1) via sub-pixel decomposition (no zero-dilation)."""
    N, H, W, Cin = x.shape
    Cout = w.shape[1]
    patches, _, _ = _im2col_nhwc(x, 3, 3, 1, 1)            # (N*H*W, 9*Cin)
    wm = _convT_subpixel_weight(w)                         # (9*Cin, 4*Cout)
    bias4 = jnp.tile(b, 4)                                 # (r, s, Cout) column order
    out = gemm(patches, wm, bias4, act_in=act_in, act_out=act_out)  # (N*H*W, 4*Cout)
    out = out.reshape(N, H, W, 2, 2, Cout)
    return out.transpose(0, 1, 3, 2, 4, 5).reshape(N, 2 * H, 2 * W, Cout)


# --------------------------------------------------------------------------
# Parameter init (deterministic, synthetic) and UNet structure
# --------------------------------------------------------------------------
def init_conv(key, cout, cin, k):
    w = jax.random.normal(key, (cout, cin, k, k), jnp.float32) * 0.02
    return {"w": w, "b": jnp.zeros((cout,), jnp.float32)}


def init_convT(key, cin, cout, k):
    w = jax.random.normal(key, (cin, cout, k, k), jnp.float32) * 0.02
    return {"w": w, "b": jnp.zeros((cout,), jnp.float32)}


def init_bn(c):
    return {"gamma": jnp.ones((c,), jnp.float32), "beta": jnp.zeros((c,), jnp.float32)}


def init_block(key, outer_nc, inner_nc, *, outermost=False, innermost=False, sub=None):
    k0, k1, k2 = jax.random.split(key, 3)
    if outermost:
        return {"downconv": init_conv(k0, inner_nc, 3, 4),       # Conv2d(3, inner_nc, 4,2,1)
                "upconvT": init_convT(k1, inner_nc * 2, inner_nc, 4),
                "final_conv": init_conv(k2, 1, inner_nc, 1),
                "sub": sub}
    p = {"downconv": init_conv(k0, inner_nc, outer_nc, 4),
         "downnorm": init_bn(inner_nc),
         "upnorm": init_bn(outer_nc),
         "upconvT": init_convT(k1, inner_nc if innermost else inner_nc * 2, outer_nc, 4),
         "sub": sub}
    return p


def block_forward(p, x):
    """x: NHWC.  For non-outermost blocks x is already LeakyReLU(0.2)-activated,
    matching the in-place downrelu semantics of the PyTorch source."""
    if "final_conv" in p:                                   # outermost
        # downconv; fuse the submodule's (in-place) LeakyReLU into the epilogue
        h = conv2d_nhwc(x, p["downconv"]["w"], p["downconv"]["b"], 2, 1, act_out="leaky")
        h = block_forward(p["sub"], h)
        # uprelu fused as act_in; trailing ReLU(False) fused as act_out
        u = conv_transpose2d_nhwc(h, p["upconvT"]["w"], p["upconvT"]["b"],
                                  act_in="relu", act_out="relu")
        y = conv2d_nhwc(u, p["final_conv"]["w"], p["final_conv"]["b"], 1, 0,
                        act_out="sigmoid")
        # TODO(synk): source returns (y, self.grid_y) but grid_y is never defined.
        return y

    innermost = p["sub"] is None
    h = conv2d_nhwc(x, p["downconv"]["w"], p["downconv"]["b"], 2, 1)
    Nh, Hh, Wh, Ch = h.shape
    # downnorm; fuse the next activation: innermost -> its own uprelu (ReLU),
    # otherwise the child's in-place LeakyReLU (skip also uses that value).
    h2 = batchnorm2d(h.reshape(-1, Ch), p["downnorm"]["gamma"], p["downnorm"]["beta"],
                     act="relu" if innermost else "leaky")
    h = h2.reshape(Nh, Hh, Wh, Ch)
    if innermost:
        u = conv_transpose2d_nhwc(h, p["upconvT"]["w"], p["upconvT"]["b"])
    else:
        h = block_forward(p["sub"], h)
        u = conv_transpose2d_nhwc(h, p["upconvT"]["w"], p["upconvT"]["b"], act_in="relu")
    Nu, Hu, Wu, Cu = u.shape
    y2 = batchnorm2d(u.reshape(-1, Cu), p["upnorm"]["gamma"], p["upnorm"]["beta"])
    y = y2.reshape(Nu, Hu, Wu, Cu)
    return jnp.concatenate([y, x], axis=-1)                 # torch.cat([y, x], 1) in NHWC


def init_generator(key, output_nc, num_downs, ngf):
    keys = iter(jax.random.split(key, num_downs))
    blk = init_block(next(keys), ngf * 8, ngf * 8, innermost=True)
    for _ in range(num_downs - 5):
        blk = init_block(next(keys), ngf * 8, ngf * 8, sub=blk)
    blk = init_block(next(keys), ngf * 4, ngf * 8, sub=blk)  # source's gird=True branch is dead
    blk = init_block(next(keys), ngf * 2, ngf * 4, sub=blk)
    blk = init_block(next(keys), ngf, ngf * 2, sub=blk)
    blk = init_block(next(keys), output_nc, ngf, outermost=True, sub=blk)
    return blk


def single_unet_generator_L(params, x_nchw):
    x = jnp.transpose(x_nchw, (0, 2, 3, 1))                 # NCHW -> NHWC once at entry
    y = block_forward(params, x)
    return jnp.transpose(y, (0, 3, 1, 2))                   # back to NCHW at exit


if __name__ == "__main__":
    key = jax.random.PRNGKey(0)
    kx, kp = jax.random.split(key)

    # small config: ngf=8 (module default 64), num_downs=5 (minimum), 32x32 input
    ngf, num_downs = 8, 5
    x = jax.random.normal(kx, (2, 3, 32, 32), jnp.float32)  # 3 in-channels hardcoded
    params = init_generator(kp, output_nc=1, num_downs=num_downs, ngf=ngf)

    fwd = jax.jit(single_unet_generator_L)
    y = jax.block_until_ready(fwd(params, x))
    assert y.shape == (2, 1, 32, 32), y.shape
    assert bool(jnp.all(jnp.isfinite(y)))
    assert bool(jnp.all((y >= 0.0) & (y <= 1.0)))           # sigmoid output
    print("KERNEL_OK")
</pallas_src>

<mosaic_0001>
module attributes {stable_mosaic.version = 11 : i64} {
  func.func @_gemm_kernel(%arg0: i32, %arg1: i32, %arg2: i32, %arg3: memref<256x128xbf16, #tpu.memory_space<vmem>>, %arg4: memref<128x128xbf16, #tpu.memory_space<vmem>>, %arg5: memref<1x128xf32, #tpu.memory_space<vmem>>, %arg6: memref<256x128xf32, #tpu.memory_space<vmem>>, %arg7: memref<256x128xf32, #tpu.memory_space<vmem>>) attributes {dimension_semantics = [#tpu.dimension_semantics<parallel>, #tpu.dimension_semantics<parallel>, #tpu.dimension_semantics<arbitrary>], iteration_bounds = array<i64: 2, 1, 1>, scalar_prefetch = 0 : i64, scratch_operands = 1 : i64, tpu.core_type = #tpu.core_type<tc>, window_params = [{transform_indices = @transform_0, window_bounds = array<i64: 256, 128>}, {transform_indices = @transform_1, window_bounds = array<i64: 128, 128>}, {transform_indices = @transform_2, window_bounds = array<i64: 1, 128>}, {transform_indices = @transform_3, window_bounds = array<i64: 256, 128>}]} {
    %c0_i32 = arith.constant 0 : i32
    %0 = arith.cmpi eq, %arg2, %c0_i32 : i32
    %1 = arith.extui %0 : i1 to i32
    %c0_i32_0 = arith.constant 0 : i32
    %2 = arith.cmpi ne, %1, %c0_i32_0 : i32
    scf.if %2 {
      %cst_10 = arith.constant 0.000000e+00 : f32
      %12 = vector.broadcast %cst_10 : f32 to vector<256x128xf32>
      %c0_11 = arith.constant 0 : index
      %c0_12 = arith.constant 0 : index
      %13 = vector.load %arg7[%c0_11, %c0_12] : memref<256x128xf32, #tpu.memory_space<vmem>>, vector<256x128xf32>
      tpu.vector_store %arg7[%c0_11, %c0_12], %12 {strides = array<i32>} : memref<256x128xf32, #tpu.memory_space<vmem>>, vector<256x128xf32>,
    } else {
    }
    %c0 = arith.constant 0 : index
    %c0_1 = arith.constant 0 : index
    %3 = vector.load %arg3[%c0, %c0_1] : memref<256x128xbf16, #tpu.memory_space<vmem>>, vector<256x128xbf16>
    %c0_2 = arith.constant 0 : index
    %c0_3 = arith.constant 0 : index
    %4 = vector.load %arg7[%c0_2, %c0_3] : memref<256x128xf32, #tpu.memory_space<vmem>>, vector<256x128xf32>
    %c0_4 = arith.constant 0 : index
    %c0_5 = arith.constant 0 : index
    %5 = vector.load %arg4[%c0_4, %c0_5] : memref<128x128xbf16, #tpu.memory_space<vmem>>, vector<128x128xbf16>
    %cst = arith.constant dense<0.000000e+00> : vector<256x128xf32>
    %6 = tpu.matmul %3, %5, %cst {dimension_numbers = #tpu.dot_dimension_numbers<[1], [0], [0], [1], [0, 0, 1, 1], [], []>} : vector<256x128xbf16>, vector<128x128xbf16>, vector<256x128xf32> -> vector<256x128xf32>
    %7 = arith.addf %4, %6 : vector<256x128xf32>
    %c0_6 = arith.constant 0 : index
    %c0_7 = arith.constant 0 : index
    %8 = vector.load %arg7[%c0_6, %c0_7] : memref<256x128xf32, #tpu.memory_space<vmem>>, vector<256x128xf32>
    tpu.vector_store %arg7[%c0_6, %c0_7], %7 {strides = array<i32>} : memref<256x128xf32, #tpu.memory_space<vmem>>, vector<256x128xf32>,
    %c0_i32_8 = arith.constant 0 : i32
    %9 = arith.cmpi eq, %arg2, %c0_i32_8 : i32
    %10 = arith.extui %9 : i1 to i32
    %c0_i32_9 = arith.constant 0 : i32
    %11 = arith.cmpi ne, %10, %c0_i32_9 : i32
    scf.if %11 {
      %c0_10 = arith.constant 0 : index
      %c0_11 = arith.constant 0 : index
      %12 = vector.load %arg7[%c0_10, %c0_11] : memref<256x128xf32, #tpu.memory_space<vmem>>, vector<256x128xf32>
      %c0_12 = arith.constant 0 : index
      %c0_13 = arith.constant 0 : index
      %13 = vector.load %arg5[%c0_12, %c0_13] : memref<1x128xf32, #tpu.memory_space<vmem>>, vector<1x128xf32>
      %14 = vector.broadcast %13 : vector<1x128xf32> to vector<256x128xf32>
      %15 = arith.addf %12, %14 : vector<256x128xf32>
      %cst_14 = arith.constant 0.000000e+00 : f32
      %16 = vector.broadcast %cst_14 : f32 to vector<256x128xf32>
      %17 = arith.cmpf oge, %15, %16 : vector<256x128xf32>
      %cst_15 = arith.constant 2.000000e-01 : f32
      %18 = vector.broadcast %cst_15 : f32 to vector<256x128xf32>
      %19 = arith.mulf %18, %15 : vector<256x128xf32>
      %20 = arith.select %17, %15, %19 : vector<256x128xi1>, vector<256x128xf32>
      %c0_16 = arith.constant 0 : index
      %c0_17 = arith.constant 0 : index
      %21 = vector.load %arg6[%c0_16, %c0_17] : memref<256x128xf32, #tpu.memory_space<vmem>>, vector<256x128xf32>
      tpu.vector_store %arg6[%c0_16, %c0_17], %20 {strides = array<i32>} : memref<256x128xf32, #tpu.memory_space<vmem>>, vector<256x128xf32>,
    } else {
    }
    return
  }
  func.func @transform_0(%arg0: i32, %arg1: i32, %arg2: i32) -> (i32, i32) {
    %c0_i32 = arith.constant 0 : i32
    return %arg0, %arg2 : i32, i32
  }
  func.func @transform_1(%arg0: i32, %arg1: i32, %arg2: i32) -> (i32, i32) {
    %c0_i32 = arith.constant 0 : i32
    return %arg2, %arg1 : i32, i32
  }
  func.func @transform_2(%arg0: i32, %arg1: i32, %arg2: i32) -> (i32, i32) {
    %c0_i32 = arith.constant 0 : i32
    %c0_i32_0 = arith.constant 0 : i32
    return %c0_i32, %arg1 : i32, i32
  }
  func.func @transform_3(%arg0: i32, %arg1: i32, %arg2: i32) -> (i32, i32) {
    %c0_i32 = arith.constant 0 : i32
    return %arg0, %arg1 : i32, i32
  }
}

module attributes {stable_mosaic.version = 11 : i64} {
  func.func @_gemm_kernel(%arg0: i32, %arg1: i32, %arg2: i32, %arg3: memref<128x128xbf16, #tpu.memory_space<vmem>>, %arg4: memref<128x128xbf16, #tpu.memory_space<vmem>>, %arg5: memref<1x128xf32, #tpu.memory_space<vmem>>, %arg6: memref<128x128xf32, #tpu.memory_space<vmem>>, %arg7: memref<128x128xf32, #tpu.memory_space<vmem>>) attributes {dimension_semantics = [#tpu.dimension_semantics<parallel>, #tpu.dimension_semantics<parallel>, #tpu.dimension_semantics<arbitrary>], iteration_bounds = array<i64: 1, 1, 1>, scalar_prefetch = 0 : i64, scratch_operands = 1 : i64, tpu.core_type = #tpu.core_type<tc>, window_params = [{transform_indices = @transform_0, window_bounds = array<i64: 128, 128>}, {transform_indices = @transform_1, window_bounds = array<i64: 128, 128>}, {transform_indices = @transform_2, window_bounds = array<i64: 1, 128>}, {transform_indices = @transform_3, window_bounds = array<i64: 128, 128>}]} {
    %c0_i32 = arith.constant 0 : i32
    %0 = arith.cmpi eq, %arg2, %c0_i32 : i32
    %1 = arith.extui %0 : i1 to i32
    %c0_i32_0 = arith.constant 0 : i32
    %2 = arith.cmpi ne, %1, %c0_i32_0 : i32
    scf.if %2 {
      %cst_10 = arith.constant 0.000000e+00 : f32
      %12 = vector.broadcast %cst_10 : f32 to vector<128x128xf32>
      %c0_11 = arith.constant 0 : index
      %c0_12 = arith.constant 0 : index
      %13 = vector.load %arg7[%c0_11, %c0_12] : memref<128x128xf32, #tpu.memory_space<vmem>>, vector<128x128xf32>
      tpu.vector_store %arg7[%c0_11, %c0_12], %12 {strides = array<i32>} : memref<128x128xf32, #tpu.memory_space<vmem>>, vector<128x128xf32>,
    } else {
    }
    %c0 = arith.constant 0 : index
    %c0_1 = arith.constant 0 : index
    %3 = vector.load %arg3[%c0, %c0_1] : memref<128x128xbf16, #tpu.memory_space<vmem>>, vector<128x128xbf16>
    %c0_2 = arith.constant 0 : index
    %c0_3 = arith.constant 0 : index
    %4 = vector.load %arg7[%c0_2, %c0_3] : memref<128x128xf32, #tpu.memory_space<vmem>>, vector<128x128xf32>
    %c0_4 = arith.constant 0 : index
    %c0_5 = arith.constant 0 : index
    %5 = vector.load %arg4[%c0_4, %c0_5] : memref<128x128xbf16, #tpu.memory_space<vmem>>, vector<128x128xbf16>
    %cst = arith.constant dense<0.000000e+00> : vector<128x128xf32>
    %6 = tpu.matmul %3, %5, %cst {dimension_numbers = #tpu.dot_dimension_numbers<[1], [0], [0], [1], [0, 0, 1, 1], [], []>} : vector<128x128xbf16>, vector<128x128xbf16>, vector<128x128xf32> -> vector<128x128xf32>
    %7 = arith.addf %4, %6 : vector<128x128xf32>
    %c0_6 = arith.constant 0 : index
    %c0_7 = arith.constant 0 : index
    %8 = vector.load %arg7[%c0_6, %c0_7] : memref<128x128xf32, #tpu.memory_space<vmem>>, vector<128x128xf32>
    tpu.vector_store %arg7[%c0_6, %c0_7], %7 {strides = array<i32>} : memref<128x128xf32, #tpu.memory_space<vmem>>, vector<128x128xf32>,
    %c0_i32_8 = arith.constant 0 : i32
    %9 = arith.cmpi eq, %arg2, %c0_i32_8 : i32
    %10 = arith.extui %9 : i1 to i32
    %c0_i32_9 = arith.constant 0 : i32
    %11 = arith.cmpi ne, %10, %c0_i32_9 : i32
    scf.if %11 {
      %c0_10 = arith.constant 0 : index
      %c0_11 = arith.constant 0 : index
      %12 = vector.load %arg7[%c0_10, %c0_11] : memref<128x128xf32, #tpu.memory_space<vmem>>, vector<128x128xf32>
      %c0_12 = arith.constant 0 : index
      %c0_13 = arith.constant 0 : index
      %13 = vector.load %arg5[%c0_12, %c0_13] : memref<1x128xf32, #tpu.memory_space<vmem>>, vector<1x128xf32>
      %14 = vector.broadcast %13 : vector<1x128xf32> to vector<128x128xf32>
      %15 = arith.addf %12, %14 : vector<128x128xf32>
      %c0_14 = arith.constant 0 : index
      %c0_15 = arith.constant 0 : index
      %16 = vector.load %arg6[%c0_14, %c0_15] : memref<128x128xf32, #tpu.memory_space<vmem>>, vector<128x128xf32>
      tpu.vector_store %arg6[%c0_14, %c0_15], %15 {strides = array<i32>} : memref<128x128xf32, #tpu.memory_space<vmem>>, vector<128x128xf32>,
    } else {
    }
    return
  }
  func.func @transform_0(%arg0: i32, %arg1: i32, %arg2: i32) -> (i32, i32) {
    %c0_i32 = arith.constant 0 : i32
    return %arg0, %arg2 : i32, i32
  }
  func.func @transform_1(%arg0: i32, %arg1: i32, %arg2: i32) -> (i32, i32) {
    %c0_i32 = arith.constant 0 : i32
    return %arg2, %arg1 : i32, i32
  }
  func.func @transform_2(%arg0: i32, %arg1: i32, %arg2: i32) -> (i32, i32) {
    %c0_i32 = arith.constant 0 : i32
    %c0_i32_0 = arith.constant 0 : i32
    return %c0_i32, %arg1 : i32, i32
  }
  func.func @transform_3(%arg0: i32, %arg1: i32, %arg2: i32) -> (i32, i32) {
    %c0_i32 = arith.constant 0 : i32
    return %arg0, %arg1 : i32, i32
  }
}

module attributes {stable_mosaic.version = 11 : i64} {
  func.func @_bn_stats_kernel(%arg0: i32, %arg1: memref<128x128xf32, #tpu.memory_space<vmem>>, %arg2: memref<1x128xf32, #tpu.memory_space<vmem>>, %arg3: memref<1x128xf32, #tpu.memory_space<vmem>>) attributes {dimension_semantics = [#tpu.dimension_semantics<arbitrary>], iteration_bounds = array<i64: 1>, scalar_prefetch = 0 : i64, scratch_operands = 0 : i64, tpu.core_type = #tpu.core_type<tc>, window_params = [{transform_indices = @transform_0, window_bounds = array<i64: 128, 128>}, {pipeline_mode = #tpu.pipeline_mode<synchronous>, transform_indices = @transform_1, window_bounds = array<i64: 1, 128>}, {pipeline_mode = #tpu.pipeline_mode<synchronous>, transform_indices = @transform_2, window_bounds = array<i64: 1, 128>}]} {
    %c0_i32 = arith.constant 0 : i32
    %0 = arith.cmpi eq, %arg0, %c0_i32 : i32
    %1 = arith.extui %0 : i1 to i32
    %c0_i32_0 = arith.constant 0 : i32
    %2 = arith.cmpi ne, %1, %c0_i32_0 : i32
    scf.if %2 {
      %cst_11 = arith.constant 0.000000e+00 : f32
      %15 = vector.broadcast %cst_11 : f32 to vector<1x128xf32>
      %c0_12 = arith.constant 0 : index
      %c0_13 = arith.constant 0 : index
      %16 = vector.load %arg2[%c0_12, %c0_13] : memref<1x128xf32, #tpu.memory_space<vmem>>, vector<1x128xf32>
      tpu.vector_store %arg2[%c0_12, %c0_13], %15 {strides = array<i32>} : memref<1x128xf32, #tpu.memory_space<vmem>>, vector<1x128xf32>,
      %cst_14 = arith.constant 0.000000e+00 : f32
      %17 = vector.broadcast %cst_14 : f32 to vector<1x128xf32>
      %c0_15 = arith.constant 0 : index
      %c0_16 = arith.constant 0 : index
      %18 = vector.load %arg3[%c0_15, %c0_16] : memref<1x128xf32, #tpu.memory_space<vmem>>, vector<1x128xf32>
      tpu.vector_store %arg3[%c0_15, %c0_16], %17 {strides = array<i32>} : memref<1x128xf32, #tpu.memory_space<vmem>>, vector<1x128xf32>,
    } else {
    }
    %c0 = arith.constant 0 : index
    %c0_1 = arith.constant 0 : index
    %3 = vector.load %arg1[%c0, %c0_1] : memref<128x128xf32, #tpu.memory_space<vmem>>, vector<128x128xf32>
    %c0_2 = arith.constant 0 : index
    %c0_3 = arith.constant 0 : index
    %4 = vector.load %arg2[%c0_2, %c0_3] : memref<1x128xf32, #tpu.memory_space<vmem>>, vector<1x128xf32>
    %cst = arith.constant dense<0.000000e+00> : vector<128xf32>
    %5 = vector.multi_reduction <add>, %3, %cst [0] : vector<128x128xf32> to vector<128xf32>
    %6 = vector.shape_cast %5 : vector<128xf32> to vector<1x128xf32>
    %7 = arith.addf %4, %6 : vector<1x128xf32>
    %c0_4 = arith.constant 0 : index
    %c0_5 = arith.constant 0 : index
    %8 = vector.load %arg2[%c0_4, %c0_5] : memref<1x128xf32, #tpu.memory_space<vmem>>, vector<1x128xf32>
    tpu.vector_store %arg2[%c0_4, %c0_5], %7 {strides = array<i32>} : memref<1x128xf32, #tpu.memory_space<vmem>>, vector<1x128xf32>,
    %c0_6 = arith.constant 0 : index
    %c0_7 = arith.constant 0 : index
    %9 = vector.load %arg3[%c0_6, %c0_7] : memref<1x128xf32, #tpu.memory_space<vmem>>, vector<1x128xf32>
    %10 = arith.mulf %3, %3 : vector<128x128xf32>
    %cst_8 = arith.constant dense<0.000000e+00> : vector<128xf32>
    %11 = vector.multi_reduction <add>, %10, %cst_8 [0] : vector<128x128xf32> to vector<128xf32>
    %12 = vector.shape_cast %11 : vector<128xf32> to vector<1x128xf32>
    %13 = arith.addf %9, %12 : vector<1x128xf32>
    %c0_9 = arith.constant 0 : index
    %c0_10 = arith.constant 0 : index
    %14 = vector.load %arg3[%c0_9, %c0_10] : memref<1x128xf32, #tpu.memory_space<vmem>>, vector<1x128xf32>
    tpu.vector_store %arg3[%c0_9, %c0_10], %13 {strides = array<i32>} : memref<1x128xf32, #tpu.memory_space<vmem>>, vector<1x128xf32>,
    return
  }
  func.func @transform_0(%arg0: i32) -> (i32, i32) {
    %c0_i32 = arith.constant 0 : i32
    %c0_i32_0 = arith.constant 0 : i32
    return %arg0, %c0_i32 : i32, i32
  }
  func.func @transform_1(%arg0: i32) -> (i32, i32) {
    %c0_i32 = arith.constant 0 : i32
    %c0_i32_0 = arith.constant 0 : i32
    %c0_i32_1 = arith.constant 0 : i32
    return %c0_i32, %c0_i32_0 : i32, i32
  }
  func.func @transform_2(%arg0: i32) -> (i32, i32) {
    %c0_i32 = arith.constant 0 : i32
    %c0_i32_0 = arith.constant 0 : i32
    %c0_i32_1 = arith.constant 0 : i32
    return %c0_i32, %c0_i32_0 : i32, i32
  }
}

module attributes {stable_mosaic.version = 11 : i64} {
  func.func @_bn_apply_kernel(%arg0: i32, %arg1: memref<128x128xf32, #tpu.memory_space<vmem>>, %arg2: memref<1x128xf32, #tpu.memory_space<vmem>>, %arg3: memref<1x128xf32, #tpu.memory_space<vmem>>, %arg4: memref<128x128xf32, #tpu.memory_space<vmem>>) attributes {dimension_semantics = [#tpu.dimension_semantics<parallel>], iteration_bounds = array<i64: 1>, scalar_prefetch = 0 : i64, scratch_operands = 0 : i64, tpu.core_type = #tpu.core_type<tc>, window_params = [{transform_indices = @transform_0, window_bounds = array<i64: 128, 128>}, {pipeline_mode = #tpu.pipeline_mode<synchronous>, transform_indices = @transform_1, window_bounds = array<i64: 1, 128>}, {pipeline_mode = #tpu.pipeline_mode<synchronous>, transform_indices = @transform_2, window_bounds = array<i64: 1, 128>}, {transform_indices = @transform_3, window_bounds = array<i64: 128, 128>}]} {
    %c0 = arith.constant 0 : index
    %c0_0 = arith.constant 0 : index
    %0 = vector.load %arg1[%c0, %c0_0] : memref<128x128xf32, #tpu.memory_space<vmem>>, vector<128x128xf32>
    %c0_1 = arith.constant 0 : index
    %c0_2 = arith.constant 0 : index
    %1 = vector.load %arg2[%c0_1, %c0_2] : memref<1x128xf32, #tpu.memory_space<vmem>>, vector<1x128xf32>
    %2 = vector.broadcast %1 : vector<1x128xf32> to vector<128x128xf32>
    %3 = arith.mulf %0, %2 : vector<128x128xf32>
    %c0_3 = arith.constant 0 : index
    %c0_4 = arith.constant 0 : index
    %4 = vector.load %arg3[%c0_3, %c0_4] : memref<1x128xf32, #tpu.memory_space<vmem>>, vector<1x128xf32>
    %5 = vector.broadcast %4 : vector<1x128xf32> to vector<128x128xf32>
    %6 = arith.addf %3, %5 : vector<128x128xf32>
    %cst = arith.constant 0.000000e+00 : f32
    %7 = vector.broadcast %cst : f32 to vector<128x128xf32>
    %8 = arith.cmpf oge, %6, %7 : vector<128x128xf32>
    %cst_5 = arith.constant 2.000000e-01 : f32
    %9 = vector.broadcast %cst_5 : f32 to vector<128x128xf32>
    %10 = arith.mulf %9, %6 : vector<128x128xf32>
    %11 = arith.select %8, %6, %10 : vector<128x128xi1>, vector<128x128xf32>
    %c0_6 = arith.constant 0 : index
    %c0_7 = arith.constant 0 : index
    %12 = vector.load %arg4[%c0_6, %c0_7] : memref<128x128xf32, #tpu.memory_space<vmem>>, vector<128x128xf32>
    tpu.vector_store %arg4[%c0_6, %c0_7], %11 {strides = array<i32>} : memref<128x128xf32, #tpu.memory_space<vmem>>, vector<128x128xf32>,
    return
  }
  func.func @transform_0(%arg0: i32) -> (i32, i32) {
    %c0_i32 = arith.constant 0 : i32
    %c0_i32_0 = arith.constant 0 : i32
    return %arg0, %c0_i32 : i32, i32
  }
  func.func @transform_1(%arg0: i32) -> (i32, i32) {
    %c0_i32 = arith.constant 0 : i32
    %c0_i32_0 = arith.constant 0 : i32
    %c0_i32_1 = arith.constant 0 : i32
    return %c0_i32, %c0_i32_0 : i32, i32
  }
  func.func @transform_2(%arg0: i32) -> (i32, i32) {
    %c0_i32 = arith.constant 0 : i32
    %c0_i32_0 = arith.constant 0 : i32
    %c0_i32_1 = arith.constant 0 : i32
    return %c0_i32, %c0_i32_0 : i32, i32
  }
  func.func @transform_3(%arg0: i32) -> (i32, i32) {
    %c0_i32 = arith.constant 0 : i32
    %c0_i32_0 = arith.constant 0 : i32
    return %arg0, %c0_i32 : i32, i32
  }
}

module attributes {stable_mosaic.version = 11 : i64} {
  func.func @_gemm_kernel(%arg0: i32, %arg1: i32, %arg2: i32, %arg3: memref<32x256xbf16, #tpu.memory_space<vmem>>, %arg4: memref<256x128xbf16, #tpu.memory_space<vmem>>, %arg5: memref<1x128xf32, #tpu.memory_space<vmem>>, %arg6: memref<32x128xf32, #tpu.memory_space<vmem>>, %arg7: memref<32x128xf32, #tpu.memory_space<vmem>>) attributes {dimension_semantics = [#tpu.dimension_semantics<parallel>, #tpu.dimension_semantics<parallel>, #tpu.dimension_semantics<arbitrary>], iteration_bounds = array<i64: 1, 1, 1>, scalar_prefetch = 0 : i64, scratch_operands = 1 : i64, tpu.core_type = #tpu.core_type<tc>, window_params = [{transform_indices = @transform_0, window_bounds = array<i64: 32, 256>}, {transform_indices = @transform_1, window_bounds = array<i64: 256, 128>}, {transform_indices = @transform_2, window_bounds = array<i64: 1, 128>}, {transform_indices = @transform_3, window_bounds = array<i64: 32, 128>}]} {
    %c0_i32 = arith.constant 0 : i32
    %0 = arith.cmpi eq, %arg2, %c0_i32 : i32
    %1 = arith.extui %0 : i1 to i32
    %c0_i32_0 = arith.constant 0 : i32
    %2 = arith.cmpi ne, %1, %c0_i32_0 : i32
    scf.if %2 {
      %cst_10 = arith.constant 0.000000e+00 : f32
      %12 = vector.broadcast %cst_10 : f32 to vector<32x128xf32>
      %c0_11 = arith.constant 0 : index
      %c0_12 = arith.constant 0 : index
      %13 = vector.load %arg7[%c0_11, %c0_12] : memref<32x128xf32, #tpu.memory_space<vmem>>, vector<32x128xf32>
      tpu.vector_store %arg7[%c0_11, %c0_12], %12 {strides = array<i32>} : memref<32x128xf32, #tpu.memory_space<vmem>>, vector<32x128xf32>,
    } else {
    }
    %c0 = arith.constant 0 : index
    %c0_1 = arith.constant 0 : index
    %3 = vector.load %arg3[%c0, %c0_1] : memref<32x256xbf16, #tpu.memory_space<vmem>>, vector<32x256xbf16>
    %c0_2 = arith.constant 0 : index
    %c0_3 = arith.constant 0 : index
    %4 = vector.load %arg7[%c0_2, %c0_3] : memref<32x128xf32, #tpu.memory_space<vmem>>, vector<32x128xf32>
    %c0_4 = arith.constant 0 : index
    %c0_5 = arith.constant 0 : index
    %5 = vector.load %arg4[%c0_4, %c0_5] : memref<256x128xbf16, #tpu.memory_space<vmem>>, vector<256x128xbf16>
    %cst = arith.constant dense<0.000000e+00> : vector<32x128xf32>
    %6 = tpu.matmul %3, %5, %cst {dimension_numbers = #tpu.dot_dimension_numbers<[1], [0], [0], [1], [0, 0, 1, 1], [], []>} : vector<32x256xbf16>, vector<256x128xbf16>, vector<32x128xf32> -> vector<32x128xf32>
    %7 = arith.addf %4, %6 : vector<32x128xf32>
    %c0_6 = arith.constant 0 : index
    %c0_7 = arith.constant 0 : index
    %8 = vector.load %arg7[%c0_6, %c0_7] : memref<32x128xf32, #tpu.memory_space<vmem>>, vector<32x128xf32>
    tpu.vector_store %arg7[%c0_6, %c0_7], %7 {strides = array<i32>} : memref<32x128xf32, #tpu.memory_space<vmem>>, vector<32x128xf32>,
    %c0_i32_8 = arith.constant 0 : i32
    %9 = arith.cmpi eq, %arg2, %c0_i32_8 : i32
    %10 = arith.extui %9 : i1 to i32
    %c0_i32_9 = arith.constant 0 : i32
    %11 = arith.cmpi ne, %10, %c0_i32_9 : i32
    scf.if %11 {
      %c0_10 = arith.constant 0 : index
      %c0_11 = arith.constant 0 : index
      %12 = vector.load %arg7[%c0_10, %c0_11] : memref<32x128xf32, #tpu.memory_space<vmem>>, vector<32x128xf32>
      %c0_12 = arith.constant 0 : index
      %c0_13 = arith.constant 0 : index
      %13 = vector.load %arg5[%c0_12, %c0_13] : memref<1x128xf32, #tpu.memory_space<vmem>>, vector<1x128xf32>
      %14 = vector.broadcast %13 : vector<1x128xf32> to vector<32x128xf32>
      %15 = arith.addf %12, %14 : vector<32x128xf32>
      %c0_14 = arith.constant 0 : index
      %c0_15 = arith.constant 0 : index
      %16 = vector.load %arg6[%c0_14, %c0_15] : memref<32x128xf32, #tpu.memory_space<vmem>>, vector<32x128xf32>
      tpu.vector_store %arg6[%c0_14, %c0_15], %15 {strides = array<i32>} : memref<32x128xf32, #tpu.memory_space<vmem>>, vector<32x128xf32>,
    } else {
    }
    return
  }
  func.func @transform_0(%arg0: i32, %arg1: i32, %arg2: i32) -> (i32, i32) {
    %c0_i32 = arith.constant 0 : i32
    return %arg0, %arg2 : i32, i32
  }
  func.func @transform_1(%arg0: i32, %arg1: i32, %arg2: i32) -> (i32, i32) {
    %c0_i32 = arith.constant 0 : i32
    return %arg2, %arg1 : i32, i32
  }
  func.func @transform_2(%arg0: i32, %arg1: i32, %arg2: i32) -> (i32, i32) {
    %c0_i32 = arith.constant 0 : i32
    %c0_i32_0 = arith.constant 0 : i32
    return %c0_i32, %arg1 : i32, i32
  }
  func.func @transform_3(%arg0: i32, %arg1: i32, %arg2: i32) -> (i32, i32) {
    %c0_i32 = arith.constant 0 : i32
    return %arg0, %arg1 : i32, i32
  }
}

module attributes {stable_mosaic.version = 11 : i64} {
  func.func @_bn_stats_kernel(%arg0: i32, %arg1: memref<32x128xf32, #tpu.memory_space<vmem>>, %arg2: memref<1x128xf32, #tpu.memory_space<vmem>>, %arg3: memref<1x128xf32, #tpu.memory_space<vmem>>) attributes {dimension_semantics = [#tpu.dimension_semantics<arbitrary>], iteration_bounds = array<i64: 1>, scalar_prefetch = 0 : i64, scratch_operands = 0 : i64, tpu.core_type = #tpu.core_type<tc>, window_params = [{transform_indices = @transform_0, window_bounds = array<i64: 32, 128>}, {pipeline_mode = #tpu.pipeline_mode<synchronous>, transform_indices = @transform_1, window_bounds = array<i64: 1, 128>}, {pipeline_mode = #tpu.pipeline_mode<synchronous>, transform_indices = @transform_2, window_bounds = array<i64: 1, 128>}]} {
    %c0_i32 = arith.constant 0 : i32
    %0 = arith.cmpi eq, %arg0, %c0_i32 : i32
    %1 = arith.extui %0 : i1 to i32
    %c0_i32_0 = arith.constant 0 : i32
    %2 = arith.cmpi ne, %1, %c0_i32_0 : i32
    scf.if %2 {
      %cst_11 = arith.constant 0.000000e+00 : f32
      %15 = vector.broadcast %cst_11 : f32 to vector<1x128xf32>
      %c0_12 = arith.constant 0 : index
      %c0_13 = arith.constant 0 : index
      %16 = vector.load %arg2[%c0_12, %c0_13] : memref<1x128xf32, #tpu.memory_space<vmem>>, vector<1x128xf32>
      tpu.vector_store %arg2[%c0_12, %c0_13], %15 {strides = array<i32>} : memref<1x128xf32, #tpu.memory_space<vmem>>, vector<1x128xf32>,
      %cst_14 = arith.constant 0.000000e+00 : f32
      %17 = vector.broadcast %cst_14 : f32 to vector<1x128xf32>
      %c0_15 = arith.constant 0 : index
      %c0_16 = arith.constant 0 : index
      %18 = vector.load %arg3[%c0_15, %c0_16] : memref<1x128xf32, #tpu.memory_space<vmem>>, vector<1x128xf32>
      tpu.vector_store %arg3[%c0_15, %c0_16], %17 {strides = array<i32>} : memref<1x128xf32, #tpu.memory_space<vmem>>, vector<1x128xf32>,
    } else {
    }
    %c0 = arith.constant 0 : index
    %c0_1 = arith.constant 0 : index
    %3 = vector.load %arg1[%c0, %c0_1] : memref<32x128xf32, #tpu.memory_space<vmem>>, vector<32x128xf32>
    %c0_2 = arith.constant 0 : index
    %c0_3 = arith.constant 0 : index
    %4 = vector.load %arg2[%c0_2, %c0_3] : memref<1x128xf32, #tpu.memory_space<vmem>>, vector<1x128xf32>
    %cst = arith.constant dense<0.000000e+00> : vector<128xf32>
    %5 = vector.multi_reduction <add>, %3, %cst [0] : vector<32x128xf32> to vector<128xf32>
    %6 = vector.shape_cast %5 : vector<128xf32> to vector<1x128xf32>
    %7 = arith.addf %4, %6 : vector<1x128xf32>
    %c0_4 = arith.constant 0 : index
    %c0_5 = arith.constant 0 : index
    %8 = vector.load %arg2[%c0_4, %c0_5] : memref<1x128xf32, #tpu.memory_space<vmem>>, vector<1x128xf32>
    tpu.vector_store %arg2[%c0_4, %c0_5], %7 {strides = array<i32>} : memref<1x128xf32, #tpu.memory_space<vmem>>, vector<1x128xf32>,
    %c0_6 = arith.constant 0 : index
    %c0_7 = arith.constant 0 : index
    %9 = vector.load %arg3[%c0_6, %c0_7] : memref<1x128xf32, #tpu.memory_space<vmem>>, vector<1x128xf32>
    %10 = arith.mulf %3, %3 : vector<32x128xf32>
    %cst_8 = arith.constant dense<0.000000e+00> : vector<128xf32>
    %11 = vector.multi_reduction <add>, %10, %cst_8 [0] : vector<32x128xf32> to vector<128xf32>
    %12 = vector.shape_cast %11 : vector<128xf32> to vector<1x128xf32>
    %13 = arith.addf %9, %12 : vector<1x128xf32>
    %c0_9 = arith.constant 0 : index
    %c0_10 = arith.constant 0 : index
    %14 = vector.load %arg3[%c0_9, %c0_10] : memref<1x128xf32, #tpu.memory_space<vmem>>, vector<1x128xf32>
    tpu.vector_store %arg3[%c0_9, %c0_10], %13 {strides = array<i32>} : memref<1x128xf32, #tpu.memory_space<vmem>>, vector<1x128xf32>,
    return
  }
  func.func @transform_0(%arg0: i32) -> (i32, i32) {
    %c0_i32 = arith.constant 0 : i32
    %c0_i32_0 = arith.constant 0 : i32
    return %arg0, %c0_i32 : i32, i32
  }
  func.func @transform_1(%arg0: i32) -> (i32, i32) {
    %c0_i32 = arith.constant 0 : i32
    %c0_i32_0 = arith.constant 0 : i32
    %c0_i32_1 = arith.constant 0 : i32
    return %c0_i32, %c0_i32_0 : i32, i32
  }
  func.func @transform_2(%arg0: i32) -> (i32, i32) {
    %c0_i32 = arith.constant 0 : i32
    %c0_i32_0 = arith.constant 0 : i32
    %c0_i32_1 = arith.constant 0 : i32
    return %c0_i32, %c0_i32_0 : i32, i32
  }
}

module attributes {stable_mosaic.version = 11 : i64} {
  func.func @_bn_apply_kernel(%arg0: i32, %arg1: memref<32x128xf32, #tpu.memory_space<vmem>>, %arg2: memref<1x128xf32, #tpu.memory_space<vmem>>, %arg3: memref<1x128xf32, #tpu.memory_space<vmem>>, %arg4: memref<32x128xf32, #tpu.memory_space<vmem>>) attributes {dimension_semantics = [#tpu.dimension_semantics<parallel>], iteration_bounds = array<i64: 1>, scalar_prefetch = 0 : i64, scratch_operands = 0 : i64, tpu.core_type = #tpu.core_type<tc>, window_params = [{transform_indices = @transform_0, window_bounds = array<i64: 32, 128>}, {pipeline_mode = #tpu.pipeline_mode<synchronous>, transform_indices = @transform_1, window_bounds = array<i64: 1, 128>}, {pipeline_mode = #tpu.pipeline_mode<synchronous>, transform_indices = @transform_2, window_bounds = array<i64: 1, 128>}, {transform_indices = @transform_3, window_bounds = array<i64: 32, 128>}]} {
    %c0 = arith.constant 0 : index
    %c0_0 = arith.constant 0 : index
    %0 = vector.load %arg1[%c0, %c0_0] : memref<32x128xf32, #tpu.memory_space<vmem>>, vector<32x128xf32>
    %c0_1 = arith.constant 0 : index
    %c0_2 = arith.constant 0 : index
    %1 = vector.load %arg2[%c0_1, %c0_2] : memref<1x128xf32, #tpu.memory_space<vmem>>, vector<1x128xf32>
    %2 = vector.broadcast %1 : vector<1x128xf32> to vector<32x128xf32>
    %3 = arith.mulf %0, %2 : vector<32x128xf32>
    %c0_3 = arith.constant 0 : index
    %c0_4 = arith.constant 0 : index
    %4 = vector.load %arg3[%c0_3, %c0_4] : memref<1x128xf32, #tpu.memory_space<vmem>>, vector<1x128xf32>
    %5 = vector.broadcast %4 : vector<1x128xf32> to vector<32x128xf32>
    %6 = arith.addf %3, %5 : vector<32x128xf32>
    %cst = arith.constant 0.000000e+00 : f32
    %7 = vector.broadcast %cst : f32 to vector<32x128xf32>
    %8 = arith.cmpf oge, %6, %7 : vector<32x128xf32>
    %cst_5 = arith.constant 2.000000e-01 : f32
    %9 = vector.broadcast %cst_5 : f32 to vector<32x128xf32>
    %10 = arith.mulf %9, %6 : vector<32x128xf32>
    %11 = arith.select %8, %6, %10 : vector<32x128xi1>, vector<32x128xf32>
    %c0_6 = arith.constant 0 : index
    %c0_7 = arith.constant 0 : index
    %12 = vector.load %arg4[%c0_6, %c0_7] : memref<32x128xf32, #tpu.memory_space<vmem>>, vector<32x128xf32>
    tpu.vector_store %arg4[%c0_6, %c0_7], %11 {strides = array<i32>} : memref<32x128xf32, #tpu.memory_space<vmem>>, vector<32x128xf32>,
    return
  }
  func.func @transform_0(%arg0: i32) -> (i32, i32) {
    %c0_i32 = arith.constant 0 : i32
    %c0_i32_0 = arith.constant 0 : i32
    return %arg0, %c0_i32 : i32, i32
  }
  func.func @transform_1(%arg0: i32) -> (i32, i32) {
    %c0_i32 = arith.constant 0 : i32
    %c0_i32_0 = arith.constant 0 : i32
    %c0_i32_1 = arith.constant 0 : i32
    return %c0_i32, %c0_i32_0 : i32, i32
  }
  func.func @transform_2(%arg0: i32) -> (i32, i32) {
    %c0_i32 = arith.constant 0 : i32
    %c0_i32_0 = arith.constant 0 : i32
    %c0_i32_1 = arith.constant 0 : i32
    return %c0_i32, %c0_i32_0 : i32, i32
  }
  func.func @transform_3(%arg0: i32) -> (i32, i32) {
    %c0_i32 = arith.constant 0 : i32
    %c0_i32_0 = arith.constant 0 : i32
    return %arg0, %c0_i32 : i32, i32
  }
}

module attributes {stable_mosaic.version = 11 : i64} {
  func.func @_bn_stats_kernel(%arg0: i32, %arg1: memref<8x128xf32, #tpu.memory_space<vmem>>, %arg2: memref<1x128xf32, #tpu.memory_space<vmem>>, %arg3: memref<1x128xf32, #tpu.memory_space<vmem>>) attributes {dimension_semantics = [#tpu.dimension_semantics<arbitrary>], iteration_bounds = array<i64: 1>, scalar_prefetch = 0 : i64, scratch_operands = 0 : i64, tpu.core_type = #tpu.core_type<tc>, window_params = [{transform_indices = @transform_0, window_bounds = array<i64: 8, 128>}, {pipeline_mode = #tpu.pipeline_mode<synchronous>, transform_indices = @transform_1, window_bounds = array<i64: 1, 128>}, {pipeline_mode = #tpu.pipeline_mode<synchronous>, transform_indices = @transform_2, window_bounds = array<i64: 1, 128>}]} {
    %c0_i32 = arith.constant 0 : i32
    %0 = arith.cmpi eq, %arg0, %c0_i32 : i32
    %1 = arith.extui %0 : i1 to i32
    %c0_i32_0 = arith.constant 0 : i32
    %2 = arith.cmpi ne, %1, %c0_i32_0 : i32
    scf.if %2 {
      %cst_11 = arith.constant 0.000000e+00 : f32
      %15 = vector.broadcast %cst_11 : f32 to vector<1x128xf32>
      %c0_12 = arith.constant 0 : index
      %c0_13 = arith.constant 0 : index
      %16 = vector.load %arg2[%c0_12, %c0_13] : memref<1x128xf32, #tpu.memory_space<vmem>>, vector<1x128xf32>
      tpu.vector_store %arg2[%c0_12, %c0_13], %15 {strides = array<i32>} : memref<1x128xf32, #tpu.memory_space<vmem>>, vector<1x128xf32>,
      %cst_14 = arith.constant 0.000000e+00 : f32
      %17 = vector.broadcast %cst_14 : f32 to vector<1x128xf32>
      %c0_15 = arith.constant 0 : index
      %c0_16 = arith.constant 0 : index
      %18 = vector.load %arg3[%c0_15, %c0_16] : memref<1x128xf32, #tpu.memory_space<vmem>>, vector<1x128xf32>
      tpu.vector_store %arg3[%c0_15, %c0_16], %17 {strides = array<i32>} : memref<1x128xf32, #tpu.memory_space<vmem>>, vector<1x128xf32>,
    } else {
    }
    %c0 = arith.constant 0 : index
    %c0_1 = arith.constant 0 : index
    %3 = vector.load %arg1[%c0, %c0_1] : memref<8x128xf32, #tpu.memory_space<vmem>>, vector<8x128xf32>
    %c0_2 = arith.constant 0 : index
    %c0_3 = arith.constant 0 : index
    %4 = vector.load %arg2[%c0_2, %c0_3] : memref<1x128xf32, #tpu.memory_space<vmem>>, vector<1x128xf32>
    %cst = arith.constant dense<0.000000e+00> : vector<128xf32>
    %5 = vector.multi_reduction <add>, %3, %cst [0] : vector<8x128xf32> to vector<128xf32>
    %6 = vector.shape_cast %5 : vector<128xf32> to vector<1x128xf32>
    %7 = arith.addf %4, %6 : vector<1x128xf32>
    %c0_4 = arith.constant 0 : index
    %c0_5 = arith.constant 0 : index
    %8 = vector.load %arg2[%c0_4, %c0_5] : memref<1x128xf32, #tpu.memory_space<vmem>>, vector<1x128xf32>
    tpu.vector_store %arg2[%c0_4, %c0_5], %7 {strides = array<i32>} : memref<1x128xf32, #tpu.memory_space<vmem>>, vector<1x128xf32>,
    %c0_6 = arith.constant 0 : index
    %c0_7 = arith.constant 0 : index
    %9 = vector.load %arg3[%c0_6, %c0_7] : memref<1x128xf32, #tpu.memory_space<vmem>>, vector<1x128xf32>
    %10 = arith.mulf %3, %3 : vector<8x128xf32>
    %cst_8 = arith.constant dense<0.000000e+00> : vector<128xf32>
    %11 = vector.multi_reduction <add>, %10, %cst_8 [0] : vector<8x128xf32> to vector<128xf32>
    %12 = vector.shape_cast %11 : vector<128xf32> to vector<1x128xf32>
    %13 = arith.addf %9, %12 : vector<1x128xf32>
    %c0_9 = arith.constant 0 : index
    %c0_10 = arith.constant 0 : index
    %14 = vector.load %arg3[%c0_9, %c0_10] : memref<1x128xf32, #tpu.memory_space<vmem>>, vector<1x128xf32>
    tpu.vector_store %arg3[%c0_9, %c0_10], %13 {strides = array<i32>} : memref<1x128xf32, #tpu.memory_space<vmem>>, vector<1x128xf32>,
    return
  }
  func.func @transform_0(%arg0: i32) -> (i32, i32) {
    %c0_i32 = arith.constant 0 : i32
    %c0_i32_0 = arith.constant 0 : i32
    return %arg0, %c0_i32 : i32, i32
  }
  func.func @transform_1(%arg0: i32) -> (i32, i32) {
    %c0_i32 = arith.constant 0 : i32
    %c0_i32_0 = arith.constant 0 : i32
    %c0_i32_1 = arith.constant 0 : i32
    return %c0_i32, %c0_i32_0 : i32, i32
  }
  func.func @transform_2(%arg0: i32) -> (i32, i32) {
    %c0_i32 = arith.constant 0 : i32
    %c0_i32_0 = arith.constant 0 : i32
    %c0_i32_1 = arith.constant 0 : i32
    return %c0_i32, %c0_i32_0 : i32, i32
  }
}

module attributes {stable_mosaic.version = 11 : i64} {
  func.func @_bn_apply_kernel(%arg0: i32, %arg1: memref<8x128xf32, #tpu.memory_space<vmem>>, %arg2: memref<1x128xf32, #tpu.memory_space<vmem>>, %arg3: memref<1x128xf32, #tpu.memory_space<vmem>>, %arg4: memref<8x128xf32, #tpu.memory_space<vmem>>) attributes {dimension_semantics = [#tpu.dimension_semantics<parallel>], iteration_bounds = array<i64: 1>, scalar_prefetch = 0 : i64, scratch_operands = 0 : i64, tpu.core_type = #tpu.core_type<tc>, window_params = [{transform_indices = @transform_0, window_bounds = array<i64: 8, 128>}, {pipeline_mode = #tpu.pipeline_mode<synchronous>, transform_indices = @transform_1, window_bounds = array<i64: 1, 128>}, {pipeline_mode = #tpu.pipeline_mode<synchronous>, transform_indices = @transform_2, window_bounds = array<i64: 1, 128>}, {transform_indices = @transform_3, window_bounds = array<i64: 8, 128>}]} {
    %c0 = arith.constant 0 : index
    %c0_0 = arith.constant 0 : index
    %0 = vector.load %arg1[%c0, %c0_0] : memref<8x128xf32, #tpu.memory_space<vmem>>, vector<8x128xf32>
    %c0_1 = arith.constant 0 : index
    %c0_2 = arith.constant 0 : index
    %1 = vector.load %arg2[%c0_1, %c0_2] : memref<1x128xf32, #tpu.memory_space<vmem>>, vector<1x128xf32>
    %2 = vector.broadcast %1 : vector<1x128xf32> to vector<8x128xf32>
    %3 = arith.mulf %0, %2 : vector<8x128xf32>
    %c0_3 = arith.constant 0 : index
    %c0_4 = arith.constant 0 : index
    %4 = vector.load %arg3[%c0_3, %c0_4] : memref<1x128xf32, #tpu.memory_space<vmem>>, vector<1x128xf32>
    %5 = vector.broadcast %4 : vector<1x128xf32> to vector<8x128xf32>
    %6 = arith.addf %3, %5 : vector<8x128xf32>
    %cst = arith.constant 0.000000e+00 : f32
    %7 = vector.broadcast %cst : f32 to vector<8x128xf32>
    %8 = arith.cmpf oge, %6, %7 : vector<8x128xf32>
    %cst_5 = arith.constant 2.000000e-01 : f32
    %9 = vector.broadcast %cst_5 : f32 to vector<8x128xf32>
    %10 = arith.mulf %9, %6 : vector<8x128xf32>
    %11 = arith.select %8, %6, %10 : vector<8x128xi1>, vector<8x128xf32>
    %c0_6 = arith.constant 0 : index
    %c0_7 = arith.constant 0 : index
    %12 = vector.load %arg4[%c0_6, %c0_7] : memref<8x128xf32, #tpu.memory_space<vmem>>, vector<8x128xf32>
    tpu.vector_store %arg4[%c0_6, %c0_7], %11 {strides = array<i32>} : memref<8x128xf32, #tpu.memory_space<vmem>>, vector<8x128xf32>,
    return
  }
  func.func @transform_0(%arg0: i32) -> (i32, i32) {
    %c0_i32 = arith.constant 0 : i32
    %c0_i32_0 = arith.constant 0 : i32
    return %arg0, %c0_i32 : i32, i32
  }
  func.func @transform_1(%arg0: i32) -> (i32, i32) {
    %c0_i32 = arith.constant 0 : i32
    %c0_i32_0 = arith.constant 0 : i32
    %c0_i32_1 = arith.constant 0 : i32
    return %c0_i32, %c0_i32_0 : i32, i32
  }
  func.func @transform_2(%arg0: i32) -> (i32, i32) {
    %c0_i32 = arith.constant 0 : i32
    %c0_i32_0 = arith.constant 0 : i32
    %c0_i32_1 = arith.constant 0 : i32
    return %c0_i32, %c0_i32_0 : i32, i32
  }
  func.func @transform_3(%arg0: i32) -> (i32, i32) {
    %c0_i32 = arith.constant 0 : i32
    %c0_i32_0 = arith.constant 0 : i32
    return %arg0, %c0_i32 : i32, i32
  }
}

module attributes {stable_mosaic.version = 11 : i64} {
  func.func @_gemm_kernel(%arg0: i32, %arg1: i32, %arg2: i32, %arg3: memref<16x512xbf16, #tpu.memory_space<vmem>>, %arg4: memref<512x128xbf16, #tpu.memory_space<vmem>>, %arg5: memref<1x128xf32, #tpu.memory_space<vmem>>, %arg6: memref<16x128xf32, #tpu.memory_space<vmem>>, %arg7: memref<16x128xf32, #tpu.memory_space<vmem>>) attributes {dimension_semantics = [#tpu.dimension_semantics<parallel>, #tpu.dimension_semantics<parallel>, #tpu.dimension_semantics<arbitrary>], iteration_bounds = array<i64: 1, 1, 1>, scalar_prefetch = 0 : i64, scratch_operands = 1 : i64, tpu.core_type = #tpu.core_type<tc>, window_params = [{transform_indices = @transform_0, window_bounds = array<i64: 16, 512>}, {transform_indices = @transform_1, window_bounds = array<i64: 512, 128>}, {transform_indices = @transform_2, window_bounds = array<i64: 1, 128>}, {transform_indices = @transform_3, window_bounds = array<i64: 16, 128>}]} {
    %c0_i32 = arith.constant 0 : i32
    %0 = arith.cmpi eq, %arg2, %c0_i32 : i32
    %1 = arith.extui %0 : i1 to i32
    %c0_i32_0 = arith.constant 0 : i32
    %2 = arith.cmpi ne, %1, %c0_i32_0 : i32
    scf.if %2 {
      %cst_10 = arith.constant 0.000000e+00 : f32
      %12 = vector.broadcast %cst_10 : f32 to vector<16x128xf32>
      %c0_11 = arith.constant 0 : index
      %c0_12 = arith.constant 0 : index
      %13 = vector.load %arg7[%c0_11, %c0_12] : memref<16x128xf32, #tpu.memory_space<vmem>>, vector<16x128xf32>
      tpu.vector_store %arg7[%c0_11, %c0_12], %12 {strides = array<i32>} : memref<16x128xf32, #tpu.memory_space<vmem>>, vector<16x128xf32>,
    } else {
    }
    %c0 = arith.constant 0 : index
    %c0_1 = arith.constant 0 : index
    %3 = vector.load %arg3[%c0, %c0_1] : memref<16x512xbf16, #tpu.memory_space<vmem>>, vector<16x512xbf16>
    %c0_2 = arith.constant 0 : index
    %c0_3 = arith.constant 0 : index
    %4 = vector.load %arg7[%c0_2, %c0_3] : memref<16x128xf32, #tpu.memory_space<vmem>>, vector<16x128xf32>
    %c0_4 = arith.constant 0 : index
    %c0_5 = arith.constant 0 : index
    %5 = vector.load %arg4[%c0_4, %c0_5] : memref<512x128xbf16, #tpu.memory_space<vmem>>, vector<512x128xbf16>
    %cst = arith.constant dense<0.000000e+00> : vector<16x128xf32>
    %6 = tpu.matmul %3, %5, %cst {dimension_numbers = #tpu.dot_dimension_numbers<[1], [0], [0], [1], [0, 0, 1, 1], [], []>} : vector<16x512xbf16>, vector<512x128xbf16>, vector<16x128xf32> -> vector<16x128xf32>
    %7 = arith.addf %4, %6 : vector<16x128xf32>
    %c0_6 = arith.constant 0 : index
    %c0_7 = arith.constant 0 : index
    %8 = vector.load %arg7[%c0_6, %c0_7] : memref<16x128xf32, #tpu.memory_space<vmem>>, vector<16x128xf32>
    tpu.vector_store %arg7[%c0_6, %c0_7], %7 {strides = array<i32>} : memref<16x128xf32, #tpu.memory_space<vmem>>, vector<16x128xf32>,
    %c0_i32_8 = arith.constant 0 : i32
    %9 = arith.cmpi eq, %arg2, %c0_i32_8 : i32
    %10 = arith.extui %9 : i1 to i32
    %c0_i32_9 = arith.constant 0 : i32
    %11 = arith.cmpi ne, %10, %c0_i32_9 : i32
    scf.if %11 {
      %c0_10 = arith.constant 0 : index
      %c0_11 = arith.constant 0 : index
      %12 = vector.load %arg7[%c0_10, %c0_11] : memref<16x128xf32, #tpu.memory_space<vmem>>, vector<16x128xf32>
      %c0_12 = arith.constant 0 : index
      %c0_13 = arith.constant 0 : index
      %13 = vector.load %arg5[%c0_12, %c0_13] : memref<1x128xf32, #tpu.memory_space<vmem>>, vector<1x128xf32>
      %14 = vector.broadcast %13 : vector<1x128xf32> to vector<16x128xf32>
      %15 = arith.addf %12, %14 : vector<16x128xf32>
      %c0_14 = arith.constant 0 : index
      %c0_15 = arith.constant 0 : index
      %16 = vector.load %arg6[%c0_14, %c0_15] : memref<16x128xf32, #tpu.memory_space<vmem>>, vector<16x128xf32>
      tpu.vector_store %arg6[%c0_14, %c0_15], %15 {strides = array<i32>} : memref<16x128xf32, #tpu.memory_space<vmem>>, vector<16x128xf32>,
    } else {
    }
    return
  }
  func.func @transform_0(%arg0: i32, %arg1: i32, %arg2: i32) -> (i32, i32) {
    %c0_i32 = arith.constant 0 : i32
    return %arg0, %arg2 : i32, i32
  }
  func.func @transform_1(%arg0: i32, %arg1: i32, %arg2: i32) -> (i32, i32) {
    %c0_i32 = arith.constant 0 : i32
    return %arg2, %arg1 : i32, i32
  }
  func.func @transform_2(%arg0: i32, %arg1: i32, %arg2: i32) -> (i32, i32) {
    %c0_i32 = arith.constant 0 : i32
    %c0_i32_0 = arith.constant 0 : i32
    return %c0_i32, %arg1 : i32, i32
  }
  func.func @transform_3(%arg0: i32, %arg1: i32, %arg2: i32) -> (i32, i32) {
    %c0_i32 = arith.constant 0 : i32
    return %arg0, %arg1 : i32, i32
  }
}

module attributes {stable_mosaic.version = 11 : i64} {
  func.func @_gemm_kernel(%arg0: i32, %arg1: i32, %arg2: i32, %arg3: memref<16x512xbf16, #tpu.memory_space<vmem>>, %arg4: memref<512x128xbf16, #tpu.memory_space<vmem>>, %arg5: memref<1x128xf32, #tpu.memory_space<vmem>>, %arg6: memref<16x128xf32, #tpu.memory_space<vmem>>, %arg7: memref<16x128xf32, #tpu.memory_space<vmem>>) attributes {dimension_semantics = [#tpu.dimension_semantics<parallel>, #tpu.dimension_semantics<parallel>, #tpu.dimension_semantics<arbitrary>], iteration_bounds = array<i64: 1, 1, 2>, scalar_prefetch = 0 : i64, scratch_operands = 1 : i64, tpu.core_type = #tpu.core_type<tc>, window_params = [{transform_indices = @transform_0, window_bounds = array<i64: 16, 512>}, {transform_indices = @transform_1, window_bounds = array<i64: 512, 128>}, {transform_indices = @transform_2, window_bounds = array<i64: 1, 128>}, {transform_indices = @transform_3, window_bounds = array<i64: 16, 128>}]} {
    %c0_i32 = arith.constant 0 : i32
    %0 = arith.cmpi eq, %arg2, %c0_i32 : i32
    %1 = arith.extui %0 : i1 to i32
    %c0_i32_0 = arith.constant 0 : i32
    %2 = arith.cmpi ne, %1, %c0_i32_0 : i32
    scf.if %2 {
      %cst_9 = arith.constant 0.000000e+00 : f32
      %12 = vector.broadcast %cst_9 : f32 to vector<16x128xf32>
      %c0_10 = arith.constant 0 : index
      %c0_11 = arith.constant 0 : index
      %13 = vector.load %arg7[%c0_10, %c0_11] : memref<16x128xf32, #tpu.memory_space<vmem>>, vector<16x128xf32>
      tpu.vector_store %arg7[%c0_10, %c0_11], %12 {strides = array<i32>} : memref<16x128xf32, #tpu.memory_space<vmem>>, vector<16x128xf32>,
    } else {
    }
    %c0 = arith.constant 0 : index
    %c0_1 = arith.constant 0 : index
    %3 = vector.load %arg3[%c0, %c0_1] : memref<16x512xbf16, #tpu.memory_space<vmem>>, vector<16x512xbf16>
    %c0_2 = arith.constant 0 : index
    %c0_3 = arith.constant 0 : index
    %4 = vector.load %arg7[%c0_2, %c0_3] : memref<16x128xf32, #tpu.memory_space<vmem>>, vector<16x128xf32>
    %c0_4 = arith.constant 0 : index
    %c0_5 = arith.constant 0 : index
    %5 = vector.load %arg4[%c0_4, %c0_5] : memref<512x128xbf16, #tpu.memory_space<vmem>>, vector<512x128xbf16>
    %cst = arith.constant dense<0.000000e+00> : vector<16x128xf32>
    %6 = tpu.matmul %3, %5, %cst {dimension_numbers = #tpu.dot_dimension_numbers<[1], [0], [0], [1], [0, 0, 1, 1], [], []>} : vector<16x512xbf16>, vector<512x128xbf16>, vector<16x128xf32> -> vector<16x128xf32>
    %7 = arith.addf %4, %6 : vector<16x128xf32>
    %c0_6 = arith.constant 0 : index
    %c0_7 = arith.constant 0 : index
    %8 = vector.load %arg7[%c0_6, %c0_7] : memref<16x128xf32, #tpu.memory_space<vmem>>, vector<16x128xf32>
    tpu.vector_store %arg7[%c0_6, %c0_7], %7 {strides = array<i32>} : memref<16x128xf32, #tpu.memory_space<vmem>>, vector<16x128xf32>,
    %c1_i32 = arith.constant 1 : i32
    %9 = arith.cmpi eq, %arg2, %c1_i32 : i32
    %10 = arith.extui %9 : i1 to i32
    %c0_i32_8 = arith.constant 0 : i32
    %11 = arith.cmpi ne, %10, %c0_i32_8 : i32
    scf.if %11 {
      %c0_9 = arith.constant 0 : index
      %c0_10 = arith.constant 0 : index
      %12 = vector.load %arg7[%c0_9, %c0_10] : memref<16x128xf32, #tpu.memory_space<vmem>>, vector<16x128xf32>
      %c0_11 = arith.constant 0 : index
      %c0_12 = arith.constant 0 : index
      %13 = vector.load %arg5[%c0_11, %c0_12] : memref<1x128xf32, #tpu.memory_space<vmem>>, vector<1x128xf32>
      %14 = vector.broadcast %13 : vector<1x128xf32> to vector<16x128xf32>
      %15 = arith.addf %12, %14 : vector<16x128xf32>
      %c0_13 = arith.constant 0 : index
      %c0_14 = arith.constant 0 : index
      %16 = vector.load %arg6[%c0_13, %c0_14] : memref<16x128xf32, #tpu.memory_space<vmem>>, vector<16x128xf32>
      tpu.vector_store %arg6[%c0_13, %c0_14], %15 {strides = array<i32>} : memref<16x128xf32, #tpu.memory_space<vmem>>, vector<16x128xf32>,
    } else {
    }
    return
  }
  func.func @transform_0(%arg0: i32, %arg1: i32, %arg2: i32) -> (i32, i32) {
    %c0_i32 = arith.constant 0 : i32
    return %arg0, %arg2 : i32, i32
  }
  func.func @transform_1(%arg0: i32, %arg1: i32, %arg2: i32) -> (i32, i32) {
    %c0_i32 = arith.constant 0 : i32
    return %arg2, %arg1 : i32, i32
  }
  func.func @transform_2(%arg0: i32, %arg1: i32, %arg2: i32) -> (i32, i32) {
    %c0_i32 = arith.constant 0 : i32
    %c0_i32_0 = arith.constant 0 : i32
    return %c0_i32, %arg1 : i32, i32
  }
  func.func @transform_3(%arg0: i32, %arg1: i32, %arg2: i32) -> (i32, i32) {
    %c0_i32 = arith.constant 0 : i32
    return %arg0, %arg1 : i32, i32
  }
}

module attributes {stable_mosaic.version = 11 : i64} {
  func.func @_bn_apply_kernel(%arg0: i32, %arg1: memref<8x128xf32, #tpu.memory_space<vmem>>, %arg2: memref<1x128xf32, #tpu.memory_space<vmem>>, %arg3: memref<1x128xf32, #tpu.memory_space<vmem>>, %arg4: memref<8x128xf32, #tpu.memory_space<vmem>>) attributes {dimension_semantics = [#tpu.dimension_semantics<parallel>], iteration_bounds = array<i64: 1>, scalar_prefetch = 0 : i64, scratch_operands = 0 : i64, tpu.core_type = #tpu.core_type<tc>, window_params = [{transform_indices = @transform_0, window_bounds = array<i64: 8, 128>}, {pipeline_mode = #tpu.pipeline_mode<synchronous>, transform_indices = @transform_1, window_bounds = array<i64: 1, 128>}, {pipeline_mode = #tpu.pipeline_mode<synchronous>, transform_indices = @transform_2, window_bounds = array<i64: 1, 128>}, {transform_indices = @transform_3, window_bounds = array<i64: 8, 128>}]} {
    %c0 = arith.constant 0 : index
    %c0_0 = arith.constant 0 : index
    %0 = vector.load %arg1[%c0, %c0_0] : memref<8x128xf32, #tpu.memory_space<vmem>>, vector<8x128xf32>
    %c0_1 = arith.constant 0 : index
    %c0_2 = arith.constant 0 : index
    %1 = vector.load %arg2[%c0_1, %c0_2] : memref<1x128xf32, #tpu.memory_space<vmem>>, vector<1x128xf32>
    %2 = vector.broadcast %1 : vector<1x128xf32> to vector<8x128xf32>
    %3 = arith.mulf %0, %2 : vector<8x128xf32>
    %c0_3 = arith.constant 0 : index
    %c0_4 = arith.constant 0 : index
    %4 = vector.load %arg3[%c0_3, %c0_4] : memref<1x128xf32, #tpu.memory_space<vmem>>, vector<1x128xf32>
    %5 = vector.broadcast %4 : vector<1x128xf32> to vector<8x128xf32>
    %6 = arith.addf %3, %5 : vector<8x128xf32>
    %cst = arith.constant 0.000000e+00 : f32
    %7 = vector.broadcast %cst : f32 to vector<8x128xf32>
    %8 = arith.maximumf %6, %7 : vector<8x128xf32>
    %c0_5 = arith.constant 0 : index
    %c0_6 = arith.constant 0 : index
    %9 = vector.load %arg4[%c0_5, %c0_6] : memref<8x128xf32, #tpu.memory_space<vmem>>, vector<8x128xf32>
    tpu.vector_store %arg4[%c0_5, %c0_6], %8 {strides = array<i32>} : memref<8x128xf32, #tpu.memory_space<vmem>>, vector<8x128xf32>,
    return
  }
  func.func @transform_0(%arg0: i32) -> (i32, i32) {
    %c0_i32 = arith.constant 0 : i32
    %c0_i32_0 = arith.constant 0 : i32
    return %arg0, %c0_i32 : i32, i32
  }
  func.func @transform_1(%arg0: i32) -> (i32, i32) {
    %c0_i32 = arith.constant 0 : i32
    %c0_i32_0 = arith.constant 0 : i32
    %c0_i32_1 = arith.constant 0 : i32
    return %c0_i32, %c0_i32_0 : i32, i32
  }
  func.func @transform_2(%arg0: i32) -> (i32, i32) {
    %c0_i32 = arith.constant 0 : i32
    %c0_i32_0 = arith.constant 0 : i32
    %c0_i32_1 = arith.constant 0 : i32
    return %c0_i32, %c0_i32_0 : i32, i32
  }
  func.func @transform_3(%arg0: i32) -> (i32, i32) {
    %c0_i32 = arith.constant 0 : i32
    %c0_i32_0 = arith.constant 0 : i32
    return %arg0, %c0_i32 : i32, i32
  }
}

module attributes {stable_mosaic.version = 11 : i64} {
  func.func @_gemm_kernel(%arg0: i32, %arg1: i32, %arg2: i32, %arg3: memref<16x128xbf16, #tpu.memory_space<vmem>>, %arg4: memref<128x256xbf16, #tpu.memory_space<vmem>>, %arg5: memref<1x256xf32, #tpu.memory_space<vmem>>, %arg6: memref<16x256xf32, #tpu.memory_space<vmem>>, %arg7: memref<16x256xf32, #tpu.memory_space<vmem>>) attributes {dimension_semantics = [#tpu.dimension_semantics<parallel>, #tpu.dimension_semantics<parallel>, #tpu.dimension_semantics<arbitrary>], iteration_bounds = array<i64: 1, 1, 5>, scalar_prefetch = 0 : i64, scratch_operands = 1 : i64, tpu.core_type = #tpu.core_type<tc>, window_params = [{transform_indices = @transform_0, window_bounds = array<i64: 16, 128>}, {transform_indices = @transform_1, window_bounds = array<i64: 128, 256>}, {transform_indices = @transform_2, window_bounds = array<i64: 1, 256>}, {transform_indices = @transform_3, window_bounds = array<i64: 16, 256>}]} {
    %c0_i32 = arith.constant 0 : i32
    %0 = arith.cmpi eq, %arg2, %c0_i32 : i32
    %1 = arith.extui %0 : i1 to i32
    %c0_i32_0 = arith.constant 0 : i32
    %2 = arith.cmpi ne, %1, %c0_i32_0 : i32
    scf.if %2 {
      %cst_9 = arith.constant 0.000000e+00 : f32
      %12 = vector.broadcast %cst_9 : f32 to vector<16x256xf32>
      %c0_10 = arith.constant 0 : index
      %c0_11 = arith.constant 0 : index
      %13 = vector.load %arg7[%c0_10, %c0_11] : memref<16x256xf32, #tpu.memory_space<vmem>>, vector<16x256xf32>
      tpu.vector_store %arg7[%c0_10, %c0_11], %12 {strides = array<i32>} : memref<16x256xf32, #tpu.memory_space<vmem>>, vector<16x256xf32>,
    } else {
    }
    %c0 = arith.constant 0 : index
    %c0_1 = arith.constant 0 : index
    %3 = vector.load %arg3[%c0, %c0_1] : memref<16x128xbf16, #tpu.memory_space<vmem>>, vector<16x128xbf16>
    %c0_2 = arith.constant 0 : index
    %c0_3 = arith.constant 0 : index
    %4 = vector.load %arg7[%c0_2, %c0_3] : memref<16x256xf32, #tpu.memory_space<vmem>>, vector<16x256xf32>
    %c0_4 = arith.constant 0 : index
    %c0_5 = arith.constant 0 : index
    %5 = vector.load %arg4[%c0_4, %c0_5] : memref<128x256xbf16, #tpu.memory_space<vmem>>, vector<128x256xbf16>
    %cst = arith.constant dense<0.000000e+00> : vector<16x256xf32>
    %6 = tpu.matmul %3, %5, %cst {dimension_numbers = #tpu.dot_dimension_numbers<[1], [0], [0], [1], [0, 0, 1, 1], [], []>} : vector<16x128xbf16>, vector<128x256xbf16>, vector<16x256xf32> -> vector<16x256xf32>
    %7 = arith.addf %4, %6 : vector<16x256xf32>
    %c0_6 = arith.constant 0 : index
    %c0_7 = arith.constant 0 : index
    %8 = vector.load %arg7[%c0_6, %c0_7] : memref<16x256xf32, #tpu.memory_space<vmem>>, vector<16x256xf32>
    tpu.vector_store %arg7[%c0_6, %c0_7], %7 {strides = array<i32>} : memref<16x256xf32, #tpu.memory_space<vmem>>, vector<16x256xf32>,
    %c4_i32 = arith.constant 4 : i32
    %9 = arith.cmpi eq, %arg2, %c4_i32 : i32
    %10 = arith.extui %9 : i1 to i32
    %c0_i32_8 = arith.constant 0 : i32
    %11 = arith.cmpi ne, %10, %c0_i32_8 : i32
    scf.if %11 {
      %c0_9 = arith.constant 0 : index
      %c0_10 = arith.constant 0 : index
      %12 = vector.load %arg7[%c0_9, %c0_10] : memref<16x256xf32, #tpu.memory_space<vmem>>, vector<16x256xf32>
      %c0_11 = arith.constant 0 : index
      %c0_12 = arith.constant 0 : index
      %13 = vector.load %arg5[%c0_11, %c0_12] : memref<1x256xf32, #tpu.memory_space<vmem>>, vector<1x256xf32>
      %14 = vector.broadcast %13 : vector<1x256xf32> to vector<16x256xf32>
      %15 = arith.addf %12, %14 : vector<16x256xf32>
      %c0_13 = arith.constant 0 : index
      %c0_14 = arith.constant 0 : index
      %16 = vector.load %arg6[%c0_13, %c0_14] : memref<16x256xf32, #tpu.memory_space<vmem>>, vector<16x256xf32>
      tpu.vector_store %arg6[%c0_13, %c0_14], %15 {strides = array<i32>} : memref<16x256xf32, #tpu.memory_space<vmem>>, vector<16x256xf32>,
    } else {
    }
    return
  }
  func.func @transform_0(%arg0: i32, %arg1: i32, %arg2: i32) -> (i32, i32) {
    %c0_i32 = arith.constant 0 : i32
    return %arg0, %arg2 : i32, i32
  }
  func.func @transform_1(%arg0: i32, %arg1: i32, %arg2: i32) -> (i32, i32) {
    %c0_i32 = arith.constant 0 : i32
    return %arg2, %arg1 : i32, i32
  }
  func.func @transform_2(%arg0: i32, %arg1: i32, %arg2: i32) -> (i32, i32) {
    %c0_i32 = arith.constant 0 : i32
    %c0_i32_0 = arith.constant 0 : i32
    return %c0_i32, %arg1 : i32, i32
  }
  func.func @transform_3(%arg0: i32, %arg1: i32, %arg2: i32) -> (i32, i32) {
    %c0_i32 = arith.constant 0 : i32
    return %arg0, %arg1 : i32, i32
  }
}

module attributes {stable_mosaic.version = 11 : i64} {
  func.func @_bn_apply_kernel(%arg0: i32, %arg1: memref<8x128xf32, #tpu.memory_space<vmem>>, %arg2: memref<1x128xf32, #tpu.memory_space<vmem>>, %arg3: memref<1x128xf32, #tpu.memory_space<vmem>>, %arg4: memref<8x128xf32, #tpu.memory_space<vmem>>) attributes {dimension_semantics = [#tpu.dimension_semantics<parallel>], iteration_bounds = array<i64: 1>, scalar_prefetch = 0 : i64, scratch_operands = 0 : i64, tpu.core_type = #tpu.core_type<tc>, window_params = [{transform_indices = @transform_0, window_bounds = array<i64: 8, 128>}, {pipeline_mode = #tpu.pipeline_mode<synchronous>, transform_indices = @transform_1, window_bounds = array<i64: 1, 128>}, {pipeline_mode = #tpu.pipeline_mode<synchronous>, transform_indices = @transform_2, window_bounds = array<i64: 1, 128>}, {transform_indices = @transform_3, window_bounds = array<i64: 8, 128>}]} {
    %c0 = arith.constant 0 : index
    %c0_0 = arith.constant 0 : index
    %0 = vector.load %arg1[%c0, %c0_0] : memref<8x128xf32, #tpu.memory_space<vmem>>, vector<8x128xf32>
    %c0_1 = arith.constant 0 : index
    %c0_2 = arith.constant 0 : index
    %1 = vector.load %arg2[%c0_1, %c0_2] : memref<1x128xf32, #tpu.memory_space<vmem>>, vector<1x128xf32>
    %2 = vector.broadcast %1 : vector<1x128xf32> to vector<8x128xf32>
    %3 = arith.mulf %0, %2 : vector<8x128xf32>
    %c0_3 = arith.constant 0 : index
    %c0_4 = arith.constant 0 : index
    %4 = vector.load %arg3[%c0_3, %c0_4] : memref<1x128xf32, #tpu.memory_space<vmem>>, vector<1x128xf32>
    %5 = vector.broadcast %4 : vector<1x128xf32> to vector<8x128xf32>
    %6 = arith.addf %3, %5 : vector<8x128xf32>
    %c0_5 = arith.constant 0 : index
    %c0_6 = arith.constant 0 : index
    %7 = vector.load %arg4[%c0_5, %c0_6] : memref<8x128xf32, #tpu.memory_space<vmem>>, vector<8x128xf32>
    tpu.vector_store %arg4[%c0_5, %c0_6], %6 {strides = array<i32>} : memref<8x128xf32, #tpu.memory_space<vmem>>, vector<8x128xf32>,
    return
  }
  func.func @transform_0(%arg0: i32) -> (i32, i32) {
    %c0_i32 = arith.constant 0 : i32
    %c0_i32_0 = arith.constant 0 : i32
    return %arg0, %c0_i32 : i32, i32
  }
  func.func @transform_1(%arg0: i32) -> (i32, i32) {
    %c0_i32 = arith.constant 0 : i32
    %c0_i32_0 = arith.constant 0 : i32
    %c0_i32_1 = arith.constant 0 : i32
    return %c0_i32, %c0_i32_0 : i32, i32
  }
  func.func @transform_2(%arg0: i32) -> (i32, i32) {
    %c0_i32 = arith.constant 0 : i32
    %c0_i32_0 = arith.constant 0 : i32
    %c0_i32_1 = arith.constant 0 : i32
    return %c0_i32, %c0_i32_0 : i32, i32
  }
  func.func @transform_3(%arg0: i32) -> (i32, i32) {
    %c0_i32 = arith.constant 0 : i32
    %c0_i32_0 = arith.constant 0 : i32
    return %arg0, %c0_i32 : i32, i32
  }
}

module attributes {stable_mosaic.version = 11 : i64} {
  func.func @_gemm_kernel(%arg0: i32, %arg1: i32, %arg2: i32, %arg3: memref<16x384xbf16, #tpu.memory_space<vmem>>, %arg4: memref<384x128xbf16, #tpu.memory_space<vmem>>, %arg5: memref<1x128xf32, #tpu.memory_space<vmem>>, %arg6: memref<16x128xf32, #tpu.memory_space<vmem>>, %arg7: memref<16x128xf32, #tpu.memory_space<vmem>>) attributes {dimension_semantics = [#tpu.dimension_semantics<parallel>, #tpu.dimension_semantics<parallel>, #tpu.dimension_semantics<arbitrary>], iteration_bounds = array<i64: 1, 1, 3>, scalar_prefetch = 0 : i64, scratch_operands = 1 : i64, tpu.core_type = #tpu.core_type<tc>, window_params = [{transform_indices = @transform_0, window_bounds = array<i64: 16, 384>}, {transform_indices = @transform_1, window_bounds = array<i64: 384, 128>}, {transform_indices = @transform_2, window_bounds = array<i64: 1, 128>}, {transform_indices = @transform_3, window_bounds = array<i64: 16, 128>}]} {
    %c0_i32 = arith.constant 0 : i32
    %0 = arith.cmpi eq, %arg2, %c0_i32 : i32
    %1 = arith.extui %0 : i1 to i32
    %c0_i32_0 = arith.constant 0 : i32
    %2 = arith.cmpi ne, %1, %c0_i32_0 : i32
    scf.if %2 {
      %cst_10 = arith.constant 0.000000e+00 : f32
      %14 = vector.broadcast %cst_10 : f32 to vector<16x128xf32>
      %c0_11 = arith.constant 0 : index
      %c0_12 = arith.constant 0 : index
      %15 = vector.load %arg7[%c0_11, %c0_12] : memref<16x128xf32, #tpu.memory_space<vmem>>, vector<16x128xf32>
      tpu.vector_store %arg7[%c0_11, %c0_12], %14 {strides = array<i32>} : memref<16x128xf32, #tpu.memory_space<vmem>>, vector<16x128xf32>,
    } else {
    }
    %c0 = arith.constant 0 : index
    %c0_1 = arith.constant 0 : index
    %3 = vector.load %arg3[%c0, %c0_1] : memref<16x384xbf16, #tpu.memory_space<vmem>>, vector<16x384xbf16>
    %cst = arith.constant 0.000000e+00 : bf16
    %4 = vector.broadcast %cst : bf16 to vector<16x384xbf16>
    %5 = arith.maximumf %3, %4 : vector<16x384xbf16>
    %c0_2 = arith.constant 0 : index
    %c0_3 = arith.constant 0 : index
    %6 = vector.load %arg7[%c0_2, %c0_3] : memref<16x128xf32, #tpu.memory_space<vmem>>, vector<16x128xf32>
    %c0_4 = arith.constant 0 : index
    %c0_5 = arith.constant 0 : index
    %7 = vector.load %arg4[%c0_4, %c0_5] : memref<384x128xbf16, #tpu.memory_space<vmem>>, vector<384x128xbf16>
    %cst_6 = arith.constant dense<0.000000e+00> : vector<16x128xf32>
    %8 = tpu.matmul %5, %7, %cst_6 {dimension_numbers = #tpu.dot_dimension_numbers<[1], [0], [0], [1], [0, 0, 1, 1], [], []>} : vector<16x384xbf16>, vector<384x128xbf16>, vector<16x128xf32> -> vector<16x128xf32>
    %9 = arith.addf %6, %8 : vector<16x128xf32>
    %c0_7 = arith.constant 0 : index
    %c0_8 = arith.constant 0 : index
    %10 = vector.load %arg7[%c0_7, %c0_8] : memref<16x128xf32, #tpu.memory_space<vmem>>, vector<16x128xf32>
    tpu.vector_store %arg7[%c0_7, %c0_8], %9 {strides = array<i32>} : memref<16x128xf32, #tpu.memory_space<vmem>>, vector<16x128xf32>,
    %c2_i32 = arith.constant 2 : i32
    %11 = arith.cmpi eq, %arg2, %c2_i32 : i32
    %12 = arith.extui %11 : i1 to i32
    %c0_i32_9 = arith.constant 0 : i32
    %13 = arith.cmpi ne, %12, %c0_i32_9 : i32
    scf.if %13 {
      %c0_10 = arith.constant 0 : index
      %c0_11 = arith.constant 0 : index
      %14 = vector.load %arg7[%c0_10, %c0_11] : memref<16x128xf32, #tpu.memory_space<vmem>>, vector<16x128xf32>
      %c0_12 = arith.constant 0 : index
      %c0_13 = arith.constant 0 : index
      %15 = vector.load %arg5[%c0_12, %c0_13] : memref<1x128xf32, #tpu.memory_space<vmem>>, vector<1x128xf32>
      %16 = vector.broadcast %15 : vector<1x128xf32> to vector<16x128xf32>
      %17 = arith.addf %14, %16 : vector<16x128xf32>
      %c0_14 = arith.constant 0 : index
      %c0_15 = arith.constant 0 : index
      %18 = vector.load %arg6[%c0_14, %c0_15] : memref<16x128xf32, #tpu.memory_space<vmem>>, vector<16x128xf32>
      tpu.vector_store %arg6[%c0_14, %c0_15], %17 {strides = array<i32>} : memref<16x128xf32, #tpu.memory_space<vmem>>, vector<16x128xf32>,
    } else {
    }
    return
  }
  func.func @transform_0(%arg0: i32, %arg1: i32, %arg2: i32) -> (i32, i32) {
    %c0_i32 = arith.constant 0 : i32
    return %arg0, %arg2 : i32, i32
  }
  func.func @transform_1(%arg0: i32, %arg1: i32, %arg2: i32) -> (i32, i32) {
    %c0_i32 = arith.constant 0 : i32
    return %arg2, %arg1 : i32, i32
  }
  func.func @transform_2(%arg0: i32, %arg1: i32, %arg2: i32) -> (i32, i32) {
    %c0_i32 = arith.constant 0 : i32
    %c0_i32_0 = arith.constant 0 : i32
    return %c0_i32, %arg1 : i32, i32
  }
  func.func @transform_3(%arg0: i32, %arg1: i32, %arg2: i32) -> (i32, i32) {
    %c0_i32 = arith.constant 0 : i32
    return %arg0, %arg1 : i32, i32
  }
}

module attributes {stable_mosaic.version = 11 : i64} {
  func.func @_bn_apply_kernel(%arg0: i32, %arg1: memref<32x128xf32, #tpu.memory_space<vmem>>, %arg2: memref<1x128xf32, #tpu.memory_space<vmem>>, %arg3: memref<1x128xf32, #tpu.memory_space<vmem>>, %arg4: memref<32x128xf32, #tpu.memory_space<vmem>>) attributes {dimension_semantics = [#tpu.dimension_semantics<parallel>], iteration_bounds = array<i64: 1>, scalar_prefetch = 0 : i64, scratch_operands = 0 : i64, tpu.core_type = #tpu.core_type<tc>, window_params = [{transform_indices = @transform_0, window_bounds = array<i64: 32, 128>}, {pipeline_mode = #tpu.pipeline_mode<synchronous>, transform_indices = @transform_1, window_bounds = array<i64: 1, 128>}, {pipeline_mode = #tpu.pipeline_mode<synchronous>, transform_indices = @transform_2, window_bounds = array<i64: 1, 128>}, {transform_indices = @transform_3, window_bounds = array<i64: 32, 128>}]} {
    %c0 = arith.constant 0 : index
    %c0_0 = arith.constant 0 : index
    %0 = vector.load %arg1[%c0, %c0_0] : memref<32x128xf32, #tpu.memory_space<vmem>>, vector<32x128xf32>
    %c0_1 = arith.constant 0 : index
    %c0_2 = arith.constant 0 : index
    %1 = vector.load %arg2[%c0_1, %c0_2] : memref<1x128xf32, #tpu.memory_space<vmem>>, vector<1x128xf32>
    %2 = vector.broadcast %1 : vector<1x128xf32> to vector<32x128xf32>
    %3 = arith.mulf %0, %2 : vector<32x128xf32>
    %c0_3 = arith.constant 0 : index
    %c0_4 = arith.constant 0 : index
    %4 = vector.load %arg3[%c0_3, %c0_4] : memref<1x128xf32, #tpu.memory_space<vmem>>, vector<1x128xf32>
    %5 = vector.broadcast %4 : vector<1x128xf32> to vector<32x128xf32>
    %6 = arith.addf %3, %5 : vector<32x128xf32>
    %c0_5 = arith.constant 0 : index
    %c0_6 = arith.constant 0 : index
    %7 = vector.load %arg4[%c0_5, %c0_6] : memref<32x128xf32, #tpu.memory_space<vmem>>, vector<32x128xf32>
    tpu.vector_store %arg4[%c0_5, %c0_6], %6 {strides = array<i32>} : memref<32x128xf32, #tpu.memory_space<vmem>>, vector<32x128xf32>,
    return
  }
  func.func @transform_0(%arg0: i32) -> (i32, i32) {
    %c0_i32 = arith.constant 0 : i32
    %c0_i32_0 = arith.constant 0 : i32
    return %arg0, %c0_i32 : i32, i32
  }
  func.func @transform_1(%arg0: i32) -> (i32, i32) {
    %c0_i32 = arith.constant 0 : i32
    %c0_i32_0 = arith.constant 0 : i32
    %c0_i32_1 = arith.constant 0 : i32
    return %c0_i32, %c0_i32_0 : i32, i32
  }
  func.func @transform_2(%arg0: i32) -> (i32, i32) {
    %c0_i32 = arith.constant 0 : i32
    %c0_i32_0 = arith.constant 0 : i32
    %c0_i32_1 = arith.constant 0 : i32
    return %c0_i32, %c0_i32_0 : i32, i32
  }
  func.func @transform_3(%arg0: i32) -> (i32, i32) {
    %c0_i32 = arith.constant 0 : i32
    %c0_i32_0 = arith.constant 0 : i32
    return %arg0, %c0_i32 : i32, i32
  }
}

module attributes {stable_mosaic.version = 11 : i64} {
  func.func @_gemm_kernel(%arg0: i32, %arg1: i32, %arg2: i32, %arg3: memref<32x128xbf16, #tpu.memory_space<vmem>>, %arg4: memref<128x128xbf16, #tpu.memory_space<vmem>>, %arg5: memref<1x128xf32, #tpu.memory_space<vmem>>, %arg6: memref<32x128xf32, #tpu.memory_space<vmem>>, %arg7: memref<32x128xf32, #tpu.memory_space<vmem>>) attributes {dimension_semantics = [#tpu.dimension_semantics<parallel>, #tpu.dimension_semantics<parallel>, #tpu.dimension_semantics<arbitrary>], iteration_bounds = array<i64: 1, 1, 5>, scalar_prefetch = 0 : i64, scratch_operands = 1 : i64, tpu.core_type = #tpu.core_type<tc>, window_params = [{transform_indices = @transform_0, window_bounds = array<i64: 32, 128>}, {transform_indices = @transform_1, window_bounds = array<i64: 128, 128>}, {transform_indices = @transform_2, window_bounds = array<i64: 1, 128>}, {transform_indices = @transform_3, window_bounds = array<i64: 32, 128>}]} {
    %c0_i32 = arith.constant 0 : i32
    %0 = arith.cmpi eq, %arg2, %c0_i32 : i32
    %1 = arith.extui %0 : i1 to i32
    %c0_i32_0 = arith.constant 0 : i32
    %2 = arith.cmpi ne, %1, %c0_i32_0 : i32
    scf.if %2 {
      %cst_10 = arith.constant 0.000000e+00 : f32
      %14 = vector.broadcast %cst_10 : f32 to vector<32x128xf32>
      %c0_11 = arith.constant 0 : index
      %c0_12 = arith.constant 0 : index
      %15 = vector.load %arg7[%c0_11, %c0_12] : memref<32x128xf32, #tpu.memory_space<vmem>>, vector<32x128xf32>
      tpu.vector_store %arg7[%c0_11, %c0_12], %14 {strides = array<i32>} : memref<32x128xf32, #tpu.memory_space<vmem>>, vector<32x128xf32>,
    } else {
    }
    %c0 = arith.constant 0 : index
    %c0_1 = arith.constant 0 : index
    %3 = vector.load %arg3[%c0, %c0_1] : memref<32x128xbf16, #tpu.memory_space<vmem>>, vector<32x128xbf16>
    %cst = arith.constant 0.000000e+00 : bf16
    %4 = vector.broadcast %cst : bf16 to vector<32x128xbf16>
    %5 = arith.maximumf %3, %4 : vector<32x128xbf16>
    %c0_2 = arith.constant 0 : index
    %c0_3 = arith.constant 0 : index
    %6 = vector.load %arg7[%c0_2, %c0_3] : memref<32x128xf32, #tpu.memory_space<vmem>>, vector<32x128xf32>
    %c0_4 = arith.constant 0 : index
    %c0_5 = arith.constant 0 : index
    %7 = vector.load %arg4[%c0_4, %c0_5] : memref<128x128xbf16, #tpu.memory_space<vmem>>, vector<128x128xbf16>
    %cst_6 = arith.constant dense<0.000000e+00> : vector<32x128xf32>
    %8 = tpu.matmul %5, %7, %cst_6 {dimension_numbers = #tpu.dot_dimension_numbers<[1], [0], [0], [1], [0, 0, 1, 1], [], []>} : vector<32x128xbf16>, vector<128x128xbf16>, vector<32x128xf32> -> vector<32x128xf32>
    %9 = arith.addf %6, %8 : vector<32x128xf32>
    %c0_7 = arith.constant 0 : index
    %c0_8 = arith.constant 0 : index
    %10 = vector.load %arg7[%c0_7, %c0_8] : memref<32x128xf32, #tpu.memory_space<vmem>>, vector<32x128xf32>
    tpu.vector_store %arg7[%c0_7, %c0_8], %9 {strides = array<i32>} : memref<32x128xf32, #tpu.memory_space<vmem>>, vector<32x128xf32>,
    %c4_i32 = arith.constant 4 : i32
    %11 = arith.cmpi eq, %arg2, %c4_i32 : i32
    %12 = arith.extui %11 : i1 to i32
    %c0_i32_9 = arith.constant 0 : i32
    %13 = arith.cmpi ne, %12, %c0_i32_9 : i32
    scf.if %13 {
      %c0_10 = arith.constant 0 : index
      %c0_11 = arith.constant 0 : index
      %14 = vector.load %arg7[%c0_10, %c0_11] : memref<32x128xf32, #tpu.memory_space<vmem>>, vector<32x128xf32>
      %c0_12 = arith.constant 0 : index
      %c0_13 = arith.constant 0 : index
      %15 = vector.load %arg5[%c0_12, %c0_13] : memref<1x128xf32, #tpu.memory_space<vmem>>, vector<1x128xf32>
      %16 = vector.broadcast %15 : vector<1x128xf32> to vector<32x128xf32>
      %17 = arith.addf %14, %16 : vector<32x128xf32>
      %c0_14 = arith.constant 0 : index
      %c0_15 = arith.constant 0 : index
      %18 = vector.load %arg6[%c0_14, %c0_15] : memref<32x128xf32, #tpu.memory_space<vmem>>, vector<32x128xf32>
      tpu.vector_store %arg6[%c0_14, %c0_15], %17 {strides = array<i32>} : memref<32x128xf32, #tpu.memory_space<vmem>>, vector<32x128xf32>,
    } else {
    }
    return
  }
  func.func @transform_0(%arg0: i32, %arg1: i32, %arg2: i32) -> (i32, i32) {
    %c0_i32 = arith.constant 0 : i32
    return %arg0, %arg2 : i32, i32
  }
  func.func @transform_1(%arg0: i32, %arg1: i32, %arg2: i32) -> (i32, i32) {
    %c0_i32 = arith.constant 0 : i32
    return %arg2, %arg1 : i32, i32
  }
  func.func @transform_2(%arg0: i32, %arg1: i32, %arg2: i32) -> (i32, i32) {
    %c0_i32 = arith.constant 0 : i32
    %c0_i32_0 = arith.constant 0 : i32
    return %c0_i32, %arg1 : i32, i32
  }
  func.func @transform_3(%arg0: i32, %arg1: i32, %arg2: i32) -> (i32, i32) {
    %c0_i32 = arith.constant 0 : i32
    return %arg0, %arg1 : i32, i32
  }
}

module attributes {stable_mosaic.version = 11 : i64} {
  func.func @_bn_apply_kernel(%arg0: i32, %arg1: memref<128x128xf32, #tpu.memory_space<vmem>>, %arg2: memref<1x128xf32, #tpu.memory_space<vmem>>, %arg3: memref<1x128xf32, #tpu.memory_space<vmem>>, %arg4: memref<128x128xf32, #tpu.memory_space<vmem>>) attributes {dimension_semantics = [#tpu.dimension_semantics<parallel>], iteration_bounds = array<i64: 1>, scalar_prefetch = 0 : i64, scratch_operands = 0 : i64, tpu.core_type = #tpu.core_type<tc>, window_params = [{transform_indices = @transform_0, window_bounds = array<i64: 128, 128>}, {pipeline_mode = #tpu.pipeline_mode<synchronous>, transform_indices = @transform_1, window_bounds = array<i64: 1, 128>}, {pipeline_mode = #tpu.pipeline_mode<synchronous>, transform_indices = @transform_2, window_bounds = array<i64: 1, 128>}, {transform_indices = @transform_3, window_bounds = array<i64: 128, 128>}]} {
    %c0 = arith.constant 0 : index
    %c0_0 = arith.constant 0 : index
    %0 = vector.load %arg1[%c0, %c0_0] : memref<128x128xf32, #tpu.memory_space<vmem>>, vector<128x128xf32>
    %c0_1 = arith.constant 0 : index
    %c0_2 = arith.constant 0 : index
    %1 = vector.load %arg2[%c0_1, %c0_2] : memref<1x128xf32, #tpu.memory_space<vmem>>, vector<1x128xf32>
    %2 = vector.broadcast %1 : vector<1x128xf32> to vector<128x128xf32>
    %3 = arith.mulf %0, %2 : vector<128x128xf32>
    %c0_3 = arith.constant 0 : index
    %c0_4 = arith.constant 0 : index
    %4 = vector.load %arg3[%c0_3, %c0_4] : memref<1x128xf32, #tpu.memory_space<vmem>>, vector<1x128xf32>
    %5 = vector.broadcast %4 : vector<1x128xf32> to vector<128x128xf32>
    %6 = arith.addf %3, %5 : vector<128x128xf32>
    %c0_5 = arith.constant 0 : index
    %c0_6 = arith.constant 0 : index
    %7 = vector.load %arg4[%c0_5, %c0_6] : memref<128x128xf32, #tpu.memory_space<vmem>>, vector<128x128xf32>
    tpu.vector_store %arg4[%c0_5, %c0_6], %6 {strides = array<i32>} : memref<128x128xf32, #tpu.memory_space<vmem>>, vector<128x128xf32>,
    return
  }
  func.func @transform_0(%arg0: i32) -> (i32, i32) {
    %c0_i32 = arith.constant 0 : i32
    %c0_i32_0 = arith.constant 0 : i32
    return %arg0, %c0_i32 : i32, i32
  }
  func.func @transform_1(%arg0: i32) -> (i32, i32) {
    %c0_i32 = arith.constant 0 : i32
    %c0_i32_0 = arith.constant 0 : i32
    %c0_i32_1 = arith.constant 0 : i32
    return %c0_i32, %c0_i32_0 : i32, i32
  }
  func.func @transform_2(%arg0: i32) -> (i32, i32) {
    %c0_i32 = arith.constant 0 : i32
    %c0_i32_0 = arith.constant 0 : i32
    %c0_i32_1 = arith.constant 0 : i32
    return %c0_i32, %c0_i32_0 : i32, i32
  }
  func.func @transform_3(%arg0: i32) -> (i32, i32) {
    %c0_i32 = arith.constant 0 : i32
    %c0_i32_0 = arith.constant 0 : i32
    return %arg0, %c0_i32 : i32, i32
  }
}

module attributes {stable_mosaic.version = 11 : i64} {
  func.func @_gemm_kernel(%arg0: i32, %arg1: i32, %arg2: i32, %arg3: memref<128x384xbf16, #tpu.memory_space<vmem>>, %arg4: memref<384x128xbf16, #tpu.memory_space<vmem>>, %arg5: memref<1x128xf32, #tpu.memory_space<vmem>>, %arg6: memref<128x128xf32, #tpu.memory_space<vmem>>, %arg7: memref<128x128xf32, #tpu.memory_space<vmem>>) attributes {dimension_semantics = [#tpu.dimension_semantics<parallel>, #tpu.dimension_semantics<parallel>, #tpu.dimension_semantics<arbitrary>], iteration_bounds = array<i64: 1, 1, 1>, scalar_prefetch = 0 : i64, scratch_operands = 1 : i64, tpu.core_type = #tpu.core_type<tc>, window_params = [{transform_indices = @transform_0, window_bounds = array<i64: 128, 384>}, {transform_indices = @transform_1, window_bounds = array<i64: 384, 128>}, {transform_indices = @transform_2, window_bounds = array<i64: 1, 128>}, {transform_indices = @transform_3, window_bounds = array<i64: 128, 128>}]} {
    %c0_i32 = arith.constant 0 : i32
    %0 = arith.cmpi eq, %arg2, %c0_i32 : i32
    %1 = arith.extui %0 : i1 to i32
    %c0_i32_0 = arith.constant 0 : i32
    %2 = arith.cmpi ne, %1, %c0_i32_0 : i32
    scf.if %2 {
      %cst_11 = arith.constant 0.000000e+00 : f32
      %14 = vector.broadcast %cst_11 : f32 to vector<128x128xf32>
      %c0_12 = arith.constant 0 : index
      %c0_13 = arith.constant 0 : index
      %15 = vector.load %arg7[%c0_12, %c0_13] : memref<128x128xf32, #tpu.memory_space<vmem>>, vector<128x128xf32>
      tpu.vector_store %arg7[%c0_12, %c0_13], %14 {strides = array<i32>} : memref<128x128xf32, #tpu.memory_space<vmem>>, vector<128x128xf32>,
    } else {
    }
    %c0 = arith.constant 0 : index
    %c0_1 = arith.constant 0 : index
    %3 = vector.load %arg3[%c0, %c0_1] : memref<128x384xbf16, #tpu.memory_space<vmem>>, vector<128x384xbf16>
    %cst = arith.constant 0.000000e+00 : bf16
    %4 = vector.broadcast %cst : bf16 to vector<128x384xbf16>
    %5 = arith.maximumf %3, %4 : vector<128x384xbf16>
    %c0_2 = arith.constant 0 : index
    %c0_3 = arith.constant 0 : index
    %6 = vector.load %arg7[%c0_2, %c0_3] : memref<128x128xf32, #tpu.memory_space<vmem>>, vector<128x128xf32>
    %c0_4 = arith.constant 0 : index
    %c0_5 = arith.constant 0 : index
    %7 = vector.load %arg4[%c0_4, %c0_5] : memref<384x128xbf16, #tpu.memory_space<vmem>>, vector<384x128xbf16>
    %cst_6 = arith.constant dense<0.000000e+00> : vector<128x128xf32>
    %8 = tpu.matmul %5, %7, %cst_6 {dimension_numbers = #tpu.dot_dimension_numbers<[1], [0], [0], [1], [0, 0, 1, 1], [], []>} : vector<128x384xbf16>, vector<384x128xbf16>, vector<128x128xf32> -> vector<128x128xf32>
    %9 = arith.addf %6, %8 : vector<128x128xf32>
    %c0_7 = arith.constant 0 : index
    %c0_8 = arith.constant 0 : index
    %10 = vector.load %arg7[%c0_7, %c0_8] : memref<128x128xf32, #tpu.memory_space<vmem>>, vector<128x128xf32>
    tpu.vector_store %arg7[%c0_7, %c0_8], %9 {strides = array<i32>} : memref<128x128xf32, #tpu.memory_space<vmem>>, vector<128x128xf32>,
    %c0_i32_9 = arith.constant 0 : i32
    %11 = arith.cmpi eq, %arg2, %c0_i32_9 : i32
    %12 = arith.extui %11 : i1 to i32
    %c0_i32_10 = arith.constant 0 : i32
    %13 = arith.cmpi ne, %12, %c0_i32_10 : i32
    scf.if %13 {
      %c0_11 = arith.constant 0 : index
      %c0_12 = arith.constant 0 : index
      %14 = vector.load %arg7[%c0_11, %c0_12] : memref<128x128xf32, #tpu.memory_space<vmem>>, vector<128x128xf32>
      %c0_13 = arith.constant 0 : index
      %c0_14 = arith.constant 0 : index
      %15 = vector.load %arg5[%c0_13, %c0_14] : memref<1x128xf32, #tpu.memory_space<vmem>>, vector<1x128xf32>
      %16 = vector.broadcast %15 : vector<1x128xf32> to vector<128x128xf32>
      %17 = arith.addf %14, %16 : vector<128x128xf32>
      %c0_15 = arith.constant 0 : index
      %c0_16 = arith.constant 0 : index
      %18 = vector.load %arg6[%c0_15, %c0_16] : memref<128x128xf32, #tpu.memory_space<vmem>>, vector<128x128xf32>
      tpu.vector_store %arg6[%c0_15, %c0_16], %17 {strides = array<i32>} : memref<128x128xf32, #tpu.memory_space<vmem>>, vector<128x128xf32>,
    } else {
    }
    return
  }
  func.func @transform_0(%arg0: i32, %arg1: i32, %arg2: i32) -> (i32, i32) {
    %c0_i32 = arith.constant 0 : i32
    return %arg0, %arg2 : i32, i32
  }
  func.func @transform_1(%arg0: i32, %arg1: i32, %arg2: i32) -> (i32, i32) {
    %c0_i32 = arith.constant 0 : i32
    return %arg2, %arg1 : i32, i32
  }
  func.func @transform_2(%arg0: i32, %arg1: i32, %arg2: i32) -> (i32, i32) {
    %c0_i32 = arith.constant 0 : i32
    %c0_i32_0 = arith.constant 0 : i32
    return %c0_i32, %arg1 : i32, i32
  }
  func.func @transform_3(%arg0: i32, %arg1: i32, %arg2: i32) -> (i32, i32) {
    %c0_i32 = arith.constant 0 : i32
    return %arg0, %arg1 : i32, i32
  }
}

module attributes {stable_mosaic.version = 11 : i64} {
  func.func @_bn_stats_kernel(%arg0: i32, %arg1: memref<512x128xf32, #tpu.memory_space<vmem>>, %arg2: memref<1x128xf32, #tpu.memory_space<vmem>>, %arg3: memref<1x128xf32, #tpu.memory_space<vmem>>) attributes {dimension_semantics = [#tpu.dimension_semantics<arbitrary>], iteration_bounds = array<i64: 1>, scalar_prefetch = 0 : i64, scratch_operands = 0 : i64, tpu.core_type = #tpu.core_type<tc>, window_params = [{transform_indices = @transform_0, window_bounds = array<i64: 512, 128>}, {pipeline_mode = #tpu.pipeline_mode<synchronous>, transform_indices = @transform_1, window_bounds = array<i64: 1, 128>}, {pipeline_mode = #tpu.pipeline_mode<synchronous>, transform_indices = @transform_2, window_bounds = array<i64: 1, 128>}]} {
    %c0_i32 = arith.constant 0 : i32
    %0 = arith.cmpi eq, %arg0, %c0_i32 : i32
    %1 = arith.extui %0 : i1 to i32
    %c0_i32_0 = arith.constant 0 : i32
    %2 = arith.cmpi ne, %1, %c0_i32_0 : i32
    scf.if %2 {
      %cst_11 = arith.constant 0.000000e+00 : f32
      %15 = vector.broadcast %cst_11 : f32 to vector<1x128xf32>
      %c0_12 = arith.constant 0 : index
      %c0_13 = arith.constant 0 : index
      %16 = vector.load %arg2[%c0_12, %c0_13] : memref<1x128xf32, #tpu.memory_space<vmem>>, vector<1x128xf32>
      tpu.vector_store %arg2[%c0_12, %c0_13], %15 {strides = array<i32>} : memref<1x128xf32, #tpu.memory_space<vmem>>, vector<1x128xf32>,
      %cst_14 = arith.constant 0.000000e+00 : f32
      %17 = vector.broadcast %cst_14 : f32 to vector<1x128xf32>
      %c0_15 = arith.constant 0 : index
      %c0_16 = arith.constant 0 : index
      %18 = vector.load %arg3[%c0_15, %c0_16] : memref<1x128xf32, #tpu.memory_space<vmem>>, vector<1x128xf32>
      tpu.vector_store %arg3[%c0_15, %c0_16], %17 {strides = array<i32>} : memref<1x128xf32, #tpu.memory_space<vmem>>, vector<1x128xf32>,
    } else {
    }
    %c0 = arith.constant 0 : index
    %c0_1 = arith.constant 0 : index
    %3 = vector.load %arg1[%c0, %c0_1] : memref<512x128xf32, #tpu.memory_space<vmem>>, vector<512x128xf32>
    %c0_2 = arith.constant 0 : index
    %c0_3 = arith.constant 0 : index
    %4 = vector.load %arg2[%c0_2, %c0_3] : memref<1x128xf32, #tpu.memory_space<vmem>>, vector<1x128xf32>
    %cst = arith.constant dense<0.000000e+00> : vector<128xf32>
    %5 = vector.multi_reduction <add>, %3, %cst [0] : vector<512x128xf32> to vector<128xf32>
    %6 = vector.shape_cast %5 : vector<128xf32> to vector<1x128xf32>
    %7 = arith.addf %4, %6 : vector<1x128xf32>
    %c0_4 = arith.constant 0 : index
    %c0_5 = arith.constant 0 : index
    %8 = vector.load %arg2[%c0_4, %c0_5] : memref<1x128xf32, #tpu.memory_space<vmem>>, vector<1x128xf32>
    tpu.vector_store %arg2[%c0_4, %c0_5], %7 {strides = array<i32>} : memref<1x128xf32, #tpu.memory_space<vmem>>, vector<1x128xf32>,
    %c0_6 = arith.constant 0 : index
    %c0_7 = arith.constant 0 : index
    %9 = vector.load %arg3[%c0_6, %c0_7] : memref<1x128xf32, #tpu.memory_space<vmem>>, vector<1x128xf32>
    %10 = arith.mulf %3, %3 : vector<512x128xf32>
    %cst_8 = arith.constant dense<0.000000e+00> : vector<128xf32>
    %11 = vector.multi_reduction <add>, %10, %cst_8 [0] : vector<512x128xf32> to vector<128xf32>
    %12 = vector.shape_cast %11 : vector<128xf32> to vector<1x128xf32>
    %13 = arith.addf %9, %12 : vector<1x128xf32>
    %c0_9 = arith.constant 0 : index
    %c0_10 = arith.constant 0 : index
    %14 = vector.load %arg3[%c0_9, %c0_10] : memref<1x128xf32, #tpu.memory_space<vmem>>, vector<1x128xf32>
    tpu.vector_store %arg3[%c0_9, %c0_10], %13 {strides = array<i32>} : memref<1x128xf32, #tpu.memory_space<vmem>>, vector<1x128xf32>,
    return
  }
  func.func @transform_0(%arg0: i32) -> (i32, i32) {
    %c0_i32 = arith.constant 0 : i32
    %c0_i32_0 = arith.constant 0 : i32
    return %arg0, %c0_i32 : i32, i32
  }
  func.func @transform_1(%arg0: i32) -> (i32, i32) {
    %c0_i32 = arith.constant 0 : i32
    %c0_i32_0 = arith.constant 0 : i32
    %c0_i32_1 = arith.constant 0 : i32
    return %c0_i32, %c0_i32_0 : i32, i32
  }
  func.func @transform_2(%arg0: i32) -> (i32, i32) {
    %c0_i32 = arith.constant 0 : i32
    %c0_i32_0 = arith.constant 0 : i32
    %c0_i32_1 = arith.constant 0 : i32
    return %c0_i32, %c0_i32_0 : i32, i32
  }
}

module attributes {stable_mosaic.version = 11 : i64} {
  func.func @_bn_apply_kernel(%arg0: i32, %arg1: memref<512x128xf32, #tpu.memory_space<vmem>>, %arg2: memref<1x128xf32, #tpu.memory_space<vmem>>, %arg3: memref<1x128xf32, #tpu.memory_space<vmem>>, %arg4: memref<512x128xf32, #tpu.memory_space<vmem>>) attributes {dimension_semantics = [#tpu.dimension_semantics<parallel>], iteration_bounds = array<i64: 1>, scalar_prefetch = 0 : i64, scratch_operands = 0 : i64, tpu.core_type = #tpu.core_type<tc>, window_params = [{transform_indices = @transform_0, window_bounds = array<i64: 512, 128>}, {pipeline_mode = #tpu.pipeline_mode<synchronous>, transform_indices = @transform_1, window_bounds = array<i64: 1, 128>}, {pipeline_mode = #tpu.pipeline_mode<synchronous>, transform_indices = @transform_2, window_bounds = array<i64: 1, 128>}, {transform_indices = @transform_3, window_bounds = array<i64: 512, 128>}]} {
    %c0 = arith.constant 0 : index
    %c0_0 = arith.constant 0 : index
    %0 = vector.load %arg1[%c0, %c0_0] : memref<512x128xf32, #tpu.memory_space<vmem>>, vector<512x128xf32>
    %c0_1 = arith.constant 0 : index
    %c0_2 = arith.constant 0 : index
    %1 = vector.load %arg2[%c0_1, %c0_2] : memref<1x128xf32, #tpu.memory_space<vmem>>, vector<1x128xf32>
    %2 = vector.broadcast %1 : vector<1x128xf32> to vector<512x128xf32>
    %3 = arith.mulf %0, %2 : vector<512x128xf32>
    %c0_3 = arith.constant 0 : index
    %c0_4 = arith.constant 0 : index
    %4 = vector.load %arg3[%c0_3, %c0_4] : memref<1x128xf32, #tpu.memory_space<vmem>>, vector<1x128xf32>
    %5 = vector.broadcast %4 : vector<1x128xf32> to vector<512x128xf32>
    %6 = arith.addf %3, %5 : vector<512x128xf32>
    %c0_5 = arith.constant 0 : index
    %c0_6 = arith.constant 0 : index
    %7 = vector.load %arg4[%c0_5, %c0_6] : memref<512x128xf32, #tpu.memory_space<vmem>>, vector<512x128xf32>
    tpu.vector_store %arg4[%c0_5, %c0_6], %6 {strides = array<i32>} : memref<512x128xf32, #tpu.memory_space<vmem>>, vector<512x128xf32>,
    return
  }
  func.func @transform_0(%arg0: i32) -> (i32, i32) {
    %c0_i32 = arith.constant 0 : i32
    %c0_i32_0 = arith.constant 0 : i32
    return %arg0, %c0_i32 : i32, i32
  }
  func.func @transform_1(%arg0: i32) -> (i32, i32) {
    %c0_i32 = arith.constant 0 : i32
    %c0_i32_0 = arith.constant 0 : i32
    %c0_i32_1 = arith.constant 0 : i32
    return %c0_i32, %c0_i32_0 : i32, i32
  }
  func.func @transform_2(%arg0: i32) -> (i32, i32) {
    %c0_i32 = arith.constant 0 : i32
    %c0_i32_0 = arith.constant 0 : i32
    %c0_i32_1 = arith.constant 0 : i32
    return %c0_i32, %c0_i32_0 : i32, i32
  }
  func.func @transform_3(%arg0: i32) -> (i32, i32) {
    %c0_i32 = arith.constant 0 : i32
    %c0_i32_0 = arith.constant 0 : i32
    return %arg0, %c0_i32 : i32, i32
  }
}

module attributes {stable_mosaic.version = 11 : i64} {
  func.func @_gemm_kernel(%arg0: i32, %arg1: i32, %arg2: i32, %arg3: memref<256x256xbf16, #tpu.memory_space<vmem>>, %arg4: memref<256x128xbf16, #tpu.memory_space<vmem>>, %arg5: memref<1x128xf32, #tpu.memory_space<vmem>>, %arg6: memref<256x128xf32, #tpu.memory_space<vmem>>, %arg7: memref<256x128xf32, #tpu.memory_space<vmem>>) attributes {dimension_semantics = [#tpu.dimension_semantics<parallel>, #tpu.dimension_semantics<parallel>, #tpu.dimension_semantics<arbitrary>], iteration_bounds = array<i64: 2, 1, 1>, scalar_prefetch = 0 : i64, scratch_operands = 1 : i64, tpu.core_type = #tpu.core_type<tc>, window_params = [{transform_indices = @transform_0, window_bounds = array<i64: 256, 256>}, {transform_indices = @transform_1, window_bounds = array<i64: 256, 128>}, {transform_indices = @transform_2, window_bounds = array<i64: 1, 128>}, {transform_indices = @transform_3, window_bounds = array<i64: 256, 128>}]} {
    %c0_i32 = arith.constant 0 : i32
    %0 = arith.cmpi eq, %arg2, %c0_i32 : i32
    %1 = arith.extui %0 : i1 to i32
    %c0_i32_0 = arith.constant 0 : i32
    %2 = arith.cmpi ne, %1, %c0_i32_0 : i32
    scf.if %2 {
      %cst_11 = arith.constant 0.000000e+00 : f32
      %14 = vector.broadcast %cst_11 : f32 to vector<256x128xf32>
      %c0_12 = arith.constant 0 : index
      %c0_13 = arith.constant 0 : index
      %15 = vector.load %arg7[%c0_12, %c0_13] : memref<256x128xf32, #tpu.memory_space<vmem>>, vector<256x128xf32>
      tpu.vector_store %arg7[%c0_12, %c0_13], %14 {strides = array<i32>} : memref<256x128xf32, #tpu.memory_space<vmem>>, vector<256x128xf32>,
    } else {
    }
    %c0 = arith.constant 0 : index
    %c0_1 = arith.constant 0 : index
    %3 = vector.load %arg3[%c0, %c0_1] : memref<256x256xbf16, #tpu.memory_space<vmem>>, vector<256x256xbf16>
    %cst = arith.constant 0.000000e+00 : bf16
    %4 = vector.broadcast %cst : bf16 to vector<256x256xbf16>
    %5 = arith.maximumf %3, %4 : vector<256x256xbf16>
    %c0_2 = arith.constant 0 : index
    %c0_3 = arith.constant 0 : index
    %6 = vector.load %arg7[%c0_2, %c0_3] : memref<256x128xf32, #tpu.memory_space<vmem>>, vector<256x128xf32>
    %c0_4 = arith.constant 0 : index
    %c0_5 = arith.constant 0 : index
    %7 = vector.load %arg4[%c0_4, %c0_5] : memref<256x128xbf16, #tpu.memory_space<vmem>>, vector<256x128xbf16>
    %cst_6 = arith.constant dense<0.000000e+00> : vector<256x128xf32>
    %8 = tpu.matmul %5, %7, %cst_6 {dimension_numbers = #tpu.dot_dimension_numbers<[1], [0], [0], [1], [0, 0, 1, 1], [], []>} : vector<256x256xbf16>, vector<256x128xbf16>, vector<256x128xf32> -> vector<256x128xf32>
    %9 = arith.addf %6, %8 : vector<256x128xf32>
    %c0_7 = arith.constant 0 : index
    %c0_8 = arith.constant 0 : index
    %10 = vector.load %arg7[%c0_7, %c0_8] : memref<256x128xf32, #tpu.memory_space<vmem>>, vector<256x128xf32>
    tpu.vector_store %arg7[%c0_7, %c0_8], %9 {strides = array<i32>} : memref<256x128xf32, #tpu.memory_space<vmem>>, vector<256x128xf32>,
    %c0_i32_9 = arith.constant 0 : i32
    %11 = arith.cmpi eq, %arg2, %c0_i32_9 : i32
    %12 = arith.extui %11 : i1 to i32
    %c0_i32_10 = arith.constant 0 : i32
    %13 = arith.cmpi ne, %12, %c0_i32_10 : i32
    scf.if %13 {
      %c0_11 = arith.constant 0 : index
      %c0_12 = arith.constant 0 : index
      %14 = vector.load %arg7[%c0_11, %c0_12] : memref<256x128xf32, #tpu.memory_space<vmem>>, vector<256x128xf32>
      %c0_13 = arith.constant 0 : index
      %c0_14 = arith.constant 0 : index
      %15 = vector.load %arg5[%c0_13, %c0_14] : memref<1x128xf32, #tpu.memory_space<vmem>>, vector<1x128xf32>
      %16 = vector.broadcast %15 : vector<1x128xf32> to vector<256x128xf32>
      %17 = arith.addf %14, %16 : vector<256x128xf32>
      %cst_15 = arith.constant 0.000000e+00 : f32
      %18 = vector.broadcast %cst_15 : f32 to vector<256x128xf32>
      %19 = arith.maximumf %17, %18 : vector<256x128xf32>
      %c0_16 = arith.constant 0 : index
      %c0_17 = arith.constant 0 : index
      %20 = vector.load %arg6[%c0_16, %c0_17] : memref<256x128xf32, #tpu.memory_space<vmem>>, vector<256x128xf32>
      tpu.vector_store %arg6[%c0_16, %c0_17], %19 {strides = array<i32>} : memref<256x128xf32, #tpu.memory_space<vmem>>, vector<256x128xf32>,
    } else {
    }
    return
  }
  func.func @transform_0(%arg0: i32, %arg1: i32, %arg2: i32) -> (i32, i32) {
    %c0_i32 = arith.constant 0 : i32
    return %arg0, %arg2 : i32, i32
  }
  func.func @transform_1(%arg0: i32, %arg1: i32, %arg2: i32) -> (i32, i32) {
    %c0_i32 = arith.constant 0 : i32
    return %arg2, %arg1 : i32, i32
  }
  func.func @transform_2(%arg0: i32, %arg1: i32, %arg2: i32) -> (i32, i32) {
    %c0_i32 = arith.constant 0 : i32
    %c0_i32_0 = arith.constant 0 : i32
    return %c0_i32, %arg1 : i32, i32
  }
  func.func @transform_3(%arg0: i32, %arg1: i32, %arg2: i32) -> (i32, i32) {
    %c0_i32 = arith.constant 0 : i32
    return %arg0, %arg1 : i32, i32
  }
}

module attributes {stable_mosaic.version = 11 : i64} {
  func.func @_gemm_kernel(%arg0: i32, %arg1: i32, %arg2: i32, %arg3: memref<256x128xbf16, #tpu.memory_space<vmem>>, %arg4: memref<128x128xbf16, #tpu.memory_space<vmem>>, %arg5: memref<1x128xf32, #tpu.memory_space<vmem>>, %arg6: memref<256x128xf32, #tpu.memory_space<vmem>>, %arg7: memref<256x128xf32, #tpu.memory_space<vmem>>) attributes {dimension_semantics = [#tpu.dimension_semantics<parallel>, #tpu.dimension_semantics<parallel>, #tpu.dimension_semantics<arbitrary>], iteration_bounds = array<i64: 8, 1, 1>, scalar_prefetch = 0 : i64, scratch_operands = 1 : i64, tpu.core_type = #tpu.core_type<tc>, window_params = [{transform_indices = @transform_0, window_bounds = array<i64: 256, 128>}, {transform_indices = @transform_1, window_bounds = array<i64: 128, 128>}, {transform_indices = @transform_2, window_bounds = array<i64: 1, 128>}, {transform_indices = @transform_3, window_bounds = array<i64: 256, 128>}]} {
    %c0_i32 = arith.constant 0 : i32
    %0 = arith.cmpi eq, %arg2, %c0_i32 : i32
    %1 = arith.extui %0 : i1 to i32
    %c0_i32_0 = arith.constant 0 : i32
    %2 = arith.cmpi ne, %1, %c0_i32_0 : i32
    scf.if %2 {
      %cst_10 = arith.constant 0.000000e+00 : f32
      %12 = vector.broadcast %cst_10 : f32 to vector<256x128xf32>
      %c0_11 = arith.constant 0 : index
      %c0_12 = arith.constant 0 : index
      %13 = vector.load %arg7[%c0_11, %c0_12] : memref<256x128xf32, #tpu.memory_space<vmem>>, vector<256x128xf32>
      tpu.vector_store %arg7[%c0_11, %c0_12], %12 {strides = array<i32>} : memref<256x128xf32, #tpu.memory_space<vmem>>, vector<256x128xf32>,
    } else {
    }
    %c0 = arith.constant 0 : index
    %c0_1 = arith.constant 0 : index
    %3 = vector.load %arg3[%c0, %c0_1] : memref<256x128xbf16, #tpu.memory_space<vmem>>, vector<256x128xbf16>
    %c0_2 = arith.constant 0 : index
    %c0_3 = arith.constant 0 : index
    %4 = vector.load %arg7[%c0_2, %c0_3] : memref<256x128xf32, #tpu.memory_space<vmem>>, vector<256x128xf32>
    %c0_4 = arith.constant 0 : index
    %c0_5 = arith.constant 0 : index
    %5 = vector.load %arg4[%c0_4, %c0_5] : memref<128x128xbf16, #tpu.memory_space<vmem>>, vector<128x128xbf16>
    %cst = arith.constant dense<0.000000e+00> : vector<256x128xf32>
    %6 = tpu.matmul %3, %5, %cst {dimension_numbers = #tpu.dot_dimension_numbers<[1], [0], [0], [1], [0, 0, 1, 1], [], []>} : vector<256x128xbf16>, vector<128x128xbf16>, vector<256x128xf32> -> vector<256x128xf32>
    %7 = arith.addf %4, %6 : vector<256x128xf32>
    %c0_6 = arith.constant 0 : index
    %c0_7 = arith.constant 0 : index
    %8 = vector.load %arg7[%c0_6, %c0_7] : memref<256x128xf32, #tpu.memory_space<vmem>>, vector<256x128xf32>
    tpu.vector_store %arg7[%c0_6, %c0_7], %7 {strides = array<i32>} : memref<256x128xf32, #tpu.memory_space<vmem>>, vector<256x128xf32>,
    %c0_i32_8 = arith.constant 0 : i32
    %9 = arith.cmpi eq, %arg2, %c0_i32_8 : i32
    %10 = arith.extui %9 : i1 to i32
    %c0_i32_9 = arith.constant 0 : i32
    %11 = arith.cmpi ne, %10, %c0_i32_9 : i32
    scf.if %11 {
      %c0_10 = arith.constant 0 : index
      %c0_11 = arith.constant 0 : index
      %12 = vector.load %arg7[%c0_10, %c0_11] : memref<256x128xf32, #tpu.memory_space<vmem>>, vector<256x128xf32>
      %c0_12 = arith.constant 0 : index
      %c0_13 = arith.constant 0 : index
      %13 = vector.load %arg5[%c0_12, %c0_13] : memref<1x128xf32, #tpu.memory_space<vmem>>, vector<1x128xf32>
      %14 = vector.broadcast %13 : vector<1x128xf32> to vector<256x128xf32>
      %15 = arith.addf %12, %14 : vector<256x128xf32>
      %cst_14 = arith.constant 0.000000e+00 : f32
      %16 = vector.broadcast %cst_14 : f32 to vector<256x128xf32>
      %17 = arith.subf %16, %15 : vector<256x128xf32>
      %18 = math.exp %17 : vector<256x128xf32>
      %cst_15 = arith.constant 1.000000e+00 : f32
      %19 = vector.broadcast %cst_15 : f32 to vector<256x128xf32>
      %20 = arith.addf %19, %18 : vector<256x128xf32>
      %cst_16 = arith.constant 1.000000e+00 : f32
      %21 = vector.broadcast %cst_16 : f32 to vector<256x128xf32>
      %22 = arith.divf %21, %20 : vector<256x128xf32>
      %c0_17 = arith.constant 0 : index
      %c0_18 = arith.constant 0 : index
      %23 = vector.load %arg6[%c0_17, %c0_18] : memref<256x128xf32, #tpu.memory_space<vmem>>, vector<256x128xf32>
      tpu.vector_store %arg6[%c0_17, %c0_18], %22 {strides = array<i32>} : memref<256x128xf32, #tpu.memory_space<vmem>>, vector<256x128xf32>,
    } else {
    }
    return
  }
  func.func @transform_0(%arg0: i32, %arg1: i32, %arg2: i32) -> (i32, i32) {
    %c0_i32 = arith.constant 0 : i32
    return %arg0, %arg2 : i32, i32
  }
  func.func @transform_1(%arg0: i32, %arg1: i32, %arg2: i32) -> (i32, i32) {
    %c0_i32 = arith.constant 0 : i32
    return %arg2, %arg1 : i32, i32
  }
  func.func @transform_2(%arg0: i32, %arg1: i32, %arg2: i32) -> (i32, i32) {
    %c0_i32 = arith.constant 0 : i32
    %c0_i32_0 = arith.constant 0 : i32
    return %c0_i32, %arg1 : i32, i32
  }
  func.func @transform_3(%arg0: i32, %arg1: i32, %arg2: i32) -> (i32, i32) {
    %c0_i32 = arith.constant 0 : i32
    return %arg0, %arg1 : i32, i32
  }
}

</mosaic_0001>

<bundles_post_ra>
// kernel: single_unet_generator_L.27
= control target key start
LH: loop header
LB: loop body
LE: loop exit
PB: predicated region body
PF: predicated region fallthrough
CT: control target
= control target key end

     0   :  { %s1276_s12 = smov 0   ;;  %s1278_s13 = smov 0   ;;  %s1426_s0 = inlined_call_operand.vmem [shape: bf16[512,128], index: 0, kind: input, shape index: {}]   ;;  %s1427_s1 = inlined_call_operand.vmem [shape: bf16[128,128], index: 1, kind: input, shape index: {}]   ;;  %s1428_s2 = inlined_call_operand.vmem [shape: f32[1,128], index: 2, kind: input, shape index: {}]   ;;  %s1429_s3 = inlined_call_operand.vmem [shape: f32[512,128], index: 3, kind: output, shape index: {}]  }
   0x1   :  { %s1280_s14 = smov 0  }
   0x2 LB: > { %s32_s15 = sadd.s32 1, %s1250_s13  ;;  %p1064_p0 = scmp.ge.s32.totalorder %s1254_s14, 1  ;;  %s1254_s14 = sphi %s1280_s14, %s13_s14   ;;  %s1250_s13 = sphi %s1278_s13, %s1431_s13   ;;  %s1246_s12 = sphi %s1276_s12, %s1430_s12  }
   0x3   : > { %p34_p1 = scmp.ge.s32.totalorder %s32_s15, 2  ;;  %p188_p2 = scmp.lt.s32.totalorder %s1254_s14, 3 }
   0x5   : > { %s1433_s15 = smov (%p34_p1, %s32_s15), 0  ;;  %p189_p3 = pnand %p1064_p0, %p188_p2 }
   0x6   : > { %v1208_v0 = vld [vmem:[%s1427_s1] sm:$0xff] (!%p189_p3)   ;;  %s1065_s18 = sshll.u32 (!%p189_p3), %s1246_s12, 5  ;;  %v1209_v1 = vld [vmem:[%s1427_s1 + $0x8] sm:$0xff] (!%p189_p3)   ;;  %v1210_v2 = vld [vmem:[%s1427_s1 + $0x10] sm:$0xff] (!%p189_p3)  }
   0x7   : > { %192 = sbr.rel (%p189_p3) target bundleno = 288 (0x120), region = 32  ;;  %p230_p4 = scmp.lt.s32.totalorder (!%p189_p3), %s1065_s18, 63  ;;  %1120 = vmatprep.subr.bf16.mxu0 (!%p189_p3), %v1208_v0  ;;  %1168 = vmatprep.subr.bf16.mxu1 (!%p189_p3), %v1208_v0  ;;  %v1211_v3 = vld [vmem:[%s1427_s1 + $0x18] sm:$0xff] (!%p189_p3)   ;;  %v1212_v6 = vld [vmem:[%s1427_s1 + $0x20] sm:$0xff] (!%p189_p3)   ;;  %v1213_v7 = vld [vmem:[%s1427_s1 + $0x28] sm:$0xff] (!%p189_p3)  }
   0x8   : > { %1121 = vmatpush3.bf16.msra.mxu0 (!%p189_p3), %v1208_v0  ;;  %1176 = vmatpush3.bf16.msra.mxu1 (!%p189_p3), %v1208_v0  ;;  %v1214_v8 = vld [vmem:[%s1427_s1 + $0x30] sm:$0xff] (!%p189_p3)   ;;  %v1215_v9 = vld [vmem:[%s1427_s1 + $0x38] sm:$0xff] (!%p189_p3)   ;;  %v1345_v24 = vld [vmem:[%s1428_s2] ss:$0 sm:$0xff] (!%p189_p3) }
   0x9   : > { %1122 = vmatprep.subr.bf16.mxu0 (!%p189_p3), %v1209_v1  ;;  %1169 = vmatprep.subr.bf16.mxu1 (!%p189_p3), %v1209_v1 }
   0xc   : > { %1123 = vmatpush3.bf16.msra.mxu0 (!%p189_p3), %v1209_v1  ;;  %1177 = vmatpush3.bf16.msra.mxu1 (!%p189_p3), %v1209_v1 }
   0xd   : > { %1124 = vmatprep.subr.bf16.mxu0 (!%p189_p3), %v1210_v2  ;;  %1170 = vmatprep.subr.bf16.mxu1 (!%p189_p3), %v1210_v2 }
   0xe   : > { %s1435_s18 = smov (!%p230_p4, %s1065_s18), 63 }
   0xf   : > { %s1066_s23 = sshll.u32 %s1435_s18, 2  ;;  %s1068_s12 = sshll.u32 %s1435_s18, 3 }
  0x10   : > { %s1309_s26 = scalar_lea.vmem %s1426_s0, %s1066_s23  ;;  %1125 = vmatpush3.bf16.msra.mxu0 %v1210_v2  ;;  %1178 = vmatpush3.bf16.msra.mxu1 %v1210_v2  ;;  %s1355_s19 = scalar_lea.vmem %s1429_s3, %s1068_s12 }
  0x11   : > { %v1216_v4 = vld [vmem:[%s1309_s26] sm:$0xff]   ;;  %1126 = vmatprep.subr.bf16.mxu0 %v1211_v3  ;;  %1171 = vmatprep.subr.bf16.mxu1 %v1211_v3  ;;  %v1218_v10 = vld [vmem:[%s1309_s26 + $0x8] sm:$0xff]   ;;  %v1220_v12 = vld [vmem:[%s1309_s26 + $0x10] sm:$0xff]  }
  0x12   : > { %v1217_v5 = vld [vmem:[%s1309_s26 + $0x40] sm:$0xff]   ;;  %1136 = vmatprep.mubr.bf16.mxu0 %v1216_v4  ;;  %v1219_v11 = vld [vmem:[%s1309_s26 + $0x48] sm:$0xff]   ;;  %v1221_v13 = vld [vmem:[%s1309_s26 + $0x50] sm:$0xff]  }
  0x13   : > { %1152 = vmatprep.mubr.bf16.mxu1 %v1217_v5  ;;  %v1222_v14 = vld [vmem:[%s1309_s26 + $0x18] sm:$0xff]   ;;  %v1224_v16 = vld [vmem:[%s1309_s26 + $0x20] sm:$0xff]   ;;  %v1226_v18 = vld [vmem:[%s1309_s26 + $0x28] sm:$0xff]  }
  0x14   : > { %1127 = vmatpush3.bf16.msra.mxu0 %v1211_v3  ;;  %1179 = vmatpush3.bf16.msra.mxu1 %v1211_v3  ;;  %v1223_v15 = vld [vmem:[%s1309_s26 + $0x58] sm:$0xff]   ;;  %v1225_v17 = vld [vmem:[%s1309_s26 + $0x60] sm:$0xff]   ;;  %v1227_v19 = vld [vmem:[%s1309_s26 + $0x68] sm:$0xff]  }
  0x15   : > { %1128 = vmatprep.subr.bf16.mxu0 %v1212_v6  ;;  %1172 = vmatprep.subr.bf16.mxu1 %v1212_v6  ;;  %v1228_v20 = vld [vmem:[%s1309_s26 + $0x30] sm:$0xff]   ;;  %v1230_v22 = vld [vmem:[%s1309_s26 + $0x38] sm:$0xff]  }
  0x16   : > { %v1229_v21 = vld [vmem:[%s1309_s26 + $0x70] sm:$0xff]   ;;  %v1231_v23 = vld [vmem:[%s1309_s26 + $0x78] sm:$0xff]  }
  0x18   : > { %1129 = vmatpush3.bf16.msra.mxu0 %v1212_v6  ;;  %1180 = vmatpush3.bf16.msra.mxu1 %v1212_v6 }
  0x19   : > { %1130 = vmatprep.subr.bf16.mxu0 %v1213_v7  ;;  %1173 = vmatprep.subr.bf16.mxu1 %v1213_v7 }
  0x1c   : > { %1131 = vmatpush3.bf16.msra.mxu0 %v1213_v7  ;;  %1181 = vmatpush3.bf16.msra.mxu1 %v1213_v7 }
  0x1d   : > { %1132 = vmatprep.subr.bf16.mxu0 %v1214_v8  ;;  %1174 = vmatprep.subr.bf16.mxu1 %v1214_v8 }
  0x20   : > { %1133 = vmatpush3.bf16.msra.mxu0 %v1214_v8  ;;  %1182 = vmatpush3.bf16.msra.mxu1 %v1214_v8 }
  0x21   : > { %1134 = vmatprep.subr.bf16.mxu0 %v1215_v9  ;;  %1175 = vmatprep.subr.bf16.mxu1 %v1215_v9 }
  0x24   : > { %1135 = vmatpush3.bf16.msra.mxu0 %v1215_v9  ;;  %1183 = vmatpush3.bf16.msra.mxu1 %v1215_v9 }
  0x27   : > { %1137 = vmatmul.mubr.bf16.vlgmr.msra.gmra.mrb[0].mxu0 %v1218_v10  ;;  %1153 = vmatmul.mubr.bf16.vlgmr.msra.gmra.mrb[0].mxu1 %v1219_v11 }
  0x28   : > { %1140 = vmatprep.mubr.bf16.mxu0 %v1220_v12  ;;  %1156 = vmatprep.mubr.bf16.mxu1 %v1221_v13 }
  0x2f   : > { %1141 = vmatmul.mubr.bf16.gmra.mrb[4].mxu0 %v1222_v14  ;;  %1157 = vmatmul.mubr.bf16.gmra.mrb[4].mxu1 %v1223_v15 }
  0x30   : > { %1144 = vmatprep.mubr.bf16.mxu0 %v1224_v16  ;;  %1160 = vmatprep.mubr.bf16.mxu1 %v1225_v17 }
  0x37   : > { %1145 = vmatmul.mubr.bf16.gmra.mrb[8].mxu0 %v1226_v18  ;;  %1161 = vmatmul.mubr.bf16.gmra.mrb[8].mxu1 %v1227_v19 }
  0x38   : > { %1148 = vmatprep.mubr.bf16.mxu0 %v1228_v20  ;;  %1164 = vmatprep.mubr.bf16.mxu1 %v1229_v21 }
  0x3f   : > { %1149 = vmatmul.mubr.bf16.gmra.mrb[12].mxu0 %v1230_v22  ;;  %1165 = vmatmul.mubr.bf16.gmra.mrb[12].mxu1 %v1231_v23 }
  0xfa   : > { %v1138_v25 = vpop.f32.mrb[0].mxu0  ;;  %v1154_v26 = vpop.f32.mrb[0].mxu1 }
  0xfb   : > { %v789_v27 = vadd.f32 %v1138_v25, %v1345_v24  ;;  %v805_v28 = vadd.f32 %v1154_v26, %v1345_v24  ;;  %v554_v29 = vpop.f32.mrb[1].mxu0  ;;  %v618_v30 = vpop.f32.mrb[1].mxu1 }
  0xfc   : > { %v787_v31 = vadd.f32 %v1345_v24, %v554_v29  ;;  %v803_v32 = vadd.f32 %v1345_v24, %v618_v30  ;;  %v1139_v33 = vpop.f32.mrb[2].mxu0  ;;  %v1155_v34 = vpop.f32.mrb[2].mxu1 }
  0xfd   : > { %vm821_vm0 = vcmp.ge.f32.partialorder %v789_v27, 0.0  ;;  %v853_v35 = vmul.f32 0.2, %v789_v27  ;;  %vm837_vm1 = vcmp.ge.f32.partialorder %v805_v28, 0.0  ;;  %v869_v36 = vmul.f32 0.2, %v805_v28 }
  0xfe   : > { %vm819_vm2 = vcmp.ge.f32.partialorder %v787_v31, 0.0  ;;  %v851_v37 = vmul.f32 0.2, %v787_v31  ;;  %vm835_vm3 = vcmp.ge.f32.partialorder %v803_v32, 0.0  ;;  %v867_v38 = vmul.f32 0.2, %v803_v32 }
  0xff   : > { %v885_v39 = vsel %vm821_vm0, %v789_v27, %v853_v35  ;;  %v901_v40 = vsel %vm837_vm1, %v805_v28, %v869_v36  ;;  %v790_v41 = vadd.f32 %v1139_v33, %v1345_v24  ;;  %v806_v42 = vadd.f32 %v1155_v34, %v1345_v24  ;;  %v557_v43 = vpop.f32.mrb[3].mxu0  ;;  %v621_v44 = vpop.f32.mrb[3].mxu1 }
 0x100   : > { %917 = vst [vmem:[%s1355_s19 + $0x10] sm:$0xff] %v885_v39  ;;  %933 = vst [vmem:[%s1355_s19 + $0x90] sm:$0xff] %v901_v40  ;;  %v883_v45 = vsel %vm819_vm2, %v787_v31, %v851_v37  ;;  %v899_v46 = vsel %vm835_vm3, %v803_v32, %v867_v38  ;;  %v788_v47 = vadd.f32 %v1345_v24, %v557_v43 }
 0x101   : > { %v804_v48 = vadd.f32 %v1345_v24, %v621_v44  ;;  %915 = vst [vmem:[%s1355_s19] sm:$0xff] %v883_v45  ;;  %931 = vst [vmem:[%s1355_s19 + $0x80] sm:$0xff] %v899_v46  ;;  %vm822_vm4 = vcmp.ge.f32.partialorder %v790_v41, 0.0  ;;  %v854_v49 = vmul.f32 0.2, %v790_v41  ;;  %vm838_vm5 = vcmp.ge.f32.partialorder %v806_v42, 0.0 }
 0x102   : > { %v870_v50 = vmul.f32 0.2, %v806_v42  ;;  %vm820_vm6 = vcmp.ge.f32.partialorder %v788_v47, 0.0  ;;  %v852_v51 = vmul.f32 0.2, %v788_v47  ;;  %v1142_v55 = vpop.f32.mrb[4].mxu0 }
 0x103   : > { %vm836_vm7 = vcmp.ge.f32.partialorder %v804_v48, 0.0  ;;  %v868_v52 = vmul.f32 0.2, %v804_v48  ;;  %v886_v53 = vsel %vm822_vm4, %v790_v41, %v854_v49  ;;  %v1158_v56 = vpop.f32.mrb[4].mxu1  ;;  %v793_v59 = vadd.f32 %v1142_v55, %v1345_v24  ;;  %v570_v61 = vpop.f32.mrb[5].mxu0 }
 0x104   : > { %v902_v54 = vsel %vm838_vm5, %v806_v42, %v870_v50  ;;  %918 = vst [vmem:[%s1355_s19 + $0x18] sm:$0xff] %v886_v53  ;;  %v884_v57 = vsel %vm820_vm6, %v788_v47, %v852_v51  ;;  %v809_v60 = vadd.f32 %v1158_v56, %v1345_v24  ;;  %v634_v62 = vpop.f32.mrb[5].mxu1  ;;  %v791_v63 = vadd.f32 %v1345_v24, %v570_v61  ;;  %v1143_v1 = vpop.f32.mrb[6].mxu0 }
 0x105   : > { %934 = vst [vmem:[%s1355_s19 + $0x98] sm:$0xff] %v902_v54  ;;  %v900_v58 = vsel %vm836_vm7, %v804_v48, %v868_v52  ;;  %916 = vst [vmem:[%s1355_s19 + $0x8] sm:$0xff] %v884_v57  ;;  %v807_v0 = vadd.f32 %v1345_v24, %v634_v62  ;;  %v1159_v2 = vpop.f32.mrb[6].mxu1  ;;  %vm825_vm8 = vcmp.ge.f32.partialorder %v793_v59, 0.0  ;;  %v857_v3 = vmul.f32 0.2, %v793_v59 }
 0x106   : > { %932 = vst [vmem:[%s1355_s19 + $0x88] sm:$0xff] %v900_v58  ;;  %vm841_vm9 = vcmp.ge.f32.partialorder %v809_v60, 0.0  ;;  %v873_v4 = vmul.f32 0.2, %v809_v60  ;;  %vm823_vm10 = vcmp.ge.f32.partialorder %v791_v63, 0.0  ;;  %v794_v9 = vadd.f32 %v1143_v1, %v1345_v24  ;;  %v573_v11 = vpop.f32.mrb[7].mxu0 }
 0x107   : > { %v855_v5 = vmul.f32 0.2, %v791_v63  ;;  %vm839_vm11 = vcmp.ge.f32.partialorder %v807_v0, 0.0  ;;  %v871_v6 = vmul.f32 0.2, %v807_v0  ;;  %v889_v7 = vsel %vm825_vm8, %v793_v59, %v857_v3  ;;  %v637_v12 = vpop.f32.mrb[7].mxu1 }
 0x108   : > { %v905_v8 = vsel %vm841_vm9, %v809_v60, %v873_v4  ;;  %v810_v10 = vadd.f32 %v1159_v2, %v1345_v24  ;;  %921 = vst [vmem:[%s1355_s19 + $0x30] sm:$0xff] %v889_v7  ;;  %v792_v15 = vadd.f32 %v1345_v24, %v573_v11  ;;  %v808_v16 = vadd.f32 %v1345_v24, %v637_v12 }
 0x109   : > { %937 = vst [vmem:[%s1355_s19 + $0xb0] sm:$0xff] %v905_v8  ;;  %v887_v13 = vsel %vm823_vm10, %v791_v63, %v855_v5  ;;  %v903_v14 = vsel %vm839_vm11, %v807_v0, %v871_v6  ;;  %vm826_vm12 = vcmp.ge.f32.partialorder %v794_v9, 0.0  ;;  %v858_v17 = vmul.f32 0.2, %v794_v9 }
 0x10a   : > { %919 = vst [vmem:[%s1355_s19 + $0x20] sm:$0xff] %v887_v13  ;;  %935 = vst [vmem:[%s1355_s19 + $0xa0] sm:$0xff] %v903_v14  ;;  %vm842_vm13 = vcmp.ge.f32.partialorder %v810_v10, 0.0  ;;  %v874_v18 = vmul.f32 0.2, %v810_v10  ;;  %vm824_vm14 = vcmp.ge.f32.partialorder %v792_v15, 0.0 }
 0x10b   : > { %v856_v19 = vmul.f32 0.2, %v792_v15  ;;  %vm840_vm15 = vcmp.ge.f32.partialorder %v808_v16, 0.0  ;;  %v872_v20 = vmul.f32 0.2, %v808_v16  ;;  %v890_v21 = vsel %vm826_vm12, %v794_v9, %v858_v17  ;;  %v1146_v23 = vpop.f32.mrb[8].mxu0 }
 0x10c   : > { %v906_v22 = vsel %vm842_vm13, %v810_v10, %v874_v18  ;;  %v1162_v25 = vpop.f32.mrb[8].mxu1  ;;  %922 = vst [vmem:[%s1355_s19 + $0x38] sm:$0xff] %v890_v21  ;;  %v797_v28 = vadd.f32 %v1146_v23, %v1345_v24  ;;  %v586_v30 = vpop.f32.mrb[9].mxu0 }
 0x10d   : > { %938 = vst [vmem:[%s1355_s19 + $0xb8] sm:$0xff] %v906_v22  ;;  %v888_v26 = vsel %vm824_vm14, %v792_v15, %v856_v19  ;;  %v904_v27 = vsel %vm840_vm15, %v808_v16, %v872_v20  ;;  %v813_v29 = vadd.f32 %v1162_v25, %v1345_v24  ;;  %v650_v31 = vpop.f32.mrb[9].mxu1  ;;  %v795_v32 = vadd.f32 %v1345_v24, %v586_v30  ;;  %v1147_v34 = vpop.f32.mrb[10].mxu0 }
 0x10e   : > { %920 = vst [vmem:[%s1355_s19 + $0x28] sm:$0xff] %v888_v26  ;;  %936 = vst [vmem:[%s1355_s19 + $0xa8] sm:$0xff] %v904_v27  ;;  %v811_v33 = vadd.f32 %v1345_v24, %v650_v31  ;;  %v1163_v35 = vpop.f32.mrb[10].mxu1  ;;  %vm829_vm0 = vcmp.ge.f32.partialorder %v797_v28, 0.0  ;;  %v861_v36 = vmul.f32 0.2, %v797_v28  ;;  %v798_v42 = vadd.f32 %v1147_v34, %v1345_v24 }
 0x10f   : > { %vm845_vm1 = vcmp.ge.f32.partialorder %v813_v29, 0.0  ;;  %v877_v37 = vmul.f32 0.2, %v813_v29  ;;  %vm827_vm2 = vcmp.ge.f32.partialorder %v795_v32, 0.0  ;;  %v859_v38 = vmul.f32 0.2, %v795_v32 }
 0x110   : > { %vm843_vm3 = vcmp.ge.f32.partialorder %v811_v33, 0.0  ;;  %v875_v39 = vmul.f32 0.2, %v811_v33  ;;  %v893_v40 = vsel %vm829_vm0, %v797_v28, %v861_v36  ;;  %v814_v43 = vadd.f32 %v1163_v35, %v1345_v24  ;;  %v589_v44 = vpop.f32.mrb[11].mxu0  ;;  %v653_v45 = vpop.f32.mrb[11].mxu1 }
 0x111   : > { %v909_v41 = vsel %vm845_vm1, %v813_v29, %v877_v37  ;;  %925 = vst [vmem:[%s1355_s19 + $0x50] sm:$0xff] %v893_v40  ;;  %v891_v46 = vsel %vm827_vm2, %v795_v32, %v859_v38  ;;  %v796_v48 = vadd.f32 %v1345_v24, %v589_v44  ;;  %v812_v49 = vadd.f32 %v1345_v24, %v653_v45 }
 0x112   : > { %941 = vst [vmem:[%s1355_s19 + $0xd0] sm:$0xff] %v909_v41  ;;  %v907_v47 = vsel %vm843_vm3, %v811_v33, %v875_v39  ;;  %v1150_v50 = vpop.f32.mrb[12].mxu0  ;;  %v1166_v51 = vpop.f32.mrb[12].mxu1  ;;  %923 = vst [vmem:[%s1355_s19 + $0x40] sm:$0xff] %v891_v46  ;;  %vm830_vm4 = vcmp.ge.f32.partialorder %v798_v42, 0.0  ;;  %vm846_vm5 = vcmp.ge.f32.partialorder %v814_v43, 0.0 }
 0x113   : > { %939 = vst [vmem:[%s1355_s19 + $0xc0] sm:$0xff] %v907_v47  ;;  %v862_v52 = vmul.f32 0.2, %v798_v42  ;;  %v878_v53 = vmul.f32 0.2, %v814_v43  ;;  %vm828_vm6 = vcmp.ge.f32.partialorder %v796_v48, 0.0  ;;  %v801_v58 = vadd.f32 %v1150_v50, %v1345_v24 }
 0x114   : > { %v860_v54 = vmul.f32 0.2, %v796_v48  ;;  %vm844_vm7 = vcmp.ge.f32.partialorder %v812_v49, 0.0  ;;  %v876_v55 = vmul.f32 0.2, %v812_v49  ;;  %v817_v59 = vadd.f32 %v1166_v51, %v1345_v24  ;;  %v602_v60 = vpop.f32.mrb[13].mxu0 }
 0x115   : > { %v894_v56 = vsel %vm830_vm4, %v798_v42, %v862_v52  ;;  %v910_v57 = vsel %vm846_vm5, %v814_v43, %v878_v53  ;;  %v666_v61 = vpop.f32.mrb[13].mxu1  ;;  %v799_v0 = vadd.f32 %v1345_v24, %v602_v60  ;;  %v1151_v2 = vpop.f32.mrb[14].mxu0  ;;  %vm833_vm8 = vcmp.ge.f32.partialorder %v801_v58, 0.0 }
 0x116   : > { %926 = vst [vmem:[%s1355_s19 + $0x58] sm:$0xff] %v894_v56  ;;  %942 = vst [vmem:[%s1355_s19 + $0xd8] sm:$0xff] %v910_v57  ;;  %v892_v62 = vsel %vm828_vm6, %v796_v48, %v860_v54  ;;  %v908_v63 = vsel %vm844_vm7, %v812_v49, %v876_v55  ;;  %v815_v1 = vadd.f32 %v1345_v24, %v666_v61  ;;  %v1167_v3 = vpop.f32.mrb[14].mxu1  ;;  %v865_v4 = vmul.f32 0.2, %v801_v58  ;;  %v605_v12 = vpop.f32.mrb[15].mxu0 }
 0x117   : > { %924 = vst [vmem:[%s1355_s19 + $0x48] sm:$0xff] %v892_v62  ;;  %940 = vst [vmem:[%s1355_s19 + $0xc8] sm:$0xff] %v908_v63  ;;  %vm849_vm9 = vcmp.ge.f32.partialorder %v817_v59, 0.0  ;;  %v881_v5 = vmul.f32 0.2, %v817_v59  ;;  %vm831_vm10 = vcmp.ge.f32.partialorder %v799_v0, 0.0  ;;  %v802_v10 = vadd.f32 %v1151_v2, %v1345_v24 }
 0x118   : > { %v863_v6 = vmul.f32 0.2, %v799_v0  ;;  %vm847_vm11 = vcmp.ge.f32.partialorder %v815_v1, 0.0  ;;  %v879_v7 = vmul.f32 0.2, %v815_v1  ;;  %v897_v8 = vsel %vm833_vm8, %v801_v58, %v865_v4  ;;  %v669_v13 = vpop.f32.mrb[15].mxu1 }
 0x119   : > { %v913_v9 = vsel %vm849_vm9, %v817_v59, %v881_v5  ;;  %v818_v11 = vadd.f32 %v1167_v3, %v1345_v24  ;;  %929 = vst [vmem:[%s1355_s19 + $0x70] sm:$0xff] %v897_v8  ;;  %v800_v16 = vadd.f32 %v1345_v24, %v605_v12  ;;  %v816_v17 = vadd.f32 %v1345_v24, %v669_v13 }
 0x11a   : > { %945 = vst [vmem:[%s1355_s19 + $0xf0] sm:$0xff] %v913_v9  ;;  %v895_v14 = vsel %vm831_vm10, %v799_v0, %v863_v6  ;;  %v911_v15 = vsel %vm847_vm11, %v815_v1, %v879_v7  ;;  %vm834_vm12 = vcmp.ge.f32.partialorder %v802_v10, 0.0  ;;  %v866_v18 = vmul.f32 0.2, %v802_v10 }
 0x11b   : > { %927 = vst [vmem:[%s1355_s19 + $0x60] sm:$0xff] %v895_v14  ;;  %943 = vst [vmem:[%s1355_s19 + $0xe0] sm:$0xff] %v911_v15  ;;  %vm850_vm13 = vcmp.ge.f32.partialorder %v818_v11, 0.0  ;;  %v882_v19 = vmul.f32 0.2, %v818_v11  ;;  %vm832_vm14 = vcmp.ge.f32.partialorder %v800_v16, 0.0 }
 0x11c   : > { %v864_v20 = vmul.f32 0.2, %v800_v16  ;;  %vm848_vm15 = vcmp.ge.f32.partialorder %v816_v17, 0.0  ;;  %v880_v21 = vmul.f32 0.2, %v816_v17  ;;  %v898_v22 = vsel %vm834_vm12, %v802_v10, %v866_v18 }
 0x11d   : > { %v914_v23 = vsel %vm850_vm13, %v818_v11, %v882_v19  ;;  %930 = vst [vmem:[%s1355_s19 + $0x78] sm:$0xff] %v898_v22 }
 0x11e   : > { %946 = vst [vmem:[%s1355_s19 + $0xf8] sm:$0xff] %v914_v23  ;;  %v896_v25 = vsel %vm832_vm14, %v800_v16, %v864_v20  ;;  %v912_v26 = vsel %vm848_vm15, %v816_v17, %v880_v21 }
 0x11f   : > { %928 = vst [vmem:[%s1355_s19 + $0x68] sm:$0xff] %v896_v25  ;;  %944 = vst [vmem:[%s1355_s19 + $0xe8] sm:$0xff] %v912_v26 }
 0x120 PF: > { %s13_s14 = sadd.s32 1, %s1254_s14   ;;  %s1430_s12 = smov %s1250_s13 }
 0x121   : > { %p10_p5 = scmp.ge.s32.totalorder %s13_s14, 4   ;;  %s1431_s13 = smov %s1433_s15 }
 0x123   :  { %12 = sbr.rel (!%p10_p5) target bundleno = 2 (0x2), region = 76 }

// kernel: single_unet_generator_L.28
= control target key start
LH: loop header
LB: loop body
LE: loop exit
PB: predicated region body
PF: predicated region fallthrough
CT: control target
= control target key end

     0   :  { %s586_s1 = inlined_call_operand.vmem [shape: bf16[128,128], index: 1, kind: input, shape index: {}]   ;;  %s587_s0 = inlined_call_operand.vmem [shape: bf16[128,128], index: 0, kind: input, shape index: {}]   ;;  %s588_s2 = inlined_call_operand.vmem [shape: f32[1,128], index: 2, kind: input, shape index: {}]   ;;  %s589_s3 = inlined_call_operand.vmem [shape: f32[128,128], index: 3, kind: output, shape index: {}]  }
   0x1   :  { %v451_v0 = vld [vmem:[%s586_s1] sm:$0xff]   ;;  %v452_v1 = vld [vmem:[%s586_s1 + $0x8] sm:$0xff]   ;;  %v453_v2 = vld [vmem:[%s586_s1 + $0x10] sm:$0xff]  }
   0x2   :  { %403 = vmatprep.subr.bf16.mxu0 %v451_v0  ;;  %435 = vmatprep.subr.bf16.mxu1 %v451_v0  ;;  %v454_v3 = vld [vmem:[%s586_s1 + $0x18] sm:$0xff]   ;;  %v459_v4 = vld [vmem:[%s587_s0] sm:$0xff]   ;;  %v456_v7 = vld [vmem:[%s586_s1 + $0x28] sm:$0xff]  }
   0x3   :  { %404 = vmatpush3.bf16.msra.mxu0 %v451_v0  ;;  %443 = vmatpush3.bf16.msra.mxu1 %v451_v0  ;;  %v460_v5 = vld [vmem:[%s587_s0 + $0x20] sm:$0xff]   ;;  %v457_v8 = vld [vmem:[%s586_s1 + $0x30] sm:$0xff]   ;;  %v458_v9 = vld [vmem:[%s586_s1 + $0x38] sm:$0xff]  }
   0x4   :  { %405 = vmatprep.subr.bf16.mxu0 %v452_v1  ;;  %436 = vmatprep.subr.bf16.mxu1 %v452_v1  ;;  %v455_v6 = vld [vmem:[%s586_s1 + $0x20] sm:$0xff]   ;;  %v461_v10 = vld [vmem:[%s587_s0 + $0x8] sm:$0xff]   ;;  %v463_v12 = vld [vmem:[%s587_s0 + $0x10] sm:$0xff]  }
   0x5   :  { %419 = vmatprep.mubr.bf16.mxu0 %v459_v4  ;;  %427 = vmatprep.mubr.bf16.mxu1 %v460_v5  ;;  %v462_v11 = vld [vmem:[%s587_s0 + $0x28] sm:$0xff]   ;;  %v464_v13 = vld [vmem:[%s587_s0 + $0x30] sm:$0xff]   ;;  %v465_v14 = vld [vmem:[%s587_s0 + $0x18] sm:$0xff]  }
   0x6   :  { %v466_v15 = vld [vmem:[%s587_s0 + $0x38] sm:$0xff]   ;;  %v386_v16 = vld [vmem:[%s588_s2] ss:$0 sm:$0xff] }
   0x7   :  { %406 = vmatpush3.bf16.msra.mxu0 %v452_v1  ;;  %444 = vmatpush3.bf16.msra.mxu1 %v452_v1 }
   0x8   :  { %407 = vmatprep.subr.bf16.mxu0 %v453_v2  ;;  %437 = vmatprep.subr.bf16.mxu1 %v453_v2 }
   0xb   :  { %408 = vmatpush3.bf16.msra.mxu0 %v453_v2  ;;  %445 = vmatpush3.bf16.msra.mxu1 %v453_v2 }
   0xc   :  { %409 = vmatprep.subr.bf16.mxu0 %v454_v3  ;;  %438 = vmatprep.subr.bf16.mxu1 %v454_v3 }
   0xf   :  { %410 = vmatpush3.bf16.msra.mxu0 %v454_v3  ;;  %446 = vmatpush3.bf16.msra.mxu1 %v454_v3 }
  0x10   :  { %411 = vmatprep.subr.bf16.mxu0 %v455_v6  ;;  %439 = vmatprep.subr.bf16.mxu1 %v455_v6 }
  0x13   :  { %412 = vmatpush3.bf16.msra.mxu0 %v455_v6  ;;  %447 = vmatpush3.bf16.msra.mxu1 %v455_v6 }
  0x14   :  { %413 = vmatprep.subr.bf16.mxu0 %v456_v7  ;;  %440 = vmatprep.subr.bf16.mxu1 %v456_v7 }
  0x17   :  { %414 = vmatpush3.bf16.msra.mxu0 %v456_v7  ;;  %448 = vmatpush3.bf16.msra.mxu1 %v456_v7 }
  0x18   :  { %415 = vmatprep.subr.bf16.mxu0 %v457_v8  ;;  %441 = vmatprep.subr.bf16.mxu1 %v457_v8 }
  0x1b   :  { %416 = vmatpush3.bf16.msra.mxu0 %v457_v8  ;;  %449 = vmatpush3.bf16.msra.mxu1 %v457_v8 }
  0x1c   :  { %417 = vmatprep.subr.bf16.mxu0 %v458_v9  ;;  %442 = vmatprep.subr.bf16.mxu1 %v458_v9 }
  0x1f   :  { %418 = vmatpush3.bf16.msra.mxu0 %v458_v9  ;;  %450 = vmatpush3.bf16.msra.mxu1 %v458_v9 }
  0x22   :  { %420 = vmatmul.mubr.bf16.vlgmr.msra.gmra.mrb[0].mxu0 %v461_v10  ;;  %428 = vmatmul.mubr.bf16.vlgmr.msra.gmra.mrb[0].mxu1 %v462_v11 }
  0x23   :  { %423 = vmatprep.mubr.bf16.mxu0 %v463_v12  ;;  %431 = vmatprep.mubr.bf16.mxu1 %v464_v13 }
  0x2a   :  { %424 = vmatmul.mubr.bf16.gmra.mrb[4].mxu0 %v465_v14  ;;  %432 = vmatmul.mubr.bf16.gmra.mrb[4].mxu1 %v466_v15 }
  0xf5   :  { %v421_v17 = vpop.f32.mrb[0].mxu0  ;;  %v429_v18 = vpop.f32.mrb[0].mxu1 }
  0xf6   :  { %v336_v19 = vadd.f32 %v421_v17, %v386_v16  ;;  %v344_v20 = vadd.f32 %v429_v18, %v386_v16  ;;  %v213_v21 = vpop.f32.mrb[1].mxu0  ;;  %v245_v22 = vpop.f32.mrb[1].mxu1 }
  0xf7   :  { %v334_v23 = vadd.f32 %v386_v16, %v213_v21  ;;  %v342_v24 = vadd.f32 %v386_v16, %v245_v22  ;;  %v422_v25 = vpop.f32.mrb[2].mxu0  ;;  %v430_v26 = vpop.f32.mrb[2].mxu1 }
  0xf8   :  { %352 = vst [vmem:[%s589_s3 + $0x10] sm:$0xff] %v336_v19  ;;  %360 = vst [vmem:[%s589_s3 + $0x50] sm:$0xff] %v344_v20  ;;  %v337_v27 = vadd.f32 %v422_v25, %v386_v16  ;;  %v345_v28 = vadd.f32 %v430_v26, %v386_v16  ;;  %v216_v29 = vpop.f32.mrb[3].mxu0  ;;  %v248_v30 = vpop.f32.mrb[3].mxu1 }
  0xf9   :  { %350 = vst [vmem:[%s589_s3] sm:$0xff] %v334_v23  ;;  %358 = vst [vmem:[%s589_s3 + $0x40] sm:$0xff] %v342_v24  ;;  %v335_v31 = vadd.f32 %v386_v16, %v216_v29  ;;  %v343_v32 = vadd.f32 %v386_v16, %v248_v30 }
  0xfa   :  { %353 = vst [vmem:[%s589_s3 + $0x18] sm:$0xff] %v337_v27  ;;  %361 = vst [vmem:[%s589_s3 + $0x58] sm:$0xff] %v345_v28 }
  0xfb   :  { %351 = vst [vmem:[%s589_s3 + $0x8] sm:$0xff] %v335_v31  ;;  %359 = vst [vmem:[%s589_s3 + $0x48] sm:$0xff] %v343_v32 }
  0xfd   :  { %v425_v33 = vpop.f32.mrb[4].mxu0  ;;  %v433_v34 = vpop.f32.mrb[4].mxu1 }
  0xfe   :  { %v340_v35 = vadd.f32 %v425_v33, %v386_v16  ;;  %v348_v36 = vadd.f32 %v433_v34, %v386_v16  ;;  %v229_v37 = vpop.f32.mrb[5].mxu0  ;;  %v261_v38 = vpop.f32.mrb[5].mxu1 }
  0xff   :  { %v338_v39 = vadd.f32 %v386_v16, %v229_v37  ;;  %v346_v40 = vadd.f32 %v386_v16, %v261_v38  ;;  %v426_v41 = vpop.f32.mrb[6].mxu0  ;;  %v434_v42 = vpop.f32.mrb[6].mxu1 }
 0x100   :  { %356 = vst [vmem:[%s589_s3 + $0x30] sm:$0xff] %v340_v35  ;;  %364 = vst [vmem:[%s589_s3 + $0x70] sm:$0xff] %v348_v36  ;;  %v341_v43 = vadd.f32 %v426_v41, %v386_v16  ;;  %v349_v44 = vadd.f32 %v434_v42, %v386_v16  ;;  %v232_v45 = vpop.f32.mrb[7].mxu0  ;;  %v264_v46 = vpop.f32.mrb[7].mxu1 }
 0x101   :  { %354 = vst [vmem:[%s589_s3 + $0x20] sm:$0xff] %v338_v39  ;;  %362 = vst [vmem:[%s589_s3 + $0x60] sm:$0xff] %v346_v40  ;;  %v339_v47 = vadd.f32 %v386_v16, %v232_v45  ;;  %v347_v48 = vadd.f32 %v386_v16, %v264_v46 }
 0x102   :  { %357 = vst [vmem:[%s589_s3 + $0x38] sm:$0xff] %v341_v43  ;;  %365 = vst [vmem:[%s589_s3 + $0x78] sm:$0xff] %v349_v44 }
 0x103   :  { %355 = vst [vmem:[%s589_s3 + $0x28] sm:$0xff] %v339_v47  ;;  %363 = vst [vmem:[%s589_s3 + $0x68] sm:$0xff] %v347_v48 }

// kernel: single_unet_generator_L.29
= control target key start
LH: loop header
LB: loop body
LE: loop exit
PB: predicated region body
PF: predicated region fallthrough
CT: control target
= control target key end

     0   :  { %v105_v0 = vmov 0.0   ;;  %s187_s1 = inlined_call_operand.vmem [shape: f32[1,128], index: 1, kind: output, shape index: {0}]   ;;  %s188_s2 = inlined_call_operand.vmem [shape: f32[1,128], index: 2, kind: output, shape index: {1}]   ;;  %s189_s0 = inlined_call_operand.vmem [shape: f32[128,128], index: 0, kind: input, shape index: {}]  }
   0x1   :  { %14 = vst [vmem:[%s187_s1] sm:$0x1] %v105_v0  ;;  %15 = vst [vmem:[%s188_s2] sm:$0x1] %v105_v0  ;;  %v16_v1 = vld [vmem:[%s189_s0] sm:$0xff]  ;;  %v17_v2 = vld [vmem:[%s189_s0 + $0x8] sm:$0xff] }
   0x2   :  { %v18_v3 = vld [vmem:[%s189_s0 + $0x10] sm:$0xff]  ;;  %v19_v4 = vld [vmem:[%s189_s0 + $0x18] sm:$0xff]  ;;  %v33_v5 = vadd.f32 %v17_v2, %v16_v1  ;;  %v57_v6 = vmul.f32 %v16_v1, %v16_v1  ;;  %v58_v7 = vmul.f32 %v17_v2, %v17_v2  ;;  %v20_v9 = vld [vmem:[%s189_s0 + $0x20] sm:$0xff] }
   0x3   :  { %v59_v8 = vmul.f32 %v18_v3, %v18_v3  ;;  %v60_v11 = vmul.f32 %v19_v4, %v19_v4  ;;  %v21_v13 = vld [vmem:[%s189_s0 + $0x28] sm:$0xff]  ;;  %v61_v15 = vmul.f32 %v20_v9, %v20_v9  ;;  %v22_v17 = vld [vmem:[%s189_s0 + $0x30] sm:$0xff]  ;;  %v23_v21 = vld [vmem:[%s189_s0 + $0x38] sm:$0xff] }
   0x4   :  { %v34_v10 = vadd.f32 %v33_v5, %v18_v3  ;;  %v73_v12 = vadd.f32 %v58_v7, %v57_v6  ;;  %v62_v19 = vmul.f32 %v21_v13, %v21_v13  ;;  %v63_v23 = vmul.f32 %v22_v17, %v22_v17  ;;  %v24_v25 = vld [vmem:[%s189_s0 + $0x40] sm:$0xff]  ;;  %v25_v29 = vld [vmem:[%s189_s0 + $0x48] sm:$0xff]  ;;  %v26_v33 = vld [vmem:[%s189_s0 + $0x50] sm:$0xff] }
   0x5   :  { %v64_v27 = vmul.f32 %v23_v21, %v23_v21  ;;  %v65_v31 = vmul.f32 %v24_v25, %v24_v25  ;;  %v66_v35 = vmul.f32 %v25_v29, %v25_v29  ;;  %v27_v37 = vld [vmem:[%s189_s0 + $0x58] sm:$0xff]  ;;  %v67_v39 = vmul.f32 %v26_v33, %v26_v33  ;;  %v28_v41 = vld [vmem:[%s189_s0 + $0x60] sm:$0xff]  ;;  %v29_v45 = vld [vmem:[%s189_s0 + $0x68] sm:$0xff] }
   0x6   :  { %v35_v14 = vadd.f32 %v34_v10, %v19_v4  ;;  %v74_v16 = vadd.f32 %v73_v12, %v59_v8  ;;  %v68_v43 = vmul.f32 %v27_v37, %v27_v37  ;;  %v69_v47 = vmul.f32 %v28_v41, %v28_v41  ;;  %v30_v49 = vld [vmem:[%s189_s0 + $0x70] sm:$0xff]  ;;  %v31_v53 = vld [vmem:[%s189_s0 + $0x78] sm:$0xff] }
   0x7   :  { %v70_v51 = vmul.f32 %v29_v45, %v29_v45  ;;  %v71_v55 = vmul.f32 %v30_v49, %v30_v49  ;;  %v72_v58 = vmul.f32 %v31_v53, %v31_v53 }
   0x8   :  { %v36_v18 = vadd.f32 %v35_v14, %v20_v9  ;;  %v75_v20 = vadd.f32 %v74_v16, %v60_v11  ;;  %v32_v7 = vld [vmem:[%s187_s1] sm:$0x1] }
   0x9   :  { %v56_v12 = vld [vmem:[%s188_s2] sm:$0x1] }
   0xa   :  { %v37_v22 = vadd.f32 %v36_v18, %v21_v13  ;;  %v76_v24 = vadd.f32 %v75_v20, %v61_v15 }
   0xc   :  { %v38_v26 = vadd.f32 %v37_v22, %v22_v17  ;;  %v77_v28 = vadd.f32 %v76_v24, %v62_v19 }
   0xe   :  { %v39_v30 = vadd.f32 %v38_v26, %v23_v21  ;;  %v78_v32 = vadd.f32 %v77_v28, %v63_v23 }
  0x10   :  { %v40_v34 = vadd.f32 %v39_v30, %v24_v25  ;;  %v79_v36 = vadd.f32 %v78_v32, %v64_v27 }
  0x12   :  { %v41_v38 = vadd.f32 %v40_v34, %v25_v29  ;;  %v80_v40 = vadd.f32 %v79_v36, %v65_v31 }
  0x14   :  { %v42_v42 = vadd.f32 %v41_v38, %v26_v33  ;;  %v81_v44 = vadd.f32 %v80_v40, %v66_v35 }
  0x16   :  { %v43_v46 = vadd.f32 %v42_v42, %v27_v37  ;;  %v82_v48 = vadd.f32 %v81_v44, %v67_v39 }
  0x18   :  { %v44_v50 = vadd.f32 %v43_v46, %v28_v41  ;;  %v83_v52 = vadd.f32 %v82_v48, %v68_v43 }
  0x1a   :  { %v45_v54 = vadd.f32 %v44_v50, %v29_v45  ;;  %v84_v56 = vadd.f32 %v83_v52, %v69_v47 }
  0x1c   :  { %v46_v57 = vadd.f32 %v45_v54, %v30_v49  ;;  %v85_v59 = vadd.f32 %v84_v56, %v70_v51 }
  0x1e   :  { %v47_v60 = vadd.f32 %v46_v57, %v31_v53  ;;  %v86_v61 = vadd.f32 %v85_v59, %v71_v55 }
  0x20   :  { %v48_v62 = vrot.slane %v47_v60, 4  ;;  %v87_v63 = vadd.f32 %v86_v61, %v72_v58 }
  0x22   :  { %v49_v0 = vadd.f32 %v48_v62, %v47_v60  ;;  %v88_v1 = vrot.slane %v87_v63, 4 }
  0x24   :  { %v50_v2 = vrot.slane %v49_v0, 2  ;;  %v89_v3 = vadd.f32 %v88_v1, %v87_v63 }
  0x26   :  { %v51_v4 = vadd.f32 %v50_v2, %v49_v0  ;;  %v90_v5 = vrot.slane %v89_v3, 2 }
  0x28   :  { %v52_v6 = vrot.slane %v51_v4, 1  ;;  %v91_v8 = vadd.f32 %v90_v5, %v89_v3 }
  0x2a   :  { %v53_v9 = vadd.f32 %v52_v6, %v51_v4  ;;  %v92_v10 = vrot.slane %v91_v8, 1 }
  0x2c   :  { %v54_v11 = vadd.f32 %v53_v9, %v32_v7  ;;  %v93_v13 = vadd.f32 %v92_v10, %v91_v8 }
  0x2e   :  { %55 = vst [vmem:[%s187_s1] sm:$0x1] %v54_v11  ;;  %v94_v14 = vadd.f32 %v93_v13, %v56_v12 }
  0x30   :  { %95 = vst [vmem:[%s188_s2] sm:$0x1] %v94_v14 }

// kernel: single_unet_generator_L.30
= control target key start
LH: loop header
LB: loop body
LE: loop exit
PB: predicated region body
PF: predicated region fallthrough
CT: control target
= control target key end

     0   :  { %s305_s0 = inlined_call_operand.vmem [shape: f32[128,128], index: 0, kind: input, shape index: {}]   ;;  %s306_s1 = inlined_call_operand.vmem [shape: f32[1,128], index: 1, kind: input, shape index: {}]   ;;  %s307_s2 = inlined_call_operand.vmem [shape: f32[1,128], index: 2, kind: input, shape index: {}]   ;;  %s308_s3 = inlined_call_operand.vmem [shape: f32[128,128], index: 3, kind: output, shape index: {}]  }
   0x1   :  { %v14_v0 = vld [vmem:[%s305_s0] sm:$0xff]  ;;  %v15_v4 = vld [vmem:[%s305_s0 + $0x8] sm:$0xff]  ;;  %v16_v5 = vld [vmem:[%s305_s0 + $0x10] sm:$0xff] }
   0x2   :  { %v172_v1 = vld [vmem:[%s306_s1] ss:$0 sm:$0xff]  ;;  %v17_v6 = vld [vmem:[%s305_s0 + $0x18] sm:$0xff]  ;;  %v19_v11 = vld [vmem:[%s305_s0 + $0x28] sm:$0xff] }
   0x3   :  { %v177_v2 = vld [vmem:[%s307_s2] ss:$0 sm:$0xff]  ;;  %v37_v3 = vmul.f32 %v172_v1, %v14_v0  ;;  %v38_v7 = vmul.f32 %v172_v1, %v15_v4  ;;  %v39_v8 = vmul.f32 %v172_v1, %v16_v5  ;;  %v40_v9 = vmul.f32 %v172_v1, %v17_v6  ;;  %v20_v12 = vld [vmem:[%s305_s0 + $0x30] sm:$0xff]  ;;  %v21_v17 = vld [vmem:[%s305_s0 + $0x38] sm:$0xff] }
   0x4   :  { %v18_v10 = vld [vmem:[%s305_s0 + $0x20] sm:$0xff]  ;;  %v42_v15 = vmul.f32 %v172_v1, %v19_v11  ;;  %v43_v16 = vmul.f32 %v172_v1, %v20_v12  ;;  %v44_v21 = vmul.f32 %v172_v1, %v21_v17  ;;  %v23_v30 = vld [vmem:[%s305_s0 + $0x48] sm:$0xff]  ;;  %v24_v31 = vld [vmem:[%s305_s0 + $0x50] sm:$0xff] }
   0x5   :  { %v60_v13 = vadd.f32 %v177_v2, %v37_v3  ;;  %v41_v14 = vmul.f32 %v172_v1, %v18_v10  ;;  %v61_v18 = vadd.f32 %v177_v2, %v38_v7  ;;  %v62_v19 = vadd.f32 %v177_v2, %v39_v8  ;;  %v22_v25 = vld [vmem:[%s305_s0 + $0x40] sm:$0xff]  ;;  %v25_v43 = vld [vmem:[%s305_s0 + $0x58] sm:$0xff]  ;;  %v27_v45 = vld [vmem:[%s305_s0 + $0x68] sm:$0xff] }
   0x6   :  { %v63_v20 = vadd.f32 %v177_v2, %v40_v9  ;;  %v65_v24 = vadd.f32 %v177_v2, %v42_v15  ;;  %v66_v37 = vadd.f32 %v177_v2, %v43_v16  ;;  %v67_v38 = vadd.f32 %v177_v2, %v44_v21  ;;  %v26_v44 = vld [vmem:[%s305_s0 + $0x60] sm:$0xff]  ;;  %v28_v56 = vld [vmem:[%s305_s0 + $0x70] sm:$0xff]  ;;  %v29_v4 = vld [vmem:[%s305_s0 + $0x78] sm:$0xff] }
   0x7   :  { %vm76_vm0 = vcmp.ge.f32.partialorder %v60_v13, 0.0  ;;  %v92_v22 = vmul.f32 0.2, %v60_v13  ;;  %v64_v23 = vadd.f32 %v177_v2, %v41_v14  ;;  %vm77_vm1 = vcmp.ge.f32.partialorder %v61_v18, 0.0 }
   0x8   :  { %v93_v26 = vmul.f32 0.2, %v61_v18  ;;  %vm78_vm2 = vcmp.ge.f32.partialorder %v62_v19, 0.0  ;;  %v94_v27 = vmul.f32 0.2, %v62_v19  ;;  %vm79_vm3 = vcmp.ge.f32.partialorder %v63_v20, 0.0 }
   0x9   :  { %v108_v28 = vsel %vm76_vm0, %v60_v13, %v92_v22  ;;  %v95_v29 = vmul.f32 0.2, %v63_v20  ;;  %vm80_vm4 = vcmp.ge.f32.partialorder %v64_v23, 0.0  ;;  %v96_v34 = vmul.f32 0.2, %v64_v23 }
   0xa   :  { %124 = vst [vmem:[%s308_s3] sm:$0xff] %v108_v28  ;;  %v109_v32 = vsel %vm77_vm1, %v61_v18, %v93_v26  ;;  %v110_v33 = vsel %vm78_vm2, %v62_v19, %v94_v27  ;;  %vm81_vm5 = vcmp.ge.f32.partialorder %v65_v24, 0.0  ;;  %v97_v36 = vmul.f32 0.2, %v65_v24 }
   0xb   :  { %125 = vst [vmem:[%s308_s3 + $0x8] sm:$0xff] %v109_v32  ;;  %126 = vst [vmem:[%s308_s3 + $0x10] sm:$0xff] %v110_v33  ;;  %v111_v35 = vsel %vm79_vm3, %v63_v20, %v95_v29  ;;  %v112_v39 = vsel %vm80_vm4, %v64_v23, %v96_v34  ;;  %v45_v40 = vmul.f32 %v172_v1, %v22_v25  ;;  %vm82_vm6 = vcmp.ge.f32.partialorder %v66_v37, 0.0 }
   0xc   :  { %127 = vst [vmem:[%s308_s3 + $0x18] sm:$0xff] %v111_v35  ;;  %v46_v41 = vmul.f32 %v172_v1, %v23_v30  ;;  %v47_v42 = vmul.f32 %v172_v1, %v24_v31  ;;  %128 = vst [vmem:[%s308_s3 + $0x20] sm:$0xff] %v112_v39  ;;  %v113_v46 = vsel %vm81_vm5, %v65_v24, %v97_v36  ;;  %v98_v47 = vmul.f32 0.2, %v66_v37 }
   0xd   :  { %vm83_vm7 = vcmp.ge.f32.partialorder %v67_v38, 0.0  ;;  %129 = vst [vmem:[%s308_s3 + $0x28] sm:$0xff] %v113_v46  ;;  %v99_v48 = vmul.f32 0.2, %v67_v38  ;;  %v68_v49 = vadd.f32 %v177_v2, %v45_v40  ;;  %v48_v53 = vmul.f32 %v172_v1, %v25_v43 }
   0xe   :  { %v69_v50 = vadd.f32 %v177_v2, %v46_v41  ;;  %v70_v51 = vadd.f32 %v177_v2, %v47_v42  ;;  %v114_v52 = vsel %vm82_vm6, %v66_v37, %v98_v47  ;;  %v49_v54 = vmul.f32 %v172_v1, %v26_v44 }
   0xf   :  { %v50_v55 = vmul.f32 %v172_v1, %v27_v45  ;;  %130 = vst [vmem:[%s308_s3 + $0x30] sm:$0xff] %v114_v52  ;;  %v115_v57 = vsel %vm83_vm7, %v67_v38, %v99_v48  ;;  %vm84_vm8 = vcmp.ge.f32.partialorder %v68_v49, 0.0  ;;  %v100_v58 = vmul.f32 0.2, %v68_v49 }
  0x10   :  { %vm85_vm9 = vcmp.ge.f32.partialorder %v69_v50, 0.0  ;;  %131 = vst [vmem:[%s308_s3 + $0x38] sm:$0xff] %v115_v57  ;;  %v101_v59 = vmul.f32 0.2, %v69_v50  ;;  %vm86_vm10 = vcmp.ge.f32.partialorder %v70_v51, 0.0  ;;  %v71_v61 = vadd.f32 %v177_v2, %v48_v53 }
  0x11   :  { %v102_v60 = vmul.f32 0.2, %v70_v51  ;;  %v116_v62 = vsel %vm84_vm8, %v68_v49, %v100_v58  ;;  %v72_v63 = vadd.f32 %v177_v2, %v49_v54  ;;  %v73_v0 = vadd.f32 %v177_v2, %v50_v55 }
  0x12   :  { %v51_v3 = vmul.f32 %v172_v1, %v28_v56  ;;  %132 = vst [vmem:[%s308_s3 + $0x40] sm:$0xff] %v116_v62  ;;  %v117_v5 = vsel %vm85_vm9, %v69_v50, %v101_v59  ;;  %vm87_vm11 = vcmp.ge.f32.partialorder %v71_v61, 0.0  ;;  %v103_v7 = vmul.f32 0.2, %v71_v61 }
  0x13   :  { %v118_v6 = vsel %vm86_vm10, %v70_v51, %v102_v60  ;;  %133 = vst [vmem:[%s308_s3 + $0x48] sm:$0xff] %v117_v5  ;;  %vm88_vm12 = vcmp.ge.f32.partialorder %v72_v63, 0.0  ;;  %v104_v8 = vmul.f32 0.2, %v72_v63  ;;  %vm89_vm13 = vcmp.ge.f32.partialorder %v73_v0, 0.0 }
  0x14   :  { %134 = vst [vmem:[%s308_s3 + $0x50] sm:$0xff] %v118_v6  ;;  %v105_v9 = vmul.f32 0.2, %v73_v0  ;;  %v119_v10 = vsel %vm87_vm11, %v71_v61, %v103_v7  ;;  %v74_v11 = vadd.f32 %v177_v2, %v51_v3  ;;  %v52_v12 = vmul.f32 %v172_v1, %v29_v4 }
  0x15   :  { %135 = vst [vmem:[%s308_s3 + $0x58] sm:$0xff] %v119_v10  ;;  %v120_v13 = vsel %vm88_vm12, %v72_v63, %v104_v8 }
  0x16   :  { %v121_v14 = vsel %vm89_vm13, %v73_v0, %v105_v9  ;;  %136 = vst [vmem:[%s308_s3 + $0x60] sm:$0xff] %v120_v13  ;;  %vm90_vm14 = vcmp.ge.f32.partialorder %v74_v11, 0.0  ;;  %v106_v15 = vmul.f32 0.2, %v74_v11  ;;  %v75_v16 = vadd.f32 %v177_v2, %v52_v12 }
  0x17   :  { %137 = vst [vmem:[%s308_s3 + $0x68] sm:$0xff] %v121_v14 }
  0x18   :  { %v122_v17 = vsel %vm90_vm14, %v74_v11, %v106_v15  ;;  %vm91_vm15 = vcmp.ge.f32.partialorder %v75_v16, 0.0  ;;  %v107_v1 = vmul.f32 0.2, %v75_v16 }
  0x19   :  { %138 = vst [vmem:[%s308_s3 + $0x70] sm:$0xff] %v122_v17 }
  0x1a   :  { %v123_v18 = vsel %vm91_vm15, %v75_v16, %v107_v1 }
  0x1b   :  { %139 = vst [vmem:[%s308_s3 + $0x78] sm:$0xff] %v123_v18 }

// kernel: single_unet_generator_L.32
= control target key start
LH: loop header
LB: loop body
LE: loop exit
PB: predicated region body
PF: predicated region fallthrough
CT: control target
= control target key end

     0   :  { %v57_v0 = vmov 0.0   ;;  %s103_s1 = inlined_call_operand.vmem [shape: f32[1,128], index: 1, kind: output, shape index: {0}]   ;;  %s104_s2 = inlined_call_operand.vmem [shape: f32[1,128], index: 2, kind: output, shape index: {1}]   ;;  %s105_s0 = inlined_call_operand.vmem [shape: f32[32,128], index: 0, kind: input, shape index: {}]  }
   0x1   :  { %14 = vst [vmem:[%s103_s1] sm:$0x1] %v57_v0  ;;  %15 = vst [vmem:[%s104_s2] sm:$0x1] %v57_v0  ;;  %v16_v1 = vld [vmem:[%s105_s0] sm:$0xff]  ;;  %v17_v2 = vld [vmem:[%s105_s0 + $0x8] sm:$0xff] }
   0x2   :  { %v18_v3 = vld [vmem:[%s105_s0 + $0x10] sm:$0xff]  ;;  %v19_v4 = vld [vmem:[%s105_s0 + $0x18] sm:$0xff]  ;;  %v21_v5 = vadd.f32 %v17_v2, %v16_v1  ;;  %v33_v6 = vmul.f32 %v16_v1, %v16_v1  ;;  %v34_v7 = vmul.f32 %v17_v2, %v17_v2 }
   0x3   :  { %v35_v8 = vmul.f32 %v18_v3, %v18_v3  ;;  %v36_v10 = vmul.f32 %v19_v4, %v19_v4 }
   0x4   :  { %v22_v9 = vadd.f32 %v21_v5, %v18_v3  ;;  %v37_v11 = vadd.f32 %v34_v7, %v33_v6 }
   0x6   :  { %v23_v12 = vadd.f32 %v22_v9, %v19_v4  ;;  %v38_v13 = vadd.f32 %v37_v11, %v35_v8 }
   0x8   :  { %v24_v14 = vrot.slane %v23_v12, 4  ;;  %v39_v15 = vadd.f32 %v38_v13, %v36_v10  ;;  %v20_v24 = vld [vmem:[%s103_s1] sm:$0x1] }
   0x9   :  { %v32_v27 = vld [vmem:[%s104_s2] sm:$0x1] }
   0xa   :  { %v25_v16 = vadd.f32 %v24_v14, %v23_v12  ;;  %v40_v17 = vrot.slane %v39_v15, 4 }
   0xc   :  { %v26_v18 = vrot.slane %v25_v16, 2  ;;  %v41_v19 = vadd.f32 %v40_v17, %v39_v15 }
   0xe   :  { %v27_v20 = vadd.f32 %v26_v18, %v25_v16  ;;  %v42_v21 = vrot.slane %v41_v19, 2 }
  0x10   :  { %v28_v22 = vrot.slane %v27_v20, 1  ;;  %v43_v23 = vadd.f32 %v42_v21, %v41_v19 }
  0x12   :  { %v29_v25 = vadd.f32 %v28_v22, %v27_v20  ;;  %v44_v26 = vrot.slane %v43_v23, 1 }
  0x14   :  { %v30_v28 = vadd.f32 %v29_v25, %v20_v24  ;;  %v45_v29 = vadd.f32 %v44_v26, %v43_v23 }
  0x16   :  { %31 = vst [vmem:[%s103_s1] sm:$0x1] %v30_v28  ;;  %v46_v30 = vadd.f32 %v45_v29, %v32_v27 }
  0x18   :  { %47 = vst [vmem:[%s104_s2] sm:$0x1] %v46_v30 }

// kernel: single_unet_generator_L.31
= control target key start
LH: loop header
LB: loop body
LE: loop exit
PB: predicated region body
PF: predicated region fallthrough
CT: control target
= control target key end

     0   :  { %s444_s1 = inlined_call_operand.vmem [shape: bf16[256,128], index: 1, kind: input, shape index: {}]   ;;  %s445_s0 = inlined_call_operand.vmem [shape: bf16[32,256], index: 0, kind: input, shape index: {}]   ;;  %s446_s2 = inlined_call_operand.vmem [shape: f32[1,128], index: 2, kind: input, shape index: {}]   ;;  %s447_s3 = inlined_call_operand.vmem [shape: f32[32,128], index: 3, kind: output, shape index: {}]  }
   0x1   :  { %v327_v0 = vld [vmem:[%s444_s1 + $0x40] sm:$0xff]   ;;  %v329_v2 = vld [vmem:[%s444_s1 + $0x48] sm:$0xff]   ;;  %v331_v4 = vld [vmem:[%s444_s1 + $0x50] sm:$0xff]  }
   0x2   :  { %v328_v1 = vld [vmem:[%s444_s1] sm:$0xff]   ;;  %283 = vmatprep.subr.bf16.mxu0 %v327_v0  ;;  %311 = vmatprep.subr.bf16.mxu1 %v327_v0  ;;  %v330_v3 = vld [vmem:[%s444_s1 + $0x8] sm:$0xff]   ;;  %v332_v5 = vld [vmem:[%s444_s1 + $0x10] sm:$0xff]  }
   0x3   :  { %284 = vmatpush3.bf16.msra.mxu0 %v328_v1  ;;  %319 = vmatpush3.bf16.msra.mxu1 %v328_v1  ;;  %v333_v6 = vld [vmem:[%s444_s1 + $0x58] sm:$0xff]   ;;  %v335_v8 = vld [vmem:[%s444_s1 + $0x60] sm:$0xff]   ;;  %v337_v10 = vld [vmem:[%s444_s1 + $0x68] sm:$0xff]  }
   0x4   :  { %285 = vmatprep.subr.bf16.mxu0 %v329_v2  ;;  %312 = vmatprep.subr.bf16.mxu1 %v329_v2  ;;  %v334_v7 = vld [vmem:[%s444_s1 + $0x18] sm:$0xff]   ;;  %v336_v9 = vld [vmem:[%s444_s1 + $0x20] sm:$0xff]   ;;  %v338_v13 = vld [vmem:[%s444_s1 + $0x28] sm:$0xff]  }
   0x5   :  { %v345_v11 = vld [vmem:[%s445_s0 + $0x4] ss:$8 sps:$4 sm:$0xff]   ;;  %v348_v12 = vld [vmem:[%s445_s0 + $0x14] ss:$8 sps:$4 sm:$0xff]   ;;  %v343_v18 = vld [vmem:[%s445_s0] ss:$8 sps:$4 sm:$0xff]  }
   0x6   :  { %v339_v14 = vld [vmem:[%s444_s1 + $0x70] sm:$0xff]   ;;  %211 = vmatprep.mubr.bf16.mxu0 %v345_v11  ;;  %219 = vmatprep.mubr.bf16.mxu1 %v348_v12  ;;  %v341_v16 = vld [vmem:[%s444_s1 + $0x78] sm:$0xff]   ;;  %v282_v23 = vld [vmem:[%s446_s2] ss:$0 sm:$0xff] }
   0x7   :  { %286 = vmatpush3.bf16.msra.mxu0 %v330_v3  ;;  %320 = vmatpush3.bf16.msra.mxu1 %v330_v3  ;;  %v340_v15 = vld [vmem:[%s444_s1 + $0x30] sm:$0xff]   ;;  %v342_v17 = vld [vmem:[%s444_s1 + $0x38] sm:$0xff]  }
   0x8   :  { %287 = vmatprep.subr.bf16.mxu0 %v331_v4  ;;  %313 = vmatprep.subr.bf16.mxu1 %v331_v4  ;;  %v346_v19 = vld [vmem:[%s445_s0 + $0x10] ss:$8 sps:$4 sm:$0xff]  }
   0xb   :  { %288 = vmatpush3.bf16.msra.mxu0 %v332_v5  ;;  %321 = vmatpush3.bf16.msra.mxu1 %v332_v5 }
   0xc   :  { %289 = vmatprep.subr.bf16.mxu0 %v333_v6  ;;  %314 = vmatprep.subr.bf16.mxu1 %v333_v6 }
   0xf   :  { %290 = vmatpush3.bf16.msra.mxu0 %v334_v7  ;;  %322 = vmatpush3.bf16.msra.mxu1 %v334_v7 }
  0x10   :  { %291 = vmatprep.subr.bf16.mxu0 %v335_v8  ;;  %315 = vmatprep.subr.bf16.mxu1 %v335_v8 }
  0x13   :  { %292 = vmatpush3.bf16.msra.mxu0 %v336_v9  ;;  %323 = vmatpush3.bf16.msra.mxu1 %v336_v9 }
  0x14   :  { %293 = vmatprep.subr.bf16.mxu0 %v337_v10  ;;  %316 = vmatprep.subr.bf16.mxu1 %v337_v10 }
  0x17   :  { %294 = vmatpush3.bf16.msra.mxu0 %v338_v13  ;;  %324 = vmatpush3.bf16.msra.mxu1 %v338_v13 }
  0x18   :  { %295 = vmatprep.subr.bf16.mxu0 %v339_v14  ;;  %317 = vmatprep.subr.bf16.mxu1 %v339_v14 }
  0x1b   :  { %296 = vmatpush3.bf16.msra.mxu0 %v340_v15  ;;  %325 = vmatpush3.bf16.msra.mxu1 %v340_v15 }
  0x1c   :  { %297 = vmatprep.subr.bf16.mxu0 %v341_v16  ;;  %318 = vmatprep.subr.bf16.mxu1 %v341_v16 }
  0x1f   :  { %298 = vmatpush3.bf16.msra.mxu0 %v342_v17  ;;  %326 = vmatpush3.bf16.msra.mxu1 %v342_v17 }
  0x22   :  { %212 = vmatmul.mubr.bf16.vlgmr.msra.gmra.mrb[0].mxu0 %v343_v18  ;;  %220 = vmatmul.mubr.bf16.vlgmr.msra.gmra.mrb[0].mxu1 %v346_v19 }
  0xf5   :  { %v299_v20 = vpop.f32.mrb[0].mxu0  ;;  %v305_v21 = vpop.f32.mrb[0].mxu1 }
  0xf6   :  { %v300_v22 = vpop.f32.mrb[1].mxu0  ;;  %v306_v24 = vpop.f32.mrb[1].mxu1 }
  0xf7   :  { %v301_v25 = vadd.f32 %v300_v22, %v299_v20  ;;  %v307_v26 = vadd.f32 %v306_v24, %v305_v21  ;;  %v302_v27 = vpop.f32.mrb[2].mxu0  ;;  %v308_v28 = vpop.f32.mrb[2].mxu1 }
  0xf8   :  { %v303_v29 = vpop.f32.mrb[3].mxu0  ;;  %v309_v30 = vpop.f32.mrb[3].mxu1 }
  0xf9   :  { %v250_v31 = vadd.f32 %v301_v25, %v282_v23  ;;  %v252_v32 = vadd.f32 %v307_v26, %v282_v23  ;;  %v304_v33 = vadd.f32 %v303_v29, %v302_v27  ;;  %v310_v34 = vadd.f32 %v309_v30, %v308_v28 }
  0xfb   :  { %254 = vst [vmem:[%s447_s3] sm:$0xff] %v250_v31  ;;  %256 = vst [vmem:[%s447_s3 + $0x10] sm:$0xff] %v252_v32  ;;  %v251_v35 = vadd.f32 %v304_v33, %v282_v23  ;;  %v253_v36 = vadd.f32 %v310_v34, %v282_v23 }
  0xfd   :  { %255 = vst [vmem:[%s447_s3 + $0x8] sm:$0xff] %v251_v35  ;;  %257 = vst [vmem:[%s447_s3 + $0x18] sm:$0xff] %v253_v36 }

// kernel: single_unet_generator_L.33
= control target key start
LH: loop header
LB: loop body
LE: loop exit
PB: predicated region body
PF: predicated region fallthrough
CT: control target
= control target key end

     0   :  { %s112_s0 = inlined_call_operand.vmem [shape: f32[32,128], index: 0, kind: input, shape index: {}]   ;;  %s113_s1 = inlined_call_operand.vmem [shape: f32[1,128], index: 1, kind: input, shape index: {}]   ;;  %s114_s2 = inlined_call_operand.vmem [shape: f32[1,128], index: 2, kind: input, shape index: {}]   ;;  %s115_s3 = inlined_call_operand.vmem [shape: f32[32,128], index: 3, kind: output, shape index: {}]  }
   0x1   :  { %v14_v0 = vld [vmem:[%s112_s0] sm:$0xff]  ;;  %v15_v4 = vld [vmem:[%s112_s0 + $0x8] sm:$0xff]  ;;  %v16_v5 = vld [vmem:[%s112_s0 + $0x10] sm:$0xff] }
   0x2   :  { %v60_v1 = vld [vmem:[%s113_s1] ss:$0 sm:$0xff]  ;;  %v17_v6 = vld [vmem:[%s112_s0 + $0x18] sm:$0xff] }
   0x3   :  { %v61_v2 = vld [vmem:[%s114_s2] ss:$0 sm:$0xff]  ;;  %v25_v3 = vmul.f32 %v60_v1, %v14_v0  ;;  %v26_v7 = vmul.f32 %v60_v1, %v15_v4  ;;  %v27_v8 = vmul.f32 %v60_v1, %v16_v5  ;;  %v28_v9 = vmul.f32 %v60_v1, %v17_v6 }
   0x5   :  { %v36_v10 = vadd.f32 %v61_v2, %v25_v3  ;;  %v37_v11 = vadd.f32 %v61_v2, %v26_v7  ;;  %v38_v12 = vadd.f32 %v61_v2, %v27_v8  ;;  %v39_v13 = vadd.f32 %v61_v2, %v28_v9 }
   0x7   :  { %vm40_vm0 = vcmp.ge.f32.partialorder %v36_v10, 0.0  ;;  %v44_v14 = vmul.f32 0.2, %v36_v10  ;;  %vm41_vm1 = vcmp.ge.f32.partialorder %v37_v11, 0.0  ;;  %v45_v15 = vmul.f32 0.2, %v37_v11 }
   0x8   :  { %vm42_vm2 = vcmp.ge.f32.partialorder %v38_v12, 0.0  ;;  %v46_v16 = vmul.f32 0.2, %v38_v12  ;;  %vm43_vm3 = vcmp.ge.f32.partialorder %v39_v13, 0.0  ;;  %v47_v18 = vmul.f32 0.2, %v39_v13 }
   0x9   :  { %v48_v17 = vsel %vm40_vm0, %v36_v10, %v44_v14  ;;  %v49_v19 = vsel %vm41_vm1, %v37_v11, %v45_v15 }
   0xa   :  { %52 = vst [vmem:[%s115_s3] sm:$0xff] %v48_v17  ;;  %v50_v20 = vsel %vm42_vm2, %v38_v12, %v46_v16  ;;  %53 = vst [vmem:[%s115_s3 + $0x8] sm:$0xff] %v49_v19  ;;  %v51_v21 = vsel %vm43_vm3, %v39_v13, %v47_v18 }
   0xb   :  { %54 = vst [vmem:[%s115_s3 + $0x10] sm:$0xff] %v50_v20  ;;  %55 = vst [vmem:[%s115_s3 + $0x18] sm:$0xff] %v51_v21 }

// kernel: single_unet_generator_L.35
= control target key start
LH: loop header
LB: loop body
LE: loop exit
PB: predicated region body
PF: predicated region fallthrough
CT: control target
= control target key end

     0   :  { %v45_v0 = vmov 0.0   ;;  %s82_s1 = inlined_call_operand.vmem [shape: f32[1,128], index: 1, kind: output, shape index: {0}]   ;;  %s83_s2 = inlined_call_operand.vmem [shape: f32[1,128], index: 2, kind: output, shape index: {1}]   ;;  %s84_s0 = inlined_call_operand.vmem [shape: f32[8,128], index: 0, kind: input, shape index: {}]  }
   0x1   :  { %14 = vst [vmem:[%s82_s1] sm:$0x1] %v45_v0  ;;  %15 = vst [vmem:[%s83_s2] sm:$0x1] %v45_v0  ;;  %v16_v1 = vld [vmem:[%s84_s0] sm:$0xff] }
   0x2   :  { %v18_v2 = vrot.slane %v16_v1, 4  ;;  %v27_v3 = vmul.f32 %v16_v1, %v16_v1 }
   0x4   :  { %v19_v4 = vadd.f32 %v18_v2, %v16_v1  ;;  %v28_v5 = vrot.slane %v27_v3, 4 }
   0x6   :  { %v20_v6 = vrot.slane %v19_v4, 2  ;;  %v29_v7 = vadd.f32 %v28_v5, %v27_v3 }
   0x8   :  { %v21_v8 = vadd.f32 %v20_v6, %v19_v4  ;;  %v30_v9 = vrot.slane %v29_v7, 2  ;;  %v17_v12 = vld [vmem:[%s82_s1] sm:$0x1] }
   0x9   :  { %v26_v15 = vld [vmem:[%s83_s2] sm:$0x1] }
   0xa   :  { %v22_v10 = vrot.slane %v21_v8, 1  ;;  %v31_v11 = vadd.f32 %v30_v9, %v29_v7 }
   0xc   :  { %v23_v13 = vadd.f32 %v22_v10, %v21_v8  ;;  %v32_v14 = vrot.slane %v31_v11, 1 }
   0xe   :  { %v24_v16 = vadd.f32 %v23_v13, %v17_v12  ;;  %v33_v17 = vadd.f32 %v32_v14, %v31_v11 }
  0x10   :  { %25 = vst [vmem:[%s82_s1] sm:$0x1] %v24_v16  ;;  %v34_v18 = vadd.f32 %v33_v17, %v26_v15 }
  0x12   :  { %35 = vst [vmem:[%s83_s2] sm:$0x1] %v34_v18 }

// kernel: single_unet_generator_L.36
= control target key start
LH: loop header
LB: loop body
LE: loop exit
PB: predicated region body
PF: predicated region fallthrough
CT: control target
= control target key end

     0   :  { %s73_s0 = inlined_call_operand.vmem [shape: f32[8,128], index: 0, kind: input, shape index: {}]   ;;  %s74_s1 = inlined_call_operand.vmem [shape: f32[1,128], index: 1, kind: input, shape index: {}]   ;;  %s75_s2 = inlined_call_operand.vmem [shape: f32[1,128], index: 2, kind: input, shape index: {}]   ;;  %s76_s3 = inlined_call_operand.vmem [shape: f32[8,128], index: 3, kind: output, shape index: {}]  }
   0x1   :  { %v14_v0 = vld [vmem:[%s73_s0] sm:$0xff] }
   0x2   :  { %v39_v1 = vld [vmem:[%s74_s1] ss:$0 sm:$0xff] }
   0x3   :  { %v40_v2 = vld [vmem:[%s75_s2] ss:$0 sm:$0xff]  ;;  %v22_v3 = vmul.f32 %v39_v1, %v14_v0 }
   0x5   :  { %v30_v4 = vadd.f32 %v40_v2, %v22_v3 }
   0x7   :  { %vm31_vm0 = vcmp.ge.f32.partialorder %v30_v4, 0.0  ;;  %v32_v5 = vmul.f32 0.2, %v30_v4 }
   0x9   :  { %v33_v6 = vsel %vm31_vm0, %v30_v4, %v32_v5 }
   0xa   :  { %34 = vst [vmem:[%s76_s3] sm:$0xff] %v33_v6 }

// kernel: single_unet_generator_L.34
= control target key start
LH: loop header
LB: loop body
LE: loop exit
PB: predicated region body
PF: predicated region fallthrough
CT: control target
= control target key end

     0   :  { %s665_s1 = inlined_call_operand.vmem [shape: bf16[512,128], index: 1, kind: input, shape index: {}]   ;;  %s666_s0 = inlined_call_operand.vmem [shape: bf16[16,512], index: 0, kind: input, shape index: {}]   ;;  %s667_s2 = inlined_call_operand.vmem [shape: f32[1,128], index: 2, kind: input, shape index: {}]   ;;  %s668_s3 = inlined_call_operand.vmem [shape: f32[16,128], index: 3, kind: output, shape index: {}]  }
   0x1   :  { %v490_v0 = vld [vmem:[%s665_s1 + $0x40] sm:$0xff]   ;;  %v494_v4 = vld [vmem:[%s665_s1 + $0x48] sm:$0xff]   ;;  %v498_v8 = vld [vmem:[%s665_s1 + $0x50] sm:$0xff]  }
   0x2   :  { %v491_v1 = vld [vmem:[%s665_s1 + $0xc0] sm:$0xff]   ;;  %446 = vmatprep.subr.bf16.mxu0 %v490_v0  ;;  %v495_v5 = vld [vmem:[%s665_s1 + $0xc8] sm:$0xff]   ;;  %v499_v9 = vld [vmem:[%s665_s1 + $0xd0] sm:$0xff]  }
   0x3   :  { %v492_v2 = vld [vmem:[%s665_s1] sm:$0xff]   ;;  %468 = vmatprep.subr.bf16.mxu1 %v491_v1  ;;  %v496_v6 = vld [vmem:[%s665_s1 + $0x8] sm:$0xff]   ;;  %v500_v10 = vld [vmem:[%s665_s1 + $0x10] sm:$0xff]  }
   0x4   :  { %v493_v3 = vld [vmem:[%s665_s1 + $0x80] sm:$0xff]   ;;  %447 = vmatpush3.bf16.msra.mxu0 %v492_v2  ;;  %v497_v7 = vld [vmem:[%s665_s1 + $0x88] sm:$0xff]   ;;  %v501_v11 = vld [vmem:[%s665_s1 + $0x90] sm:$0xff]  }
   0x5   :  { %469 = vmatpush3.bf16.msra.mxu1 %v493_v3  ;;  %448 = vmatprep.subr.bf16.mxu0 %v494_v4  ;;  %v502_v12 = vld [vmem:[%s665_s1 + $0x58] sm:$0xff]   ;;  %v506_v16 = vld [vmem:[%s665_s1 + $0x60] sm:$0xff]   ;;  %v510_v20 = vld [vmem:[%s665_s1 + $0x68] sm:$0xff]  }
   0x6   :  { %470 = vmatprep.subr.bf16.mxu1 %v495_v5  ;;  %v503_v13 = vld [vmem:[%s665_s1 + $0xd8] sm:$0xff]   ;;  %v507_v17 = vld [vmem:[%s665_s1 + $0xe0] sm:$0xff]   ;;  %v511_v21 = vld [vmem:[%s665_s1 + $0xe8] sm:$0xff]  }
   0x7   :  { %v504_v14 = vld [vmem:[%s665_s1 + $0x18] sm:$0xff]   ;;  %v508_v18 = vld [vmem:[%s665_s1 + $0x20] sm:$0xff]   ;;  %v512_v22 = vld [vmem:[%s665_s1 + $0x28] sm:$0xff]  }
   0x8   :  { %449 = vmatpush3.bf16.msra.mxu0 %v496_v6  ;;  %v505_v15 = vld [vmem:[%s665_s1 + $0x98] sm:$0xff]   ;;  %v509_v19 = vld [vmem:[%s665_s1 + $0xa0] sm:$0xff]   ;;  %v513_v23 = vld [vmem:[%s665_s1 + $0xa8] sm:$0xff]  }
   0x9   :  { %471 = vmatpush3.bf16.msra.mxu1 %v497_v7  ;;  %450 = vmatprep.subr.bf16.mxu0 %v498_v8  ;;  %v514_v24 = vld [vmem:[%s665_s1 + $0x70] sm:$0xff]   ;;  %v518_v28 = vld [vmem:[%s665_s1 + $0x78] sm:$0xff]   ;;  %v445_v45 = vld [vmem:[%s667_s2] ss:$0 sm:$0xff] }
   0xa   :  { %472 = vmatprep.subr.bf16.mxu1 %v499_v9  ;;  %v515_v25 = vld [vmem:[%s665_s1 + $0xf0] sm:$0xff]   ;;  %v519_v29 = vld [vmem:[%s665_s1 + $0xf8] sm:$0xff]  }
   0xb   :  { %v516_v26 = vld [vmem:[%s665_s1 + $0x30] sm:$0xff]   ;;  %v520_v30 = vld [vmem:[%s665_s1 + $0x38] sm:$0xff]  }
   0xc   :  { %451 = vmatpush3.bf16.msra.mxu0 %v500_v10  ;;  %v517_v27 = vld [vmem:[%s665_s1 + $0xb0] sm:$0xff]   ;;  %v521_v31 = vld [vmem:[%s665_s1 + $0xb8] sm:$0xff]  }
   0xd   :  { %473 = vmatpush3.bf16.msra.mxu1 %v501_v11  ;;  %452 = vmatprep.subr.bf16.mxu0 %v502_v12  ;;  %v522_v32 = vld [vmem:[%s666_s0] ss:$16 sps:$4 sm:$0xff]   ;;  %v524_v33 = vld [vmem:[%s666_s0 + $0x4] ss:$16 sps:$4 sm:$0xff]   ;;  %v525_v34 = vld [vmem:[%s666_s0 + $0x8] ss:$16 sps:$4 sm:$0xff]  }
   0xe   :  { %474 = vmatprep.subr.bf16.mxu1 %v503_v13  ;;  %v527_v35 = vld [vmem:[%s666_s0 + $0xc] ss:$16 sps:$4 sm:$0xff]   ;;  %335 = vmatprep.mubr.bf16.mxu0 %v524_v33 }
   0xf   :  { %376 = vmatprep.mubr.bf16.mxu1 %v527_v35 }
  0x10   :  { %453 = vmatpush3.bf16.msra.mxu0 %v504_v14 }
  0x11   :  { %475 = vmatpush3.bf16.msra.mxu1 %v505_v15  ;;  %454 = vmatprep.subr.bf16.mxu0 %v506_v16 }
  0x12   :  { %476 = vmatprep.subr.bf16.mxu1 %v507_v17 }
  0x14   :  { %455 = vmatpush3.bf16.msra.mxu0 %v508_v18 }
  0x15   :  { %477 = vmatpush3.bf16.msra.mxu1 %v509_v19  ;;  %456 = vmatprep.subr.bf16.mxu0 %v510_v20 }
  0x16   :  { %478 = vmatprep.subr.bf16.mxu1 %v511_v21 }
  0x18   :  { %457 = vmatpush3.bf16.msra.mxu0 %v512_v22 }
  0x19   :  { %479 = vmatpush3.bf16.msra.mxu1 %v513_v23  ;;  %458 = vmatprep.subr.bf16.mxu0 %v514_v24 }
  0x1a   :  { %480 = vmatprep.subr.bf16.mxu1 %v515_v25 }
  0x1c   :  { %459 = vmatpush3.bf16.msra.mxu0 %v516_v26 }
  0x1d   :  { %481 = vmatpush3.bf16.msra.mxu1 %v517_v27  ;;  %460 = vmatprep.subr.bf16.mxu0 %v518_v28 }
  0x1e   :  { %482 = vmatprep.subr.bf16.mxu1 %v519_v29 }
  0x20   :  { %461 = vmatpush3.bf16.msra.mxu0 %v520_v30 }
  0x21   :  { %483 = vmatpush3.bf16.msra.mxu1 %v521_v31 }
  0x23   :  { %336 = vmatmul.mubr.bf16.vlgmr.msra.gmra.mrb[0].mxu0 %v522_v32 }
  0x24   :  { %377 = vmatmul.mubr.bf16.vlgmr.msra.gmra.mrb[0].mxu1 %v525_v34 }
  0xf6   :  { %v462_v36 = vpop.f32.mrb[0].mxu0 }
  0xf7   :  { %v484_v37 = vpop.f32.mrb[0].mxu1  ;;  %v463_v38 = vpop.f32.mrb[1].mxu0 }
  0xf8   :  { %v464_v39 = vadd.f32 %v463_v38, %v462_v36  ;;  %v485_v40 = vpop.f32.mrb[1].mxu1  ;;  %v465_v41 = vpop.f32.mrb[2].mxu0 }
  0xf9   :  { %v486_v42 = vadd.f32 %v485_v40, %v484_v37  ;;  %v487_v43 = vpop.f32.mrb[2].mxu1  ;;  %v466_v44 = vpop.f32.mrb[3].mxu0 }
  0xfa   :  { %v467_v46 = vadd.f32 %v466_v44, %v465_v41  ;;  %v488_v47 = vpop.f32.mrb[3].mxu1 }
  0xfb   :  { %v379_v48 = vadd.f32 %v486_v42, %v464_v39  ;;  %v489_v49 = vadd.f32 %v488_v47, %v487_v43 }
  0xfd   :  { %v401_v50 = vadd.f32 %v445_v45, %v379_v48  ;;  %v382_v51 = vadd.f32 %v489_v49, %v467_v46 }
  0xff   :  { %403 = vst [vmem:[%s668_s3] sm:$0xff] %v401_v50  ;;  %v402_v52 = vadd.f32 %v445_v45, %v382_v51 }
 0x101   :  { %404 = vst [vmem:[%s668_s3 + $0x8] sm:$0xff] %v402_v52 }

// kernel: single_unet_generator_L.39
= control target key start
LH: loop header
LB: loop body
LE: loop exit
PB: predicated region body
PF: predicated region fallthrough
CT: control target
= control target key end

     0   :  { %s71_s0 = inlined_call_operand.vmem [shape: f32[8,128], index: 0, kind: input, shape index: {}]   ;;  %s72_s1 = inlined_call_operand.vmem [shape: f32[1,128], index: 1, kind: input, shape index: {}]   ;;  %s73_s2 = inlined_call_operand.vmem [shape: f32[1,128], index: 2, kind: input, shape index: {}]   ;;  %s74_s3 = inlined_call_operand.vmem [shape: f32[8,128], index: 3, kind: output, shape index: {}]  }
   0x1   :  { %v14_v0 = vld [vmem:[%s71_s0] sm:$0xff] }
   0x2   :  { %v37_v1 = vld [vmem:[%s72_s1] ss:$0 sm:$0xff] }
   0x3   :  { %v38_v2 = vld [vmem:[%s73_s2] ss:$0 sm:$0xff]  ;;  %v22_v3 = vmul.f32 %v37_v1, %v14_v0 }
   0x5   :  { %v30_v4 = vadd.f32 %v38_v2, %v22_v3 }
   0x7   :  { %v31_v5 = vmax.f32 %v30_v4, 0.0 }
   0x9   :  { %32 = vst [vmem:[%s74_s3] sm:$0xff] %v31_v5 }

// kernel: single_unet_generator_L.37
= control target key start
LH: loop header
LB: loop body
LE: loop exit
PB: predicated region body
PF: predicated region fallthrough
CT: control target
= control target key end

     0   :  { %s1021_s12 = smov 0   ;;  %s1023_s13 = smov 0   ;;  %s1137_s0 = inlined_call_operand.vmem [shape: bf16[16,1024], index: 0, kind: input, shape index: {}]   ;;  %s1138_s1 = inlined_call_operand.vmem [shape: bf16[1024,128], index: 1, kind: input, shape index: {}]   ;;  %s1139_s2 = inlined_call_operand.vmem [shape: f32[1,128], index: 2, kind: input, shape index: {}]   ;;  %s1140_s3 = inlined_call_operand.vmem [shape: f32[16,128], index: 3, kind: output, shape index: {}]  }
   0x1   :  { %s1025_s14 = smov 0   ;;  %s1027_s15 = smov 0  }
   0x2   :  { %s1029_s16 = smov 0  }
   0x3 LB: > { %s25_s17 = sadd.s32 1, %s994_s15  ;;  %p48_p1 = scmp.ne.s32.totalorder %s986_s13, %s982_s12  ;;  %s998_s16 = sphi %s1029_s16, %s13_s16   ;;  %s994_s15 = sphi %s1027_s15, %s1144_s15   ;;  %s990_s14 = sphi %s1025_s14, %s1143_s14   ;;  %s986_s13 = sphi %s1023_s13, %s1142_s13   ;;  %s982_s12 = sphi %s1021_s12, %s1141_s12  }
   0x4   : > { %p26_p0 = scmp.ge.s32.totalorder %s25_s17, 2  ;;  %p49_p2 = scmp.eq.s32.totalorder %s998_s16, 0 }
   0x5   : > { %s41_s19 = sadd.s32 1, %s986_s13  ;;  %p785_p5 = scmp.ge.s32.totalorder %s998_s16, 2 }
   0x6   : > { %s1146_s17 = smov (%p26_p0, %s25_s17), 0  ;;  %p50_p3 = por %p49_p2, %p48_p1 }
   0x7   : > { %s37_s18 = ssub.s32 %s994_s15, %s1146_s17  ;;  %162 = sbr.rel (%p785_p5) target bundleno = 21 (0x15), region = 20 }
   0x8   : > { %p39_p4 = scmp.eq.s32.totalorder %s37_s18, 0 }
   0xa   : > { %s1056_s20 = scalar_select %p39_p4, %s986_s13, %s41_s19  }
   0xe   : > { %165 = sbr.rel (!%p50_p3) target bundleno = 21 (0x15), region = 24  ;;  %s167_s21 = sand.u32 (%p50_p3), 1, %s986_s13  }
   0xf   : > { %s836_s22 = sshll.u32 (%p50_p3), %s994_s15, 4  ;;  %s786_s23 = sshll.u32 (%p50_p3), %s167_s21, 5 }
  0x10   : > { %s175_s26 = scalar_lea.vmem (%p50_p3), %s1137_s0, %s836_s22  ;;  %s169_s27 = scalar_lea.vmem (%p50_p3), [#allocation3], %s786_s23 }
  0x11   : > { %v188_v0 = vld [vmem:[%s175_s26] sm:$0xff] (%p50_p3)  ;;  %v190_v1 = vld [vmem:[%s175_s26 + $0x8] sm:$0xff] (%p50_p3) }
  0x12   : > { %v192_v2 = vld [vmem:[%s175_s26 + $0x20] sm:$0xff] (%p50_p3)  ;;  %189 = vst [vmem:[%s169_s27] sm:$0xff] (%p50_p3), %v188_v0  ;;  %191 = vst [vmem:[%s169_s27 + $0x8] sm:$0xff] (%p50_p3), %v190_v1  ;;  %v194_v3 = vld [vmem:[%s175_s26 + $0x28] sm:$0xff] (%p50_p3) }
  0x13   : > { %193 = vst [vmem:[%s169_s27 + $0x10] sm:$0xff] (%p50_p3), %v192_v2  ;;  %195 = vst [vmem:[%s169_s27 + $0x18] sm:$0xff] (%p50_p3), %v194_v3 }
  0x15 PF: > { %p789_p6 = scmp.ge.s32.totalorder %s998_s16, 1  ;;  %p212_p7 = scmp.lt.s32.totalorder %s998_s16, 3 }
  0x17   : > { %p213_p8 = pnand %p789_p6, %p212_p7 }
  0x18   : > { %s219_s28 = sand.u32 (!%p213_p8), 1, %s982_s12   ;;  %s791_s29 = sshll.u32 (!%p213_p8), %s990_s14, 6 }
  0x19   : > { %216 = sbr.rel (%p213_p8) target bundleno = 306 (0x132), region = 51  ;;  %s790_s30 = sshll.u32 (!%p213_p8), %s219_s28, 5 }
  0x1a   : > { %p259_p9 = scmp.lt.s32.totalorder (!%p213_p8), %s791_s29, 127  ;;  %s1073_s8 = scalar_lea.vmem (!%p213_p8), [#allocation3], %s790_s30 }
  0x1b   : > { %p793_p10 = scmp.ne.s32.totalorder (!%p213_p8), %s990_s14, 0 }
  0x20   : > { %s1148_s29 = smov (!%p259_p9, %s791_s29), 127  ;;  %283 = sbr.rel (%p793_p10) target bundleno = 39 (0x27), region = 59 }
  0x21   : > { %s792_s4 = sshll.u32 %s1148_s29, 2  ;;  %v1000_v4 = vmov (!%p793_p10), 0.0  }
  0x22   : > { %s1071_s7 = scalar_lea.vmem %s1138_s1, %s792_s4  ;;  %284 = vst [vmem:[#allocation2] sm:$0xff] (!%p793_p10), %v1000_v4  ;;  %285 = vst [vmem:[#allocation2 + $0x8] sm:$0xff] (!%p793_p10), %v1000_v4 }
  0x27 PF: > { %v922_v5 = vld [vmem:[%s1071_s7 + $0x40] sm:$0xff]   ;;  %v926_v9 = vld [vmem:[%s1071_s7 + $0x48] sm:$0xff]   ;;  %v930_v13 = vld [vmem:[%s1071_s7 + $0x50] sm:$0xff]   ;;  %p830_p11 = scmp.ne.s32.totalorder %s990_s14, 1 }
  0x28   : > { %v923_v6 = vld [vmem:[%s1071_s7 + $0xc0] sm:$0xff]   ;;  %837 = vmatprep.subr.bf16.mxu0 %v922_v5  ;;  %v927_v10 = vld [vmem:[%s1071_s7 + $0xc8] sm:$0xff]   ;;  %v931_v14 = vld [vmem:[%s1071_s7 + $0xd0] sm:$0xff]  }
  0x29   : > { %v924_v7 = vld [vmem:[%s1071_s7] sm:$0xff]   ;;  %859 = vmatprep.subr.bf16.mxu1 %v923_v6  ;;  %v928_v11 = vld [vmem:[%s1071_s7 + $0x8] sm:$0xff]   ;;  %v932_v15 = vld [vmem:[%s1071_s7 + $0x10] sm:$0xff]  }
  0x2a   : > { %v925_v8 = vld [vmem:[%s1071_s7 + $0x80] sm:$0xff]   ;;  %838 = vmatpush3.bf16.msra.mxu0 %v924_v7  ;;  %v929_v12 = vld [vmem:[%s1071_s7 + $0x88] sm:$0xff]   ;;  %v933_v16 = vld [vmem:[%s1071_s7 + $0x90] sm:$0xff]  }
  0x2b   : > { %860 = vmatpush3.bf16.msra.mxu1 %v925_v8  ;;  %839 = vmatprep.subr.bf16.mxu0 %v926_v9  ;;  %v934_v17 = vld [vmem:[%s1071_s7 + $0x58] sm:$0xff]   ;;  %v938_v21 = vld [vmem:[%s1071_s7 + $0x60] sm:$0xff]   ;;  %v942_v25 = vld [vmem:[%s1071_s7 + $0x68] sm:$0xff]  }
  0x2c   : > { %861 = vmatprep.subr.bf16.mxu1 %v927_v10  ;;  %v935_v18 = vld [vmem:[%s1071_s7 + $0xd8] sm:$0xff]   ;;  %v939_v22 = vld [vmem:[%s1071_s7 + $0xe0] sm:$0xff]   ;;  %v943_v26 = vld [vmem:[%s1071_s7 + $0xe8] sm:$0xff]  }
  0x2d   : > { %v936_v19 = vld [vmem:[%s1071_s7 + $0x18] sm:$0xff]   ;;  %v940_v23 = vld [vmem:[%s1071_s7 + $0x20] sm:$0xff]   ;;  %v944_v27 = vld [vmem:[%s1071_s7 + $0x28] sm:$0xff]  }
  0x2e   : > { %840 = vmatpush3.bf16.msra.mxu0 %v928_v11  ;;  %v937_v20 = vld [vmem:[%s1071_s7 + $0x98] sm:$0xff]   ;;  %v941_v24 = vld [vmem:[%s1071_s7 + $0xa0] sm:$0xff]   ;;  %v945_v28 = vld [vmem:[%s1071_s7 + $0xa8] sm:$0xff]  }
  0x2f   : > { %862 = vmatpush3.bf16.msra.mxu1 %v929_v12  ;;  %841 = vmatprep.subr.bf16.mxu0 %v930_v13  ;;  %v946_v29 = vld [vmem:[%s1071_s7 + $0x70] sm:$0xff]   ;;  %v950_v33 = vld [vmem:[%s1071_s7 + $0x78] sm:$0xff]   ;;  %v290_v50 = vld [vmem:[#allocation2] sm:$0xff] }
  0x30   : > { %863 = vmatprep.subr.bf16.mxu1 %v931_v14  ;;  %v947_v30 = vld [vmem:[%s1071_s7 + $0xf0] sm:$0xff]   ;;  %v951_v34 = vld [vmem:[%s1071_s7 + $0xf8] sm:$0xff]   ;;  %v291_v55 = vld [vmem:[#allocation2 + $0x8] sm:$0xff] }
  0x31   : > { %v948_v31 = vld [vmem:[%s1071_s7 + $0x30] sm:$0xff]   ;;  %v952_v35 = vld [vmem:[%s1071_s7 + $0x38] sm:$0xff]   ;;  %v831_v60 = vld [vmem:[%s1139_s2] ss:$0 sm:$0xff] (!%p830_p11) }
  0x32   : > { %842 = vmatpush3.bf16.msra.mxu0 %v932_v15  ;;  %v949_v32 = vld [vmem:[%s1071_s7 + $0xb0] sm:$0xff]   ;;  %v953_v36 = vld [vmem:[%s1071_s7 + $0xb8] sm:$0xff]  }
  0x33   : > { %864 = vmatpush3.bf16.msra.mxu1 %v933_v16  ;;  %843 = vmatprep.subr.bf16.mxu0 %v934_v17  ;;  %v954_v37 = vld [vmem:[%s1073_s8] ss:$16 sps:$4 sm:$0xff]   ;;  %v956_v38 = vld [vmem:[%s1073_s8 + $0x4] ss:$16 sps:$4 sm:$0xff]   ;;  %v957_v39 = vld [vmem:[%s1073_s8 + $0x8] ss:$16 sps:$4 sm:$0xff]  }
  0x34   : > { %865 = vmatprep.subr.bf16.mxu1 %v935_v18  ;;  %v959_v40 = vld [vmem:[%s1073_s8 + $0xc] ss:$16 sps:$4 sm:$0xff]   ;;  %600 = vmatprep.mubr.bf16.mxu0 %v956_v38 }
  0x35   : > { %641 = vmatprep.mubr.bf16.mxu1 %v959_v40 }
  0x36   : > { %844 = vmatpush3.bf16.msra.mxu0 %v936_v19 }
  0x37   : > { %866 = vmatpush3.bf16.msra.mxu1 %v937_v20  ;;  %845 = vmatprep.subr.bf16.mxu0 %v938_v21 }
  0x38   : > { %867 = vmatprep.subr.bf16.mxu1 %v939_v22 }
  0x3a   : > { %846 = vmatpush3.bf16.msra.mxu0 %v940_v23 }
  0x3b   : > { %868 = vmatpush3.bf16.msra.mxu1 %v941_v24  ;;  %847 = vmatprep.subr.bf16.mxu0 %v942_v25 }
  0x3c   : > { %869 = vmatprep.subr.bf16.mxu1 %v943_v26 }
  0x3e   : > { %848 = vmatpush3.bf16.msra.mxu0 %v944_v27 }
  0x3f   : > { %870 = vmatpush3.bf16.msra.mxu1 %v945_v28  ;;  %849 = vmatprep.subr.bf16.mxu0 %v946_v29 }
  0x40   : > { %871 = vmatprep.subr.bf16.mxu1 %v947_v30 }
  0x42   : > { %850 = vmatpush3.bf16.msra.mxu0 %v948_v31 }
  0x43   : > { %872 = vmatpush3.bf16.msra.mxu1 %v949_v32  ;;  %851 = vmatprep.subr.bf16.mxu0 %v950_v33 }
  0x44   : > { %873 = vmatprep.subr.bf16.mxu1 %v951_v34 }
  0x46   : > { %852 = vmatpush3.bf16.msra.mxu0 %v952_v35 }
  0x47   : > { %874 = vmatpush3.bf16.msra.mxu1 %v953_v36 }
  0x49   : > { %601 = vmatmul.mubr.bf16.vlgmr.msra.gmra.mrb[0].mxu0 %v954_v37 }
  0x4a   : > { %642 = vmatmul.mubr.bf16.vlgmr.msra.gmra.mrb[0].mxu1 %v957_v39 }
 0x11c   : > { %v853_v41 = vpop.f32.mrb[0].mxu0 }
 0x11d   : > { %v875_v42 = vpop.f32.mrb[0].mxu1  ;;  %v854_v43 = vpop.f32.mrb[1].mxu0 }
 0x11e   : > { %v855_v44 = vadd.f32 %v854_v43, %v853_v41  ;;  %v876_v45 = vpop.f32.mrb[1].mxu1  ;;  %v856_v46 = vpop.f32.mrb[2].mxu0 }
 0x11f   : > { %v877_v47 = vadd.f32 %v876_v45, %v875_v42  ;;  %v878_v48 = vpop.f32.mrb[2].mxu1  ;;  %v857_v49 = vpop.f32.mrb[3].mxu0 }
 0x120   : > { %v858_v51 = vadd.f32 %v857_v49, %v856_v46  ;;  %v879_v52 = vpop.f32.mrb[3].mxu1 }
 0x121   : > { %v644_v53 = vadd.f32 %v877_v47, %v855_v44  ;;  %v880_v54 = vadd.f32 %v879_v52, %v878_v48  ;;  %657 = sbr.rel (%p830_p11) target bundleno = 306 (0x132), region = 63 }
 0x123   : > { %v650_v56 = vadd.f32 %v644_v53, %v290_v50  ;;  %v647_v57 = vadd.f32 %v880_v54, %v858_v51 }
 0x125   : > { %652 = vst [vmem:[#allocation2] sm:$0xff] %v650_v56  ;;  %v651_v58 = vadd.f32 %v647_v57, %v291_v55 }
 0x127   : > { %653 = vst [vmem:[#allocation2 + $0x8] sm:$0xff] %v651_v58 }
 0x12c   : > { %v658_v59 = vld [vmem:[#allocation2] sm:$0xff] }
 0x12d   : > { %v667_v62 = vadd.f32 %v831_v60, %v658_v59 }
 0x12e   : > { %v659_v61 = vld [vmem:[#allocation2 + $0x8] sm:$0xff] }
 0x12f   : > { %v668_v63 = vadd.f32 %v831_v60, %v659_v61  ;;  %669 = vst [vmem:[%s1140_s3] sm:$0xff] %v667_v62 }
 0x131   : > { %670 = vst [vmem:[%s1140_s3 + $0x8] sm:$0xff] %v668_v63 }
 0x132 PF: > { %s13_s16 = sadd.s32 1, %s998_s16   ;;  %s1141_s12 = smov %s986_s13 }
 0x133   : > { %p10_p12 = scmp.ge.s32.totalorder %s13_s16, 4   ;;  %s1142_s13 = smov %s1056_s20 }
 0x134   : > { %s1143_s14 = smov %s994_s15  ;;  %s1144_s15 = smov %s1146_s17 }
 0x135   :  { %12 = sbr.rel (!%p10_p12) target bundleno = 3 (0x3), region = 104 }

// kernel: tile.28
= control target key start
LH: loop header
LB: loop body
LE: loop exit
PB: predicated region body
PF: predicated region fallthrough
CT: control target
= control target key end

     0   :  { %s22_s0 = inlined_call_operand.vmem [shape: f32[64], index: 0, kind: input, shape index: {}]   ;;  %s23_s1 = inlined_call_operand.vmem [shape: f32[4,64], index: 1, kind: output, shape index: {}]  }
   0x1   :  { %v4_v0 = vld [vmem:[%s22_s0] ss:$0 sm:$0xff] }
   0x2   :  { %5 = vst [vmem:[%s23_s1] sm:$0xf] %v4_v0 }

// kernel: single_unet_generator_L.40
= control target key start
LH: loop header
LB: loop body
LE: loop exit
PB: predicated region body
PF: predicated region fallthrough
CT: control target
= control target key end

     0   :  { %s797_s12 = smov 0   ;;  %s799_s13 = smov 0   ;;  %s902_s0 = inlined_call_operand.vmem [shape: bf16[16,640], index: 0, kind: input, shape index: {}]   ;;  %s903_s1 = inlined_call_operand.vmem [shape: bf16[640,256], index: 1, kind: input, shape index: {}]   ;;  %s904_s2 = inlined_call_operand.vmem [shape: f32[1,256], index: 2, kind: input, shape index: {}]   ;;  %s905_s3 = inlined_call_operand.vmem [shape: f32[16,256], index: 3, kind: output, shape index: {}]  }
   0x1   :  { %s801_s14 = smov 0   ;;  %s803_s15 = smov 0  }
   0x2   :  { %s805_s16 = smov 0  }
   0x3 LB: > { %s25_s17 = sadd.s32 1, %s769_s15  ;;  %p48_p1 = scmp.ne.s32.totalorder %s761_s13, %s757_s12  ;;  %s773_s16 = sphi %s805_s16, %s13_s16   ;;  %s769_s15 = sphi %s803_s15, %s909_s15   ;;  %s765_s14 = sphi %s801_s14, %s908_s14   ;;  %s761_s13 = sphi %s799_s13, %s907_s13   ;;  %s757_s12 = sphi %s797_s12, %s906_s12  }
   0x4   : > { %p26_p0 = scmp.ge.s32.totalorder %s25_s17, 5  ;;  %p49_p2 = scmp.eq.s32.totalorder %s773_s16, 0 }
   0x5   : > { %s41_s19 = sadd.s32 1, %s761_s13  ;;  %p636_p5 = scmp.ge.s32.totalorder %s773_s16, 5 }
   0x6   : > { %s911_s17 = smov (%p26_p0, %s25_s17), 0  ;;  %p50_p3 = por %p49_p2, %p48_p1 }
   0x7   : > { %s37_s18 = ssub.s32 %s769_s15, %s911_s17  ;;  %164 = sbr.rel (%p636_p5) target bundleno = 21 (0x15), region = 20 }
   0x8   : > { %p39_p4 = scmp.eq.s32.totalorder %s37_s18, 0 }
   0xa   : > { %s832_s20 = scalar_select %p39_p4, %s761_s13, %s41_s19  }
   0xe   : > { %167 = sbr.rel (!%p50_p3) target bundleno = 21 (0x15), region = 24  ;;  %s169_s21 = sand.u32 (%p50_p3), 1, %s761_s13  }
   0xf   : > { %s638_s22 = sshll.u32 (%p50_p3), %s769_s15, 2  ;;  %s637_s23 = sshll.u32 (%p50_p3), %s169_s21, 3 }
  0x10   : > { %s176_s26 = scalar_lea.vmem (%p50_p3), %s902_s0, %s638_s22  ;;  %s171_s27 = scalar_lea.vmem (%p50_p3), [#allocation3], %s637_s23 }
  0x11   : > { %v192_v0 = vld [vmem:[%s176_s26] sm:$0xf] (%p50_p3)  ;;  %v194_v1 = vld [vmem:[%s176_s26 + $0x14] sm:$0xf] (%p50_p3) }
  0x12   : > { %193 = vst [vmem:[%s171_s27] sm:$0xf] (%p50_p3), %v192_v0  ;;  %195 = vst [vmem:[%s171_s27 + $0x4] sm:$0xf] (%p50_p3), %v194_v1 }
  0x15 PF: > { %p639_p6 = scmp.ge.s32.totalorder %s773_s16, 1  ;;  %p236_p7 = scmp.lt.s32.totalorder %s773_s16, 6 }
  0x17   : > { %p237_p8 = pnand %p639_p6, %p236_p7 }
  0x18   : > { %s243_s28 = sand.u32 (!%p237_p8), 1, %s757_s12   ;;  %s641_s29 = sshll.u32 (!%p237_p8), %s765_s14, 4 }
  0x19   : > { %240 = sbr.rel (%p237_p8) target bundleno = 300 (0x12c), region = 69  ;;  %s844_s30 = sshll.u32 (!%p237_p8), %s243_s28, 3 }
  0x1a   : > { %p288_p9 = scmp.lt.s32.totalorder (!%p237_p8), %s641_s29, 79  ;;  %s245_s8 = scalar_lea.vmem (!%p237_p8), [#allocation3], %s844_s30 }
  0x1b   : > { %p644_p10 = scmp.ne.s32.totalorder (!%p237_p8), %s765_s14, 0 }
  0x20   : > { %s913_s29 = smov (!%p288_p9, %s641_s29), 79  ;;  %319 = sbr.rel (%p644_p10) target bundleno = 39 (0x27), region = 77 }
  0x21   : > { %s667_s4 = sshll.u32 %s913_s29, 3  ;;  %v775_v2 = vmov (!%p644_p10), 0.0  }
  0x22   : > { %s849_s7 = scalar_lea.vmem %s903_s1, %s667_s4  ;;  %320 = vst [vmem:[#allocation2] sm:$0xff] (!%p644_p10), %v775_v2  ;;  %321 = vst [vmem:[#allocation2 + $0x8] sm:$0xff] (!%p644_p10), %v775_v2 }
  0x23   : > { %322 = vst [vmem:[#allocation2 + $0x10] sm:$0xff] (!%p644_p10), %v775_v2  ;;  %323 = vst [vmem:[#allocation2 + $0x18] sm:$0xff] (!%p644_p10), %v775_v2 }
  0x27 PF: > { %v710_v3 = vld [vmem:[%s849_s7 + $0x4] ss:$8 sps:$4 sm:$0xff]   ;;  %v712_v4 = vld [vmem:[%s849_s7] ss:$8 sps:$4 sm:$0xff]   ;;  %v776_v5 = vmov 0   ;;  %p662_p11 = scmp.ne.s32.totalorder %s765_s14, 4 }
  0x28   : > { %464 = vmatprep.mubr.bf16.mxu0 %v776_v5  ;;  %432 = vmatprep.subr.bf16.mxu0 %v710_v3  ;;  %v713_v6 = vld [vmem:[%s849_s7 + $0x14] ss:$8 sps:$4 sm:$0xff]   ;;  %v715_v7 = vld [vmem:[%s849_s7 + $0x10] ss:$8 sps:$4 sm:$0xff]   ;;  %v716_v8 = vld [vmem:[%s849_s7 + $0x24] ss:$8 sps:$4 sm:$0xff]   ;;  %v493_v33 = vlaneseq (!%p662_p11) }
  0x29   : > { %433 = vmatpush1.bf16.msra.mxu0 %v712_v4  ;;  %v718_v9 = vld [vmem:[%s849_s7 + $0x20] ss:$8 sps:$4 sm:$0xff]   ;;  %v719_v10 = vld [vmem:[%s849_s7 + $0x34] ss:$8 sps:$4 sm:$0xff]   ;;  %v721_v11 = vld [vmem:[%s849_s7 + $0x30] ss:$8 sps:$4 sm:$0xff]  }
  0x2a   : > { %434 = vmatprep.subr.bf16.mxu0 %v713_v6  ;;  %v722_v12 = vld [vmem:[%s849_s7 + $0x44] ss:$8 sps:$4 sm:$0xff]   ;;  %v724_v13 = vld [vmem:[%s849_s7 + $0x40] ss:$8 sps:$4 sm:$0xff]   ;;  %v725_v14 = vld [vmem:[%s849_s7 + $0x54] ss:$8 sps:$4 sm:$0xff]  }
  0x2b   : > { %v727_v15 = vld [vmem:[%s849_s7 + $0x50] ss:$8 sps:$4 sm:$0xff]   ;;  %v728_v16 = vld [vmem:[%s849_s7 + $0x64] ss:$8 sps:$4 sm:$0xff]   ;;  %v730_v17 = vld [vmem:[%s849_s7 + $0x60] ss:$8 sps:$4 sm:$0xff]  }
  0x2c   : > { %v731_v18 = vld [vmem:[%s849_s7 + $0x74] ss:$8 sps:$4 sm:$0xff]   ;;  %v733_v19 = vld [vmem:[%s849_s7 + $0x70] ss:$8 sps:$4 sm:$0xff]   ;;  %v734_v20 = vld [vmem:[%s245_s8] sm:$0xff]   ;;  %v494_v34 = vshrl.u32 (!%p662_p11), %v493_v33, 7 }
  0x2d   : > { %435 = vmatpush1.bf16.msra.mxu0 %v715_v7  ;;  %v326_v21 = vld [vmem:[#allocation2] sm:$0xff]  ;;  %v327_v22 = vld [vmem:[#allocation2 + $0x8] sm:$0xff]  ;;  %v328_v24 = vld [vmem:[#allocation2 + $0x10] sm:$0xff] }
  0x2e   : > { %436 = vmatprep.subr.bf16.mxu0 %v716_v8  ;;  %v329_v27 = vld [vmem:[#allocation2 + $0x18] sm:$0xff]  ;;  %v491_v35 = vld [vmem:[%s904_s2] sm:$0x3] (!%p662_p11)  ;;  %v495_v37 = vsub.s32 (!%p662_p11), 0, %v494_v34  ;;  %v499_v38 = vsub.s32 (!%p662_p11), 1, %v494_v34 }
  0x30   : > { %v496_v42 = vrot.slane (!%p662_p11), %v491_v35, %v495_v37  ;;  %v500_v43 = vrot.slane (!%p662_p11), %v491_v35, %v499_v38 }
  0x31   : > { %437 = vmatpush1.bf16.msra.mxu0 %v718_v9 }
  0x32   : > { %438 = vmatprep.subr.bf16.mxu0 %v719_v10 }
  0x35   : > { %439 = vmatpush1.bf16.msra.mxu0 %v721_v11 }
  0x36   : > { %440 = vmatprep.subr.bf16.mxu0 %v722_v12 }
  0x39   : > { %441 = vmatpush1.bf16.msra.mxu0 %v724_v13 }
  0x3a   : > { %442 = vmatprep.subr.bf16.mxu0 %v725_v14 }
  0x3d   : > { %443 = vmatpush1.bf16.msra.mxu0 %v727_v15 }
  0x3e   : > { %444 = vmatprep.subr.bf16.mxu0 %v728_v16 }
  0x41   : > { %445 = vmatpush1.bf16.msra.mxu0 %v730_v17 }
  0x42   : > { %446 = vmatprep.subr.bf16.mxu0 %v731_v18 }
  0x45   : > { %447 = vmatpush1.bf16.msra.mxu0 %v733_v19 }
  0x48   : > { %465 = vmatmul.mubr.bf16.vlgmr.msra.gmra.mrb[0].mxu0 %v734_v20 }
 0x11b   : > { %v466_v23 = vpop.f32.mrb[0].mxu0  ;;  %486 = sbr.rel (%p662_p11) target bundleno = 300 (0x12c), region = 81 }
 0x11c   : > { %v475_v25 = vadd.f32 %v466_v23, %v326_v21  ;;  %v468_v26 = vpop.f32.mrb[1].mxu0 }
 0x11d   : > { %v476_v28 = vadd.f32 %v468_v26, %v327_v22  ;;  %v470_v29 = vpop.f32.mrb[2].mxu0 }
 0x11e   : > { %479 = vst [vmem:[#allocation2] sm:$0xff] %v475_v25  ;;  %v477_v30 = vadd.f32 %v470_v29, %v328_v24  ;;  %v472_v31 = vpop.f32.mrb[3].mxu0 }
 0x11f   : > { %480 = vst [vmem:[#allocation2 + $0x8] sm:$0xff] %v476_v28  ;;  %v478_v32 = vadd.f32 %v472_v31, %v329_v27 }
 0x120   : > { %481 = vst [vmem:[#allocation2 + $0x10] sm:$0xff] %v477_v30 }
 0x121   : > { %482 = vst [vmem:[#allocation2 + $0x18] sm:$0xff] %v478_v32 }
 0x125   : > { %v487_v36 = vld [vmem:[#allocation2] sm:$0xff] }
 0x126   : > { %v488_v39 = vld [vmem:[#allocation2 + $0x8] sm:$0xff]  ;;  %v503_v44 = vadd.f32 %v496_v42, %v487_v36 }
 0x127   : > { %v489_v40 = vld [vmem:[#allocation2 + $0x10] sm:$0xff]  ;;  %v504_v45 = vadd.f32 %v500_v43, %v488_v39 }
 0x128   : > { %v490_v41 = vld [vmem:[#allocation2 + $0x18] sm:$0xff]  ;;  %v505_v46 = vadd.f32 %v496_v42, %v489_v40  ;;  %507 = vst [vmem:[%s905_s3] sm:$0xff] %v503_v44 }
 0x129   : > { %v506_v47 = vadd.f32 %v500_v43, %v490_v41  ;;  %508 = vst [vmem:[%s905_s3 + $0x8] sm:$0xff] %v504_v45 }
 0x12a   : > { %509 = vst [vmem:[%s905_s3 + $0x10] sm:$0xff] %v505_v46 }
 0x12b   : > { %510 = vst [vmem:[%s905_s3 + $0x18] sm:$0xff] %v506_v47 }
 0x12c PF: > { %s13_s16 = sadd.s32 1, %s773_s16   ;;  %s906_s12 = smov %s761_s13 }
 0x12d   : > { %p10_p12 = scmp.ge.s32.totalorder %s13_s16, 7   ;;  %s907_s13 = smov %s832_s20 }
 0x12e   : > { %s908_s14 = smov %s769_s15  ;;  %s909_s15 = smov %s911_s17 }
 0x12f   :  { %12 = sbr.rel (!%p10_p12) target bundleno = 3 (0x3), region = 122 }

// kernel: single_unet_generator_L.42
= control target key start
LH: loop header
LB: loop body
LE: loop exit
PB: predicated region body
PF: predicated region fallthrough
CT: control target
= control target key end

     0   :  { %s70_s0 = inlined_call_operand.vmem [shape: f32[8,128], index: 0, kind: input, shape index: {}]   ;;  %s71_s1 = inlined_call_operand.vmem [shape: f32[1,128], index: 1, kind: input, shape index: {}]   ;;  %s72_s2 = inlined_call_operand.vmem [shape: f32[1,128], index: 2, kind: input, shape index: {}]   ;;  %s73_s3 = inlined_call_operand.vmem [shape: f32[8,128], index: 3, kind: output, shape index: {}]  }
   0x1   :  { %v14_v0 = vld [vmem:[%s70_s0] sm:$0xff] }
   0x2   :  { %v36_v1 = vld [vmem:[%s71_s1] ss:$0 sm:$0xff] }
   0x3   :  { %v37_v2 = vld [vmem:[%s72_s2] ss:$0 sm:$0xff]  ;;  %v22_v3 = vmul.f32 %v36_v1, %v14_v0 }
   0x5   :  { %v30_v4 = vadd.f32 %v37_v2, %v22_v3 }
   0x7   :  { %31 = vst [vmem:[%s73_s3] sm:$0xff] %v30_v4 }

// kernel: tile.33
= control target key start
LH: loop header
LB: loop body
LE: loop exit
PB: predicated region body
PF: predicated region fallthrough
CT: control target
= control target key end

     0   :  { %s22_s0 = inlined_call_operand.vmem [shape: f32[32], index: 0, kind: input, shape index: {}]   ;;  %s23_s1 = inlined_call_operand.vmem [shape: f32[4,32], index: 1, kind: output, shape index: {}]  }
   0x1   :  { %v4_v0 = vld [vmem:[%s22_s0] ss:$0 sm:$0xff] }
   0x2   :  { %5 = vst [vmem:[%s23_s1] sm:$0xf] %v4_v0 }

// kernel: single_unet_generator_L.43
= control target key start
LH: loop header
LB: loop body
LE: loop exit
PB: predicated region body
PF: predicated region fallthrough
CT: control target
= control target key end

     0   :  { %s962_s12 = smov 0   ;;  %s964_s13 = smov 0   ;;  %s1079_s0 = inlined_call_operand.vmem [shape: bf16[16,1152], index: 0, kind: input, shape index: {}]   ;;  %s1080_s1 = inlined_call_operand.vmem [shape: bf16[1152,128], index: 1, kind: input, shape index: {}]   ;;  %s1081_s2 = inlined_call_operand.vmem [shape: f32[1,128], index: 2, kind: input, shape index: {}]   ;;  %s1082_s3 = inlined_call_operand.vmem [shape: f32[16,128], index: 3, kind: output, shape index: {}]  }
   0x1   :  { %s966_s14 = smov 0   ;;  %s968_s15 = smov 0  }
   0x2   :  { %s970_s16 = smov 0  }
   0x3 LB: > { %s25_s17 = sadd.s32 1, %s932_s15  ;;  %p48_p1 = scmp.ne.s32.totalorder %s924_s13, %s920_s12  ;;  %s936_s16 = sphi %s970_s16, %s13_s16   ;;  %s932_s15 = sphi %s968_s15, %s1086_s15   ;;  %s928_s14 = sphi %s966_s14, %s1085_s14   ;;  %s924_s13 = sphi %s964_s13, %s1084_s13   ;;  %s920_s12 = sphi %s962_s12, %s1083_s12  }
   0x4   : > { %p26_p0 = scmp.ge.s32.totalorder %s25_s17, 3  ;;  %p49_p2 = scmp.eq.s32.totalorder %s936_s16, 0 }
   0x5   : > { %s41_s19 = sadd.s32 1, %s924_s13  ;;  %p734_p5 = scmp.ge.s32.totalorder %s936_s16, 3 }
   0x6   : > { %s1088_s17 = smov (%p26_p0, %s25_s17), 0  ;;  %p50_p3 = por %p49_p2, %p48_p1 }
   0x7   : > { %s37_s18 = ssub.s32 %s932_s15, %s1088_s17  ;;  %162 = sbr.rel (%p734_p5) target bundleno = 21 (0x15), region = 20 }
   0x8   : > { %p39_p4 = scmp.eq.s32.totalorder %s37_s18, 0 }
   0xa   : > { %s997_s20 = scalar_select %p39_p4, %s924_s13, %s41_s19  }
   0xe   : > { %165 = sbr.rel (!%p50_p3) target bundleno = 21 (0x15), region = 24  ;;  %s167_s21 = sand.u32 (%p50_p3), 1, %s924_s13  }
   0xf   : > { %s776_s22 = smul.u32 (%p50_p3), 12, %s932_s15 }
  0x10   : > { %s828_s23 = smul.u32 (%p50_p3), 24, %s167_s21 }
  0x11   : > { %s175_s26 = scalar_lea.vmem (%p50_p3), %s1079_s0, %s776_s22 }
  0x12   : > { %v190_v0 = vld [vmem:[%s175_s26] sm:$0xff] (%p50_p3)  ;;  %v736_v2 = vld [vmem:[%s175_s26 + $0x8] sm:$0xf] (%p50_p3)  ;;  %s169_s27 = scalar_lea.vmem (%p50_p3), [#allocation3], %s828_s23  ;;  %v738_v3 = vld [vmem:[%s175_s26 + $0x2c] sm:$0xf] (%p50_p3) }
  0x13   : > { %v192_v1 = vld [vmem:[%s175_s26 + $0x24] sm:$0xff] (%p50_p3)  ;;  %191 = vst [vmem:[%s169_s27] sm:$0xff] (%p50_p3), %v190_v0  ;;  %737 = vst [vmem:[%s169_s27 + $0x8] sm:$0xf] (%p50_p3), %v736_v2 }
  0x14   : > { %193 = vst [vmem:[%s169_s27 + $0xc] sm:$0xff] (%p50_p3), %v192_v1  ;;  %739 = vst [vmem:[%s169_s27 + $0x14] sm:$0xf] (%p50_p3), %v738_v3 }
  0x15 PF: > { %p740_p6 = scmp.ge.s32.totalorder %s936_s16, 1  ;;  %p221_p7 = scmp.lt.s32.totalorder %s936_s16, 4 }
  0x17   : > { %p222_p8 = pnand %p740_p6, %p221_p7 }
  0x18   : > { %s228_s28 = sand.u32 (!%p222_p8), 1, %s920_s12   ;;  %s267_s29 = smul.u32 (!%p222_p8), 48, %s928_s14 }
  0x19   : > { %225 = sbr.rel (%p222_p8) target bundleno = 304 (0x130), region = 54  ;;  %p742_p10 = scmp.ne.s32.totalorder (!%p222_p8), %s928_s14, 0 }
  0x1a   : > { %s829_s30 = smul.u32 (!%p222_p8), 24, %s228_s28  ;;  %p268_p9 = scmp.lt.s32.totalorder (!%p222_p8), %s267_s29, 143 }
  0x1c   : > { %s1014_s8 = scalar_lea.vmem (!%p222_p8), [#allocation3], %s829_s30 }
  0x20   : > { %s1090_s29 = smov (!%p268_p9, %s267_s29), 143  ;;  %292 = sbr.rel (%p742_p10) target bundleno = 39 (0x27), region = 62 }
  0x21   : > { %s741_s4 = sshll.u32 %s1090_s29, 2  ;;  %v938_v4 = vmov (!%p742_p10), 0.0  }
  0x22   : > { %s1012_s7 = scalar_lea.vmem %s1080_s1, %s741_s4  ;;  %293 = vst [vmem:[#allocation2] sm:$0xff] (!%p742_p10), %v938_v4  ;;  %294 = vst [vmem:[#allocation2 + $0x8] sm:$0xff] (!%p742_p10), %v938_v4 }
  0x27 PF: > { %v874_v5 = vld [vmem:[%s1012_s7 + $0x40] sm:$0xff]   ;;  %v939_v6 = vmov 0.0   ;;  %v877_v9 = vld [vmem:[%s1012_s7 + $0x48] sm:$0xff]   ;;  %vm940_vm0 = vmmov 0   ;;  %v880_v12 = vld [vmem:[%s1012_s7 + $0x50] sm:$0xff]   ;;  %v941_v31 = vmov 0  }
  0x28   : > { %808 = vmatprep.subr.bf16.mxu1 %v939_v6  ;;  %v875_v7 = vld [vmem:[%s1012_s7] sm:$0xff]   ;;  %777 = vmatprep.subr.bf16.mxu0 %v874_v5  ;;  %v878_v10 = vld [vmem:[%s1012_s7 + $0x8] sm:$0xff]   ;;  %v881_v13 = vld [vmem:[%s1012_s7 + $0x10] sm:$0xff]   ;;  %p770_p11 = scmp.ne.s32.totalorder %s928_s14, 2 }
  0x29   : > { %v876_v8 = vld [vmem:[%s1012_s7 + $0x80] sm:$0xff]   ;;  %778 = vmatpush3.bf16.msra.mxu0 %v875_v7  ;;  %824 = vmatprep.mubr.msk.bf16.mxu1 %vm940_vm0, %v939_v6  ;;  %v879_v11 = vld [vmem:[%s1012_s7 + $0x88] sm:$0xff]   ;;  %v882_v14 = vld [vmem:[%s1012_s7 + $0x90] sm:$0xff]  }
  0x2a   : > { %809 = vmatpush3.bf16.msra.mxu1 %v876_v8  ;;  %779 = vmatprep.subr.bf16.mxu0 %v877_v9  ;;  %v883_v15 = vld [vmem:[%s1012_s7 + $0x58] sm:$0xff]   ;;  %v886_v18 = vld [vmem:[%s1012_s7 + $0x60] sm:$0xff]   ;;  %v889_v21 = vld [vmem:[%s1012_s7 + $0x68] sm:$0xff]  }
  0x2b   : > { %810 = vmatprep.subr.bf16.mxu1 %v939_v6  ;;  %v884_v16 = vld [vmem:[%s1012_s7 + $0x18] sm:$0xff]   ;;  %v887_v19 = vld [vmem:[%s1012_s7 + $0x20] sm:$0xff]   ;;  %v890_v22 = vld [vmem:[%s1012_s7 + $0x28] sm:$0xff]  }
  0x2c   : > { %v885_v17 = vld [vmem:[%s1012_s7 + $0x98] sm:$0xff]   ;;  %v888_v20 = vld [vmem:[%s1012_s7 + $0xa0] sm:$0xff]   ;;  %v891_v23 = vld [vmem:[%s1012_s7 + $0xa8] sm:$0xff]  }
  0x2d   : > { %780 = vmatpush3.bf16.msra.mxu0 %v878_v10  ;;  %v892_v24 = vld [vmem:[%s1012_s7 + $0x70] sm:$0xff]   ;;  %v895_v27 = vld [vmem:[%s1012_s7 + $0x78] sm:$0xff]   ;;  %v303_v48 = vld [vmem:[#allocation2] sm:$0xff] }
  0x2e   : > { %811 = vmatpush3.bf16.msra.mxu1 %v879_v11  ;;  %781 = vmatprep.subr.bf16.mxu0 %v880_v12  ;;  %v893_v25 = vld [vmem:[%s1012_s7 + $0x30] sm:$0xff]   ;;  %v298_v34 = vld [vmem:[%s1014_s8 + $0x14] sm:$0xf]  ;;  %v304_v54 = vld [vmem:[#allocation2 + $0x8] sm:$0xff] }
  0x2f   : > { %812 = vmatprep.subr.bf16.mxu1 %v939_v6  ;;  %v894_v26 = vld [vmem:[%s1012_s7 + $0xb0] sm:$0xff]   ;;  %v896_v35 = vld [vmem:[%s1012_s7 + $0x38] sm:$0xff]   ;;  %v302_v38 = vmax.bf16 %v941_v31, %v298_v34  ;;  %v771_v59 = vld [vmem:[%s1081_s2] ss:$0 sm:$0xff] (!%p770_p11) }
  0x30   : > { %v295_v28 = vld [vmem:[%s1014_s8] sm:$0xff]  ;;  %v297_v29 = vld [vmem:[%s1014_s8 + $0xc] sm:$0xff]  ;;  %v296_v30 = vld [vmem:[%s1014_s8 + $0x8] sm:$0xf] }
  0x31   : > { %782 = vmatpush3.bf16.msra.mxu0 %v881_v13  ;;  %v299_v32 = vmax.bf16 %v941_v31, %v295_v28  ;;  %v301_v33 = vmax.bf16 %v941_v31, %v297_v29  ;;  %v300_v37 = vmax.bf16 %v941_v31, %v296_v30  ;;  %v897_v39 = vld [vmem:[%s1012_s7 + $0xb8] sm:$0xff]  }
  0x32   : > { %813 = vmatpush3.bf16.msra.mxu1 %v882_v14  ;;  %783 = vmatprep.subr.bf16.mxu0 %v883_v15 }
  0x33   : > { %814 = vmatprep.subr.bf16.mxu1 %v939_v6  ;;  %v744_v36 = vcombine.high %v299_v32, %v301_v33  ;;  %v743_v40 = vcombine.low %v299_v32, %v301_v33  ;;  %v745_v41 = vcombine.low %v300_v37, %v302_v38 }
  0x35   : > { %784 = vmatpush3.bf16.msra.mxu0 %v884_v16  ;;  %545 = vmatprep.mubr.bf16.mxu0 %v744_v36 }
  0x36   : > { %815 = vmatpush3.bf16.msra.mxu1 %v885_v17  ;;  %785 = vmatprep.subr.bf16.mxu0 %v886_v18 }
  0x37   : > { %816 = vmatprep.subr.bf16.mxu1 %v939_v6 }
  0x39   : > { %786 = vmatpush3.bf16.msra.mxu0 %v887_v19 }
  0x3a   : > { %817 = vmatpush3.bf16.msra.mxu1 %v888_v20  ;;  %787 = vmatprep.subr.bf16.mxu0 %v889_v21 }
  0x3b   : > { %818 = vmatprep.subr.bf16.mxu1 %v939_v6 }
  0x3d   : > { %788 = vmatpush3.bf16.msra.mxu0 %v890_v22 }
  0x3e   : > { %819 = vmatpush3.bf16.msra.mxu1 %v891_v23  ;;  %789 = vmatprep.subr.bf16.mxu0 %v892_v24 }
  0x3f   : > { %820 = vmatprep.subr.bf16.mxu1 %v939_v6 }
  0x41   : > { %790 = vmatpush3.bf16.msra.mxu0 %v893_v25 }
  0x42   : > { %821 = vmatpush3.bf16.msra.mxu1 %v894_v26  ;;  %791 = vmatprep.subr.bf16.mxu0 %v895_v27 }
  0x43   : > { %822 = vmatprep.subr.bf16.mxu1 %v939_v6 }
  0x45   : > { %792 = vmatpush3.bf16.msra.mxu0 %v896_v35 }
  0x46   : > { %823 = vmatpush3.bf16.msra.mxu1 %v897_v39 }
  0x48   : > { %546 = vmatmul.mubr.bf16.vlgmr.msra.gmra.mrb[0].mxu0 %v743_v40 }
  0x49   : > { %825 = vmatmul.mubr.bf16.vlgmr.msra.gmra.mrb[0].mxu1 %v745_v41 }
 0x11b   : > { %v793_v42 = vpop.f32.mrb[0].mxu0 }
 0x11c   : > { %v588_v43 = vpop.f32.mrb[0].mxu1  ;;  %v794_v44 = vpop.f32.mrb[1].mxu0 }
 0x11d   : > { %v795_v45 = vadd.f32 %v794_v44, %v793_v42  ;;  %v826_v46 = vpop.f32.mrb[1].mxu1  ;;  %v796_v47 = vpop.f32.mrb[2].mxu0 }
 0x11e   : > { %v591_v49 = vpop.f32.mrb[2].mxu1  ;;  %v797_v50 = vpop.f32.mrb[3].mxu0 }
 0x11f   : > { %v589_v51 = vadd.f32 %v795_v45, %v588_v43  ;;  %v798_v52 = vadd.f32 %v797_v50, %v796_v47  ;;  %v827_v53 = vpop.f32.mrb[3].mxu1  ;;  %602 = sbr.rel (%p770_p11) target bundleno = 304 (0x130), region = 66 }
 0x121   : > { %v595_v55 = vadd.f32 %v589_v51, %v303_v48  ;;  %v592_v56 = vadd.f32 %v798_v52, %v591_v49 }
 0x123   : > { %597 = vst [vmem:[#allocation2] sm:$0xff] %v595_v55  ;;  %v596_v57 = vadd.f32 %v592_v56, %v304_v54 }
 0x125   : > { %598 = vst [vmem:[#allocation2 + $0x8] sm:$0xff] %v596_v57 }
 0x12a   : > { %v603_v58 = vld [vmem:[#allocation2] sm:$0xff] }
 0x12b   : > { %v612_v61 = vadd.f32 %v771_v59, %v603_v58 }
 0x12c   : > { %v604_v60 = vld [vmem:[#allocation2 + $0x8] sm:$0xff] }
 0x12d   : > { %v613_v62 = vadd.f32 %v771_v59, %v604_v60  ;;  %614 = vst [vmem:[%s1082_s3] sm:$0xff] %v612_v61 }
 0x12f   : > { %615 = vst [vmem:[%s1082_s3 + $0x8] sm:$0xff] %v613_v62 }
 0x130 PF: > { %s13_s16 = sadd.s32 1, %s936_s16   ;;  %s1083_s12 = smov %s924_s13 }
 0x131   : > { %p10_p12 = scmp.ge.s32.totalorder %s13_s16, 5   ;;  %s1084_s13 = smov %s997_s20 }
 0x132   : > { %s1085_s14 = smov %s932_s15  ;;  %s1086_s15 = smov %s1088_s17 }
 0x133   :  { %12 = sbr.rel (!%p10_p12) target bundleno = 3 (0x3), region = 113 }

// kernel: single_unet_generator_L.45
= control target key start
LH: loop header
LB: loop body
LE: loop exit
PB: predicated region body
PF: predicated region fallthrough
CT: control target
= control target key end

     0   :  { %s100_s0 = inlined_call_operand.vmem [shape: f32[32,128], index: 0, kind: input, shape index: {}]   ;;  %s101_s1 = inlined_call_operand.vmem [shape: f32[1,128], index: 1, kind: input, shape index: {}]   ;;  %s102_s2 = inlined_call_operand.vmem [shape: f32[1,128], index: 2, kind: input, shape index: {}]   ;;  %s103_s3 = inlined_call_operand.vmem [shape: f32[32,128], index: 3, kind: output, shape index: {}]  }
   0x1   :  { %v14_v0 = vld [vmem:[%s100_s0] sm:$0xff]  ;;  %v15_v4 = vld [vmem:[%s100_s0 + $0x8] sm:$0xff]  ;;  %v16_v5 = vld [vmem:[%s100_s0 + $0x10] sm:$0xff] }
   0x2   :  { %v48_v1 = vld [vmem:[%s101_s1] ss:$0 sm:$0xff]  ;;  %v17_v6 = vld [vmem:[%s100_s0 + $0x18] sm:$0xff] }
   0x3   :  { %v49_v2 = vld [vmem:[%s102_s2] ss:$0 sm:$0xff]  ;;  %v25_v3 = vmul.f32 %v48_v1, %v14_v0  ;;  %v26_v7 = vmul.f32 %v48_v1, %v15_v4  ;;  %v27_v8 = vmul.f32 %v48_v1, %v16_v5  ;;  %v28_v9 = vmul.f32 %v48_v1, %v17_v6 }
   0x5   :  { %v36_v10 = vadd.f32 %v49_v2, %v25_v3  ;;  %v37_v11 = vadd.f32 %v49_v2, %v26_v7  ;;  %v38_v12 = vadd.f32 %v49_v2, %v27_v8  ;;  %v39_v13 = vadd.f32 %v49_v2, %v28_v9 }
   0x7   :  { %40 = vst [vmem:[%s103_s3] sm:$0xff] %v36_v10  ;;  %41 = vst [vmem:[%s103_s3 + $0x8] sm:$0xff] %v37_v11 }
   0x8   :  { %42 = vst [vmem:[%s103_s3 + $0x10] sm:$0xff] %v38_v12  ;;  %43 = vst [vmem:[%s103_s3 + $0x18] sm:$0xff] %v39_v13 }

// kernel: tile.38
= control target key start
LH: loop header
LB: loop body
LE: loop exit
PB: predicated region body
PF: predicated region fallthrough
CT: control target
= control target key end

     0   :  { %s22_s0 = inlined_call_operand.vmem [shape: f32[16], index: 0, kind: input, shape index: {}]   ;;  %s23_s1 = inlined_call_operand.vmem [shape: f32[4,16], index: 1, kind: output, shape index: {}]  }
   0x1   :  { %v4_v0 = vld [vmem:[%s22_s0] ss:$0 sm:$0xff] }
   0x2   :  { %5 = vst [vmem:[%s23_s1] sm:$0xf] %v4_v0 }

// kernel: tile.39
= control target key start
LH: loop header
LB: loop body
LE: loop exit
PB: predicated region body
PF: predicated region fallthrough
CT: control target
= control target key end

     0   :  { %vm7_vm0 = vcmask 130048   ;;  %s37_s8 = smov 16   ;;  %s38_s9 = smov 32   ;;  %vm13_vm1 = vcmask 523648   ;;  %vm19_vm2 = vcmask 392448   ;;  %vm25_vm3 = vcmask 261248   ;;  %s55_s0 = inlined_call_operand.vmem [shape: f32[4,16], index: 0, kind: input, shape index: {}]   ;;  %s56_s1 = inlined_call_operand.vmem [shape: f32[64], index: 1, kind: output, shape index: {}]  }
   0x1   :  { %v4_v0 = vld [vmem:[%s55_s0] sm:$0xf]  ;;  %s36_s0 = smov 48  }
   0x2   :  { %5 = vst [vmem:[#allocation1] sm:$0xf] %v4_v0 }
   0x9   :  { %v10_v1 = vld [vmem:[#allocation1 + $0x3] sm:$0x1]   ;;  %v22_v2 = vld [vmem:[#allocation1 + $0x1] sm:$0x1]   ;;  %v6_v3 = vld [vmem:[#allocation1] sm:$0x1]  }
   0xa   :  { %11 = vrot.lane.b32.xlu0 %v10_v1, %s36_s0  ;;  %23 = vrot.lane.b32.xlu1 %v22_v2, %s37_s8  ;;  %v16_v4 = vld [vmem:[#allocation1 + $0x2] sm:$0x1]   ;;  %8 = vst.msk [vmem:[#allocation0] sm:$0x1] %vm7_vm0, %v6_v3  }
   0xe   :  { %17 = vrot.lane.b32.xlu0 %v16_v4, %s38_s9 }
  0x7c   :  { %v12_v5 = vpop.permute.xlu0 %11   ;;  %v24_v6 = vpop.permute.xlu1 %23  }
  0x7d   :  { %14 = vst.msk [vmem:[#allocation0] sm:$0x1] %vm13_vm1, %v12_v5  }
  0x80   :  { %v18_v7 = vpop.permute.xlu0 %17  }
  0x81   :  { %20 = vst.msk [vmem:[#allocation0] sm:$0x1] %vm19_vm2, %v18_v7  }
  0x82   :  { %26 = vst.msk [vmem:[#allocation0] sm:$0x1] %vm25_vm3, %v24_v6  }
  0x89   :  { %v30_v8 = vld [vmem:[#allocation0] sm:$0x1] }
  0x8a   :  { %32 = vst [vmem:[%s56_s1] sm:$0x1] %v30_v8 }

// kernel: single_unet_generator_L.46
= control target key start
LH: loop header
LB: loop body
LE: loop exit
PB: predicated region body
PF: predicated region fallthrough
CT: control target
= control target key end

     0   :  { %s761_s12 = smov 0   ;;  %s763_s13 = smov 0   ;;  %s859_s0 = inlined_call_operand.vmem [shape: bf16[32,640], index: 0, kind: input, shape index: {}]   ;;  %s860_s1 = inlined_call_operand.vmem [shape: bf16[640,128], index: 1, kind: input, shape index: {}]   ;;  %s861_s2 = inlined_call_operand.vmem [shape: f32[1,128], index: 2, kind: input, shape index: {}]   ;;  %s862_s3 = inlined_call_operand.vmem [shape: f32[32,128], index: 3, kind: output, shape index: {}]  }
   0x1   :  { %s765_s14 = smov 0   ;;  %s767_s15 = smov 0  }
   0x2   :  { %s769_s16 = smov 0  }
   0x3 LB: > { %s25_s17 = sadd.s32 1, %s733_s15  ;;  %p48_p1 = scmp.ne.s32.totalorder %s725_s13, %s721_s12  ;;  %s737_s16 = sphi %s769_s16, %s13_s16   ;;  %s733_s15 = sphi %s767_s15, %s866_s15   ;;  %s729_s14 = sphi %s765_s14, %s865_s14   ;;  %s725_s13 = sphi %s763_s13, %s864_s13   ;;  %s721_s12 = sphi %s761_s12, %s863_s12  }
   0x4   : > { %p26_p0 = scmp.ge.s32.totalorder %s25_s17, 5  ;;  %p49_p2 = scmp.eq.s32.totalorder %s737_s16, 0 }
   0x5   : > { %s41_s19 = sadd.s32 1, %s725_s13  ;;  %p595_p5 = scmp.ge.s32.totalorder %s737_s16, 5 }
   0x6   : > { %s868_s17 = smov (%p26_p0, %s25_s17), 0  ;;  %p50_p3 = por %p49_p2, %p48_p1 }
   0x7   : > { %s37_s18 = ssub.s32 %s733_s15, %s868_s17  ;;  %162 = sbr.rel (%p595_p5) target bundleno = 21 (0x15), region = 20 }
   0x8   : > { %p39_p4 = scmp.eq.s32.totalorder %s37_s18, 0 }
   0xa   : > { %s796_s20 = scalar_select %p39_p4, %s725_s13, %s41_s19  }
   0xe   : > { %165 = sbr.rel (!%p50_p3) target bundleno = 21 (0x15), region = 24  ;;  %s167_s21 = sand.u32 (%p50_p3), 1, %s725_s13  }
   0xf   : > { %s597_s22 = sshll.u32 (%p50_p3), %s733_s15, 2  ;;  %s596_s23 = sshll.u32 (%p50_p3), %s167_s21, 4 }
  0x10   : > { %s174_s26 = scalar_lea.vmem (%p50_p3), %s859_s0, %s597_s22  ;;  %s169_s27 = scalar_lea.vmem (%p50_p3), [#allocation3], %s596_s23 }
  0x11   : > { %v190_v0 = vld [vmem:[%s174_s26] sm:$0xf] (%p50_p3)  ;;  %v192_v1 = vld [vmem:[%s174_s26 + $0x14] sm:$0xf] (%p50_p3)  ;;  %v194_v2 = vld [vmem:[%s174_s26 + $0x28] sm:$0xf] (%p50_p3) }
  0x12   : > { %191 = vst [vmem:[%s169_s27] sm:$0xf] (%p50_p3), %v190_v0  ;;  %193 = vst [vmem:[%s169_s27 + $0x4] sm:$0xf] (%p50_p3), %v192_v1  ;;  %v196_v3 = vld [vmem:[%s174_s26 + $0x3c] sm:$0xf] (%p50_p3) }
  0x13   : > { %195 = vst [vmem:[%s169_s27 + $0x8] sm:$0xf] (%p50_p3), %v194_v2  ;;  %197 = vst [vmem:[%s169_s27 + $0xc] sm:$0xf] (%p50_p3), %v196_v3 }
  0x15 PF: > { %p598_p6 = scmp.ge.s32.totalorder %s737_s16, 1  ;;  %p239_p7 = scmp.lt.s32.totalorder %s737_s16, 6 }
  0x17   : > { %p240_p8 = pnand %p598_p6, %p239_p7 }
  0x18   : > { %s246_s28 = sand.u32 (!%p240_p8), 1, %s721_s12   ;;  %s600_s29 = sshll.u32 (!%p240_p8), %s729_s14, 4 }
  0x19   : > { %243 = sbr.rel (%p240_p8) target bundleno = 300 (0x12c), region = 69  ;;  %s599_s30 = sshll.u32 (!%p240_p8), %s246_s28, 4 }
  0x1a   : > { %p285_p9 = scmp.lt.s32.totalorder (!%p240_p8), %s600_s29, 79  ;;  %s813_s8 = scalar_lea.vmem (!%p240_p8), [#allocation3], %s599_s30 }
  0x1b   : > { %p602_p10 = scmp.ne.s32.totalorder (!%p240_p8), %s729_s14, 0 }
  0x20   : > { %s870_s29 = smov (!%p285_p9, %s600_s29), 79  ;;  %309 = sbr.rel (%p602_p10) target bundleno = 39 (0x27), region = 77 }
  0x21   : > { %s601_s4 = sshll.u32 %s870_s29, 2  ;;  %v739_v4 = vmov (!%p602_p10), 0.0  }
  0x22   : > { %s811_s7 = scalar_lea.vmem %s860_s1, %s601_s4  ;;  %310 = vst [vmem:[#allocation2] sm:$0xff] (!%p602_p10), %v739_v4  ;;  %311 = vst [vmem:[#allocation2 + $0x8] sm:$0xff] (!%p602_p10), %v739_v4 }
  0x23   : > { %312 = vst [vmem:[#allocation2 + $0x10] sm:$0xff] (!%p602_p10), %v739_v4  ;;  %313 = vst [vmem:[#allocation2 + $0x18] sm:$0xff] (!%p602_p10), %v739_v4 }
  0x27 PF: > { %v691_v5 = vld [vmem:[%s811_s7] sm:$0xff]   ;;  %v692_v6 = vld [vmem:[%s811_s7 + $0x8] sm:$0xff]   ;;  %v693_v7 = vld [vmem:[%s811_s7 + $0x10] sm:$0xff]   ;;  %v740_v11 = vmov 0   ;;  %p613_p11 = scmp.ne.s32.totalorder %s729_s14, 4 }
  0x28   : > { %629 = vmatprep.subr.bf16.mxu0 %v691_v5  ;;  %v694_v8 = vld [vmem:[%s811_s7 + $0x18] sm:$0xff]   ;;  %v314_v9 = vld [vmem:[%s813_s8] sm:$0xf]  ;;  %v315_v10 = vld [vmem:[%s813_s8 + $0x4] sm:$0xf] }
  0x29   : > { %630 = vmatpush3.bf16.msra.mxu0 %v691_v5  ;;  %v318_v12 = vmax.bf16 %v740_v11, %v314_v9  ;;  %v319_v13 = vmax.bf16 %v740_v11, %v315_v10  ;;  %v695_v15 = vld [vmem:[%s811_s7 + $0x20] sm:$0xff]   ;;  %v696_v16 = vld [vmem:[%s811_s7 + $0x28] sm:$0xff]   ;;  %v697_v17 = vld [vmem:[%s811_s7 + $0x30] sm:$0xff]  }
  0x2a   : > { %631 = vmatprep.subr.bf16.mxu0 %v692_v6  ;;  %v316_v18 = vld [vmem:[%s813_s8 + $0x8] sm:$0xf]  ;;  %v317_v19 = vld [vmem:[%s813_s8 + $0xc] sm:$0xf]  ;;  %v324_v24 = vld [vmem:[#allocation2 + $0x10] sm:$0xff] }
  0x2b   : > { %v603_v14 = vcombine.low %v318_v12, %v319_v13  ;;  %v698_v20 = vld [vmem:[%s811_s7 + $0x38] sm:$0xff]   ;;  %v320_v21 = vmax.bf16 %v740_v11, %v316_v18  ;;  %v321_v22 = vmax.bf16 %v740_v11, %v317_v19  ;;  %v322_v25 = vld [vmem:[#allocation2] sm:$0xff]  ;;  %v323_v30 = vld [vmem:[#allocation2 + $0x8] sm:$0xff] }
  0x2c   : > { %v325_v27 = vld [vmem:[#allocation2 + $0x18] sm:$0xff]  ;;  %v614_v37 = vld [vmem:[%s861_s2] ss:$0 sm:$0xff] (!%p613_p11) }
  0x2d   : > { %632 = vmatpush3.bf16.msra.mxu0 %v692_v6  ;;  %645 = vmatprep.mubr.bf16.mxu0 %v603_v14  ;;  %v604_v23 = vcombine.low %v320_v21, %v321_v22 }
  0x2e   : > { %633 = vmatprep.subr.bf16.mxu0 %v693_v7 }
  0x31   : > { %634 = vmatpush3.bf16.msra.mxu0 %v693_v7 }
  0x32   : > { %635 = vmatprep.subr.bf16.mxu0 %v694_v8 }
  0x35   : > { %636 = vmatpush3.bf16.msra.mxu0 %v694_v8 }
  0x36   : > { %637 = vmatprep.subr.bf16.mxu0 %v695_v15 }
  0x39   : > { %638 = vmatpush3.bf16.msra.mxu0 %v695_v15 }
  0x3a   : > { %639 = vmatprep.subr.bf16.mxu0 %v696_v16 }
  0x3d   : > { %640 = vmatpush3.bf16.msra.mxu0 %v696_v16 }
  0x3e   : > { %641 = vmatprep.subr.bf16.mxu0 %v697_v17 }
  0x41   : > { %642 = vmatpush3.bf16.msra.mxu0 %v697_v17 }
  0x42   : > { %643 = vmatprep.subr.bf16.mxu0 %v698_v20 }
  0x45   : > { %644 = vmatpush3.bf16.msra.mxu0 %v698_v20 }
  0x48   : > { %646 = vmatmul.mubr.bf16.vlgmr.msra.gmra.mrb[0].mxu0 %v604_v23 }
 0x11b   : > { %v647_v26 = vpop.f32.mrb[0].mxu0  ;;  %462 = sbr.rel (%p613_p11) target bundleno = 300 (0x12c), region = 81 }
 0x11c   : > { %v453_v28 = vadd.f32 %v647_v26, %v324_v24  ;;  %v436_v29 = vpop.f32.mrb[1].mxu0 }
 0x11d   : > { %v451_v31 = vadd.f32 %v436_v29, %v322_v25  ;;  %v648_v32 = vpop.f32.mrb[2].mxu0 }
 0x11e   : > { %457 = vst [vmem:[#allocation2 + $0x10] sm:$0xff] %v453_v28  ;;  %v454_v33 = vadd.f32 %v648_v32, %v325_v27  ;;  %v439_v34 = vpop.f32.mrb[3].mxu0 }
 0x11f   : > { %455 = vst [vmem:[#allocation2] sm:$0xff] %v451_v31  ;;  %v452_v35 = vadd.f32 %v439_v34, %v323_v30 }
 0x120   : > { %458 = vst [vmem:[#allocation2 + $0x18] sm:$0xff] %v454_v33 }
 0x121   : > { %456 = vst [vmem:[#allocation2 + $0x8] sm:$0xff] %v452_v35 }
 0x125   : > { %v465_v41 = vld [vmem:[#allocation2 + $0x10] sm:$0xff] }
 0x126   : > { %v463_v36 = vld [vmem:[#allocation2] sm:$0xff]  ;;  %v476_v43 = vadd.f32 %v614_v37, %v465_v41 }
 0x127   : > { %v474_v39 = vadd.f32 %v614_v37, %v463_v36  ;;  %v466_v42 = vld [vmem:[#allocation2 + $0x18] sm:$0xff] }
 0x128   : > { %v464_v38 = vld [vmem:[#allocation2 + $0x8] sm:$0xff]  ;;  %v477_v44 = vadd.f32 %v614_v37, %v466_v42  ;;  %480 = vst [vmem:[%s862_s3 + $0x10] sm:$0xff] %v476_v43 }
 0x129   : > { %v475_v40 = vadd.f32 %v614_v37, %v464_v38  ;;  %478 = vst [vmem:[%s862_s3] sm:$0xff] %v474_v39 }
 0x12a   : > { %481 = vst [vmem:[%s862_s3 + $0x18] sm:$0xff] %v477_v44 }
 0x12b   : > { %479 = vst [vmem:[%s862_s3 + $0x8] sm:$0xff] %v475_v40 }
 0x12c PF: > { %s13_s16 = sadd.s32 1, %s737_s16   ;;  %s863_s12 = smov %s725_s13 }
 0x12d   : > { %p10_p12 = scmp.ge.s32.totalorder %s13_s16, 7   ;;  %s864_s13 = smov %s796_s20 }
 0x12e   : > { %s865_s14 = smov %s733_s15  ;;  %s866_s15 = smov %s868_s17 }
 0x12f   :  { %12 = sbr.rel (!%p10_p12) target bundleno = 3 (0x3), region = 122 }

// kernel: single_unet_generator_L.48
= control target key start
LH: loop header
LB: loop body
LE: loop exit
PB: predicated region body
PF: predicated region fallthrough
CT: control target
= control target key end

     0   :  { %s220_s0 = inlined_call_operand.vmem [shape: f32[128,128], index: 0, kind: input, shape index: {}]   ;;  %s221_s1 = inlined_call_operand.vmem [shape: f32[1,128], index: 1, kind: input, shape index: {}]   ;;  %s222_s2 = inlined_call_operand.vmem [shape: f32[1,128], index: 2, kind: input, shape index: {}]   ;;  %s223_s3 = inlined_call_operand.vmem [shape: f32[128,128], index: 3, kind: output, shape index: {}]  }
   0x1   :  { %v14_v0 = vld [vmem:[%s220_s0] sm:$0xff]  ;;  %v15_v4 = vld [vmem:[%s220_s0 + $0x8] sm:$0xff]  ;;  %v16_v5 = vld [vmem:[%s220_s0 + $0x10] sm:$0xff] }
   0x2   :  { %v96_v1 = vld [vmem:[%s221_s1] ss:$0 sm:$0xff]  ;;  %v17_v6 = vld [vmem:[%s220_s0 + $0x18] sm:$0xff]  ;;  %v19_v11 = vld [vmem:[%s220_s0 + $0x28] sm:$0xff] }
   0x3   :  { %v97_v2 = vld [vmem:[%s222_s2] ss:$0 sm:$0xff]  ;;  %v37_v3 = vmul.f32 %v96_v1, %v14_v0  ;;  %v38_v7 = vmul.f32 %v96_v1, %v15_v4  ;;  %v39_v8 = vmul.f32 %v96_v1, %v16_v5  ;;  %v40_v9 = vmul.f32 %v96_v1, %v17_v6  ;;  %v20_v12 = vld [vmem:[%s220_s0 + $0x30] sm:$0xff]  ;;  %v21_v17 = vld [vmem:[%s220_s0 + $0x38] sm:$0xff] }
   0x4   :  { %v18_v10 = vld [vmem:[%s220_s0 + $0x20] sm:$0xff]  ;;  %v42_v15 = vmul.f32 %v96_v1, %v19_v11  ;;  %v43_v16 = vmul.f32 %v96_v1, %v20_v12  ;;  %v23_v19 = vld [vmem:[%s220_s0 + $0x48] sm:$0xff]  ;;  %v44_v23 = vmul.f32 %v96_v1, %v21_v17  ;;  %v24_v24 = vld [vmem:[%s220_s0 + $0x50] sm:$0xff] }
   0x5   :  { %v60_v13 = vadd.f32 %v97_v2, %v37_v3  ;;  %v41_v14 = vmul.f32 %v96_v1, %v18_v10  ;;  %v22_v18 = vld [vmem:[%s220_s0 + $0x40] sm:$0xff]  ;;  %v61_v20 = vadd.f32 %v97_v2, %v38_v7  ;;  %v62_v21 = vadd.f32 %v97_v2, %v39_v8  ;;  %v25_v25 = vld [vmem:[%s220_s0 + $0x58] sm:$0xff]  ;;  %v27_v31 = vld [vmem:[%s220_s0 + $0x68] sm:$0xff] }
   0x6   :  { %v63_v22 = vadd.f32 %v97_v2, %v40_v9  ;;  %v26_v26 = vld [vmem:[%s220_s0 + $0x60] sm:$0xff]  ;;  %v65_v28 = vadd.f32 %v97_v2, %v42_v15  ;;  %v66_v29 = vadd.f32 %v97_v2, %v43_v16  ;;  %v45_v30 = vmul.f32 %v96_v1, %v22_v18  ;;  %v28_v32 = vld [vmem:[%s220_s0 + $0x70] sm:$0xff]  ;;  %v29_v33 = vld [vmem:[%s220_s0 + $0x78] sm:$0xff] }
   0x7   :  { %76 = vst [vmem:[%s223_s3] sm:$0xff] %v60_v13  ;;  %v64_v27 = vadd.f32 %v97_v2, %v41_v14  ;;  %77 = vst [vmem:[%s223_s3 + $0x8] sm:$0xff] %v61_v20  ;;  %v67_v34 = vadd.f32 %v97_v2, %v44_v23  ;;  %v46_v35 = vmul.f32 %v96_v1, %v23_v19 }
   0x8   :  { %78 = vst [vmem:[%s223_s3 + $0x10] sm:$0xff] %v62_v21  ;;  %79 = vst [vmem:[%s223_s3 + $0x18] sm:$0xff] %v63_v22  ;;  %v47_v36 = vmul.f32 %v96_v1, %v24_v24  ;;  %v48_v37 = vmul.f32 %v96_v1, %v25_v25  ;;  %v68_v38 = vadd.f32 %v97_v2, %v45_v30 }
   0x9   :  { %80 = vst [vmem:[%s223_s3 + $0x20] sm:$0xff] %v64_v27  ;;  %81 = vst [vmem:[%s223_s3 + $0x28] sm:$0xff] %v65_v28  ;;  %v49_v39 = vmul.f32 %v96_v1, %v26_v26  ;;  %v50_v40 = vmul.f32 %v96_v1, %v27_v31  ;;  %v51_v41 = vmul.f32 %v96_v1, %v28_v32 }
   0xa   :  { %82 = vst [vmem:[%s223_s3 + $0x30] sm:$0xff] %v66_v29  ;;  %83 = vst [vmem:[%s223_s3 + $0x38] sm:$0xff] %v67_v34  ;;  %v69_v42 = vadd.f32 %v97_v2, %v46_v35  ;;  %v70_v43 = vadd.f32 %v97_v2, %v47_v36  ;;  %v71_v44 = vadd.f32 %v97_v2, %v48_v37 }
   0xb   :  { %v52_v45 = vmul.f32 %v96_v1, %v29_v33  ;;  %84 = vst [vmem:[%s223_s3 + $0x40] sm:$0xff] %v68_v38  ;;  %v72_v46 = vadd.f32 %v97_v2, %v49_v39  ;;  %v73_v47 = vadd.f32 %v97_v2, %v50_v40  ;;  %v74_v48 = vadd.f32 %v97_v2, %v51_v41 }
   0xc   :  { %85 = vst [vmem:[%s223_s3 + $0x48] sm:$0xff] %v69_v42  ;;  %86 = vst [vmem:[%s223_s3 + $0x50] sm:$0xff] %v70_v43 }
   0xd   :  { %87 = vst [vmem:[%s223_s3 + $0x58] sm:$0xff] %v71_v44  ;;  %v75_v49 = vadd.f32 %v97_v2, %v52_v45  ;;  %88 = vst [vmem:[%s223_s3 + $0x60] sm:$0xff] %v72_v46 }
   0xe   :  { %89 = vst [vmem:[%s223_s3 + $0x68] sm:$0xff] %v73_v47  ;;  %90 = vst [vmem:[%s223_s3 + $0x70] sm:$0xff] %v74_v48 }
   0xf   :  { %91 = vst [vmem:[%s223_s3 + $0x78] sm:$0xff] %v75_v49 }

// kernel: tile.43
= control target key start
LH: loop header
LB: loop body
LE: loop exit
PB: predicated region body
PF: predicated region fallthrough
CT: control target
= control target key end

     0   :  { %s22_s0 = inlined_call_operand.vmem [shape: f32[8], index: 0, kind: input, shape index: {}]   ;;  %s23_s1 = inlined_call_operand.vmem [shape: f32[4,8], index: 1, kind: output, shape index: {}]  }
   0x1   :  { %v4_v0 = vld [vmem:[%s22_s0] ss:$0 sm:$0xff] }
   0x2   :  { %5 = vst [vmem:[%s23_s1] sm:$0xf] %v4_v0 }

// kernel: tile.44
= control target key start
LH: loop header
LB: loop body
LE: loop exit
PB: predicated region body
PF: predicated region fallthrough
CT: control target
= control target key end

     0   :  { %vm7_vm0 = vcmask 64512   ;;  %s37_s8 = smov 8   ;;  %s38_s9 = smov 16   ;;  %vm13_vm1 = vcmask 261312   ;;  %vm19_vm2 = vcmask 195712   ;;  %vm25_vm3 = vcmask 130112   ;;  %s55_s0 = inlined_call_operand.vmem [shape: f32[4,8], index: 0, kind: input, shape index: {}]   ;;  %s56_s1 = inlined_call_operand.vmem [shape: f32[32], index: 1, kind: output, shape index: {}]  }
   0x1   :  { %v4_v0 = vld [vmem:[%s55_s0] sm:$0xf]  ;;  %s36_s0 = smov 24  }
   0x2   :  { %5 = vst [vmem:[#allocation1] sm:$0xf] %v4_v0 }
   0x9   :  { %v10_v1 = vld [vmem:[#allocation1 + $0x3] sm:$0x1]   ;;  %v22_v2 = vld [vmem:[#allocation1 + $0x1] sm:$0x1]   ;;  %v6_v3 = vld [vmem:[#allocation1] sm:$0x1]  }
   0xa   :  { %11 = vrot.lane.b32.xlu0 %v10_v1, %s36_s0  ;;  %23 = vrot.lane.b32.xlu1 %v22_v2, %s37_s8  ;;  %v16_v4 = vld [vmem:[#allocation1 + $0x2] sm:$0x1]   ;;  %8 = vst.msk [vmem:[#allocation0] sm:$0x1] %vm7_vm0, %v6_v3  }
   0xe   :  { %17 = vrot.lane.b32.xlu0 %v16_v4, %s38_s9 }
  0x7c   :  { %v12_v5 = vpop.permute.xlu0 %11   ;;  %v24_v6 = vpop.permute.xlu1 %23  }
  0x7d   :  { %14 = vst.msk [vmem:[#allocation0] sm:$0x1] %vm13_vm1, %v12_v5  }
  0x80   :  { %v18_v7 = vpop.permute.xlu0 %17  }
  0x81   :  { %20 = vst.msk [vmem:[#allocation0] sm:$0x1] %vm19_vm2, %v18_v7  }
  0x82   :  { %26 = vst.msk [vmem:[#allocation0] sm:$0x1] %vm25_vm3, %v24_v6  }
  0x89   :  { %v30_v8 = vld [vmem:[#allocation0] sm:$0x1] }
  0x8a   :  { %32 = vst [vmem:[%s56_s1] sm:$0x1] %v30_v8 }

// kernel: single_unet_generator_L.49
= control target key start
LH: loop header
LB: loop body
LE: loop exit
PB: predicated region body
PF: predicated region fallthrough
CT: control target
= control target key end

     0   :  { %v909_v25 = vmov 0   ;;  %s1199_s1 = inlined_call_operand.vmem [shape: bf16[384,128], index: 1, kind: input, shape index: {}]   ;;  %s1200_s0 = inlined_call_operand.vmem [shape: bf16[128,384], index: 0, kind: input, shape index: {}]   ;;  %s1201_s2 = inlined_call_operand.vmem [shape: f32[1,128], index: 2, kind: input, shape index: {}]   ;;  %s1202_s3 = inlined_call_operand.vmem [shape: f32[128,128], index: 3, kind: output, shape index: {}]  }
   0x1   :  { %v885_v0 = vld [vmem:[%s1199_s1 + $0x40] sm:$0xff]   ;;  %v888_v3 = vld [vmem:[%s1199_s1 + $0x48] sm:$0xff]   ;;  %v891_v6 = vld [vmem:[%s1199_s1 + $0x50] sm:$0xff]  }
   0x2   :  { %v886_v1 = vld [vmem:[%s1199_s1] sm:$0xff]   ;;  %772 = vmatprep.subr.bf16.mxu0 %v885_v0  ;;  %v889_v4 = vld [vmem:[%s1199_s1 + $0x8] sm:$0xff]   ;;  %v892_v7 = vld [vmem:[%s1199_s1 + $0x10] sm:$0xff]  }
   0x3   :  { %v887_v2 = vld [vmem:[%s1199_s1 + $0x80] sm:$0xff]   ;;  %773 = vmatpush3.bf16.msra.mxu0 %v886_v1  ;;  %v890_v5 = vld [vmem:[%s1199_s1 + $0x88] sm:$0xff]   ;;  %v893_v8 = vld [vmem:[%s1199_s1 + $0x90] sm:$0xff]  }
   0x4   :  { %852 = vmatprep.subr.bf16.mxu1 %v887_v2  ;;  %774 = vmatprep.subr.bf16.mxu0 %v888_v3  ;;  %v894_v9 = vld [vmem:[%s1199_s1 + $0x58] sm:$0xff]   ;;  %v897_v12 = vld [vmem:[%s1199_s1 + $0x60] sm:$0xff]   ;;  %v900_v15 = vld [vmem:[%s1199_s1 + $0x68] sm:$0xff]  }
   0x5   :  { %853 = vmatpush3.bf16.msra.mxu1 %v887_v2  ;;  %v895_v10 = vld [vmem:[%s1199_s1 + $0x18] sm:$0xff]   ;;  %v899_v13 = vld [vmem:[%s1199_s1 + $0xa0] sm:$0xff]   ;;  %v902_v16 = vld [vmem:[%s1199_s1 + $0xa8] sm:$0xff]  }
   0x6   :  { %854 = vmatprep.subr.bf16.mxu1 %v890_v5  ;;  %v896_v11 = vld [vmem:[%s1199_s1 + $0x98] sm:$0xff]   ;;  %v898_v14 = vld [vmem:[%s1199_s1 + $0x20] sm:$0xff]   ;;  %v901_v17 = vld [vmem:[%s1199_s1 + $0x28] sm:$0xff]  }
   0x7   :  { %775 = vmatpush3.bf16.msra.mxu0 %v889_v4  ;;  %v903_v18 = vld [vmem:[%s1199_s1 + $0x70] sm:$0xff]   ;;  %v906_v21 = vld [vmem:[%s1199_s1 + $0x78] sm:$0xff]   ;;  %v35_v22 = vld [vmem:[%s1200_s0] sm:$0xff] }
   0x8   :  { %776 = vmatprep.subr.bf16.mxu0 %v891_v6  ;;  %v904_v19 = vld [vmem:[%s1199_s1 + $0x30] sm:$0xff]   ;;  %v36_v24 = vld [vmem:[%s1200_s0 + $0x8] sm:$0xf]  ;;  %v67_v26 = vmax.bf16 %v909_v25, %v35_v22  ;;  %v40_v30 = vld [vmem:[%s1200_s0 + $0x20] sm:$0xf] }
   0x9   :  { %855 = vmatpush3.bf16.msra.mxu1 %v890_v5  ;;  %v905_v20 = vld [vmem:[%s1199_s1 + $0xb0] sm:$0xff]   ;;  %v68_v29 = vmax.bf16 %v909_v25, %v36_v24  ;;  %v42_v31 = vld [vmem:[%s1200_s0 + $0x2c] sm:$0xf]  ;;  %v908_v32 = vld [vmem:[%s1199_s1 + $0xb8] sm:$0xff]   ;;  %v72_v43 = vmax.bf16 %v909_v25, %v40_v30 }
   0xa   :  { %856 = vmatprep.subr.bf16.mxu1 %v893_v8  ;;  %v37_v23 = vld [vmem:[%s1200_s0 + $0xc] sm:$0xff]  ;;  %v38_v28 = vld [vmem:[%s1200_s0 + $0x14] sm:$0xf]  ;;  %v39_v34 = vld [vmem:[%s1200_s0 + $0x18] sm:$0xff]  ;;  %v74_v44 = vmax.bf16 %v909_v25, %v42_v31 }
   0xb   :  { %777 = vmatpush3.bf16.msra.mxu0 %v892_v7  ;;  %v69_v27 = vmax.bf16 %v909_v25, %v37_v23  ;;  %v70_v33 = vmax.bf16 %v909_v25, %v38_v28  ;;  %v41_v35 = vld [vmem:[%s1200_s0 + $0x24] sm:$0xff]  ;;  %v907_v36 = vld [vmem:[%s1199_s1 + $0x38] sm:$0xff]   ;;  %v71_v38 = vmax.bf16 %v909_v25, %v39_v34  ;;  %v43_v50 = vld [vmem:[%s1200_s0 + $0x30] sm:$0xff] }
   0xc   :  { %778 = vmatprep.subr.bf16.mxu0 %v894_v9  ;;  %v73_v39 = vmax.bf16 %v909_v25, %v41_v35  ;;  %v44_v40 = vld [vmem:[%s1200_s0 + $0x38] sm:$0xf]  ;;  %v46_v41 = vld [vmem:[%s1200_s0 + $0x44] sm:$0xf]  ;;  %v728_v49 = vcombine.low %v72_v43, %v74_v44  ;;  %v45_v51 = vld [vmem:[%s1200_s0 + $0x3c] sm:$0xff]  ;;  %v75_v57 = vmax.bf16 %v909_v25, %v43_v50 }
   0xd   :  { %857 = vmatpush3.bf16.msra.mxu1 %v893_v8  ;;  %v724_v37 = vcombine.high %v67_v26, %v69_v27  ;;  %v725_v42 = vcombine.low %v68_v29, %v70_v33  ;;  %v76_v45 = vmax.bf16 %v909_v25, %v44_v40  ;;  %v723_v46 = vcombine.low %v67_v26, %v69_v27  ;;  %v48_v53 = vld [vmem:[%s1200_s0 + $0x50] sm:$0xf]  ;;  %v50_v54 = vld [vmem:[%s1200_s0 + $0x5c] sm:$0xf]  ;;  %v52_v55 = vld [vmem:[%s1200_s0 + $0x68] sm:$0xf] }
   0xe   :  { %858 = vmatprep.subr.bf16.mxu1 %v896_v11  ;;  %v78_v47 = vmax.bf16 %v909_v25, %v46_v41  ;;  %v727_v48 = vcombine.high %v71_v38, %v73_v39  ;;  %v54_v56 = vld [vmem:[%s1200_s0 + $0x74] sm:$0xf]  ;;  %v77_v58 = vmax.bf16 %v909_v25, %v45_v51  ;;  %v80_v59 = vmax.bf16 %v909_v25, %v48_v53  ;;  %v47_v2 = vld [vmem:[%s1200_s0 + $0x48] sm:$0xff]  ;;  %v56_v5 = vld [vmem:[%s1200_s0 + $0x80] sm:$0xf] }
   0xf   :  { %779 = vmatpush3.bf16.msra.mxu0 %v895_v10  ;;  %467 = vmatprep.mubr.bf16.mxu0 %v724_v37  ;;  %v82_v60 = vmax.bf16 %v909_v25, %v50_v54  ;;  %v84_v61 = vmax.bf16 %v909_v25, %v52_v55  ;;  %v86_v62 = vmax.bf16 %v909_v25, %v54_v56  ;;  %v49_v3 = vld [vmem:[%s1200_s0 + $0x54] sm:$0xff]  ;;  %v58_v6 = vld [vmem:[%s1200_s0 + $0x8c] sm:$0xf]  ;;  %v62_v8 = vld [vmem:[%s1200_s0 + $0xa4] sm:$0xf] }
  0x10   :  { %780 = vmatprep.subr.bf16.mxu0 %v897_v12  ;;  %868 = vmatprep.mubr.bf16.mxu1 %v725_v42  ;;  %v731_v52 = vcombine.low %v76_v45, %v78_v47  ;;  %v726_v63 = vcombine.low %v71_v38, %v73_v39  ;;  %v730_v0 = vcombine.high %v75_v57, %v77_v58  ;;  %v60_v7 = vld [vmem:[%s1200_s0 + $0x98] sm:$0xf]  ;;  %v66_v22 = vld [vmem:[%s1200_s0 + $0xbc] sm:$0xf]  ;;  %v57_v31 = vld [vmem:[%s1200_s0 + $0x84] sm:$0xff] }
  0x11   :  { %859 = vmatpush3.bf16.msra.mxu1 %v896_v11  ;;  %v734_v1 = vcombine.low %v80_v59, %v82_v60  ;;  %v737_v4 = vcombine.low %v84_v61, %v86_v62  ;;  %v79_v9 = vmax.bf16 %v909_v25, %v47_v2  ;;  %v81_v10 = vmax.bf16 %v909_v25, %v49_v3  ;;  %v55_v30 = vld [vmem:[%s1200_s0 + $0x78] sm:$0xff]  ;;  %v59_v37 = vld [vmem:[%s1200_s0 + $0x90] sm:$0xff]  ;;  %v63_v43 = vld [vmem:[%s1200_s0 + $0xa8] sm:$0xff] }
  0x12   :  { %860 = vmatprep.subr.bf16.mxu1 %v899_v13  ;;  %v88_v11 = vmax.bf16 %v909_v25, %v56_v5  ;;  %v90_v12 = vmax.bf16 %v909_v25, %v58_v6  ;;  %v98_v27 = vmax.bf16 %v909_v25, %v66_v22  ;;  %v87_v33 = vmax.bf16 %v909_v25, %v55_v30  ;;  %v61_v38 = vld [vmem:[%s1200_s0 + $0x9c] sm:$0xff]  ;;  %v65_v44 = vld [vmem:[%s1200_s0 + $0xb4] sm:$0xff] }
  0x13   :  { %781 = vmatpush3.bf16.msra.mxu0 %v898_v14  ;;  %v94_v14 = vmax.bf16 %v909_v25, %v62_v8  ;;  %v732_v28 = vcombine.low %v79_v9, %v81_v10  ;;  %v89_v34 = vmax.bf16 %v909_v25, %v57_v31  ;;  %v91_v39 = vmax.bf16 %v909_v25, %v59_v37 }
  0x14   :  { %782 = vmatprep.subr.bf16.mxu0 %v900_v15  ;;  %v729_v15 = vcombine.low %v75_v57, %v77_v58  ;;  %v93_v40 = vmax.bf16 %v909_v25, %v61_v38  ;;  %v95_v45 = vmax.bf16 %v909_v25, %v63_v43  ;;  %v1133_v57 = vld [vmem:[%s1201_s2] ss:$0 sm:$0xff] }
  0x15   :  { %861 = vmatpush3.bf16.msra.mxu1 %v899_v13  ;;  %v92_v13 = vmax.bf16 %v909_v25, %v60_v7  ;;  %v738_v41 = vcombine.low %v87_v33, %v89_v34 }
  0x16   :  { %862 = vmatprep.subr.bf16.mxu1 %v902_v16  ;;  %v742_v42 = vcombine.high %v91_v39, %v93_v40  ;;  %v741_v47 = vcombine.low %v91_v39, %v93_v40 }
  0x17   :  { %783 = vmatpush3.bf16.msra.mxu0 %v901_v17  ;;  %v51_v17 = vld [vmem:[%s1200_s0 + $0x60] sm:$0xff] }
  0x18   :  { %784 = vmatprep.subr.bf16.mxu0 %v903_v18  ;;  %v53_v18 = vld [vmem:[%s1200_s0 + $0x6c] sm:$0xff]  ;;  %v83_v23 = vmax.bf16 %v909_v25, %v51_v17 }
  0x19   :  { %863 = vmatpush3.bf16.msra.mxu1 %v902_v16  ;;  %v733_v16 = vcombine.high %v79_v9, %v81_v10  ;;  %v85_v24 = vmax.bf16 %v909_v25, %v53_v18 }
  0x1a   :  { %864 = vmatprep.subr.bf16.mxu1 %v905_v20 }
  0x1b   :  { %785 = vmatpush3.bf16.msra.mxu0 %v904_v19  ;;  %v740_v19 = vcombine.low %v88_v11, %v90_v12  ;;  %v736_v29 = vcombine.high %v83_v23, %v85_v24  ;;  %v735_v35 = vcombine.low %v83_v23, %v85_v24 }
  0x1c   :  { %786 = vmatprep.subr.bf16.mxu0 %v906_v21  ;;  %v64_v21 = vld [vmem:[%s1200_s0 + $0xb0] sm:$0xf] }
  0x1d   :  { %865 = vmatpush3.bf16.msra.mxu1 %v905_v20  ;;  %v743_v20 = vcombine.low %v92_v13, %v94_v14  ;;  %v96_v26 = vmax.bf16 %v909_v25, %v64_v21 }
  0x1e   :  { %866 = vmatprep.subr.bf16.mxu1 %v908_v32 }
  0x1f   :  { %787 = vmatpush3.bf16.msra.mxu0 %v907_v36  ;;  %v739_v36 = vcombine.high %v87_v33, %v89_v34 }
  0x21   :  { %867 = vmatpush3.bf16.msra.mxu1 %v908_v32  ;;  %v746_v32 = vcombine.low %v96_v26, %v98_v27 }
  0x22   :  { %468 = vmatmul.mubr.bf16.vlgmr.msra.gmra.mrb[0].mxu0 %v723_v46  ;;  %v97_v46 = vmax.bf16 %v909_v25, %v65_v44 }
  0x23   :  { %475 = vmatprep.mubr.bf16.mxu0 %v727_v48 }
  0x24   :  { %869 = vmatmul.mubr.bf16.vlgmr.msra.gmra.mrb[0].mxu1 %v728_v49  ;;  %v745_v48 = vcombine.high %v95_v45, %v97_v46  ;;  %v744_v49 = vcombine.low %v95_v45, %v97_v46 }
  0x25   :  { %872 = vmatprep.mubr.bf16.mxu1 %v731_v52 }
  0x2a   :  { %476 = vmatmul.mubr.bf16.gmra.mrb[4].mxu0 %v726_v63 }
  0x2b   :  { %483 = vmatprep.mubr.bf16.mxu0 %v730_v0 }
  0x2c   :  { %873 = vmatmul.mubr.bf16.gmra.mrb[4].mxu1 %v734_v1 }
  0x2d   :  { %876 = vmatprep.mubr.bf16.mxu1 %v737_v4 }
  0x32   :  { %484 = vmatmul.mubr.bf16.gmra.mrb[8].mxu0 %v729_v15 }
  0x33   :  { %491 = vmatprep.mubr.bf16.mxu0 %v733_v16 }
  0x34   :  { %877 = vmatmul.mubr.bf16.gmra.mrb[8].mxu1 %v740_v19 }
  0x35   :  { %880 = vmatprep.mubr.bf16.mxu1 %v743_v20 }
  0x3a   :  { %492 = vmatmul.mubr.bf16.gmra.mrb[12].mxu0 %v732_v28 }
  0x3b   :  { %499 = vmatprep.mubr.bf16.mxu0 %v736_v29 }
  0x3c   :  { %881 = vmatmul.mubr.bf16.gmra.mrb[12].mxu1 %v746_v32 }
  0x42   :  { %500 = vmatmul.mubr.bf16.gmra.mrb[16].mxu0 %v735_v35 }
  0x43   :  { %507 = vmatprep.mubr.bf16.mxu0 %v739_v36 }
  0x4a   :  { %508 = vmatmul.mubr.bf16.gmra.mrb[20].mxu0 %v738_v41 }
  0x4b   :  { %515 = vmatprep.mubr.bf16.mxu0 %v742_v42 }
  0x52   :  { %516 = vmatmul.mubr.bf16.gmra.mrb[24].mxu0 %v741_v47 }
  0x53   :  { %523 = vmatprep.mubr.bf16.mxu0 %v745_v48 }
  0x5a   :  { %524 = vmatmul.mubr.bf16.gmra.mrb[28].mxu0 %v744_v49 }
  0xf5   :  { %v788_v50 = vpop.f32.mrb[0].mxu0 }
  0xf6   :  { %v789_v51 = vpop.f32.mrb[1].mxu0 }
  0xf7   :  { %v790_v52 = vadd.f32 %v789_v51, %v788_v50  ;;  %v791_v53 = vpop.f32.mrb[2].mxu0  ;;  %v870_v54 = vpop.f32.mrb[0].mxu1 }
  0xf8   :  { %v792_v55 = vpop.f32.mrb[3].mxu0  ;;  %v566_v56 = vpop.f32.mrb[1].mxu1 }
  0xf9   :  { %v793_v58 = vadd.f32 %v792_v55, %v791_v53  ;;  %v567_v25 = vadd.f32 %v790_v52, %v566_v56  ;;  %v871_v59 = vpop.f32.mrb[2].mxu1 }
  0xfa   :  { %v569_v60 = vpop.f32.mrb[3].mxu1 }
  0xfb   :  { %v687_v61 = vadd.f32 %v1133_v57, %v567_v25  ;;  %v570_v62 = vadd.f32 %v793_v58, %v569_v60 }
  0xfd   :  { %703 = vst [vmem:[%s1202_s3] sm:$0xff] %v687_v61  ;;  %v688_v63 = vadd.f32 %v1133_v57, %v570_v62  ;;  %v794_v0 = vpop.f32.mrb[4].mxu0 }
  0xfe   :  { %v795_v1 = vpop.f32.mrb[5].mxu0 }
  0xff   :  { %704 = vst [vmem:[%s1202_s3 + $0x8] sm:$0xff] %v688_v63  ;;  %v796_v2 = vadd.f32 %v795_v1, %v794_v0  ;;  %v797_v3 = vpop.f32.mrb[6].mxu0  ;;  %v874_v4 = vpop.f32.mrb[4].mxu1 }
 0x100   :  { %v798_v5 = vpop.f32.mrb[7].mxu0  ;;  %v582_v6 = vpop.f32.mrb[5].mxu1 }
 0x101   :  { %v575_v7 = vadd.f32 %v870_v54, %v796_v2  ;;  %v799_v8 = vadd.f32 %v798_v5, %v797_v3  ;;  %v875_v9 = vpop.f32.mrb[6].mxu1 }
 0x102   :  { %v585_v10 = vpop.f32.mrb[7].mxu1 }
 0x103   :  { %v689_v11 = vadd.f32 %v1133_v57, %v575_v7  ;;  %v578_v12 = vadd.f32 %v871_v59, %v799_v8 }
 0x105   :  { %705 = vst [vmem:[%s1202_s3 + $0x10] sm:$0xff] %v689_v11  ;;  %v690_v13 = vadd.f32 %v1133_v57, %v578_v12  ;;  %v800_v14 = vpop.f32.mrb[8].mxu0 }
 0x106   :  { %v801_v15 = vpop.f32.mrb[9].mxu0 }
 0x107   :  { %706 = vst [vmem:[%s1202_s3 + $0x18] sm:$0xff] %v690_v13  ;;  %v802_v16 = vadd.f32 %v801_v15, %v800_v14  ;;  %v803_v17 = vpop.f32.mrb[10].mxu0  ;;  %v878_v18 = vpop.f32.mrb[8].mxu1 }
 0x108   :  { %v804_v19 = vpop.f32.mrb[11].mxu0  ;;  %v598_v20 = vpop.f32.mrb[9].mxu1 }
 0x109   :  { %v805_v21 = vadd.f32 %v804_v19, %v803_v17  ;;  %v583_v22 = vadd.f32 %v802_v16, %v582_v6  ;;  %v879_v23 = vpop.f32.mrb[10].mxu1 }
 0x10a   :  { %v601_v24 = vpop.f32.mrb[11].mxu1 }
 0x10b   :  { %v691_v26 = vadd.f32 %v1133_v57, %v583_v22  ;;  %v586_v27 = vadd.f32 %v805_v21, %v585_v10 }
 0x10d   :  { %707 = vst [vmem:[%s1202_s3 + $0x20] sm:$0xff] %v691_v26  ;;  %v692_v28 = vadd.f32 %v1133_v57, %v586_v27  ;;  %v806_v29 = vpop.f32.mrb[12].mxu0 }
 0x10e   :  { %v807_v30 = vpop.f32.mrb[13].mxu0 }
 0x10f   :  { %708 = vst [vmem:[%s1202_s3 + $0x28] sm:$0xff] %v692_v28  ;;  %v808_v31 = vadd.f32 %v807_v30, %v806_v29  ;;  %v809_v32 = vpop.f32.mrb[14].mxu0  ;;  %v882_v33 = vpop.f32.mrb[12].mxu1 }
 0x110   :  { %v810_v34 = vpop.f32.mrb[15].mxu0  ;;  %v614_v35 = vpop.f32.mrb[13].mxu1 }
 0x111   :  { %v591_v36 = vadd.f32 %v874_v4, %v808_v31  ;;  %v811_v37 = vadd.f32 %v810_v34, %v809_v32  ;;  %v883_v38 = vpop.f32.mrb[14].mxu1 }
 0x112   :  { %v617_v39 = vpop.f32.mrb[15].mxu1 }
 0x113   :  { %v693_v40 = vadd.f32 %v1133_v57, %v591_v36  ;;  %v594_v41 = vadd.f32 %v875_v9, %v811_v37 }
 0x115   :  { %709 = vst [vmem:[%s1202_s3 + $0x30] sm:$0xff] %v693_v40  ;;  %v694_v42 = vadd.f32 %v1133_v57, %v594_v41  ;;  %v812_v43 = vpop.f32.mrb[16].mxu0 }
 0x116   :  { %v813_v44 = vpop.f32.mrb[17].mxu0 }
 0x117   :  { %710 = vst [vmem:[%s1202_s3 + $0x38] sm:$0xff] %v694_v42  ;;  %v814_v45 = vadd.f32 %v813_v44, %v812_v43  ;;  %v815_v46 = vpop.f32.mrb[18].mxu0 }
 0x118   :  { %v816_v47 = vpop.f32.mrb[19].mxu0 }
 0x119   :  { %v817_v48 = vadd.f32 %v816_v47, %v815_v46  ;;  %v599_v49 = vadd.f32 %v814_v45, %v598_v20 }
 0x11b   :  { %v695_v50 = vadd.f32 %v1133_v57, %v599_v49  ;;  %v602_v51 = vadd.f32 %v817_v48, %v601_v24 }
 0x11d   :  { %711 = vst [vmem:[%s1202_s3 + $0x40] sm:$0xff] %v695_v50  ;;  %v696_v52 = vadd.f32 %v1133_v57, %v602_v51  ;;  %v818_v53 = vpop.f32.mrb[20].mxu0 }
 0x11e   :  { %v819_v54 = vpop.f32.mrb[21].mxu0 }
 0x11f   :  { %712 = vst [vmem:[%s1202_s3 + $0x48] sm:$0xff] %v696_v52  ;;  %v820_v55 = vadd.f32 %v819_v54, %v818_v53  ;;  %v821_v56 = vpop.f32.mrb[22].mxu0 }
 0x120   :  { %v822_v58 = vpop.f32.mrb[23].mxu0 }
 0x121   :  { %v607_v25 = vadd.f32 %v878_v18, %v820_v55  ;;  %v823_v59 = vadd.f32 %v822_v58, %v821_v56 }
 0x123   :  { %v697_v60 = vadd.f32 %v1133_v57, %v607_v25  ;;  %v610_v61 = vadd.f32 %v879_v23, %v823_v59 }
 0x125   :  { %713 = vst [vmem:[%s1202_s3 + $0x50] sm:$0xff] %v697_v60  ;;  %v698_v62 = vadd.f32 %v1133_v57, %v610_v61  ;;  %v824_v63 = vpop.f32.mrb[24].mxu0 }
 0x126   :  { %v825_v0 = vpop.f32.mrb[25].mxu0 }
 0x127   :  { %714 = vst [vmem:[%s1202_s3 + $0x58] sm:$0xff] %v698_v62  ;;  %v826_v1 = vadd.f32 %v825_v0, %v824_v63  ;;  %v827_v2 = vpop.f32.mrb[26].mxu0 }
 0x128   :  { %v828_v3 = vpop.f32.mrb[27].mxu0 }
 0x129   :  { %v829_v4 = vadd.f32 %v828_v3, %v827_v2  ;;  %v615_v5 = vadd.f32 %v826_v1, %v614_v35 }
 0x12b   :  { %v699_v6 = vadd.f32 %v1133_v57, %v615_v5  ;;  %v618_v7 = vadd.f32 %v829_v4, %v617_v39 }
 0x12d   :  { %715 = vst [vmem:[%s1202_s3 + $0x60] sm:$0xff] %v699_v6  ;;  %v700_v8 = vadd.f32 %v1133_v57, %v618_v7  ;;  %v830_v9 = vpop.f32.mrb[28].mxu0 }
 0x12e   :  { %v831_v10 = vpop.f32.mrb[29].mxu0 }
 0x12f   :  { %716 = vst [vmem:[%s1202_s3 + $0x68] sm:$0xff] %v700_v8  ;;  %v832_v11 = vadd.f32 %v831_v10, %v830_v9  ;;  %v833_v12 = vpop.f32.mrb[30].mxu0 }
 0x130   :  { %v834_v13 = vpop.f32.mrb[31].mxu0 }
 0x131   :  { %v623_v14 = vadd.f32 %v882_v33, %v832_v11  ;;  %v835_v15 = vadd.f32 %v834_v13, %v833_v12 }
 0x133   :  { %v701_v16 = vadd.f32 %v1133_v57, %v623_v14  ;;  %v626_v17 = vadd.f32 %v883_v38, %v835_v15 }
 0x135   :  { %717 = vst [vmem:[%s1202_s3 + $0x70] sm:$0xff] %v701_v16  ;;  %v702_v18 = vadd.f32 %v1133_v57, %v626_v17 }
 0x137   :  { %718 = vst [vmem:[%s1202_s3 + $0x78] sm:$0xff] %v702_v18 }

// kernel: single_unet_generator_L.50
= control target key start
LH: loop header
LB: loop body
LE: loop exit
PB: predicated region body
PF: predicated region fallthrough
CT: control target
= control target key end

     0   :  { %v297_v0 = vmov 0.0   ;;  %s523_s0 = inlined_call_operand.vmem [shape: f32[512,128], index: 0, kind: input, shape index: {}]   ;;  %s524_s1 = inlined_call_operand.vmem [shape: f32[1,128], index: 1, kind: output, shape index: {0}]   ;;  %s525_s2 = inlined_call_operand.vmem [shape: f32[1,128], index: 2, kind: output, shape index: {1}]  }
   0x1   :  { %14 = vst [vmem:[%s524_s1] sm:$0x1] %v297_v0  ;;  %15 = vst [vmem:[%s525_s2] sm:$0x1] %v297_v0  ;;  %v16_v1 = vld [vmem:[%s523_s0] sm:$0xff]  ;;  %v17_v2 = vld [vmem:[%s523_s0 + $0x8] sm:$0xff] }
   0x2   :  { %v18_v3 = vld [vmem:[%s523_s0 + $0x10] sm:$0xff]  ;;  %v19_v4 = vld [vmem:[%s523_s0 + $0x18] sm:$0xff]  ;;  %v81_v5 = vadd.f32 %v17_v2, %v16_v1  ;;  %v153_v6 = vmul.f32 %v16_v1, %v16_v1  ;;  %v154_v7 = vmul.f32 %v17_v2, %v17_v2  ;;  %v20_v9 = vld [vmem:[%s523_s0 + $0x20] sm:$0xff] }
   0x3   :  { %v155_v8 = vmul.f32 %v18_v3, %v18_v3  ;;  %v156_v11 = vmul.f32 %v19_v4, %v19_v4  ;;  %v21_v13 = vld [vmem:[%s523_s0 + $0x28] sm:$0xff]  ;;  %v157_v15 = vmul.f32 %v20_v9, %v20_v9  ;;  %v22_v17 = vld [vmem:[%s523_s0 + $0x30] sm:$0xff]  ;;  %v23_v21 = vld [vmem:[%s523_s0 + $0x38] sm:$0xff] }
   0x4   :  { %v82_v10 = vadd.f32 %v81_v5, %v18_v3  ;;  %v217_v12 = vadd.f32 %v154_v7, %v153_v6  ;;  %v158_v19 = vmul.f32 %v21_v13, %v21_v13  ;;  %v159_v23 = vmul.f32 %v22_v17, %v22_v17  ;;  %v24_v25 = vld [vmem:[%s523_s0 + $0x40] sm:$0xff]  ;;  %v25_v29 = vld [vmem:[%s523_s0 + $0x48] sm:$0xff]  ;;  %v26_v33 = vld [vmem:[%s523_s0 + $0x50] sm:$0xff] }
   0x5   :  { %v160_v27 = vmul.f32 %v23_v21, %v23_v21  ;;  %v161_v31 = vmul.f32 %v24_v25, %v24_v25  ;;  %v162_v35 = vmul.f32 %v25_v29, %v25_v29  ;;  %v27_v37 = vld [vmem:[%s523_s0 + $0x58] sm:$0xff]  ;;  %v163_v39 = vmul.f32 %v26_v33, %v26_v33  ;;  %v28_v41 = vld [vmem:[%s523_s0 + $0x60] sm:$0xff]  ;;  %v29_v45 = vld [vmem:[%s523_s0 + $0x68] sm:$0xff] }
   0x6   :  { %v83_v14 = vadd.f32 %v82_v10, %v19_v4  ;;  %v218_v16 = vadd.f32 %v217_v12, %v155_v8  ;;  %v164_v43 = vmul.f32 %v27_v37, %v27_v37  ;;  %v165_v47 = vmul.f32 %v28_v41, %v28_v41  ;;  %v30_v49 = vld [vmem:[%s523_s0 + $0x70] sm:$0xff]  ;;  %v31_v53 = vld [vmem:[%s523_s0 + $0x78] sm:$0xff]  ;;  %v32_v57 = vld [vmem:[%s523_s0 + $0x80] sm:$0xff] }
   0x7   :  { %v166_v51 = vmul.f32 %v29_v45, %v29_v45  ;;  %v167_v55 = vmul.f32 %v30_v49, %v30_v49  ;;  %v168_v59 = vmul.f32 %v31_v53, %v31_v53  ;;  %v33_v61 = vld [vmem:[%s523_s0 + $0x88] sm:$0xff]  ;;  %v169_v63 = vmul.f32 %v32_v57, %v32_v57  ;;  %v34_v1 = vld [vmem:[%s523_s0 + $0x90] sm:$0xff]  ;;  %v35_v5 = vld [vmem:[%s523_s0 + $0x98] sm:$0xff] }
   0x8   :  { %v84_v18 = vadd.f32 %v83_v14, %v20_v9  ;;  %v219_v20 = vadd.f32 %v218_v16, %v156_v11  ;;  %v170_v3 = vmul.f32 %v33_v61, %v33_v61  ;;  %v171_v7 = vmul.f32 %v34_v1, %v34_v1  ;;  %v36_v9 = vld [vmem:[%s523_s0 + $0xa0] sm:$0xff] }
   0x9   :  { %v172_v11 = vmul.f32 %v35_v5, %v35_v5 }
   0xa   :  { %v85_v22 = vadd.f32 %v84_v18, %v21_v13  ;;  %v220_v24 = vadd.f32 %v219_v20, %v157_v15  ;;  %v37_v13 = vld [vmem:[%s523_s0 + $0xa8] sm:$0xff]  ;;  %v173_v15 = vmul.f32 %v36_v9, %v36_v9 }
   0xc   :  { %v86_v26 = vadd.f32 %v85_v22, %v22_v17  ;;  %v221_v28 = vadd.f32 %v220_v24, %v158_v19  ;;  %v38_v17 = vld [vmem:[%s523_s0 + $0xb0] sm:$0xff]  ;;  %v174_v19 = vmul.f32 %v37_v13, %v37_v13 }
   0xe   :  { %v87_v30 = vadd.f32 %v86_v26, %v23_v21  ;;  %v222_v32 = vadd.f32 %v221_v28, %v159_v23  ;;  %v39_v21 = vld [vmem:[%s523_s0 + $0xb8] sm:$0xff]  ;;  %v175_v23 = vmul.f32 %v38_v17, %v38_v17 }
  0x10   :  { %v88_v34 = vadd.f32 %v87_v30, %v24_v25  ;;  %v223_v36 = vadd.f32 %v222_v32, %v160_v27  ;;  %v40_v25 = vld [vmem:[%s523_s0 + $0xc0] sm:$0xff]  ;;  %v176_v27 = vmul.f32 %v39_v21, %v39_v21 }
  0x12   :  { %v89_v38 = vadd.f32 %v88_v34, %v25_v29  ;;  %v224_v40 = vadd.f32 %v223_v36, %v161_v31  ;;  %v41_v29 = vld [vmem:[%s523_s0 + $0xc8] sm:$0xff]  ;;  %v177_v31 = vmul.f32 %v40_v25, %v40_v25 }
  0x14   :  { %v90_v42 = vadd.f32 %v89_v38, %v26_v33  ;;  %v225_v44 = vadd.f32 %v224_v40, %v162_v35  ;;  %v42_v33 = vld [vmem:[%s523_s0 + $0xd0] sm:$0xff]  ;;  %v178_v35 = vmul.f32 %v41_v29, %v41_v29 }
  0x16   :  { %v91_v46 = vadd.f32 %v90_v42, %v27_v37  ;;  %v226_v48 = vadd.f32 %v225_v44, %v163_v39  ;;  %v43_v37 = vld [vmem:[%s523_s0 + $0xd8] sm:$0xff]  ;;  %v179_v39 = vmul.f32 %v42_v33, %v42_v33 }
  0x18   :  { %v92_v50 = vadd.f32 %v91_v46, %v28_v41  ;;  %v227_v52 = vadd.f32 %v226_v48, %v164_v43  ;;  %v44_v41 = vld [vmem:[%s523_s0 + $0xe0] sm:$0xff]  ;;  %v180_v43 = vmul.f32 %v43_v37, %v43_v37 }
  0x1a   :  { %v93_v54 = vadd.f32 %v92_v50, %v29_v45  ;;  %v228_v56 = vadd.f32 %v227_v52, %v165_v47  ;;  %v45_v45 = vld [vmem:[%s523_s0 + $0xe8] sm:$0xff]  ;;  %v181_v47 = vmul.f32 %v44_v41, %v44_v41 }
  0x1c   :  { %v94_v58 = vadd.f32 %v93_v54, %v30_v49  ;;  %v229_v60 = vadd.f32 %v228_v56, %v166_v51  ;;  %v46_v49 = vld [vmem:[%s523_s0 + $0xf0] sm:$0xff]  ;;  %v182_v51 = vmul.f32 %v45_v45, %v45_v45 }
  0x1e   :  { %v95_v62 = vadd.f32 %v94_v58, %v31_v53  ;;  %v230_v0 = vadd.f32 %v229_v60, %v167_v55  ;;  %v47_v53 = vld [vmem:[%s523_s0 + $0xf8] sm:$0xff]  ;;  %v183_v55 = vmul.f32 %v46_v49, %v46_v49 }
  0x20   :  { %v96_v2 = vadd.f32 %v95_v62, %v32_v57  ;;  %v231_v4 = vadd.f32 %v230_v0, %v168_v59  ;;  %v48_v57 = vld [vmem:[%s523_s0 + $0x100] sm:$0xff]  ;;  %v184_v59 = vmul.f32 %v47_v53, %v47_v53 }
  0x22   :  { %v97_v6 = vadd.f32 %v96_v2, %v33_v61  ;;  %v232_v8 = vadd.f32 %v231_v4, %v169_v63  ;;  %v49_v61 = vld [vmem:[%s523_s0 + $0x108] sm:$0xff]  ;;  %v185_v63 = vmul.f32 %v48_v57, %v48_v57 }
  0x24   :  { %v98_v10 = vadd.f32 %v97_v6, %v34_v1  ;;  %v233_v12 = vadd.f32 %v232_v8, %v170_v3  ;;  %v50_v1 = vld [vmem:[%s523_s0 + $0x110] sm:$0xff]  ;;  %v186_v3 = vmul.f32 %v49_v61, %v49_v61 }
  0x26   :  { %v99_v14 = vadd.f32 %v98_v10, %v35_v5  ;;  %v234_v16 = vadd.f32 %v233_v12, %v171_v7  ;;  %v51_v5 = vld [vmem:[%s523_s0 + $0x118] sm:$0xff]  ;;  %v187_v7 = vmul.f32 %v50_v1, %v50_v1 }
  0x28   :  { %v100_v18 = vadd.f32 %v99_v14, %v36_v9  ;;  %v235_v20 = vadd.f32 %v234_v16, %v172_v11  ;;  %v52_v9 = vld [vmem:[%s523_s0 + $0x120] sm:$0xff]  ;;  %v188_v11 = vmul.f32 %v51_v5, %v51_v5 }
  0x2a   :  { %v101_v22 = vadd.f32 %v100_v18, %v37_v13  ;;  %v236_v24 = vadd.f32 %v235_v20, %v173_v15  ;;  %v53_v13 = vld [vmem:[%s523_s0 + $0x128] sm:$0xff]  ;;  %v189_v15 = vmul.f32 %v52_v9, %v52_v9 }
  0x2c   :  { %v102_v26 = vadd.f32 %v101_v22, %v38_v17  ;;  %v237_v28 = vadd.f32 %v236_v24, %v174_v19  ;;  %v54_v17 = vld [vmem:[%s523_s0 + $0x130] sm:$0xff]  ;;  %v190_v19 = vmul.f32 %v53_v13, %v53_v13 }
  0x2e   :  { %v103_v30 = vadd.f32 %v102_v26, %v39_v21  ;;  %v238_v32 = vadd.f32 %v237_v28, %v175_v23  ;;  %v55_v21 = vld [vmem:[%s523_s0 + $0x138] sm:$0xff]  ;;  %v191_v23 = vmul.f32 %v54_v17, %v54_v17 }
  0x30   :  { %v104_v34 = vadd.f32 %v103_v30, %v40_v25  ;;  %v239_v36 = vadd.f32 %v238_v32, %v176_v27  ;;  %v56_v25 = vld [vmem:[%s523_s0 + $0x140] sm:$0xff]  ;;  %v192_v27 = vmul.f32 %v55_v21, %v55_v21 }
  0x32   :  { %v105_v38 = vadd.f32 %v104_v34, %v41_v29  ;;  %v240_v40 = vadd.f32 %v239_v36, %v177_v31  ;;  %v57_v29 = vld [vmem:[%s523_s0 + $0x148] sm:$0xff]  ;;  %v193_v31 = vmul.f32 %v56_v25, %v56_v25 }
  0x34   :  { %v106_v42 = vadd.f32 %v105_v38, %v42_v33  ;;  %v241_v44 = vadd.f32 %v240_v40, %v178_v35  ;;  %v58_v33 = vld [vmem:[%s523_s0 + $0x150] sm:$0xff]  ;;  %v194_v35 = vmul.f32 %v57_v29, %v57_v29 }
  0x36   :  { %v107_v46 = vadd.f32 %v106_v42, %v43_v37  ;;  %v242_v48 = vadd.f32 %v241_v44, %v179_v39  ;;  %v59_v37 = vld [vmem:[%s523_s0 + $0x158] sm:$0xff]  ;;  %v195_v39 = vmul.f32 %v58_v33, %v58_v33 }
  0x38   :  { %v108_v50 = vadd.f32 %v107_v46, %v44_v41  ;;  %v243_v52 = vadd.f32 %v242_v48, %v180_v43  ;;  %v60_v41 = vld [vmem:[%s523_s0 + $0x160] sm:$0xff]  ;;  %v196_v43 = vmul.f32 %v59_v37, %v59_v37 }
  0x3a   :  { %v109_v54 = vadd.f32 %v108_v50, %v45_v45  ;;  %v244_v56 = vadd.f32 %v243_v52, %v181_v47  ;;  %v61_v45 = vld [vmem:[%s523_s0 + $0x168] sm:$0xff]  ;;  %v197_v47 = vmul.f32 %v60_v41, %v60_v41 }
  0x3c   :  { %v110_v58 = vadd.f32 %v109_v54, %v46_v49  ;;  %v245_v60 = vadd.f32 %v244_v56, %v182_v51  ;;  %v62_v49 = vld [vmem:[%s523_s0 + $0x170] sm:$0xff]  ;;  %v198_v51 = vmul.f32 %v61_v45, %v61_v45 }
  0x3e   :  { %v111_v62 = vadd.f32 %v110_v58, %v47_v53  ;;  %v246_v0 = vadd.f32 %v245_v60, %v183_v55  ;;  %v63_v53 = vld [vmem:[%s523_s0 + $0x178] sm:$0xff]  ;;  %v199_v55 = vmul.f32 %v62_v49, %v62_v49 }
  0x40   :  { %v112_v2 = vadd.f32 %v111_v62, %v48_v57  ;;  %v247_v4 = vadd.f32 %v246_v0, %v184_v59  ;;  %v64_v57 = vld [vmem:[%s523_s0 + $0x180] sm:$0xff]  ;;  %v200_v59 = vmul.f32 %v63_v53, %v63_v53 }
  0x42   :  { %v113_v6 = vadd.f32 %v112_v2, %v49_v61  ;;  %v248_v8 = vadd.f32 %v247_v4, %v185_v63  ;;  %v65_v61 = vld [vmem:[%s523_s0 + $0x188] sm:$0xff]  ;;  %v201_v63 = vmul.f32 %v64_v57, %v64_v57 }
  0x44   :  { %v114_v10 = vadd.f32 %v113_v6, %v50_v1  ;;  %v249_v12 = vadd.f32 %v248_v8, %v186_v3  ;;  %v66_v1 = vld [vmem:[%s523_s0 + $0x190] sm:$0xff]  ;;  %v202_v3 = vmul.f32 %v65_v61, %v65_v61 }
  0x46   :  { %v115_v14 = vadd.f32 %v114_v10, %v51_v5  ;;  %v250_v16 = vadd.f32 %v249_v12, %v187_v7  ;;  %v67_v5 = vld [vmem:[%s523_s0 + $0x198] sm:$0xff]  ;;  %v203_v7 = vmul.f32 %v66_v1, %v66_v1 }
  0x48   :  { %v116_v18 = vadd.f32 %v115_v14, %v52_v9  ;;  %v251_v20 = vadd.f32 %v250_v16, %v188_v11  ;;  %v68_v9 = vld [vmem:[%s523_s0 + $0x1a0] sm:$0xff]  ;;  %v204_v11 = vmul.f32 %v67_v5, %v67_v5 }
  0x4a   :  { %v117_v22 = vadd.f32 %v116_v18, %v53_v13  ;;  %v252_v24 = vadd.f32 %v251_v20, %v189_v15  ;;  %v69_v13 = vld [vmem:[%s523_s0 + $0x1a8] sm:$0xff]  ;;  %v205_v15 = vmul.f32 %v68_v9, %v68_v9 }
  0x4c   :  { %v118_v26 = vadd.f32 %v117_v22, %v54_v17  ;;  %v253_v28 = vadd.f32 %v252_v24, %v190_v19  ;;  %v70_v17 = vld [vmem:[%s523_s0 + $0x1b0] sm:$0xff]  ;;  %v206_v19 = vmul.f32 %v69_v13, %v69_v13 }
  0x4e   :  { %v119_v30 = vadd.f32 %v118_v26, %v55_v21  ;;  %v254_v32 = vadd.f32 %v253_v28, %v191_v23  ;;  %v71_v21 = vld [vmem:[%s523_s0 + $0x1b8] sm:$0xff]  ;;  %v207_v23 = vmul.f32 %v70_v17, %v70_v17 }
  0x50   :  { %v120_v34 = vadd.f32 %v119_v30, %v56_v25  ;;  %v255_v36 = vadd.f32 %v254_v32, %v192_v27  ;;  %v72_v25 = vld [vmem:[%s523_s0 + $0x1c0] sm:$0xff]  ;;  %v208_v27 = vmul.f32 %v71_v21, %v71_v21 }
  0x52   :  { %v121_v38 = vadd.f32 %v120_v34, %v57_v29  ;;  %v256_v40 = vadd.f32 %v255_v36, %v193_v31  ;;  %v73_v29 = vld [vmem:[%s523_s0 + $0x1c8] sm:$0xff]  ;;  %v209_v31 = vmul.f32 %v72_v25, %v72_v25 }
  0x54   :  { %v122_v42 = vadd.f32 %v121_v38, %v58_v33  ;;  %v257_v44 = vadd.f32 %v256_v40, %v194_v35  ;;  %v74_v33 = vld [vmem:[%s523_s0 + $0x1d0] sm:$0xff]  ;;  %v210_v35 = vmul.f32 %v73_v29, %v73_v29 }
  0x56   :  { %v123_v46 = vadd.f32 %v122_v42, %v59_v37  ;;  %v258_v48 = vadd.f32 %v257_v44, %v195_v39  ;;  %v75_v37 = vld [vmem:[%s523_s0 + $0x1d8] sm:$0xff]  ;;  %v211_v39 = vmul.f32 %v74_v33, %v74_v33 }
  0x58   :  { %v124_v50 = vadd.f32 %v123_v46, %v60_v41  ;;  %v259_v52 = vadd.f32 %v258_v48, %v196_v43  ;;  %v76_v41 = vld [vmem:[%s523_s0 + $0x1e0] sm:$0xff]  ;;  %v212_v43 = vmul.f32 %v75_v37, %v75_v37 }
  0x5a   :  { %v125_v54 = vadd.f32 %v124_v50, %v61_v45  ;;  %v260_v56 = vadd.f32 %v259_v52, %v197_v47  ;;  %v77_v45 = vld [vmem:[%s523_s0 + $0x1e8] sm:$0xff]  ;;  %v213_v47 = vmul.f32 %v76_v41, %v76_v41 }
  0x5c   :  { %v126_v58 = vadd.f32 %v125_v54, %v62_v49  ;;  %v261_v60 = vadd.f32 %v260_v56, %v198_v51  ;;  %v78_v49 = vld [vmem:[%s523_s0 + $0x1f0] sm:$0xff]  ;;  %v214_v51 = vmul.f32 %v77_v45, %v77_v45 }
  0x5e   :  { %v127_v62 = vadd.f32 %v126_v58, %v63_v53  ;;  %v262_v0 = vadd.f32 %v261_v60, %v199_v55  ;;  %v79_v53 = vld [vmem:[%s523_s0 + $0x1f8] sm:$0xff]  ;;  %v215_v55 = vmul.f32 %v78_v49, %v78_v49 }
  0x5f   :  { %v216_v58 = vmul.f32 %v79_v53, %v79_v53 }
  0x60   :  { %v128_v2 = vadd.f32 %v127_v62, %v64_v57  ;;  %v263_v4 = vadd.f32 %v262_v0, %v200_v59 }
  0x62   :  { %v129_v6 = vadd.f32 %v128_v2, %v65_v61  ;;  %v264_v8 = vadd.f32 %v263_v4, %v201_v63 }
  0x64   :  { %v130_v10 = vadd.f32 %v129_v6, %v66_v1  ;;  %v265_v12 = vadd.f32 %v264_v8, %v202_v3 }
  0x66   :  { %v131_v14 = vadd.f32 %v130_v10, %v67_v5  ;;  %v266_v16 = vadd.f32 %v265_v12, %v203_v7  ;;  %v80_v7 = vld [vmem:[%s524_s1] sm:$0x1] }
  0x67   :  { %v152_v12 = vld [vmem:[%s525_s2] sm:$0x1] }
  0x68   :  { %v132_v18 = vadd.f32 %v131_v14, %v68_v9  ;;  %v267_v20 = vadd.f32 %v266_v16, %v204_v11 }
  0x6a   :  { %v133_v22 = vadd.f32 %v132_v18, %v69_v13  ;;  %v268_v24 = vadd.f32 %v267_v20, %v205_v15 }
  0x6c   :  { %v134_v26 = vadd.f32 %v133_v22, %v70_v17  ;;  %v269_v28 = vadd.f32 %v268_v24, %v206_v19 }
  0x6e   :  { %v135_v30 = vadd.f32 %v134_v26, %v71_v21  ;;  %v270_v32 = vadd.f32 %v269_v28, %v207_v23 }
  0x70   :  { %v136_v34 = vadd.f32 %v135_v30, %v72_v25  ;;  %v271_v36 = vadd.f32 %v270_v32, %v208_v27 }
  0x72   :  { %v137_v38 = vadd.f32 %v136_v34, %v73_v29  ;;  %v272_v40 = vadd.f32 %v271_v36, %v209_v31 }
  0x74   :  { %v138_v42 = vadd.f32 %v137_v38, %v74_v33  ;;  %v273_v44 = vadd.f32 %v272_v40, %v210_v35 }
  0x76   :  { %v139_v46 = vadd.f32 %v138_v42, %v75_v37  ;;  %v274_v48 = vadd.f32 %v273_v44, %v211_v39 }
  0x78   :  { %v140_v50 = vadd.f32 %v139_v46, %v76_v41  ;;  %v275_v52 = vadd.f32 %v274_v48, %v212_v43 }
  0x7a   :  { %v141_v54 = vadd.f32 %v140_v50, %v77_v45  ;;  %v276_v56 = vadd.f32 %v275_v52, %v213_v47 }
  0x7c   :  { %v142_v57 = vadd.f32 %v141_v54, %v78_v49  ;;  %v277_v59 = vadd.f32 %v276_v56, %v214_v51 }
  0x7e   :  { %v143_v60 = vadd.f32 %v142_v57, %v79_v53  ;;  %v278_v61 = vadd.f32 %v277_v59, %v215_v55 }
  0x80   :  { %v144_v62 = vrot.slane %v143_v60, 4  ;;  %v279_v63 = vadd.f32 %v278_v61, %v216_v58 }
  0x82   :  { %v145_v0 = vadd.f32 %v144_v62, %v143_v60  ;;  %v280_v1 = vrot.slane %v279_v63, 4 }
  0x84   :  { %v146_v2 = vrot.slane %v145_v0, 2  ;;  %v281_v3 = vadd.f32 %v280_v1, %v279_v63 }
  0x86   :  { %v147_v4 = vadd.f32 %v146_v2, %v145_v0  ;;  %v282_v5 = vrot.slane %v281_v3, 2 }
  0x88   :  { %v148_v6 = vrot.slane %v147_v4, 1  ;;  %v283_v8 = vadd.f32 %v282_v5, %v281_v3 }
  0x8a   :  { %v149_v9 = vadd.f32 %v148_v6, %v147_v4  ;;  %v284_v10 = vrot.slane %v283_v8, 1 }
  0x8c   :  { %v150_v11 = vadd.f32 %v149_v9, %v80_v7  ;;  %v285_v13 = vadd.f32 %v284_v10, %v283_v8 }
  0x8e   :  { %151 = vst [vmem:[%s524_s1] sm:$0x1] %v150_v11  ;;  %v286_v14 = vadd.f32 %v285_v13, %v152_v12 }
  0x90   :  { %287 = vst [vmem:[%s525_s2] sm:$0x1] %v286_v14 }

// kernel: single_unet_generator_L.51
= control target key start
LH: loop header
LB: loop body
LE: loop exit
PB: predicated region body
PF: predicated region fallthrough
CT: control target
= control target key end

     0   :  { %s832_s0 = inlined_call_operand.vmem [shape: f32[512,128], index: 0, kind: input, shape index: {}]   ;;  %s833_s1 = inlined_call_operand.vmem [shape: f32[1,128], index: 1, kind: input, shape index: {}]   ;;  %s834_s2 = inlined_call_operand.vmem [shape: f32[1,128], index: 2, kind: input, shape index: {}]   ;;  %s835_s3 = inlined_call_operand.vmem [shape: f32[512,128], index: 3, kind: output, shape index: {}]  }
   0x1   :  { %v14_v0 = vld [vmem:[%s832_s0] sm:$0xff]  ;;  %v15_v4 = vld [vmem:[%s832_s0 + $0x8] sm:$0xff]  ;;  %v16_v5 = vld [vmem:[%s832_s0 + $0x10] sm:$0xff] }
   0x2   :  { %v316_v1 = vld [vmem:[%s833_s1] ss:$0 sm:$0xff]  ;;  %v17_v6 = vld [vmem:[%s832_s0 + $0x18] sm:$0xff]  ;;  %v19_v11 = vld [vmem:[%s832_s0 + $0x28] sm:$0xff] }
   0x3   :  { %v321_v2 = vld [vmem:[%s834_s2] ss:$0 sm:$0xff]  ;;  %v85_v3 = vmul.f32 %v316_v1, %v14_v0  ;;  %v86_v7 = vmul.f32 %v316_v1, %v15_v4  ;;  %v87_v8 = vmul.f32 %v316_v1, %v16_v5  ;;  %v88_v9 = vmul.f32 %v316_v1, %v17_v6  ;;  %v20_v12 = vld [vmem:[%s832_s0 + $0x30] sm:$0xff]  ;;  %v21_v17 = vld [vmem:[%s832_s0 + $0x38] sm:$0xff] }
   0x4   :  { %v18_v10 = vld [vmem:[%s832_s0 + $0x20] sm:$0xff]  ;;  %v90_v15 = vmul.f32 %v316_v1, %v19_v11  ;;  %v91_v16 = vmul.f32 %v316_v1, %v20_v12  ;;  %v23_v19 = vld [vmem:[%s832_s0 + $0x48] sm:$0xff]  ;;  %v92_v23 = vmul.f32 %v316_v1, %v21_v17  ;;  %v24_v24 = vld [vmem:[%s832_s0 + $0x50] sm:$0xff] }
   0x5   :  { %v156_v13 = vadd.f32 %v321_v2, %v85_v3  ;;  %v89_v14 = vmul.f32 %v316_v1, %v18_v10  ;;  %v22_v18 = vld [vmem:[%s832_s0 + $0x40] sm:$0xff]  ;;  %v157_v20 = vadd.f32 %v321_v2, %v86_v7  ;;  %v158_v21 = vadd.f32 %v321_v2, %v87_v8  ;;  %v25_v25 = vld [vmem:[%s832_s0 + $0x58] sm:$0xff]  ;;  %v27_v31 = vld [vmem:[%s832_s0 + $0x68] sm:$0xff] }
   0x6   :  { %v159_v22 = vadd.f32 %v321_v2, %v88_v9  ;;  %v26_v26 = vld [vmem:[%s832_s0 + $0x60] sm:$0xff]  ;;  %v161_v28 = vadd.f32 %v321_v2, %v90_v15  ;;  %v162_v29 = vadd.f32 %v321_v2, %v91_v16  ;;  %v93_v30 = vmul.f32 %v316_v1, %v22_v18  ;;  %v28_v32 = vld [vmem:[%s832_s0 + $0x70] sm:$0xff]  ;;  %v29_v33 = vld [vmem:[%s832_s0 + $0x78] sm:$0xff] }
   0x7   :  { %220 = vst [vmem:[%s835_s3] sm:$0xff] %v156_v13  ;;  %v160_v27 = vadd.f32 %v321_v2, %v89_v14  ;;  %221 = vst [vmem:[%s835_s3 + $0x8] sm:$0xff] %v157_v20  ;;  %v163_v34 = vadd.f32 %v321_v2, %v92_v23  ;;  %v94_v35 = vmul.f32 %v316_v1, %v23_v19  ;;  %v30_v38 = vld [vmem:[%s832_s0 + $0x80] sm:$0xff]  ;;  %v31_v43 = vld [vmem:[%s832_s0 + $0x88] sm:$0xff] }
   0x8   :  { %222 = vst [vmem:[%s835_s3 + $0x10] sm:$0xff] %v158_v21  ;;  %223 = vst [vmem:[%s835_s3 + $0x18] sm:$0xff] %v159_v22  ;;  %v95_v36 = vmul.f32 %v316_v1, %v24_v24  ;;  %v96_v37 = vmul.f32 %v316_v1, %v25_v25  ;;  %v164_v39 = vadd.f32 %v321_v2, %v93_v30  ;;  %v32_v44 = vld [vmem:[%s832_s0 + $0x90] sm:$0xff]  ;;  %v33_v45 = vld [vmem:[%s832_s0 + $0x98] sm:$0xff] }
   0x9   :  { %224 = vst [vmem:[%s835_s3 + $0x20] sm:$0xff] %v160_v27  ;;  %225 = vst [vmem:[%s835_s3 + $0x28] sm:$0xff] %v161_v28  ;;  %v97_v40 = vmul.f32 %v316_v1, %v26_v26  ;;  %v98_v41 = vmul.f32 %v316_v1, %v27_v31  ;;  %v99_v42 = vmul.f32 %v316_v1, %v28_v32  ;;  %v34_v50 = vld [vmem:[%s832_s0 + $0xa0] sm:$0xff]  ;;  %v35_v51 = vld [vmem:[%s832_s0 + $0xa8] sm:$0xff] }
   0xa   :  { %226 = vst [vmem:[%s835_s3 + $0x30] sm:$0xff] %v162_v29  ;;  %227 = vst [vmem:[%s835_s3 + $0x38] sm:$0xff] %v163_v34  ;;  %v165_v46 = vadd.f32 %v321_v2, %v94_v35  ;;  %v166_v47 = vadd.f32 %v321_v2, %v95_v36  ;;  %v167_v48 = vadd.f32 %v321_v2, %v96_v37  ;;  %v36_v52 = vld [vmem:[%s832_s0 + $0xb0] sm:$0xff]  ;;  %v37_v57 = vld [vmem:[%s832_s0 + $0xb8] sm:$0xff] }
   0xb   :  { %v100_v49 = vmul.f32 %v316_v1, %v29_v33  ;;  %228 = vst [vmem:[%s835_s3 + $0x40] sm:$0xff] %v164_v39  ;;  %v168_v53 = vadd.f32 %v321_v2, %v97_v40  ;;  %v169_v54 = vadd.f32 %v321_v2, %v98_v41  ;;  %v170_v55 = vadd.f32 %v321_v2, %v99_v42  ;;  %v38_v62 = vld [vmem:[%s832_s0 + $0xc0] sm:$0xff]  ;;  %v39_v5 = vld [vmem:[%s832_s0 + $0xc8] sm:$0xff]  ;;  %v40_v6 = vld [vmem:[%s832_s0 + $0xd0] sm:$0xff] }
   0xc   :  { %v101_v56 = vmul.f32 %v316_v1, %v30_v38  ;;  %229 = vst [vmem:[%s835_s3 + $0x48] sm:$0xff] %v165_v46  ;;  %230 = vst [vmem:[%s835_s3 + $0x50] sm:$0xff] %v166_v47  ;;  %v102_v59 = vmul.f32 %v316_v1, %v31_v43  ;;  %v103_v60 = vmul.f32 %v316_v1, %v32_v44  ;;  %v41_v7 = vld [vmem:[%s832_s0 + $0xd8] sm:$0xff]  ;;  %v42_v12 = vld [vmem:[%s832_s0 + $0xe0] sm:$0xff] }
   0xd   :  { %231 = vst [vmem:[%s835_s3 + $0x58] sm:$0xff] %v167_v48  ;;  %v171_v58 = vadd.f32 %v321_v2, %v100_v49  ;;  %v104_v61 = vmul.f32 %v316_v1, %v33_v45  ;;  %232 = vst [vmem:[%s835_s3 + $0x60] sm:$0xff] %v168_v53  ;;  %v105_v0 = vmul.f32 %v316_v1, %v34_v50  ;;  %v43_v13 = vld [vmem:[%s832_s0 + $0xe8] sm:$0xff]  ;;  %v44_v14 = vld [vmem:[%s832_s0 + $0xf0] sm:$0xff] }
   0xe   :  { %233 = vst [vmem:[%s835_s3 + $0x68] sm:$0xff] %v169_v54  ;;  %234 = vst [vmem:[%s835_s3 + $0x70] sm:$0xff] %v170_v55  ;;  %v172_v63 = vadd.f32 %v321_v2, %v101_v56  ;;  %v106_v3 = vmul.f32 %v316_v1, %v35_v51  ;;  %v107_v4 = vmul.f32 %v316_v1, %v36_v52  ;;  %v45_v19 = vld [vmem:[%s832_s0 + $0xf8] sm:$0xff]  ;;  %v46_v24 = vld [vmem:[%s832_s0 + $0x100] sm:$0xff] }
   0xf   :  { %235 = vst [vmem:[%s835_s3 + $0x78] sm:$0xff] %v171_v58  ;;  %v173_v8 = vadd.f32 %v321_v2, %v102_v59  ;;  %v174_v9 = vadd.f32 %v321_v2, %v103_v60  ;;  %v175_v10 = vadd.f32 %v321_v2, %v104_v61  ;;  %v108_v11 = vmul.f32 %v316_v1, %v37_v57  ;;  %v47_v29 = vld [vmem:[%s832_s0 + $0x108] sm:$0xff]  ;;  %v48_v30 = vld [vmem:[%s832_s0 + $0x110] sm:$0xff]  ;;  %v49_v31 = vld [vmem:[%s832_s0 + $0x118] sm:$0xff] }
  0x10   :  { %236 = vst [vmem:[%s835_s3 + $0x80] sm:$0xff] %v172_v63  ;;  %v176_v15 = vadd.f32 %v321_v2, %v105_v0  ;;  %v177_v16 = vadd.f32 %v321_v2, %v106_v3  ;;  %v178_v17 = vadd.f32 %v321_v2, %v107_v4  ;;  %v109_v18 = vmul.f32 %v316_v1, %v38_v62  ;;  %v50_v36 = vld [vmem:[%s832_s0 + $0x120] sm:$0xff]  ;;  %v51_v37 = vld [vmem:[%s832_s0 + $0x128] sm:$0xff]  ;;  %v52_v38 = vld [vmem:[%s832_s0 + $0x130] sm:$0xff] }
  0x11   :  { %237 = vst [vmem:[%s835_s3 + $0x88] sm:$0xff] %v173_v8  ;;  %238 = vst [vmem:[%s835_s3 + $0x90] sm:$0xff] %v174_v9  ;;  %v179_v20 = vadd.f32 %v321_v2, %v108_v11  ;;  %v110_v21 = vmul.f32 %v316_v1, %v39_v5  ;;  %v111_v22 = vmul.f32 %v316_v1, %v40_v6  ;;  %v53_v43 = vld [vmem:[%s832_s0 + $0x138] sm:$0xff]  ;;  %v54_v48 = vld [vmem:[%s832_s0 + $0x140] sm:$0xff] }
  0x12   :  { %239 = vst [vmem:[%s835_s3 + $0x98] sm:$0xff] %v175_v10  ;;  %v112_v23 = vmul.f32 %v316_v1, %v41_v7  ;;  %240 = vst [vmem:[%s835_s3 + $0xa0] sm:$0xff] %v176_v15  ;;  %v180_v25 = vadd.f32 %v321_v2, %v109_v18  ;;  %v113_v26 = vmul.f32 %v316_v1, %v42_v12  ;;  %v55_v53 = vld [vmem:[%s832_s0 + $0x148] sm:$0xff]  ;;  %v56_v54 = vld [vmem:[%s832_s0 + $0x150] sm:$0xff] }
  0x13   :  { %241 = vst [vmem:[%s835_s3 + $0xa8] sm:$0xff] %v177_v16  ;;  %242 = vst [vmem:[%s835_s3 + $0xb0] sm:$0xff] %v178_v17  ;;  %v114_v27 = vmul.f32 %v316_v1, %v43_v13  ;;  %v115_v28 = vmul.f32 %v316_v1, %v44_v14  ;;  %v181_v32 = vadd.f32 %v321_v2, %v110_v21  ;;  %v57_v55 = vld [vmem:[%s832_s0 + $0x158] sm:$0xff]  ;;  %v58_v60 = vld [vmem:[%s832_s0 + $0x160] sm:$0xff] }
  0x14   :  { %243 = vst [vmem:[%s835_s3 + $0xb8] sm:$0xff] %v179_v20  ;;  %v182_v33 = vadd.f32 %v321_v2, %v111_v22  ;;  %v183_v34 = vadd.f32 %v321_v2, %v112_v23  ;;  %v116_v35 = vmul.f32 %v316_v1, %v45_v19  ;;  %244 = vst [vmem:[%s835_s3 + $0xc0] sm:$0xff] %v180_v25  ;;  %v59_v61 = vld [vmem:[%s832_s0 + $0x168] sm:$0xff]  ;;  %v60_v62 = vld [vmem:[%s832_s0 + $0x170] sm:$0xff] }
  0x15   :  { %v184_v39 = vadd.f32 %v321_v2, %v113_v26  ;;  %v185_v40 = vadd.f32 %v321_v2, %v114_v27  ;;  %v186_v41 = vadd.f32 %v321_v2, %v115_v28  ;;  %v117_v42 = vmul.f32 %v316_v1, %v46_v24  ;;  %245 = vst [vmem:[%s835_s3 + $0xc8] sm:$0xff] %v181_v32  ;;  %v61_v5 = vld [vmem:[%s832_s0 + $0x178] sm:$0xff]  ;;  %v62_v10 = vld [vmem:[%s832_s0 + $0x180] sm:$0xff]  ;;  %v63_v15 = vld [vmem:[%s832_s0 + $0x188] sm:$0xff] }
  0x16   :  { %246 = vst [vmem:[%s835_s3 + $0xd0] sm:$0xff] %v182_v33  ;;  %247 = vst [vmem:[%s835_s3 + $0xd8] sm:$0xff] %v183_v34  ;;  %v187_v44 = vadd.f32 %v321_v2, %v116_v35  ;;  %v118_v45 = vmul.f32 %v316_v1, %v47_v29  ;;  %v119_v46 = vmul.f32 %v316_v1, %v48_v30  ;;  %v64_v16 = vld [vmem:[%s832_s0 + $0x190] sm:$0xff]  ;;  %v65_v17 = vld [vmem:[%s832_s0 + $0x198] sm:$0xff] }
  0x17   :  { %v120_v47 = vmul.f32 %v316_v1, %v49_v31  ;;  %248 = vst [vmem:[%s835_s3 + $0xe0] sm:$0xff] %v184_v39  ;;  %249 = vst [vmem:[%s835_s3 + $0xe8] sm:$0xff] %v185_v40  ;;  %v188_v49 = vadd.f32 %v321_v2, %v117_v42  ;;  %v121_v50 = vmul.f32 %v316_v1, %v50_v36  ;;  %v66_v22 = vld [vmem:[%s832_s0 + $0x1a0] sm:$0xff]  ;;  %v67_v23 = vld [vmem:[%s832_s0 + $0x1a8] sm:$0xff] }
  0x18   :  { %250 = vst [vmem:[%s835_s3 + $0xf0] sm:$0xff] %v186_v41  ;;  %v122_v51 = vmul.f32 %v316_v1, %v51_v37  ;;  %v123_v52 = vmul.f32 %v316_v1, %v52_v38  ;;  %251 = vst [vmem:[%s835_s3 + $0xf8] sm:$0xff] %v187_v44  ;;  %v189_v56 = vadd.f32 %v321_v2, %v118_v45  ;;  %v68_v24 = vld [vmem:[%s832_s0 + $0x1b0] sm:$0xff]  ;;  %v69_v29 = vld [vmem:[%s832_s0 + $0x1b8] sm:$0xff] }
  0x19   :  { %v190_v57 = vadd.f32 %v321_v2, %v119_v46  ;;  %v191_v58 = vadd.f32 %v321_v2, %v120_v47  ;;  %v124_v59 = vmul.f32 %v316_v1, %v53_v43  ;;  %252 = vst [vmem:[%s835_s3 + $0x100] sm:$0xff] %v188_v49  ;;  %v192_v63 = vadd.f32 %v321_v2, %v121_v50  ;;  %v70_v34 = vld [vmem:[%s832_s0 + $0x1c0] sm:$0xff]  ;;  %v71_v39 = vld [vmem:[%s832_s0 + $0x1c8] sm:$0xff]  ;;  %v72_v40 = vld [vmem:[%s832_s0 + $0x1d0] sm:$0xff] }
  0x1a   :  { %v193_v0 = vadd.f32 %v321_v2, %v122_v51  ;;  %v194_v3 = vadd.f32 %v321_v2, %v123_v52  ;;  %v125_v4 = vmul.f32 %v316_v1, %v54_v48  ;;  %253 = vst [vmem:[%s835_s3 + $0x108] sm:$0xff] %v189_v56  ;;  %v126_v7 = vmul.f32 %v316_v1, %v55_v53  ;;  %v73_v41 = vld [vmem:[%s832_s0 + $0x1d8] sm:$0xff]  ;;  %v74_v46 = vld [vmem:[%s832_s0 + $0x1e0] sm:$0xff]  ;;  %v75_v47 = vld [vmem:[%s832_s0 + $0x1e8] sm:$0xff] }
  0x1b   :  { %254 = vst [vmem:[%s835_s3 + $0x110] sm:$0xff] %v190_v57  ;;  %255 = vst [vmem:[%s835_s3 + $0x118] sm:$0xff] %v191_v58  ;;  %v195_v6 = vadd.f32 %v321_v2, %v124_v59  ;;  %v127_v8 = vmul.f32 %v316_v1, %v56_v54  ;;  %v128_v9 = vmul.f32 %v316_v1, %v57_v55  ;;  %v76_v48 = vld [vmem:[%s832_s0 + $0x1f0] sm:$0xff]  ;;  %v77_v53 = vld [vmem:[%s832_s0 + $0x1f8] sm:$0xff] }
  0x1c   :  { %256 = vst [vmem:[%s835_s3 + $0x120] sm:$0xff] %v192_v63  ;;  %257 = vst [vmem:[%s835_s3 + $0x128] sm:$0xff] %v193_v0  ;;  %v196_v11 = vadd.f32 %v321_v2, %v125_v4  ;;  %v129_v12 = vmul.f32 %v316_v1, %v58_v60  ;;  %v130_v13 = vmul.f32 %v316_v1, %v59_v61 }
  0x1d   :  { %258 = vst [vmem:[%s835_s3 + $0x130] sm:$0xff] %v194_v3  ;;  %v131_v14 = vmul.f32 %v316_v1, %v60_v62  ;;  %259 = vst [vmem:[%s835_s3 + $0x138] sm:$0xff] %v195_v6  ;;  %v197_v18 = vadd.f32 %v321_v2, %v126_v7  ;;  %v198_v19 = vadd.f32 %v321_v2, %v127_v8 }
  0x1e   :  { %v199_v20 = vadd.f32 %v321_v2, %v128_v9  ;;  %v132_v21 = vmul.f32 %v316_v1, %v61_v5  ;;  %260 = vst [vmem:[%s835_s3 + $0x140] sm:$0xff] %v196_v11  ;;  %v200_v25 = vadd.f32 %v321_v2, %v129_v12  ;;  %v201_v26 = vadd.f32 %v321_v2, %v130_v13 }
  0x1f   :  { %v202_v27 = vadd.f32 %v321_v2, %v131_v14  ;;  %v133_v28 = vmul.f32 %v316_v1, %v62_v10  ;;  %261 = vst [vmem:[%s835_s3 + $0x148] sm:$0xff] %v197_v18  ;;  %262 = vst [vmem:[%s835_s3 + $0x150] sm:$0xff] %v198_v19  ;;  %v134_v31 = vmul.f32 %v316_v1, %v63_v15 }
  0x20   :  { %263 = vst [vmem:[%s835_s3 + $0x158] sm:$0xff] %v199_v20  ;;  %v203_v30 = vadd.f32 %v321_v2, %v132_v21  ;;  %v135_v32 = vmul.f32 %v316_v1, %v64_v16  ;;  %v136_v33 = vmul.f32 %v316_v1, %v65_v17  ;;  %264 = vst [vmem:[%s835_s3 + $0x160] sm:$0xff] %v200_v25 }
  0x21   :  { %265 = vst [vmem:[%s835_s3 + $0x168] sm:$0xff] %v201_v26  ;;  %266 = vst [vmem:[%s835_s3 + $0x170] sm:$0xff] %v202_v27  ;;  %v204_v35 = vadd.f32 %v321_v2, %v133_v28  ;;  %v137_v36 = vmul.f32 %v316_v1, %v66_v22  ;;  %v138_v37 = vmul.f32 %v316_v1, %v67_v23 }
  0x22   :  { %v139_v38 = vmul.f32 %v316_v1, %v68_v24  ;;  %267 = vst [vmem:[%s835_s3 + $0x178] sm:$0xff] %v203_v30  ;;  %v205_v42 = vadd.f32 %v321_v2, %v134_v31  ;;  %v206_v43 = vadd.f32 %v321_v2, %v135_v32  ;;  %v207_v44 = vadd.f32 %v321_v2, %v136_v33 }
  0x23   :  { %v140_v45 = vmul.f32 %v316_v1, %v69_v29  ;;  %268 = vst [vmem:[%s835_s3 + $0x180] sm:$0xff] %v204_v35  ;;  %v208_v49 = vadd.f32 %v321_v2, %v137_v36  ;;  %v209_v50 = vadd.f32 %v321_v2, %v138_v37  ;;  %v141_v52 = vmul.f32 %v316_v1, %v70_v34 }
  0x24   :  { %v210_v51 = vadd.f32 %v321_v2, %v139_v38  ;;  %269 = vst [vmem:[%s835_s3 + $0x188] sm:$0xff] %v205_v42  ;;  %270 = vst [vmem:[%s835_s3 + $0x190] sm:$0xff] %v206_v43  ;;  %v142_v55 = vmul.f32 %v316_v1, %v71_v39  ;;  %v143_v56 = vmul.f32 %v316_v1, %v72_v40 }
  0x25   :  { %271 = vst [vmem:[%s835_s3 + $0x198] sm:$0xff] %v207_v44  ;;  %v211_v54 = vadd.f32 %v321_v2, %v140_v45  ;;  %v144_v57 = vmul.f32 %v316_v1, %v73_v41  ;;  %272 = vst [vmem:[%s835_s3 + $0x1a0] sm:$0xff] %v208_v49  ;;  %v212_v58 = vadd.f32 %v321_v2, %v141_v52 }
  0x26   :  { %273 = vst [vmem:[%s835_s3 + $0x1a8] sm:$0xff] %v209_v50  ;;  %274 = vst [vmem:[%s835_s3 + $0x1b0] sm:$0xff] %v210_v51  ;;  %v145_v59 = vmul.f32 %v316_v1, %v74_v46  ;;  %v146_v60 = vmul.f32 %v316_v1, %v75_v47  ;;  %v147_v61 = vmul.f32 %v316_v1, %v76_v48 }
  0x27   :  { %275 = vst [vmem:[%s835_s3 + $0x1b8] sm:$0xff] %v211_v54  ;;  %v213_v62 = vadd.f32 %v321_v2, %v142_v55  ;;  %v214_v63 = vadd.f32 %v321_v2, %v143_v56  ;;  %v215_v0 = vadd.f32 %v321_v2, %v144_v57  ;;  %v148_v3 = vmul.f32 %v316_v1, %v77_v53 }
  0x28   :  { %276 = vst [vmem:[%s835_s3 + $0x1c0] sm:$0xff] %v212_v58  ;;  %v216_v4 = vadd.f32 %v321_v2, %v145_v59  ;;  %v217_v5 = vadd.f32 %v321_v2, %v146_v60  ;;  %v218_v6 = vadd.f32 %v321_v2, %v147_v61 }
  0x29   :  { %277 = vst [vmem:[%s835_s3 + $0x1c8] sm:$0xff] %v213_v62  ;;  %278 = vst [vmem:[%s835_s3 + $0x1d0] sm:$0xff] %v214_v63  ;;  %v219_v1 = vadd.f32 %v321_v2, %v148_v3 }
  0x2a   :  { %279 = vst [vmem:[%s835_s3 + $0x1d8] sm:$0xff] %v215_v0  ;;  %280 = vst [vmem:[%s835_s3 + $0x1e0] sm:$0xff] %v216_v4 }
  0x2b   :  { %281 = vst [vmem:[%s835_s3 + $0x1e8] sm:$0xff] %v217_v5  ;;  %282 = vst [vmem:[%s835_s3 + $0x1f0] sm:$0xff] %v218_v6 }
  0x2c   :  { %283 = vst [vmem:[%s835_s3 + $0x1f8] sm:$0xff] %v219_v1 }

// kernel: single_unet_generator_L.52
= control target key start
LH: loop header
LB: loop body
LE: loop exit
PB: predicated region body
PF: predicated region fallthrough
CT: control target
= control target key end

     0   :  { %s1443_s12 = smov 0   ;;  %s1445_s13 = smov 0   ;;  %s1668_s0 = inlined_call_operand.vmem [shape: bf16[512,256], index: 0, kind: input, shape index: {}]   ;;  %s1669_s1 = inlined_call_operand.vmem [shape: bf16[256,128], index: 1, kind: input, shape index: {}]   ;;  %s1670_s2 = inlined_call_operand.vmem [shape: f32[1,128], index: 2, kind: input, shape index: {}]   ;;  %s1671_s3 = inlined_call_operand.vmem [shape: f32[512,128], index: 3, kind: output, shape index: {}]  }
   0x1   :  { %s1447_s14 = smov 0  }
   0x2 LB: > { %s32_s15 = sadd.s32 1, %s1416_s13  ;;  %p1171_p0 = scmp.ge.s32.totalorder %s1420_s14, 1  ;;  %s1420_s14 = sphi %s1447_s14, %s13_s14   ;;  %s1416_s13 = sphi %s1445_s13, %s1673_s13   ;;  %s1412_s12 = sphi %s1443_s12, %s1672_s12  }
   0x3   : > { %p34_p1 = scmp.ge.s32.totalorder %s32_s15, 2  ;;  %p191_p2 = scmp.lt.s32.totalorder %s1420_s14, 3 }
   0x5   : > { %s1675_s15 = smov (%p34_p1, %s32_s15), 0  ;;  %p192_p3 = pnand %p1171_p0, %p191_p2 }
   0x6   : > { %v1382_v0 = vld [vmem:[%s1669_s1 + $0x40] sm:$0xff] (!%p192_p3)   ;;  %s1172_s18 = sshll.u32 (!%p192_p3), %s1412_s12, 5  ;;  %v1384_v2 = vld [vmem:[%s1669_s1 + $0x48] sm:$0xff] (!%p192_p3)   ;;  %v1386_v4 = vld [vmem:[%s1669_s1 + $0x50] sm:$0xff] (!%p192_p3)   ;;  %v1422_v14 = vmov (!%p192_p3), 0  }
   0x7   : > { %195 = sbr.rel (%p192_p3) target bundleno = 317 (0x13d), region = 32  ;;  %v1383_v1 = vld [vmem:[%s1669_s1] sm:$0xff] (!%p192_p3)   ;;  %1229 = vmatprep.subr.bf16.mxu0 (!%p192_p3), %v1382_v0  ;;  %1341 = vmatprep.subr.bf16.mxu1 (!%p192_p3), %v1382_v0  ;;  %p236_p4 = scmp.lt.s32.totalorder (!%p192_p3), %s1172_s18, 63  ;;  %v1385_v3 = vld [vmem:[%s1669_s1 + $0x8] sm:$0xff] (!%p192_p3)   ;;  %v1387_v5 = vld [vmem:[%s1669_s1 + $0x10] sm:$0xff] (!%p192_p3)  }
   0x8   : > { %1230 = vmatpush3.bf16.msra.mxu0 (!%p192_p3), %v1383_v1  ;;  %1349 = vmatpush3.bf16.msra.mxu1 (!%p192_p3), %v1383_v1  ;;  %v1388_v6 = vld [vmem:[%s1669_s1 + $0x58] sm:$0xff] (!%p192_p3)   ;;  %v1390_v8 = vld [vmem:[%s1669_s1 + $0x60] sm:$0xff] (!%p192_p3)   ;;  %v1392_v10 = vld [vmem:[%s1669_s1 + $0x68] sm:$0xff] (!%p192_p3)  }
   0x9   : > { %1231 = vmatprep.subr.bf16.mxu0 (!%p192_p3), %v1384_v2  ;;  %1342 = vmatprep.subr.bf16.mxu1 (!%p192_p3), %v1384_v2  ;;  %v1389_v7 = vld [vmem:[%s1669_s1 + $0x18] sm:$0xff] (!%p192_p3)   ;;  %v1391_v9 = vld [vmem:[%s1669_s1 + $0x20] sm:$0xff] (!%p192_p3)   ;;  %v1393_v20 = vld [vmem:[%s1669_s1 + $0x28] sm:$0xff] (!%p192_p3)  }
   0xa   : > { %v1394_v22 = vld [vmem:[%s1669_s1 + $0x70] sm:$0xff] (!%p192_p3)   ;;  %v1396_v25 = vld [vmem:[%s1669_s1 + $0x78] sm:$0xff] (!%p192_p3)  }
   0xb   : > { %v1395_v24 = vld [vmem:[%s1669_s1 + $0x30] sm:$0xff] (!%p192_p3)   ;;  %v1397_v31 = vld [vmem:[%s1669_s1 + $0x38] sm:$0xff] (!%p192_p3)  }
   0xc   : > { %1232 = vmatpush3.bf16.msra.mxu0 (!%p192_p3), %v1385_v3  ;;  %1350 = vmatpush3.bf16.msra.mxu1 (!%p192_p3), %v1385_v3 }
   0xd   : > { %1233 = vmatprep.subr.bf16.mxu0 (!%p192_p3), %v1386_v4  ;;  %1343 = vmatprep.subr.bf16.mxu1 (!%p192_p3), %v1386_v4 }
   0xe   : > { %s1677_s18 = smov (!%p236_p4, %s1172_s18), 63 }
   0xf   : > { %s1228_s4 = sshll.u32 %s1677_s18, 3 }
  0x10   : > { %1234 = vmatpush3.bf16.msra.mxu0 %v1387_v5  ;;  %1351 = vmatpush3.bf16.msra.mxu1 %v1387_v5  ;;  %s1496_s11 = scalar_lea.vmem %s1668_s0, %s1228_s4  ;;  %s1595_s8 = scalar_lea.vmem %s1671_s3, %s1228_s4 }
  0x11   : > { %1235 = vmatprep.subr.bf16.mxu0 %v1388_v6  ;;  %1344 = vmatprep.subr.bf16.mxu1 %v1388_v6  ;;  %v304_v11 = vld [vmem:[%s1496_s11] sm:$0xff]  ;;  %v305_v12 = vld [vmem:[%s1496_s11 + $0x8] sm:$0xff]  ;;  %v306_v26 = vld [vmem:[%s1496_s11 + $0x10] sm:$0xff] }
  0x12   : > { %v320_v13 = vld [vmem:[%s1496_s11 + $0x80] sm:$0xff]  ;;  %v336_v15 = vmax.bf16 %v1422_v14, %v304_v11  ;;  %v337_v16 = vmax.bf16 %v1422_v14, %v305_v12  ;;  %v321_v17 = vld [vmem:[%s1496_s11 + $0x88] sm:$0xff]  ;;  %v307_v27 = vld [vmem:[%s1496_s11 + $0x18] sm:$0xff]  ;;  %v338_v30 = vmax.bf16 %v1422_v14, %v306_v26 }
  0x13   : > { %v352_v18 = vmax.bf16 %v1422_v14, %v320_v13  ;;  %v353_v19 = vmax.bf16 %v1422_v14, %v321_v17  ;;  %v322_v28 = vld [vmem:[%s1496_s11 + $0x90] sm:$0xff]  ;;  %v323_v29 = vld [vmem:[%s1496_s11 + $0x98] sm:$0xff]  ;;  %v339_v32 = vmax.bf16 %v1422_v14, %v307_v27  ;;  %v308_v39 = vld [vmem:[%s1496_s11 + $0x20] sm:$0xff] }
  0x14   : > { %1236 = vmatpush3.bf16.msra.mxu0 %v1389_v7  ;;  %1352 = vmatpush3.bf16.msra.mxu1 %v1389_v7  ;;  %v1178_v21 = vcombine.high %v336_v15, %v337_v16  ;;  %v354_v33 = vmax.bf16 %v1422_v14, %v322_v28  ;;  %v355_v34 = vmax.bf16 %v1422_v14, %v323_v29  ;;  %v309_v40 = vld [vmem:[%s1496_s11 + $0x28] sm:$0xff]  ;;  %v324_v41 = vld [vmem:[%s1496_s11 + $0xa0] sm:$0xff]  ;;  %v310_v51 = vld [vmem:[%s1496_s11 + $0x30] sm:$0xff] }
  0x15   : > { %1237 = vmatprep.subr.bf16.mxu0 %v1390_v8  ;;  %1345 = vmatprep.subr.bf16.mxu1 %v1390_v8  ;;  %v1194_v23 = vcombine.high %v352_v18, %v353_v19  ;;  %v1177_v35 = vcombine.low %v336_v15, %v337_v16  ;;  %v1193_v36 = vcombine.low %v352_v18, %v353_v19  ;;  %v325_v42 = vld [vmem:[%s1496_s11 + $0xa8] sm:$0xff]  ;;  %v311_v52 = vld [vmem:[%s1496_s11 + $0x38] sm:$0xff]  ;;  %v326_v53 = vld [vmem:[%s1496_s11 + $0xb0] sm:$0xff] }
  0x16   : > { %720 = vmatprep.mubr.bf16.mxu0 %v1178_v21  ;;  %v1180_v37 = vcombine.high %v338_v30, %v339_v32  ;;  %v1196_v38 = vcombine.high %v354_v33, %v355_v34  ;;  %v340_v43 = vmax.bf16 %v1422_v14, %v308_v39  ;;  %v341_v44 = vmax.bf16 %v1422_v14, %v309_v40  ;;  %v327_v54 = vld [vmem:[%s1496_s11 + $0xb8] sm:$0xff]  ;;  %v312_v63 = vld [vmem:[%s1496_s11 + $0x40] sm:$0xff]  ;;  %v313_v0 = vld [vmem:[%s1496_s11 + $0x48] sm:$0xff] }
  0x17   : > { %784 = vmatprep.mubr.bf16.mxu1 %v1194_v23  ;;  %v356_v45 = vmax.bf16 %v1422_v14, %v324_v41  ;;  %v357_v46 = vmax.bf16 %v1422_v14, %v325_v42  ;;  %v1179_v47 = vcombine.low %v338_v30, %v339_v32  ;;  %v1195_v48 = vcombine.low %v354_v33, %v355_v34  ;;  %v328_v1 = vld [vmem:[%s1496_s11 + $0xc0] sm:$0xff]  ;;  %v329_v2 = vld [vmem:[%s1496_s11 + $0xc8] sm:$0xff]  ;;  %v314_v11 = vld [vmem:[%s1496_s11 + $0x50] sm:$0xff] }
  0x18   : > { %1238 = vmatpush3.bf16.msra.mxu0 %v1391_v9  ;;  %1353 = vmatpush3.bf16.msra.mxu1 %v1391_v9  ;;  %v1182_v49 = vcombine.high %v340_v43, %v341_v44  ;;  %v342_v55 = vmax.bf16 %v1422_v14, %v310_v51  ;;  %v343_v56 = vmax.bf16 %v1422_v14, %v311_v52  ;;  %v315_v12 = vld [vmem:[%s1496_s11 + $0x58] sm:$0xff]  ;;  %v330_v13 = vld [vmem:[%s1496_s11 + $0xd0] sm:$0xff]  ;;  %v332_v26 = vld [vmem:[%s1496_s11 + $0xe0] sm:$0xff] }
  0x19   : > { %1239 = vmatprep.subr.bf16.mxu0 %v1392_v10  ;;  %1346 = vmatprep.subr.bf16.mxu1 %v1392_v10  ;;  %v1198_v50 = vcombine.high %v356_v45, %v357_v46  ;;  %v358_v57 = vmax.bf16 %v1422_v14, %v326_v53  ;;  %v359_v58 = vmax.bf16 %v1422_v14, %v327_v54  ;;  %v331_v15 = vld [vmem:[%s1496_s11 + $0xd8] sm:$0xff]  ;;  %v333_v27 = vld [vmem:[%s1496_s11 + $0xe8] sm:$0xff] }
  0x1a   : > { %v1181_v59 = vcombine.low %v340_v43, %v341_v44  ;;  %v1197_v60 = vcombine.low %v356_v45, %v357_v46  ;;  %v1184_v61 = vcombine.high %v342_v55, %v343_v56  ;;  %v344_v3 = vmax.bf16 %v1422_v14, %v312_v63  ;;  %v335_v39 = vld [vmem:[%s1496_s11 + $0xf8] sm:$0xff] }
  0x1b   : > { %v1200_v62 = vcombine.high %v358_v57, %v359_v58  ;;  %v345_v4 = vmax.bf16 %v1422_v14, %v313_v0  ;;  %v360_v5 = vmax.bf16 %v1422_v14, %v328_v1  ;;  %v361_v6 = vmax.bf16 %v1422_v14, %v329_v2 }
  0x1c   : > { %1240 = vmatpush3.bf16.msra.mxu0 %v1393_v20  ;;  %1354 = vmatpush3.bf16.msra.mxu1 %v1393_v20  ;;  %v1183_v7 = vcombine.low %v342_v55, %v343_v56  ;;  %v1199_v8 = vcombine.low %v358_v57, %v359_v58  ;;  %v346_v16 = vmax.bf16 %v1422_v14, %v314_v11 }
  0x1d   : > { %1241 = vmatprep.subr.bf16.mxu0 %v1394_v22  ;;  %1347 = vmatprep.subr.bf16.mxu1 %v1394_v22  ;;  %v1186_v9 = vcombine.high %v344_v3, %v345_v4  ;;  %v1202_v10 = vcombine.high %v360_v5, %v361_v6  ;;  %v347_v17 = vmax.bf16 %v1422_v14, %v315_v12 }
  0x1e   : > { %v362_v18 = vmax.bf16 %v1422_v14, %v330_v13  ;;  %v363_v19 = vmax.bf16 %v1422_v14, %v331_v15  ;;  %v1185_v20 = vcombine.low %v344_v3, %v345_v4  ;;  %v1201_v21 = vcombine.low %v360_v5, %v361_v6 }
  0x1f   : > { %v1188_v22 = vcombine.high %v346_v16, %v347_v17  ;;  %v364_v30 = vmax.bf16 %v1422_v14, %v332_v26  ;;  %v1187_v32 = vcombine.low %v346_v16, %v347_v17  ;;  %v367_v43 = vmax.bf16 %v1422_v14, %v335_v39 }
  0x20   : > { %1242 = vmatpush3.bf16.msra.mxu0 %v1395_v24  ;;  %1355 = vmatpush3.bf16.msra.mxu1 %v1395_v24  ;;  %v1204_v23 = vcombine.high %v362_v18, %v363_v19  ;;  %v316_v24 = vld [vmem:[%s1496_s11 + $0x60] sm:$0xff]  ;;  %v1203_v33 = vcombine.low %v362_v18, %v363_v19 }
  0x21   : > { %1243 = vmatprep.subr.bf16.mxu0 %v1396_v25  ;;  %1348 = vmatprep.subr.bf16.mxu1 %v1396_v25  ;;  %v317_v25 = vld [vmem:[%s1496_s11 + $0x68] sm:$0xff]  ;;  %v348_v28 = vmax.bf16 %v1422_v14, %v316_v24 }
  0x22   : > { %v349_v29 = vmax.bf16 %v1422_v14, %v317_v25 }
  0x24   : > { %1244 = vmatpush3.bf16.msra.mxu0 %v1397_v31  ;;  %1356 = vmatpush3.bf16.msra.mxu1 %v1397_v31  ;;  %v365_v31 = vmax.bf16 %v1422_v14, %v333_v27  ;;  %v1190_v34 = vcombine.high %v348_v28, %v349_v29  ;;  %v1189_v44 = vcombine.low %v348_v28, %v349_v29 }
  0x26   : > { %v1205_v45 = vcombine.low %v364_v30, %v365_v31 }
  0x27   : > { %721 = vmatmul.mubr.bf16.vlgmr.msra.gmra.mrb[0].mxu0 %v1177_v35  ;;  %785 = vmatmul.mubr.bf16.vlgmr.msra.gmra.mrb[0].mxu1 %v1193_v36  ;;  %v1206_v35 = vcombine.high %v364_v30, %v365_v31  ;;  %v318_v36 = vld [vmem:[%s1496_s11 + $0x70] sm:$0xff] }
  0x28   : > { %728 = vmatprep.mubr.bf16.mxu0 %v1180_v37  ;;  %792 = vmatprep.mubr.bf16.mxu1 %v1196_v38  ;;  %v319_v37 = vld [vmem:[%s1496_s11 + $0x78] sm:$0xff]  ;;  %v334_v38 = vld [vmem:[%s1496_s11 + $0xf0] sm:$0xff]  ;;  %v350_v40 = vmax.bf16 %v1422_v14, %v318_v36 }
  0x29   : > { %v351_v41 = vmax.bf16 %v1422_v14, %v319_v37  ;;  %v366_v42 = vmax.bf16 %v1422_v14, %v334_v38  ;;  %v1586_v14 = vld [vmem:[%s1670_s2] ss:$0 sm:$0xff] }
  0x2b   : > { %v1192_v46 = vcombine.high %v350_v40, %v351_v41 }
  0x2f   : > { %729 = vmatmul.mubr.bf16.gmra.mrb[4].mxu0 %v1179_v47  ;;  %793 = vmatmul.mubr.bf16.gmra.mrb[4].mxu1 %v1195_v48  ;;  %v1208_v47 = vcombine.high %v366_v42, %v367_v43  ;;  %v1191_v48 = vcombine.low %v350_v40, %v351_v41 }
  0x30   : > { %736 = vmatprep.mubr.bf16.mxu0 %v1182_v49  ;;  %800 = vmatprep.mubr.bf16.mxu1 %v1198_v50  ;;  %v1207_v49 = vcombine.low %v366_v42, %v367_v43 }
  0x37   : > { %737 = vmatmul.mubr.bf16.gmra.mrb[8].mxu0 %v1181_v59  ;;  %801 = vmatmul.mubr.bf16.gmra.mrb[8].mxu1 %v1197_v60 }
  0x38   : > { %744 = vmatprep.mubr.bf16.mxu0 %v1184_v61  ;;  %808 = vmatprep.mubr.bf16.mxu1 %v1200_v62 }
  0x3f   : > { %745 = vmatmul.mubr.bf16.gmra.mrb[12].mxu0 %v1183_v7  ;;  %809 = vmatmul.mubr.bf16.gmra.mrb[12].mxu1 %v1199_v8 }
  0x40   : > { %752 = vmatprep.mubr.bf16.mxu0 %v1186_v9  ;;  %816 = vmatprep.mubr.bf16.mxu1 %v1202_v10 }
  0x47   : > { %753 = vmatmul.mubr.bf16.gmra.mrb[16].mxu0 %v1185_v20  ;;  %817 = vmatmul.mubr.bf16.gmra.mrb[16].mxu1 %v1201_v21 }
  0x48   : > { %760 = vmatprep.mubr.bf16.mxu0 %v1188_v22  ;;  %824 = vmatprep.mubr.bf16.mxu1 %v1204_v23 }
  0x4f   : > { %761 = vmatmul.mubr.bf16.gmra.mrb[20].mxu0 %v1187_v32  ;;  %825 = vmatmul.mubr.bf16.gmra.mrb[20].mxu1 %v1203_v33 }
  0x50   : > { %768 = vmatprep.mubr.bf16.mxu0 %v1190_v34  ;;  %832 = vmatprep.mubr.bf16.mxu1 %v1206_v35 }
  0x57   : > { %769 = vmatmul.mubr.bf16.gmra.mrb[24].mxu0 %v1189_v44  ;;  %833 = vmatmul.mubr.bf16.gmra.mrb[24].mxu1 %v1205_v45 }
  0x58   : > { %776 = vmatprep.mubr.bf16.mxu0 %v1192_v46  ;;  %840 = vmatprep.mubr.bf16.mxu1 %v1208_v47 }
  0x5f   : > { %777 = vmatmul.mubr.bf16.gmra.mrb[28].mxu0 %v1191_v48  ;;  %841 = vmatmul.mubr.bf16.gmra.mrb[28].mxu1 %v1207_v49 }
  0xfa   : > { %v1245_v50 = vpop.f32.mrb[0].mxu0  ;;  %v1293_v51 = vpop.f32.mrb[0].mxu1 }
  0xfb   : > { %v1246_v52 = vpop.f32.mrb[1].mxu0  ;;  %v1294_v53 = vpop.f32.mrb[1].mxu1 }
  0xfc   : > { %v1247_v54 = vadd.f32 %v1246_v52, %v1245_v50  ;;  %v1295_v55 = vadd.f32 %v1294_v53, %v1293_v51  ;;  %v1248_v56 = vpop.f32.mrb[2].mxu0  ;;  %v1296_v57 = vpop.f32.mrb[2].mxu1 }
  0xfd   : > { %v1249_v58 = vpop.f32.mrb[3].mxu0  ;;  %v1297_v59 = vpop.f32.mrb[3].mxu1 }
  0xfe   : > { %v955_v60 = vadd.f32 %v1247_v54, %v1586_v14  ;;  %v971_v61 = vadd.f32 %v1295_v55, %v1586_v14  ;;  %v1250_v62 = vadd.f32 %v1249_v58, %v1248_v56  ;;  %v1298_v63 = vadd.f32 %v1297_v59, %v1296_v57 }
 0x100   : > { %v987_v0 = vmax.f32 %v955_v60, 0.0  ;;  %v1003_v1 = vmax.f32 %v971_v61, 0.0  ;;  %v956_v2 = vadd.f32 %v1250_v62, %v1586_v14  ;;  %v972_v3 = vadd.f32 %v1298_v63, %v1586_v14 }
 0x102   : > { %1019 = vst [vmem:[%s1595_s8] sm:$0xff] %v987_v0  ;;  %1035 = vst [vmem:[%s1595_s8 + $0x80] sm:$0xff] %v1003_v1  ;;  %v988_v4 = vmax.f32 %v956_v2, 0.0  ;;  %v1004_v5 = vmax.f32 %v972_v3, 0.0  ;;  %v1251_v6 = vpop.f32.mrb[4].mxu0  ;;  %v1299_v7 = vpop.f32.mrb[4].mxu1 }
 0x103   : > { %v1252_v8 = vpop.f32.mrb[5].mxu0  ;;  %v1300_v9 = vpop.f32.mrb[5].mxu1 }
 0x104   : > { %1020 = vst [vmem:[%s1595_s8 + $0x8] sm:$0xff] %v988_v4  ;;  %1036 = vst [vmem:[%s1595_s8 + $0x88] sm:$0xff] %v1004_v5  ;;  %v1253_v10 = vadd.f32 %v1252_v8, %v1251_v6  ;;  %v1301_v11 = vadd.f32 %v1300_v9, %v1299_v7  ;;  %v1254_v12 = vpop.f32.mrb[6].mxu0  ;;  %v1302_v13 = vpop.f32.mrb[6].mxu1 }
 0x105   : > { %v1255_v15 = vpop.f32.mrb[7].mxu0  ;;  %v1303_v16 = vpop.f32.mrb[7].mxu1 }
 0x106   : > { %v957_v17 = vadd.f32 %v1253_v10, %v1586_v14  ;;  %v973_v18 = vadd.f32 %v1301_v11, %v1586_v14  ;;  %v1256_v19 = vadd.f32 %v1255_v15, %v1254_v12  ;;  %v1304_v20 = vadd.f32 %v1303_v16, %v1302_v13 }
 0x108   : > { %v989_v21 = vmax.f32 %v957_v17, 0.0  ;;  %v1005_v22 = vmax.f32 %v973_v18, 0.0  ;;  %v958_v23 = vadd.f32 %v1256_v19, %v1586_v14  ;;  %v974_v24 = vadd.f32 %v1304_v20, %v1586_v14 }
 0x10a   : > { %1021 = vst [vmem:[%s1595_s8 + $0x10] sm:$0xff] %v989_v21  ;;  %1037 = vst [vmem:[%s1595_s8 + $0x90] sm:$0xff] %v1005_v22  ;;  %v990_v25 = vmax.f32 %v958_v23, 0.0  ;;  %v1006_v26 = vmax.f32 %v974_v24, 0.0  ;;  %v1257_v27 = vpop.f32.mrb[8].mxu0  ;;  %v1305_v28 = vpop.f32.mrb[8].mxu1 }
 0x10b   : > { %v1258_v29 = vpop.f32.mrb[9].mxu0  ;;  %v1306_v30 = vpop.f32.mrb[9].mxu1 }
 0x10c   : > { %1022 = vst [vmem:[%s1595_s8 + $0x18] sm:$0xff] %v990_v25  ;;  %1038 = vst [vmem:[%s1595_s8 + $0x98] sm:$0xff] %v1006_v26  ;;  %v1259_v31 = vadd.f32 %v1258_v29, %v1257_v27  ;;  %v1307_v32 = vadd.f32 %v1306_v30, %v1305_v28  ;;  %v1260_v33 = vpop.f32.mrb[10].mxu0  ;;  %v1308_v34 = vpop.f32.mrb[10].mxu1 }
 0x10d   : > { %v1261_v35 = vpop.f32.mrb[11].mxu0  ;;  %v1309_v36 = vpop.f32.mrb[11].mxu1 }
 0x10e   : > { %v959_v37 = vadd.f32 %v1259_v31, %v1586_v14  ;;  %v975_v38 = vadd.f32 %v1307_v32, %v1586_v14  ;;  %v1262_v39 = vadd.f32 %v1261_v35, %v1260_v33  ;;  %v1310_v40 = vadd.f32 %v1309_v36, %v1308_v34 }
 0x110   : > { %v991_v41 = vmax.f32 %v959_v37, 0.0  ;;  %v1007_v42 = vmax.f32 %v975_v38, 0.0  ;;  %v960_v43 = vadd.f32 %v1262_v39, %v1586_v14  ;;  %v976_v44 = vadd.f32 %v1310_v40, %v1586_v14 }
 0x112   : > { %1023 = vst [vmem:[%s1595_s8 + $0x20] sm:$0xff] %v991_v41  ;;  %1039 = vst [vmem:[%s1595_s8 + $0xa0] sm:$0xff] %v1007_v42  ;;  %v992_v45 = vmax.f32 %v960_v43, 0.0  ;;  %v1008_v46 = vmax.f32 %v976_v44, 0.0  ;;  %v1263_v47 = vpop.f32.mrb[12].mxu0  ;;  %v1311_v48 = vpop.f32.mrb[12].mxu1 }
 0x113   : > { %v1264_v49 = vpop.f32.mrb[13].mxu0  ;;  %v1312_v50 = vpop.f32.mrb[13].mxu1 }
 0x114   : > { %1024 = vst [vmem:[%s1595_s8 + $0x28] sm:$0xff] %v992_v45  ;;  %1040 = vst [vmem:[%s1595_s8 + $0xa8] sm:$0xff] %v1008_v46  ;;  %v1265_v51 = vadd.f32 %v1264_v49, %v1263_v47  ;;  %v1313_v52 = vadd.f32 %v1312_v50, %v1311_v48  ;;  %v1266_v53 = vpop.f32.mrb[14].mxu0  ;;  %v1314_v54 = vpop.f32.mrb[14].mxu1 }
 0x115   : > { %v1267_v55 = vpop.f32.mrb[15].mxu0  ;;  %v1315_v56 = vpop.f32.mrb[15].mxu1 }
 0x116   : > { %v961_v57 = vadd.f32 %v1265_v51, %v1586_v14  ;;  %v977_v58 = vadd.f32 %v1313_v52, %v1586_v14  ;;  %v1268_v59 = vadd.f32 %v1267_v55, %v1266_v53  ;;  %v1316_v60 = vadd.f32 %v1315_v56, %v1314_v54 }
 0x118   : > { %v993_v61 = vmax.f32 %v961_v57, 0.0  ;;  %v1009_v62 = vmax.f32 %v977_v58, 0.0  ;;  %v962_v63 = vadd.f32 %v1268_v59, %v1586_v14  ;;  %v978_v0 = vadd.f32 %v1316_v60, %v1586_v14 }
 0x11a   : > { %1025 = vst [vmem:[%s1595_s8 + $0x30] sm:$0xff] %v993_v61  ;;  %1041 = vst [vmem:[%s1595_s8 + $0xb0] sm:$0xff] %v1009_v62  ;;  %v994_v1 = vmax.f32 %v962_v63, 0.0  ;;  %v1010_v2 = vmax.f32 %v978_v0, 0.0  ;;  %v1269_v3 = vpop.f32.mrb[16].mxu0  ;;  %v1317_v4 = vpop.f32.mrb[16].mxu1 }
 0x11b   : > { %v1270_v5 = vpop.f32.mrb[17].mxu0  ;;  %v1318_v6 = vpop.f32.mrb[17].mxu1 }
 0x11c   : > { %1026 = vst [vmem:[%s1595_s8 + $0x38] sm:$0xff] %v994_v1  ;;  %1042 = vst [vmem:[%s1595_s8 + $0xb8] sm:$0xff] %v1010_v2  ;;  %v1271_v7 = vadd.f32 %v1270_v5, %v1269_v3  ;;  %v1319_v8 = vadd.f32 %v1318_v6, %v1317_v4  ;;  %v1272_v9 = vpop.f32.mrb[18].mxu0  ;;  %v1320_v10 = vpop.f32.mrb[18].mxu1 }
 0x11d   : > { %v1273_v11 = vpop.f32.mrb[19].mxu0  ;;  %v1321_v12 = vpop.f32.mrb[19].mxu1 }
 0x11e   : > { %v963_v13 = vadd.f32 %v1271_v7, %v1586_v14  ;;  %v979_v15 = vadd.f32 %v1319_v8, %v1586_v14  ;;  %v1274_v16 = vadd.f32 %v1273_v11, %v1272_v9  ;;  %v1322_v17 = vadd.f32 %v1321_v12, %v1320_v10 }
 0x120   : > { %v995_v18 = vmax.f32 %v963_v13, 0.0  ;;  %v1011_v19 = vmax.f32 %v979_v15, 0.0  ;;  %v964_v20 = vadd.f32 %v1274_v16, %v1586_v14  ;;  %v980_v21 = vadd.f32 %v1322_v17, %v1586_v14 }
 0x122   : > { %1027 = vst [vmem:[%s1595_s8 + $0x40] sm:$0xff] %v995_v18  ;;  %1043 = vst [vmem:[%s1595_s8 + $0xc0] sm:$0xff] %v1011_v19  ;;  %v996_v22 = vmax.f32 %v964_v20, 0.0  ;;  %v1012_v23 = vmax.f32 %v980_v21, 0.0  ;;  %v1275_v24 = vpop.f32.mrb[20].mxu0  ;;  %v1323_v25 = vpop.f32.mrb[20].mxu1 }
 0x123   : > { %v1276_v26 = vpop.f32.mrb[21].mxu0  ;;  %v1324_v27 = vpop.f32.mrb[21].mxu1 }
 0x124   : > { %1028 = vst [vmem:[%s1595_s8 + $0x48] sm:$0xff] %v996_v22  ;;  %1044 = vst [vmem:[%s1595_s8 + $0xc8] sm:$0xff] %v1012_v23  ;;  %v1277_v28 = vadd.f32 %v1276_v26, %v1275_v24  ;;  %v1325_v29 = vadd.f32 %v1324_v27, %v1323_v25  ;;  %v1278_v30 = vpop.f32.mrb[22].mxu0  ;;  %v1326_v31 = vpop.f32.mrb[22].mxu1 }
 0x125   : > { %v1279_v32 = vpop.f32.mrb[23].mxu0  ;;  %v1327_v33 = vpop.f32.mrb[23].mxu1 }
 0x126   : > { %v965_v34 = vadd.f32 %v1277_v28, %v1586_v14  ;;  %v981_v35 = vadd.f32 %v1325_v29, %v1586_v14  ;;  %v1280_v36 = vadd.f32 %v1279_v32, %v1278_v30  ;;  %v1328_v37 = vadd.f32 %v1327_v33, %v1326_v31 }
 0x128   : > { %v997_v38 = vmax.f32 %v965_v34, 0.0  ;;  %v1013_v39 = vmax.f32 %v981_v35, 0.0  ;;  %v966_v40 = vadd.f32 %v1280_v36, %v1586_v14  ;;  %v982_v41 = vadd.f32 %v1328_v37, %v1586_v14 }
 0x12a   : > { %1029 = vst [vmem:[%s1595_s8 + $0x50] sm:$0xff] %v997_v38  ;;  %1045 = vst [vmem:[%s1595_s8 + $0xd0] sm:$0xff] %v1013_v39  ;;  %v998_v42 = vmax.f32 %v966_v40, 0.0  ;;  %v1014_v43 = vmax.f32 %v982_v41, 0.0  ;;  %v1281_v44 = vpop.f32.mrb[24].mxu0  ;;  %v1329_v45 = vpop.f32.mrb[24].mxu1 }
 0x12b   : > { %v1282_v46 = vpop.f32.mrb[25].mxu0  ;;  %v1330_v47 = vpop.f32.mrb[25].mxu1 }
 0x12c   : > { %1030 = vst [vmem:[%s1595_s8 + $0x58] sm:$0xff] %v998_v42  ;;  %1046 = vst [vmem:[%s1595_s8 + $0xd8] sm:$0xff] %v1014_v43  ;;  %v1283_v48 = vadd.f32 %v1282_v46, %v1281_v44  ;;  %v1331_v49 = vadd.f32 %v1330_v47, %v1329_v45  ;;  %v1284_v50 = vpop.f32.mrb[26].mxu0  ;;  %v1332_v51 = vpop.f32.mrb[26].mxu1 }
 0x12d   : > { %v1285_v52 = vpop.f32.mrb[27].mxu0  ;;  %v1333_v53 = vpop.f32.mrb[27].mxu1 }
 0x12e   : > { %v967_v54 = vadd.f32 %v1283_v48, %v1586_v14  ;;  %v983_v55 = vadd.f32 %v1331_v49, %v1586_v14  ;;  %v1286_v56 = vadd.f32 %v1285_v52, %v1284_v50  ;;  %v1334_v57 = vadd.f32 %v1333_v53, %v1332_v51 }
 0x130   : > { %v999_v58 = vmax.f32 %v967_v54, 0.0  ;;  %v1015_v59 = vmax.f32 %v983_v55, 0.0  ;;  %v968_v60 = vadd.f32 %v1286_v56, %v1586_v14  ;;  %v984_v61 = vadd.f32 %v1334_v57, %v1586_v14 }
 0x132   : > { %1031 = vst [vmem:[%s1595_s8 + $0x60] sm:$0xff] %v999_v58  ;;  %1047 = vst [vmem:[%s1595_s8 + $0xe0] sm:$0xff] %v1015_v59  ;;  %v1000_v62 = vmax.f32 %v968_v60, 0.0  ;;  %v1016_v63 = vmax.f32 %v984_v61, 0.0  ;;  %v1287_v0 = vpop.f32.mrb[28].mxu0  ;;  %v1335_v1 = vpop.f32.mrb[28].mxu1 }
 0x133   : > { %v1288_v2 = vpop.f32.mrb[29].mxu0  ;;  %v1336_v3 = vpop.f32.mrb[29].mxu1 }
 0x134   : > { %1032 = vst [vmem:[%s1595_s8 + $0x68] sm:$0xff] %v1000_v62  ;;  %1048 = vst [vmem:[%s1595_s8 + $0xe8] sm:$0xff] %v1016_v63  ;;  %v1289_v4 = vadd.f32 %v1288_v2, %v1287_v0  ;;  %v1337_v5 = vadd.f32 %v1336_v3, %v1335_v1  ;;  %v1290_v6 = vpop.f32.mrb[30].mxu0  ;;  %v1338_v7 = vpop.f32.mrb[30].mxu1 }
 0x135   : > { %v1291_v8 = vpop.f32.mrb[31].mxu0  ;;  %v1339_v9 = vpop.f32.mrb[31].mxu1 }
 0x136   : > { %v969_v10 = vadd.f32 %v1289_v4, %v1586_v14  ;;  %v985_v11 = vadd.f32 %v1337_v5, %v1586_v14  ;;  %v1292_v12 = vadd.f32 %v1291_v8, %v1290_v6  ;;  %v1340_v13 = vadd.f32 %v1339_v9, %v1338_v7 }
 0x138   : > { %v1001_v15 = vmax.f32 %v969_v10, 0.0  ;;  %v1017_v16 = vmax.f32 %v985_v11, 0.0  ;;  %v970_v17 = vadd.f32 %v1292_v12, %v1586_v14  ;;  %v986_v18 = vadd.f32 %v1340_v13, %v1586_v14 }
 0x13a   : > { %1033 = vst [vmem:[%s1595_s8 + $0x70] sm:$0xff] %v1001_v15  ;;  %1049 = vst [vmem:[%s1595_s8 + $0xf0] sm:$0xff] %v1017_v16  ;;  %v1002_v19 = vmax.f32 %v970_v17, 0.0  ;;  %v1018_v20 = vmax.f32 %v986_v18, 0.0 }
 0x13c   : > { %1034 = vst [vmem:[%s1595_s8 + $0x78] sm:$0xff] %v1002_v19  ;;  %1050 = vst [vmem:[%s1595_s8 + $0xf8] sm:$0xff] %v1018_v20 }
 0x13d PF: > { %s13_s14 = sadd.s32 1, %s1420_s14   ;;  %s1672_s12 = smov %s1416_s13 }
 0x13e   : > { %p10_p5 = scmp.ge.s32.totalorder %s13_s14, 4   ;;  %s1673_s13 = smov %s1675_s15 }
 0x140   :  { %12 = sbr.rel (!%p10_p5) target bundleno = 2 (0x2), region = 76 }

// kernel: single_unet_generator_L.53
= control target key start
LH: loop header
LB: loop body
LE: loop exit
PB: predicated region body
PF: predicated region fallthrough
CT: control target
= control target key end

     0   :  { %s1500_s12 = smov 0   ;;  %s1502_s13 = smov 0   ;;  %s1668_s0 = inlined_call_operand.vmem [shape: bf16[2048,128], index: 0, kind: input, shape index: {}]   ;;  %s1669_s1 = inlined_call_operand.vmem [shape: bf16[128,128], index: 1, kind: input, shape index: {}]   ;;  %s1670_s2 = inlined_call_operand.vmem [shape: f32[1,128], index: 2, kind: input, shape index: {}]   ;;  %s1671_s3 = inlined_call_operand.vmem [shape: f32[2048,128], index: 3, kind: output, shape index: {}]  }
   0x1   :  { %s1504_s14 = smov 0  }
   0x2 LB: > { %s32_s15 = sadd.s32 1, %s1474_s13  ;;  %p1160_p0 = scmp.ge.s32.totalorder %s1478_s14, 1  ;;  %s1478_s14 = sphi %s1504_s14, %s13_s14   ;;  %s1474_s13 = sphi %s1502_s13, %s1673_s13   ;;  %s1470_s12 = sphi %s1500_s12, %s1672_s12  }
   0x3   : > { %p34_p1 = scmp.ge.s32.totalorder %s32_s15, 8  ;;  %p188_p2 = scmp.lt.s32.totalorder %s1478_s14, 9 }
   0x5   : > { %s1675_s15 = smov (%p34_p1, %s32_s15), 0  ;;  %p189_p3 = pnand %p1160_p0, %p188_p2 }
   0x6   : > { %v1304_v0 = vld [vmem:[%s1669_s1] sm:$0xff] (!%p189_p3)   ;;  %s1161_s18 = sshll.u32 (!%p189_p3), %s1470_s12, 5  ;;  %v1305_v1 = vld [vmem:[%s1669_s1 + $0x8] sm:$0xff] (!%p189_p3)   ;;  %v1306_v2 = vld [vmem:[%s1669_s1 + $0x10] sm:$0xff] (!%p189_p3)  }
   0x7   : > { %192 = sbr.rel (%p189_p3) target bundleno = 341 (0x155), region = 32  ;;  %p230_p4 = scmp.lt.s32.totalorder (!%p189_p3), %s1161_s18, 255  ;;  %1216 = vmatprep.subr.bf16.mxu0 (!%p189_p3), %v1304_v0  ;;  %1264 = vmatprep.subr.bf16.mxu1 (!%p189_p3), %v1304_v0  ;;  %v1307_v3 = vld [vmem:[%s1669_s1 + $0x18] sm:$0xff] (!%p189_p3)   ;;  %v1308_v6 = vld [vmem:[%s1669_s1 + $0x20] sm:$0xff] (!%p189_p3)   ;;  %v1309_v7 = vld [vmem:[%s1669_s1 + $0x28] sm:$0xff] (!%p189_p3)  }
   0x8   : > { %1217 = vmatpush3.bf16.msra.mxu0 (!%p189_p3), %v1304_v0  ;;  %1272 = vmatpush3.bf16.msra.mxu1 (!%p189_p3), %v1304_v0  ;;  %v1310_v8 = vld [vmem:[%s1669_s1 + $0x30] sm:$0xff] (!%p189_p3)   ;;  %v1311_v9 = vld [vmem:[%s1669_s1 + $0x38] sm:$0xff] (!%p189_p3)   ;;  %v1569_v24 = vld [vmem:[%s1670_s2] ss:$0 sm:$0xff] (!%p189_p3) }
   0x9   : > { %1218 = vmatprep.subr.bf16.mxu0 (!%p189_p3), %v1305_v1  ;;  %1265 = vmatprep.subr.bf16.mxu1 (!%p189_p3), %v1305_v1 }
   0xc   : > { %1219 = vmatpush3.bf16.msra.mxu0 (!%p189_p3), %v1305_v1  ;;  %1273 = vmatpush3.bf16.msra.mxu1 (!%p189_p3), %v1305_v1 }
   0xd   : > { %1220 = vmatprep.subr.bf16.mxu0 (!%p189_p3), %v1306_v2  ;;  %1266 = vmatprep.subr.bf16.mxu1 (!%p189_p3), %v1306_v2 }
   0xe   : > { %s1677_s18 = smov (!%p230_p4, %s1161_s18), 255 }
   0xf   : > { %s1162_s23 = sshll.u32 %s1677_s18, 2  ;;  %s1164_s12 = sshll.u32 %s1677_s18, 3 }
  0x10   : > { %s1533_s26 = scalar_lea.vmem %s1668_s0, %s1162_s23  ;;  %1221 = vmatpush3.bf16.msra.mxu0 %v1306_v2  ;;  %1274 = vmatpush3.bf16.msra.mxu1 %v1306_v2  ;;  %s1607_s18 = scalar_lea.vmem %s1671_s3, %s1164_s12 }
  0x11   : > { %v1312_v4 = vld [vmem:[%s1533_s26] sm:$0xff]   ;;  %1222 = vmatprep.subr.bf16.mxu0 %v1307_v3  ;;  %1267 = vmatprep.subr.bf16.mxu1 %v1307_v3  ;;  %v1314_v10 = vld [vmem:[%s1533_s26 + $0x8] sm:$0xff]   ;;  %v1316_v12 = vld [vmem:[%s1533_s26 + $0x10] sm:$0xff]  }
  0x12   : > { %v1313_v5 = vld [vmem:[%s1533_s26 + $0x40] sm:$0xff]   ;;  %1232 = vmatprep.mubr.bf16.mxu0 %v1312_v4  ;;  %v1315_v11 = vld [vmem:[%s1533_s26 + $0x48] sm:$0xff]   ;;  %v1317_v13 = vld [vmem:[%s1533_s26 + $0x50] sm:$0xff]  }
  0x13   : > { %1248 = vmatprep.mubr.bf16.mxu1 %v1313_v5  ;;  %v1318_v14 = vld [vmem:[%s1533_s26 + $0x18] sm:$0xff]   ;;  %v1320_v16 = vld [vmem:[%s1533_s26 + $0x20] sm:$0xff]   ;;  %v1322_v18 = vld [vmem:[%s1533_s26 + $0x28] sm:$0xff]  }
  0x14   : > { %1223 = vmatpush3.bf16.msra.mxu0 %v1307_v3  ;;  %1275 = vmatpush3.bf16.msra.mxu1 %v1307_v3  ;;  %v1319_v15 = vld [vmem:[%s1533_s26 + $0x58] sm:$0xff]   ;;  %v1321_v17 = vld [vmem:[%s1533_s26 + $0x60] sm:$0xff]   ;;  %v1323_v19 = vld [vmem:[%s1533_s26 + $0x68] sm:$0xff]  }
  0x15   : > { %1224 = vmatprep.subr.bf16.mxu0 %v1308_v6  ;;  %1268 = vmatprep.subr.bf16.mxu1 %v1308_v6  ;;  %v1324_v20 = vld [vmem:[%s1533_s26 + $0x30] sm:$0xff]   ;;  %v1326_v22 = vld [vmem:[%s1533_s26 + $0x38] sm:$0xff]  }
  0x16   : > { %v1325_v21 = vld [vmem:[%s1533_s26 + $0x70] sm:$0xff]   ;;  %v1327_v23 = vld [vmem:[%s1533_s26 + $0x78] sm:$0xff]  }
  0x18   : > { %1225 = vmatpush3.bf16.msra.mxu0 %v1308_v6  ;;  %1276 = vmatpush3.bf16.msra.mxu1 %v1308_v6 }
  0x19   : > { %1226 = vmatprep.subr.bf16.mxu0 %v1309_v7  ;;  %1269 = vmatprep.subr.bf16.mxu1 %v1309_v7 }
  0x1c   : > { %1227 = vmatpush3.bf16.msra.mxu0 %v1309_v7  ;;  %1277 = vmatpush3.bf16.msra.mxu1 %v1309_v7 }
  0x1d   : > { %1228 = vmatprep.subr.bf16.mxu0 %v1310_v8  ;;  %1270 = vmatprep.subr.bf16.mxu1 %v1310_v8 }
  0x20   : > { %1229 = vmatpush3.bf16.msra.mxu0 %v1310_v8  ;;  %1278 = vmatpush3.bf16.msra.mxu1 %v1310_v8 }
  0x21   : > { %1230 = vmatprep.subr.bf16.mxu0 %v1311_v9  ;;  %1271 = vmatprep.subr.bf16.mxu1 %v1311_v9 }
  0x24   : > { %1231 = vmatpush3.bf16.msra.mxu0 %v1311_v9  ;;  %1279 = vmatpush3.bf16.msra.mxu1 %v1311_v9 }
  0x27   : > { %1233 = vmatmul.mubr.bf16.vlgmr.msra.gmra.mrb[0].mxu0 %v1314_v10  ;;  %1249 = vmatmul.mubr.bf16.vlgmr.msra.gmra.mrb[0].mxu1 %v1315_v11 }
  0x28   : > { %1236 = vmatprep.mubr.bf16.mxu0 %v1316_v12  ;;  %1252 = vmatprep.mubr.bf16.mxu1 %v1317_v13 }
  0x2f   : > { %1237 = vmatmul.mubr.bf16.gmra.mrb[4].mxu0 %v1318_v14  ;;  %1253 = vmatmul.mubr.bf16.gmra.mrb[4].mxu1 %v1319_v15 }
  0x30   : > { %1240 = vmatprep.mubr.bf16.mxu0 %v1320_v16  ;;  %1256 = vmatprep.mubr.bf16.mxu1 %v1321_v17 }
  0x37   : > { %1241 = vmatmul.mubr.bf16.gmra.mrb[8].mxu0 %v1322_v18  ;;  %1257 = vmatmul.mubr.bf16.gmra.mrb[8].mxu1 %v1323_v19 }
  0x38   : > { %1244 = vmatprep.mubr.bf16.mxu0 %v1324_v20  ;;  %1260 = vmatprep.mubr.bf16.mxu1 %v1325_v21 }
  0x3f   : > { %1245 = vmatmul.mubr.bf16.gmra.mrb[12].mxu0 %v1326_v22  ;;  %1261 = vmatmul.mubr.bf16.gmra.mrb[12].mxu1 %v1327_v23 }
  0xfa   : > { %v1234_v25 = vpop.f32.mrb[0].mxu0  ;;  %v1250_v26 = vpop.f32.mrb[0].mxu1 }
  0xfb   : > { %v789_v27 = vadd.f32 %v1234_v25, %v1569_v24  ;;  %v805_v28 = vadd.f32 %v1250_v26, %v1569_v24  ;;  %v554_v29 = vpop.f32.mrb[1].mxu0  ;;  %v618_v30 = vpop.f32.mrb[1].mxu1 }
  0xfc   : > { %v787_v31 = vadd.f32 %v1569_v24, %v554_v29  ;;  %v803_v32 = vadd.f32 %v1569_v24, %v618_v30  ;;  %v1235_v33 = vpop.f32.mrb[2].mxu0  ;;  %v1251_v34 = vpop.f32.mrb[2].mxu1 }
  0xfd   : > { %v821_v35 = vsub.f32 0.0, %v789_v27  ;;  %v837_v36 = vsub.f32 0.0, %v805_v28  ;;  %v790_v37 = vadd.f32 %v1235_v33, %v1569_v24  ;;  %v806_v38 = vadd.f32 %v1251_v34, %v1569_v24  ;;  %v557_v39 = vpop.f32.mrb[3].mxu0  ;;  %v621_v40 = vpop.f32.mrb[3].mxu1 }
  0xfe   : > { %v819_v41 = vsub.f32 0.0, %v787_v31  ;;  %v835_v42 = vsub.f32 0.0, %v803_v32  ;;  %v788_v43 = vadd.f32 %v1569_v24, %v557_v39  ;;  %v804_v44 = vadd.f32 %v1569_v24, %v621_v40 }
  0xff   : > { %v855_v45 = vmul.f32 1.442695, %v821_v35  ;;  %v887_v46 = vmul.f32 1.442695, %v837_v36  ;;  %v822_v47 = vsub.f32 0.0, %v790_v37  ;;  %v838_v48 = vsub.f32 0.0, %v806_v38 }
 0x100   : > { %v851_v49 = vmul.f32 1.442695, %v819_v41  ;;  %v883_v50 = vmul.f32 1.442695, %v835_v42  ;;  %v820_v51 = vsub.f32 0.0, %v788_v43  ;;  %v836_v52 = vsub.f32 0.0, %v804_v44 }
 0x101   : > { %1328 = vpow2.f32 %v855_v45  ;;  %v857_v53 = vmul.f32 1.442695, %v822_v47  ;;  %v889_v54 = vmul.f32 1.442695, %v838_v48 }
 0x102   : > { %1330 = vpow2.f32 %v887_v46  ;;  %v1238_v55 = vpop.f32.mrb[4].mxu0  ;;  %v1254_v56 = vpop.f32.mrb[4].mxu1  ;;  %v853_v57 = vmul.f32 1.442695, %v820_v51  ;;  %v885_v62 = vmul.f32 1.442695, %v836_v52 }
 0x103   : > { %1332 = vpow2.f32 %v851_v49  ;;  %v793_v58 = vadd.f32 %v1238_v55, %v1569_v24  ;;  %v809_v59 = vadd.f32 %v1254_v56, %v1569_v24  ;;  %v570_v60 = vpop.f32.mrb[5].mxu0  ;;  %v634_v61 = vpop.f32.mrb[5].mxu1 }
 0x104   : > { %1334 = vpow2.f32 %v883_v50  ;;  %v791_v63 = vadd.f32 %v1569_v24, %v570_v60  ;;  %v807_v0 = vadd.f32 %v1569_v24, %v634_v61  ;;  %v1239_v1 = vpop.f32.mrb[6].mxu0  ;;  %v1255_v2 = vpop.f32.mrb[6].mxu1 }
 0x105   : > { %1336 = vpow2.f32 %v857_v53  ;;  %v825_v3 = vsub.f32 0.0, %v793_v58  ;;  %v841_v4 = vsub.f32 0.0, %v809_v59  ;;  %v794_v5 = vadd.f32 %v1239_v1, %v1569_v24  ;;  %v573_v6 = vpop.f32.mrb[7].mxu0  ;;  %v637_v7 = vpop.f32.mrb[7].mxu1 }
 0x106   : > { %1338 = vpow2.f32 %v889_v54  ;;  %v823_v8 = vsub.f32 0.0, %v791_v63  ;;  %v839_v9 = vsub.f32 0.0, %v807_v0  ;;  %v810_v19 = vadd.f32 %v1255_v2, %v1569_v24 }
 0x107   : > { %1340 = vpow2.f32 %v853_v57  ;;  %v863_v10 = vmul.f32 1.442695, %v825_v3  ;;  %v895_v11 = vmul.f32 1.442695, %v841_v4  ;;  %v826_v12 = vsub.f32 0.0, %v794_v5 }
 0x108   : > { %1342 = vpow2.f32 %v885_v62  ;;  %v859_v13 = vmul.f32 1.442695, %v823_v8  ;;  %v891_v14 = vmul.f32 1.442695, %v839_v9  ;;  %v792_v29 = vadd.f32 %v1569_v24, %v573_v6 }
 0x109   : > { %1344 = vpow2.f32 %v863_v10  ;;  %v865_v15 = vmul.f32 1.442695, %v826_v12  ;;  %v842_v36 = vsub.f32 0.0, %v810_v19  ;;  %v808_v39 = vadd.f32 %v1569_v24, %v637_v7 }
 0x10a   : > { %1346 = vpow2.f32 %v895_v11  ;;  %v1242_v16 = vpop.f32.mrb[8].mxu0  ;;  %v1258_v17 = vpop.f32.mrb[8].mxu1  ;;  %v824_v42 = vsub.f32 0.0, %v792_v29 }
 0x10b   : > { %v1329_v18 = vpop.eup %1328  ;;  %1348 = vpow2.f32 %v859_v13  ;;  %v586_v20 = vpop.f32.mrb[9].mxu0  ;;  %v797_v45 = vadd.f32 %v1242_v16, %v1569_v24  ;;  %v897_v50 = vmul.f32 1.442695, %v842_v36  ;;  %v813_v51 = vadd.f32 %v1258_v17, %v1569_v24 }
 0x10c   : > { %v650_v21 = vpop.f32.mrb[9].mxu1  ;;  %v1331_v22 = vpop.eup %1330  ;;  %v917_v23 = vadd.f32 1.0, %v1329_v18  ;;  %1350 = vpow2.f32 %v891_v14  ;;  %v840_v56 = vsub.f32 0.0, %v808_v39  ;;  %v795_v57 = vadd.f32 %v1569_v24, %v586_v20 }
 0x10d   : > { %v1243_v25 = vpop.f32.mrb[10].mxu0  ;;  %v1259_v26 = vpop.f32.mrb[10].mxu1  ;;  %v933_v28 = vadd.f32 1.0, %v1331_v22  ;;  %1352 = vpow2.f32 %v865_v15  ;;  %v861_v62 = vmul.f32 1.442695, %v824_v42  ;;  %v811_v63 = vadd.f32 %v1569_v24, %v650_v21 }
 0x10e   : > { %v1333_v27 = vpop.eup %1332  ;;  %v589_v30 = vpop.f32.mrb[11].mxu0  ;;  %1354 = vrcp.f32 %v917_v23  ;;  %v829_v4 = vsub.f32 0.0, %v797_v45  ;;  %v798_v5 = vadd.f32 %v1243_v25, %v1569_v24  ;;  %v845_v8 = vsub.f32 0.0, %v813_v51 }
 0x10f   : > { %v1335_v31 = vpop.eup %1334  ;;  %v915_v32 = vadd.f32 1.0, %v1333_v27  ;;  %v653_v33 = vpop.f32.mrb[11].mxu1  ;;  %1356 = vrcp.f32 %v933_v28  ;;  %v814_v9 = vadd.f32 %v1259_v26, %v1569_v24  ;;  %v827_v12 = vsub.f32 0.0, %v795_v57 }
 0x110   : > { %v1337_v34 = vpop.eup %1336  ;;  %v931_v35 = vadd.f32 1.0, %v1335_v31  ;;  %v796_v13 = vadd.f32 %v1569_v24, %v589_v30  ;;  %v893_v15 = vmul.f32 1.442695, %v840_v56  ;;  %v843_v16 = vsub.f32 0.0, %v811_v63 }
 0x111   : > { %v1339_v37 = vpop.eup %1338  ;;  %1358 = vrcp.f32 %v915_v32  ;;  %v918_v38 = vadd.f32 1.0, %v1337_v34  ;;  %v812_v17 = vadd.f32 %v1569_v24, %v653_v33  ;;  %v871_v19 = vmul.f32 1.442695, %v829_v4 }
 0x112   : > { %v1341_v40 = vpop.eup %1340  ;;  %1360 = vrcp.f32 %v931_v35  ;;  %v934_v41 = vadd.f32 1.0, %v1339_v37  ;;  %v1246_v46 = vpop.f32.mrb[12].mxu0  ;;  %v830_v20 = vsub.f32 0.0, %v798_v5  ;;  %v903_v23 = vmul.f32 1.442695, %v845_v8 }
 0x113   : > { %v1343_v43 = vpop.eup %1342  ;;  %1362 = vrcp.f32 %v918_v38  ;;  %v916_v44 = vadd.f32 1.0, %v1341_v40  ;;  %v1262_v47 = vpop.f32.mrb[12].mxu1  ;;  %v801_v21 = vadd.f32 %v1246_v46, %v1569_v24  ;;  %v846_v25 = vsub.f32 0.0, %v814_v9 }
 0x114   : > { %v1345_v48 = vpop.eup %1344  ;;  %1364 = vrcp.f32 %v934_v41  ;;  %v932_v49 = vadd.f32 1.0, %v1343_v43  ;;  %v1590_v52 = vpop.f32.mrb[13].mxu0  ;;  %v817_v26 = vadd.f32 %v1262_v47, %v1569_v24  ;;  %v867_v28 = vmul.f32 1.442695, %v827_v12 }
 0x115   : > { %v1592_v53 = vpop.f32.mrb[13].mxu1  ;;  %v1347_v54 = vpop.eup %1346  ;;  %1366 = vrcp.f32 %v916_v44  ;;  %v921_v55 = vadd.f32 1.0, %v1345_v48  ;;  %v828_v29 = vsub.f32 0.0, %v796_v13  ;;  %v899_v31 = vmul.f32 1.442695, %v843_v16 }
 0x116   : > { %v1595_v58 = vpop.f32.mrb[14].mxu0  ;;  %v1597_v59 = vpop.f32.mrb[14].mxu1  ;;  %1368 = vrcp.f32 %v932_v49  ;;  %v937_v61 = vadd.f32 1.0, %v1347_v54  ;;  %v844_v32 = vsub.f32 0.0, %v812_v17  ;;  %v873_v34 = vmul.f32 1.442695, %v830_v20 }
 0x117   : > { %v1349_v60 = vpop.eup %1348  ;;  %v1600_v0 = vpop.f32.mrb[15].mxu0  ;;  %1370 = vrcp.f32 %v921_v55  ;;  %v833_v35 = vsub.f32 0.0, %v801_v21  ;;  %v905_v37 = vmul.f32 1.442695, %v846_v25  ;;  %v849_v38 = vsub.f32 0.0, %v817_v26 }
 0x118   : > { %v1602_v1 = vpop.f32.mrb[15].mxu1  ;;  %v1351_v2 = vpop.eup %1350  ;;  %v919_v3 = vadd.f32 1.0, %v1349_v60  ;;  %1372 = vrcp.f32 %v937_v61  ;;  %v869_v40 = vmul.f32 1.442695, %v828_v29  ;;  %v901_v42 = vmul.f32 1.442695, %v844_v32 }
 0x119   : > { %v1353_v6 = vpop.eup %1352  ;;  %v935_v7 = vadd.f32 1.0, %v1351_v2  ;;  %v879_v44 = vmul.f32 1.442695, %v833_v35  ;;  %v911_v46 = vmul.f32 1.442695, %v849_v38  ;;  %v799_v61 = vadd.f32 %v1569_v24, %v1590_v52 }
 0x11a   : > { %v1355_v10 = vpop.eup %1354  ;;  %1374 = vrcp.f32 %v919_v3  ;;  %v922_v11 = vadd.f32 1.0, %v1353_v6  ;;  %v815_v2 = vadd.f32 %v1569_v24, %v1592_v53  ;;  %v802_v5 = vadd.f32 %v1595_v58, %v1569_v24 }
 0x11b   : > { %v1357_v14 = vpop.eup %1356  ;;  %1013 = vst [vmem:[%s1607_s18 + $0x10] sm:$0xff] %v1355_v10  ;;  %1376 = vrcp.f32 %v935_v7  ;;  %v818_v8 = vadd.f32 %v1597_v59, %v1569_v24  ;;  %v831_v10 = vsub.f32 0.0, %v799_v61  ;;  %v816_v58 = vadd.f32 %v1569_v24, %v1602_v1 }
 0x11c   : > { %v1359_v18 = vpop.eup %1358  ;;  %1029 = vst [vmem:[%s1607_s18 + $0x90] sm:$0xff] %v1357_v14  ;;  %1378 = vrcp.f32 %v922_v11  ;;  %v800_v11 = vadd.f32 %v1569_v24, %v1600_v0  ;;  %v847_v13 = vsub.f32 0.0, %v815_v2  ;;  %v834_v16 = vsub.f32 0.0, %v802_v5 }
 0x11d   : > { %v1361_v22 = vpop.eup %1360  ;;  %1011 = vst [vmem:[%s1607_s18] sm:$0xff] %v1359_v18  ;;  %1380 = vpow2.f32 %v897_v50  ;;  %v850_v18 = vsub.f32 0.0, %v818_v8  ;;  %v875_v20 = vmul.f32 1.442695, %v831_v10  ;;  %v848_v1 = vsub.f32 0.0, %v816_v58 }
 0x11e   : > { %v1363_v27 = vpop.eup %1362  ;;  %1027 = vst [vmem:[%s1607_s18 + $0x80] sm:$0xff] %v1361_v22  ;;  %1382 = vpow2.f32 %v861_v62  ;;  %v832_v21 = vsub.f32 0.0, %v800_v11  ;;  %v907_v24 = vmul.f32 1.442695, %v847_v13  ;;  %v881_v26 = vmul.f32 1.442695, %v834_v16 }
 0x11f   : > { %v1365_v30 = vpop.eup %1364  ;;  %1014 = vst [vmem:[%s1607_s18 + $0x18] sm:$0xff] %v1363_v27  ;;  %1384 = vpow2.f32 %v893_v15  ;;  %v909_v32 = vmul.f32 1.442695, %v848_v1 }
 0x120   : > { %v1367_v33 = vpop.eup %1366  ;;  %1030 = vst [vmem:[%s1607_s18 + $0x98] sm:$0xff] %v1365_v30  ;;  %1386 = vpow2.f32 %v871_v19  ;;  %v877_v30 = vmul.f32 1.442695, %v832_v21 }
 0x121   : > { %v1369_v36 = vpop.eup %1368  ;;  %1012 = vst [vmem:[%s1607_s18 + $0x8] sm:$0xff] %v1367_v33  ;;  %1388 = vpow2.f32 %v903_v23 }
 0x122   : > { %v1371_v39 = vpop.eup %1370  ;;  %1028 = vst [vmem:[%s1607_s18 + $0x88] sm:$0xff] %v1369_v36  ;;  %1390 = vpow2.f32 %v867_v28  ;;  %v913_v28 = vmul.f32 1.442695, %v850_v18 }
 0x123   : > { %v1373_v41 = vpop.eup %1372  ;;  %1017 = vst [vmem:[%s1607_s18 + $0x30] sm:$0xff] %v1371_v39  ;;  %1392 = vpow2.f32 %v899_v31 }
 0x124   : > { %v1375_v43 = vpop.eup %1374  ;;  %1033 = vst [vmem:[%s1607_s18 + $0xb0] sm:$0xff] %v1373_v41  ;;  %1394 = vpow2.f32 %v873_v34 }
 0x125   : > { %v1377_v45 = vpop.eup %1376  ;;  %1015 = vst [vmem:[%s1607_s18 + $0x20] sm:$0xff] %v1375_v43  ;;  %1396 = vpow2.f32 %v905_v37 }
 0x126   : > { %v1379_v47 = vpop.eup %1378  ;;  %1031 = vst [vmem:[%s1607_s18 + $0xa0] sm:$0xff] %v1377_v45  ;;  %1398 = vpow2.f32 %v869_v40 }
 0x127   : > { %v1381_v48 = vpop.eup %1380  ;;  %1018 = vst [vmem:[%s1607_s18 + $0x38] sm:$0xff] %v1379_v47  ;;  %1400 = vpow2.f32 %v901_v42 }
 0x128   : > { %v1383_v49 = vpop.eup %1382  ;;  %v938_v50 = vadd.f32 1.0, %v1381_v48  ;;  %1402 = vpow2.f32 %v879_v44 }
 0x129   : > { %v1385_v51 = vpop.eup %1384  ;;  %v920_v54 = vadd.f32 1.0, %v1383_v49  ;;  %1404 = vpow2.f32 %v911_v46 }
 0x12a   : > { %v1387_v55 = vpop.eup %1386  ;;  %1406 = vrcp.f32 %v938_v50  ;;  %v936_v56 = vadd.f32 1.0, %v1385_v51 }
 0x12b   : > { %v1389_v57 = vpop.eup %1388  ;;  %1408 = vrcp.f32 %v920_v54  ;;  %v925_v60 = vadd.f32 1.0, %v1387_v55 }
 0x12c   : > { %v1391_v62 = vpop.eup %1390  ;;  %1410 = vrcp.f32 %v936_v56  ;;  %v941_v63 = vadd.f32 1.0, %v1389_v57 }
 0x12d   : > { %v1393_v3 = vpop.eup %1392  ;;  %1412 = vrcp.f32 %v925_v60  ;;  %v923_v4 = vadd.f32 1.0, %v1391_v62 }
 0x12e   : > { %v1395_v6 = vpop.eup %1394  ;;  %1414 = vrcp.f32 %v941_v63  ;;  %v939_v7 = vadd.f32 1.0, %v1393_v3 }
 0x12f   : > { %v1397_v9 = vpop.eup %1396  ;;  %1416 = vrcp.f32 %v923_v4  ;;  %v926_v52 = vadd.f32 1.0, %v1395_v6 }
 0x130   : > { %v1399_v53 = vpop.eup %1398  ;;  %1418 = vrcp.f32 %v939_v7  ;;  %v942_v12 = vadd.f32 1.0, %v1397_v9 }
 0x131   : > { %v1401_v14 = vpop.eup %1400  ;;  %1420 = vrcp.f32 %v926_v52  ;;  %v924_v15 = vadd.f32 1.0, %v1399_v53 }
 0x132   : > { %v1403_v59 = vpop.eup %1402  ;;  %1422 = vrcp.f32 %v942_v12  ;;  %v940_v17 = vadd.f32 1.0, %v1401_v14 }
 0x133   : > { %v1405_v19 = vpop.eup %1404  ;;  %1424 = vrcp.f32 %v924_v15  ;;  %v929_v0 = vadd.f32 1.0, %v1403_v59 }
 0x134   : > { %v1407_v22 = vpop.eup %1406  ;;  %1426 = vrcp.f32 %v940_v17  ;;  %v945_v23 = vadd.f32 1.0, %v1405_v19 }
 0x135   : > { %v1409_v25 = vpop.eup %1408  ;;  %1034 = vst [vmem:[%s1607_s18 + $0xb8] sm:$0xff] %v1407_v22  ;;  %1428 = vrcp.f32 %v929_v0 }
 0x136   : > { %v1411_v27 = vpop.eup %1410  ;;  %1016 = vst [vmem:[%s1607_s18 + $0x28] sm:$0xff] %v1409_v25  ;;  %1430 = vrcp.f32 %v945_v23 }
 0x137   : > { %v1413_v29 = vpop.eup %1412  ;;  %1032 = vst [vmem:[%s1607_s18 + $0xa8] sm:$0xff] %v1411_v27  ;;  %1432 = vpow2.f32 %v875_v20 }
 0x138   : > { %v1415_v31 = vpop.eup %1414  ;;  %1021 = vst [vmem:[%s1607_s18 + $0x50] sm:$0xff] %v1413_v29  ;;  %1434 = vpow2.f32 %v907_v24 }
 0x139   : > { %v1417_v33 = vpop.eup %1416  ;;  %1037 = vst [vmem:[%s1607_s18 + $0xd0] sm:$0xff] %v1415_v31  ;;  %1436 = vpow2.f32 %v881_v26 }
 0x13a   : > { %v1419_v34 = vpop.eup %1418  ;;  %1019 = vst [vmem:[%s1607_s18 + $0x40] sm:$0xff] %v1417_v33  ;;  %1438 = vpow2.f32 %v913_v28 }
 0x13b   : > { %v1421_v35 = vpop.eup %1420  ;;  %1035 = vst [vmem:[%s1607_s18 + $0xc0] sm:$0xff] %v1419_v34  ;;  %1440 = vpow2.f32 %v877_v30 }
 0x13c   : > { %v1423_v36 = vpop.eup %1422  ;;  %1022 = vst [vmem:[%s1607_s18 + $0x58] sm:$0xff] %v1421_v35  ;;  %1442 = vpow2.f32 %v909_v32 }
 0x13d   : > { %v1425_v37 = vpop.eup %1424  ;;  %1038 = vst [vmem:[%s1607_s18 + $0xd8] sm:$0xff] %v1423_v36 }
 0x13e   : > { %v1427_v38 = vpop.eup %1426  ;;  %1020 = vst [vmem:[%s1607_s18 + $0x48] sm:$0xff] %v1425_v37 }
 0x13f   : > { %v1429_v39 = vpop.eup %1428  ;;  %1036 = vst [vmem:[%s1607_s18 + $0xc8] sm:$0xff] %v1427_v38 }
 0x140   : > { %v1431_v40 = vpop.eup %1430  ;;  %1025 = vst [vmem:[%s1607_s18 + $0x70] sm:$0xff] %v1429_v39 }
 0x141   : > { %v1433_v41 = vpop.eup %1432  ;;  %1041 = vst [vmem:[%s1607_s18 + $0xf0] sm:$0xff] %v1431_v40 }
 0x142   : > { %v1435_v42 = vpop.eup %1434  ;;  %v927_v43 = vadd.f32 1.0, %v1433_v41 }
 0x143   : > { %v1437_v44 = vpop.eup %1436  ;;  %v943_v45 = vadd.f32 1.0, %v1435_v42 }
 0x144   : > { %v1439_v46 = vpop.eup %1438  ;;  %1444 = vrcp.f32 %v927_v43  ;;  %v930_v47 = vadd.f32 1.0, %v1437_v44 }
 0x145   : > { %v1441_v48 = vpop.eup %1440  ;;  %1446 = vrcp.f32 %v943_v45  ;;  %v946_v49 = vadd.f32 1.0, %v1439_v46 }
 0x146   : > { %v1443_v50 = vpop.eup %1442  ;;  %1448 = vrcp.f32 %v930_v47  ;;  %v928_v51 = vadd.f32 1.0, %v1441_v48 }
 0x147   : > { %1450 = vrcp.f32 %v946_v49  ;;  %v944_v54 = vadd.f32 1.0, %v1443_v50 }
 0x148   : > { %1452 = vrcp.f32 %v928_v51 }
 0x149   : > { %1454 = vrcp.f32 %v944_v54 }
 0x14e   : > { %v1445_v55 = vpop.eup %1444 }
 0x14f   : > { %v1447_v56 = vpop.eup %1446  ;;  %1023 = vst [vmem:[%s1607_s18 + $0x60] sm:$0xff] %v1445_v55 }
 0x150   : > { %v1449_v57 = vpop.eup %1448  ;;  %1039 = vst [vmem:[%s1607_s18 + $0xe0] sm:$0xff] %v1447_v56 }
 0x151   : > { %v1451_v60 = vpop.eup %1450  ;;  %1026 = vst [vmem:[%s1607_s18 + $0x78] sm:$0xff] %v1449_v57 }
 0x152   : > { %v1453_v61 = vpop.eup %1452  ;;  %1042 = vst [vmem:[%s1607_s18 + $0xf8] sm:$0xff] %v1451_v60 }
 0x153   : > { %v1455_v62 = vpop.eup %1454  ;;  %1024 = vst [vmem:[%s1607_s18 + $0x68] sm:$0xff] %v1453_v61 }
 0x154   : > { %1040 = vst [vmem:[%s1607_s18 + $0xe8] sm:$0xff] %v1455_v62 }
 0x155 PF: > { %s13_s14 = sadd.s32 1, %s1478_s14   ;;  %s1672_s12 = smov %s1474_s13 }
 0x156   : > { %p10_p5 = scmp.ge.s32.totalorder %s13_s14, 10   ;;  %s1673_s13 = smov %s1675_s15 }
 0x158   :  { %12 = sbr.rel (!%p10_p5) target bundleno = 2 (0x2), region = 76 }

</bundles_post_ra>
